<compile_context>
chip_gen: v6e
topology: v6e:2x2x1
jax: 0.10.0
libtpu: 0.0.40
codegen_flags: <defaults>
</compile_context>

<pallas_src>
import functools
import math

import numpy as np
import jax
import jax.numpy as jnp
from jax import lax
from jax.experimental import pallas as pl
from jax.experimental.pallas import tpu as pltpu

EPS_BN = 1e-5
EPS_ADD = 1e-12
LANES = 128        # lane-dense padded channel width


# ----------------------------- in-kernel helpers -----------------------------
def _erf(x):
    # Abramowitz & Stegun 7.1.26 rational approximation (|err| < 1.5e-7 ~ f32 eps).
    # Avoids depending on an erf primitive lowering in Mosaic; exp runs on the EUP slot.
    a = jnp.abs(x)
    t = 1.0 / (1.0 + 0.3275911 * a)
    poly = t * (0.254829592 + t * (-0.284496736 + t * (1.421413741
               + t * (-1.453152027 + t * 1.061405429))))
    e = 1.0 - poly * jnp.exp(-a * a)
    return jnp.where(x >= 0.0, e, -e)


def _gelu(x):
    # torch nn.GELU (exact erf form)
    return 0.5 * x * (1.0 + _erf(x * 0.7071067811865475))


def _bn_norm(y):
    # training-mode BatchNorm stats in ONE pass (sum / sum-of-squares), normalize only
    inv_n = 1.0 / y.shape[0]
    s1 = jnp.sum(y, axis=0, keepdims=True)
    s2 = jnp.sum(y * y, axis=0, keepdims=True)
    mean = s1 * inv_n
    var = s2 * inv_n - mean * mean
    return (y - mean) * lax.rsqrt(var + EPS_BN)


def _bn(y, gamma, beta):
    return _bn_norm(y) * gamma + beta


# --------------------------------- the kernel ---------------------------------
def clformer_kernel(B, s, C, heads,
                    addw_ref,                                   # SMEM (blocks, 4)
                    pat_ref, ew_ref, eg_ref, eb_ref,            # embedding (shared)
                    taps_ref, hmask_ref,                        # gather matrix / head mask
                    dww_ref, pww_ref, pwb_ref,                  # projector convs (bn2 folded)
                    bn1g_ref, bn1b_ref,
                    w1_ref, b1_ref, w2_ref, b2_ref,             # FFN
                    bnfg_ref, bnfb_ref,
                    out_ref, y_ref):
    blk = pl.program_id(0)
    Cp = out_ref.shape[1]
    L = s * s
    sk = (s - 1) // 2 + 1
    Lk = sk * sk
    R = B * L
    Rk = B * Lk

    # ---- grid step 0 only: Embedding (4 Conv1d branches as one matmul) + BN + GELU
    @pl.when(blk == 0)
    def _():
        ye = jnp.dot(pat_ref[...], ew_ref[...], preferred_element_type=jnp.float32)
        y_ref[...] = _gelu(_bn(ye, eg_ref[...], eb_ref[...]))

    y = y_ref[...]                                              # (R, Cp) resident activation

    # ---- all 9 taps of BOTH depthwise convs (stride-1 q, stride-2 k/v), halo
    #      zero-pad included, gathered with one 0/1 selection-matrix MXU matmul
    t_all = jnp.dot(taps_ref[...], y, preferred_element_type=jnp.float32)
    tq = t_all[:9 * R].reshape(9, R, Cp)                        # leading-axis views, no relayout
    tkv = t_all[9 * R:].reshape(9, Rk, Cp)

    dw = dww_ref[...]                                           # (3, 9, Cp) depthwise weights
    pwb = pwb_ref[...]                                          # (3, Cp)   1x1-conv bias (bn2 folded)

    def branch(taps, br):
        # depthwise 3x3 accumulate -> BN (normalize only; affine folded into 1x1 conv)
        # -> pointwise 1x1 conv -> GELU
        acc = taps[0] * dw[br, 0:1, :]
        for t in range(1, 9):
            acc = acc + taps[t] * dw[br, t:t + 1, :]
        a = _bn_norm(acc)
        a = jnp.dot(a, pww_ref[br], preferred_element_type=jnp.float32) + pwb[br:br + 1, :]
        return _gelu(a)

    yq = branch(tq, 0)                                          # (R,  Cp)
    yk = branch(tkv, 1)                                         # (Rk, Cp)
    yv = branch(tkv, 2)                                         # (Rk, Cp)

    # ---- MHSA (reference form: softmax over q channels / k sequence, ctx = k^T v)
    qf = yq.reshape(B, L, Cp)
    kf = yk.reshape(B, Lk, Cp)
    vf = yv.reshape(B, Lk, Cp)

    ks = jnp.exp(kf - jnp.max(kf, axis=1, keepdims=True))       # softmax over sequence
    ks = ks / jnp.sum(ks, axis=1, keepdims=True)

    # context computed ONCE for all heads; block-diagonal head mask keeps per-head
    # channel blocks and zeroes padded lanes
    ctx = jnp.einsum('bkc,bkd->bcd', ks, vf, preferred_element_type=jnp.float32)
    ctx = ctx * hmask_ref[...]

    hd = C // heads
    lane = lax.broadcasted_iota(jnp.int32, (1, 1, Cp), 2)
    qs = jnp.zeros_like(qf)
    for h in range(heads):                                      # per-head softmax -> disjoint lanes
        in_head = (lane >= h * hd) & (lane < (h + 1) * hd)
        m = jnp.max(jnp.where(in_head, qf, -1e30), axis=2, keepdims=True)
        e = jnp.where(in_head, jnp.exp(qf - m), 0.0)
        qs = qs + e / jnp.sum(e, axis=2, keepdims=True)

    att = jnp.einsum('blc,bcd->bld', qs, ctx,
                     preferred_element_type=jnp.float32).reshape(R, Cp)

    # ---- Projector residual: Add (weights pre-normalized host-side) + BatchNorm1d
    y1 = _bn(addw_ref[blk, 0] * att + addw_ref[blk, 1] * y,
             bn1g_ref[...], bn1b_ref[...])

    # ---- FFN: Linear(C -> C/4) -> GELU -> Linear(C/4 -> C) -> GELU, Add + BatchNorm1d
    h1 = _gelu(jnp.dot(y1, w1_ref[...], preferred_element_type=jnp.float32) + b1_ref[...])
    h2 = _gelu(jnp.dot(h1, w2_ref[...], preferred_element_type=jnp.float32) + b2_ref[...])
    y2 = _bn(addw_ref[blk, 2] * h2 + addw_ref[blk, 3] * y1,
             bnfg_ref[...], bnfb_ref[...])

    y_ref[...] = y2                                             # stays resident for next block
    out_ref[...] = y2


# ------------------------------ host-side glue --------------------------------
def conv1d_patches(x_ncl, k=13, stride=4, pad=6):
    # shared centred 13-tap im2col window for the 4 embedding Conv1d branches
    # TODO(synk): strided-gather im2col stays in XLA outside the kernel.
    B, Cin, Lsig = x_ncl.shape
    xp = jnp.pad(x_ncl, ((0, 0), (0, 0), (pad, pad)))
    Lout = (Lsig + 2 * pad - k) // stride + 1
    idx = stride * jnp.arange(Lout)[:, None] + jnp.arange(k)[None, :]
    pats = xp[:, :, idx]                                        # (B, Cin, Lout, k)
    pats = jnp.transpose(pats, (0, 2, 1, 3)).reshape(B, Lout, Cin * k)
    return pats, Lout


def _build_tap_gather(B, s):
    # 0/1 selection matrices gathering all 9 taps of the stride-1 (q) and stride-2
    # (k/v) depthwise convs (zero padding baked in) from the flat (B*s*s, C) map.
    L = s * s
    sk = (s - 1) // 2 + 1
    Lk = sk * sk
    R, Rk = B * L, B * Lk
    Sq = np.zeros((9, R, R), np.float32)
    Skv = np.zeros((9, Rk, R), np.float32)
    for di in (-1, 0, 1):
        for dj in (-1, 0, 1):
            t = (di + 1) * 3 + (dj + 1)
            for b in range(B):
                for i in range(s):
                    ii = i + di
                    if not 0 <= ii < s:
                        continue
                    for j in range(s):
                        jj = j + dj
                        if 0 <= jj < s:
                            Sq[t, b * L + i * s + j, b * L + ii * s + jj] = 1.0
                for io in range(sk):
                    ii = 2 * io + di
                    if not 0 <= ii < s:
                        continue
                    for jo in range(sk):
                        jj = 2 * jo + dj
                        if 0 <= jj < s:
                            Skv[t, b * Lk + io * sk + jo, b * L + ii * s + jj] = 1.0
    return np.concatenate([Sq.reshape(9 * R, R), Skv.reshape(9 * Rk, R)], axis=0)


def _build_head_mask(C, heads, Cp):
    hd = C // heads
    m = np.zeros((Cp, Cp), np.float32)
    for h in range(heads):
        m[h * hd:(h + 1) * hd, h * hd:(h + 1) * hd] = 1.0
    return m


def _full_spec(shape):
    nd = len(shape)
    return pl.BlockSpec(tuple(shape), lambda i, _n=nd: (0,) * _n)


def _stacked_spec(shape):
    nd = len(shape)
    return pl.BlockSpec((None,) + tuple(shape[1:]),
                        lambda i, _n=nd - 1: (i,) + (0,) * _n)


def clformer_forward(x, params, *, C, heads):
    B = x.shape[0]
    Cp = params['embed_w'].shape[1]
    blocks = params['dw_w'].shape[0]
    Kp = params['embed_w'].shape[0]

    pats, L1 = conv1d_patches(x)
    s = int(round(math.sqrt(L1)))
    assert s * s == L1, "Projector requires a square sequence length"
    R = B * L1
    pats = pats.reshape(R, -1)
    pats = jnp.pad(pats, ((0, 0), (0, Kp - pats.shape[1])))     # pad contraction dim to Kp

    taps = jnp.asarray(_build_tap_gather(B, s))                 # trace-time constants
    hmask = jnp.asarray(_build_head_mask(C, heads, Cp))

    args = [params['add_w'],
            pats, params['embed_w'], params['embed_g'], params['embed_b'],
            taps, hmask,
            params['dw_w'], params['pw_w'], params['pw_b'],
            params['bn1_g'], params['bn1_b'],
            params['w1'], params['b1'], params['w2'], params['b2'],
            params['bnf_g'], params['bnf_b']]

    in_specs = [pl.BlockSpec(memory_space=pltpu.MemorySpace.SMEM)]   # pre-normalized Add weights
    in_specs += [_full_spec(a.shape) for a in args[1:7]]             # shared (block-invariant) inputs
    in_specs += [_stacked_spec(a.shape) for a in args[7:]]           # per-block params, sliced by i

    out = pl.pallas_call(
        functools.partial(clformer_kernel, B, s, C, heads),
        out_shape=jax.ShapeDtypeStruct((R, Cp), jnp.float32),
        grid=(blocks,),
        in_specs=in_specs,
        out_specs=_full_spec((R, Cp)),
        scratch_shapes=[pltpu.VMEM((R, Cp), jnp.float32)],           # resident activation
        compiler_params=pltpu.CompilerParams(
            dimension_semantics=("arbitrary",),
            vmem_limit_bytes=32 * 1024 * 1024),
    )(*args)

    y = out[:, :C].reshape(B, L1, C)
    return jnp.transpose(y, (0, 2, 1))                          # back to torch (B, C, L)


# ------------------------------- parameter init --------------------------------
def _pad_to(x, shape):
    return jnp.pad(x, [(0, t - s) for s, t in zip(x.shape, shape)])


def _round_up(n, m):
    return ((n + m - 1) // m) * m


def init_params(key, d_in, C, blocks, heads, Cp=LANES):
    assert C % 4 == 0 and C % heads == 0 and C <= Cp
    H = C // 4                                   # FFN hidden kept at the REAL size
    Kp = _round_up(d_in * 13, 8)                 # im2col contraction dim 26 -> 32
    keys = iter(jax.random.split(key, 8 + 8 * max(blocks, 1)))

    # Embedding: 4 Conv1d branches (k = 7,9,11,13, stride 4, pad 3..6) share one
    # centred 13-tap window and pack into a single (d_in*13, C) matmul weight.
    d4 = C // 4
    Wc = jnp.zeros((C, d_in, 13), jnp.float32)
    for i in range(4):
        ksz = 2 * i + 7
        w_i = 0.2 * jax.random.normal(next(keys), (d4, d_in, ksz), jnp.float32)
        Wc = Wc.at[i * d4:(i + 1) * d4, :, 3 - i:3 - i + ksz].set(w_i)
    embed_w = jnp.transpose(Wc, (1, 2, 0)).reshape(d_in * 13, C)

    def ones_pad():                              # padded lanes stay 0 (keeps them inert)
        return _pad_to(jnp.ones((1, C), jnp.float32), (1, Cp))

    p = {
        'embed_w': _pad_to(embed_w, (Kp, Cp)),
        'embed_g': ones_pad(),
        'embed_b': jnp.zeros((1, Cp), jnp.float32),
    }

    per = {k: [] for k in ('dw_w', 'pw_w', 'pw_b', 'bn1_g', 'bn1_b',
                           'w1', 'b1', 'w2', 'b2', 'bnf_g', 'bnf_b', 'add_w')}
    for _ in range(blocks):
        dw = 0.2 * jax.random.normal(next(keys), (3, 9, C), jnp.float32)
        pw = 0.2 * jax.random.normal(next(keys), (3, C, C), jnp.float32)
        pb = 0.02 * jax.random.normal(next(keys), (3, C), jnp.float32)
        bn2_g = jnp.ones((3, C), jnp.float32)
        bn2_b = jnp.zeros((3, C), jnp.float32)
        # Fold the BatchNorm2d affine into the 1x1 conv -> in-kernel BN is normalize-only.
        pw_f = bn2_g[:, :, None] * pw
        pb_f = pb + jnp.einsum('ic,icd->id', bn2_b, pw)

        per['dw_w'].append(_pad_to(dw, (3, 9, Cp)))
        per['pw_w'].append(_pad_to(pw_f, (3, Cp, Cp)))
        per['pw_b'].append(_pad_to(pb_f, (3, Cp)))
        per['bn1_g'].append(ones_pad())
        per['bn1_b'].append(jnp.zeros((1, Cp), jnp.float32))
        per['w1'].append(_pad_to(0.2 * jax.random.normal(next(keys), (C, H), jnp.float32), (Cp, H)))
        per['b1'].append(0.02 * jax.random.normal(next(keys), (1, H), jnp.float32))
        per['w2'].append(_pad_to(0.2 * jax.random.normal(next(keys), (H, C), jnp.float32), (H, Cp)))
        per['b2'].append(_pad_to(0.02 * jax.random.normal(next(keys), (1, C), jnp.float32), (1, Cp)))
        per['bnf_g'].append(ones_pad())
        per['bnf_b'].append(jnp.zeros((1, Cp), jnp.float32))
        # Add module (param = ones(2)); relu + normalization are pure functions of the
        # parameter, so fold them host-side: [proj_w0, proj_w1, ffn_w0, ffn_w1].
        aw = []
        for _unused in range(2):
            w = jnp.maximum(jnp.ones((2,), jnp.float32), 0.0)
            aw.append(w / (jnp.sum(w) + EPS_ADD))
        per['add_w'].append(jnp.concatenate(aw))

    for k, v in per.items():
        p[k] = jnp.stack(v, axis=0)
    return p


# ------------------------------------ main --------------------------------------
if __name__ == "__main__":
    B, d_in, Lsig = 2, 2, 256            # embedded length 64 = 8x8 (square, as Projector needs)
    d_out, heads, blocks = 32, 1, 2

    key = jax.random.PRNGKey(0)
    k_x, k_p = jax.random.split(key)
    x = jax.random.normal(k_x, (B, d_in, Lsig), jnp.float32)    # torch NCL input layout
    params = init_params(k_p, d_in, d_out, blocks, heads)

    fwd = jax.jit(functools.partial(clformer_forward, C=d_out, heads=heads))
    out = jax.block_until_ready(fwd(x, params))

    assert out.shape == (B, d_out, 64), out.shape
    assert bool(jnp.all(jnp.isfinite(out)))
    print("KERNEL_OK")
</pallas_src>

<mosaic_0001>
module attributes {stable_mosaic.version = 11 : i64} {
  func.func @clformer_kernel(%arg0: i32, %arg1: memref<2x4xf32, #tpu.memory_space<smem>>, %arg2: memref<128x32xf32, #tpu.memory_space<vmem>>, %arg3: memref<32x128xf32, #tpu.memory_space<vmem>>, %arg4: memref<1x128xf32, #tpu.memory_space<vmem>>, %arg5: memref<1x128xf32, #tpu.memory_space<vmem>>, %arg6: memref<1440x128xf32, #tpu.memory_space<vmem>>, %arg7: memref<128x128xf32, #tpu.memory_space<vmem>>, %arg8: memref<1x3x9x128xf32, #tpu.memory_space<vmem>>, %arg9: memref<1x3x128x128xf32, #tpu.memory_space<vmem>>, %arg10: memref<1x3x128xf32, #tpu.memory_space<vmem>>, %arg11: memref<1x1x128xf32, #tpu.memory_space<vmem>>, %arg12: memref<1x1x128xf32, #tpu.memory_space<vmem>>, %arg13: memref<1x128x8xf32, #tpu.memory_space<vmem>>, %arg14: memref<1x1x8xf32, #tpu.memory_space<vmem>>, %arg15: memref<1x8x128xf32, #tpu.memory_space<vmem>>, %arg16: memref<1x1x128xf32, #tpu.memory_space<vmem>>, %arg17: memref<1x1x128xf32, #tpu.memory_space<vmem>>, %arg18: memref<1x1x128xf32, #tpu.memory_space<vmem>>, %arg19: memref<128x128xf32, #tpu.memory_space<vmem>>, %arg20: memref<128x128xf32, #tpu.memory_space<vmem>>) attributes {dimension_semantics = [#tpu.dimension_semantics<arbitrary>], iteration_bounds = array<i64: 2>, scalar_prefetch = 0 : i64, scratch_operands = 1 : i64, tpu.core_type = #tpu.core_type<tc>, window_params = [{transform_indices = @transform_0, window_bounds = array<i64: 2, 4>}, {pipeline_mode = #tpu.pipeline_mode<synchronous>, transform_indices = @transform_1, window_bounds = array<i64: 128, 32>}, {pipeline_mode = #tpu.pipeline_mode<synchronous>, transform_indices = @transform_2, window_bounds = array<i64: 32, 128>}, {pipeline_mode = #tpu.pipeline_mode<synchronous>, transform_indices = @transform_3, window_bounds = array<i64: 1, 128>}, {pipeline_mode = #tpu.pipeline_mode<synchronous>, transform_indices = @transform_4, window_bounds = array<i64: 1, 128>}, {pipeline_mode = #tpu.pipeline_mode<synchronous>, transform_indices = @transform_5, window_bounds = array<i64: 1440, 128>}, {pipeline_mode = #tpu.pipeline_mode<synchronous>, transform_indices = @transform_6, window_bounds = array<i64: 128, 128>}, {transform_indices = @transform_7, window_bounds = array<i64: 1, 3, 9, 128>}, {transform_indices = @transform_8, window_bounds = array<i64: 1, 3, 128, 128>}, {transform_indices = @transform_9, window_bounds = array<i64: 1, 3, 128>}, {transform_indices = @transform_10, window_bounds = array<i64: 1, 1, 128>}, {transform_indices = @transform_11, window_bounds = array<i64: 1, 1, 128>}, {transform_indices = @transform_12, window_bounds = array<i64: 1, 128, 8>}, {transform_indices = @transform_13, window_bounds = array<i64: 1, 1, 8>}, {transform_indices = @transform_14, window_bounds = array<i64: 1, 8, 128>}, {transform_indices = @transform_15, window_bounds = array<i64: 1, 1, 128>}, {transform_indices = @transform_16, window_bounds = array<i64: 1, 1, 128>}, {transform_indices = @transform_17, window_bounds = array<i64: 1, 1, 128>}, {pipeline_mode = #tpu.pipeline_mode<synchronous>, transform_indices = @transform_18, window_bounds = array<i64: 128, 128>}]} {
    %c0_i32 = arith.constant 0 : i32
    %0 = arith.cmpi eq, %arg0, %c0_i32 : i32
    %1 = arith.extui %0 : i1 to i32
    %c0_i32_0 = arith.constant 0 : i32
    %2 = arith.cmpi ne, %1, %c0_i32_0 : i32
    scf.if %2 {
      %c0_169 = arith.constant 0 : index
      %c0_170 = arith.constant 0 : index
      %602 = vector.load %arg2[%c0_169, %c0_170] : memref<128x32xf32, #tpu.memory_space<vmem>>, vector<128x32xf32>
      %c0_171 = arith.constant 0 : index
      %c0_172 = arith.constant 0 : index
      %603 = vector.load %arg3[%c0_171, %c0_172] : memref<32x128xf32, #tpu.memory_space<vmem>>, vector<32x128xf32>
      %cst_173 = arith.constant dense<0.000000e+00> : vector<128x128xf32>
      %604 = tpu.matmul %602, %603, %cst_173 {dimension_numbers = #tpu.dot_dimension_numbers<[1], [0], [0], [1], [0, 0, 1, 1], [], []>} : vector<128x32xf32>, vector<32x128xf32>, vector<128x128xf32> -> vector<128x128xf32>
      %c0_174 = arith.constant 0 : index
      %c0_175 = arith.constant 0 : index
      %605 = vector.load %arg4[%c0_174, %c0_175] : memref<1x128xf32, #tpu.memory_space<vmem>>, vector<1x128xf32>
      %c0_176 = arith.constant 0 : index
      %c0_177 = arith.constant 0 : index
      %606 = vector.load %arg5[%c0_176, %c0_177] : memref<1x128xf32, #tpu.memory_space<vmem>>, vector<1x128xf32>
      %cst_178 = arith.constant dense<0.000000e+00> : vector<128xf32>
      %607 = vector.multi_reduction <add>, %604, %cst_178 [0] : vector<128x128xf32> to vector<128xf32>
      %608 = vector.shape_cast %607 : vector<128xf32> to vector<1x128xf32>
      %609 = arith.mulf %604, %604 : vector<128x128xf32>
      %cst_179 = arith.constant dense<0.000000e+00> : vector<128xf32>
      %610 = vector.multi_reduction <add>, %609, %cst_179 [0] : vector<128x128xf32> to vector<128xf32>
      %611 = vector.shape_cast %610 : vector<128xf32> to vector<1x128xf32>
      %cst_180 = arith.constant 7.812500e-03 : f32
      %612 = vector.broadcast %cst_180 : f32 to vector<1x128xf32>
      %613 = arith.mulf %608, %612 : vector<1x128xf32>
      %cst_181 = arith.constant 7.812500e-03 : f32
      %614 = vector.broadcast %cst_181 : f32 to vector<1x128xf32>
      %615 = arith.mulf %611, %614 : vector<1x128xf32>
      %616 = arith.mulf %613, %613 : vector<1x128xf32>
      %617 = arith.subf %615, %616 : vector<1x128xf32>
      %618 = vector.broadcast %613 : vector<1x128xf32> to vector<128x128xf32>
      %619 = arith.subf %604, %618 : vector<128x128xf32>
      %cst_182 = arith.constant 9.99999974E-6 : f32
      %620 = vector.broadcast %cst_182 : f32 to vector<1x128xf32>
      %621 = arith.addf %617, %620 : vector<1x128xf32>
      %622 = math.rsqrt %621 : vector<1x128xf32>
      %623 = vector.broadcast %622 : vector<1x128xf32> to vector<128x128xf32>
      %624 = arith.mulf %619, %623 : vector<128x128xf32>
      %625 = vector.broadcast %605 : vector<1x128xf32> to vector<128x128xf32>
      %626 = arith.mulf %624, %625 : vector<128x128xf32>
      %627 = vector.broadcast %606 : vector<1x128xf32> to vector<128x128xf32>
      %628 = arith.addf %626, %627 : vector<128x128xf32>
      %cst_183 = arith.constant 5.000000e-01 : f32
      %629 = vector.broadcast %cst_183 : f32 to vector<128x128xf32>
      %630 = arith.mulf %629, %628 : vector<128x128xf32>
      %cst_184 = arith.constant 0.707106769 : f32
      %631 = vector.broadcast %cst_184 : f32 to vector<128x128xf32>
      %632 = arith.mulf %628, %631 : vector<128x128xf32>
      %633 = math.absf %632 : vector<128x128xf32>
      %cst_185 = arith.constant 0.327591091 : f32
      %634 = vector.broadcast %cst_185 : f32 to vector<128x128xf32>
      %635 = arith.mulf %634, %633 : vector<128x128xf32>
      %cst_186 = arith.constant 1.000000e+00 : f32
      %636 = vector.broadcast %cst_186 : f32 to vector<128x128xf32>
      %637 = arith.addf %636, %635 : vector<128x128xf32>
      %cst_187 = arith.constant 1.000000e+00 : f32
      %638 = vector.broadcast %cst_187 : f32 to vector<128x128xf32>
      %639 = arith.divf %638, %637 : vector<128x128xf32>
      %cst_188 = arith.constant 1.06140542 : f32
      %640 = vector.broadcast %cst_188 : f32 to vector<128x128xf32>
      %641 = arith.mulf %639, %640 : vector<128x128xf32>
      %cst_189 = arith.constant -1.45315206 : f32
      %642 = vector.broadcast %cst_189 : f32 to vector<128x128xf32>
      %643 = arith.addf %642, %641 : vector<128x128xf32>
      %644 = arith.mulf %639, %643 : vector<128x128xf32>
      %cst_190 = arith.constant 1.42141378 : f32
      %645 = vector.broadcast %cst_190 : f32 to vector<128x128xf32>
      %646 = arith.addf %645, %644 : vector<128x128xf32>
      %647 = arith.mulf %639, %646 : vector<128x128xf32>
      %cst_191 = arith.constant -0.284496725 : f32
      %648 = vector.broadcast %cst_191 : f32 to vector<128x128xf32>
      %649 = arith.addf %648, %647 : vector<128x128xf32>
      %650 = arith.mulf %639, %649 : vector<128x128xf32>
      %cst_192 = arith.constant 0.254829586 : f32
      %651 = vector.broadcast %cst_192 : f32 to vector<128x128xf32>
      %652 = arith.addf %651, %650 : vector<128x128xf32>
      %653 = arith.mulf %639, %652 : vector<128x128xf32>
      %cst_193 = arith.constant 0.000000e+00 : f32
      %654 = vector.broadcast %cst_193 : f32 to vector<128x128xf32>
      %655 = arith.subf %654, %633 : vector<128x128xf32>
      %656 = arith.mulf %655, %633 : vector<128x128xf32>
      %657 = math.exp %656 : vector<128x128xf32>
      %658 = arith.mulf %653, %657 : vector<128x128xf32>
      %cst_194 = arith.constant 1.000000e+00 : f32
      %659 = vector.broadcast %cst_194 : f32 to vector<128x128xf32>
      %660 = arith.subf %659, %658 : vector<128x128xf32>
      %cst_195 = arith.constant 0.000000e+00 : f32
      %661 = vector.broadcast %cst_195 : f32 to vector<128x128xf32>
      %662 = arith.cmpf oge, %632, %661 : vector<128x128xf32>
      %cst_196 = arith.constant 0.000000e+00 : f32
      %663 = vector.broadcast %cst_196 : f32 to vector<128x128xf32>
      %664 = arith.subf %663, %660 : vector<128x128xf32>
      %665 = arith.select %662, %660, %664 : vector<128x128xi1>, vector<128x128xf32>
      %cst_197 = arith.constant 1.000000e+00 : f32
      %666 = vector.broadcast %cst_197 : f32 to vector<128x128xf32>
      %667 = arith.addf %666, %665 : vector<128x128xf32>
      %668 = arith.mulf %630, %667 : vector<128x128xf32>
      %c0_198 = arith.constant 0 : index
      %c0_199 = arith.constant 0 : index
      %669 = vector.load %arg20[%c0_198, %c0_199] : memref<128x128xf32, #tpu.memory_space<vmem>>, vector<128x128xf32>
      tpu.vector_store %arg20[%c0_198, %c0_199], %668 {strides = array<i32>} : memref<128x128xf32, #tpu.memory_space<vmem>>, vector<128x128xf32>,
    } else {
    }
    %c0 = arith.constant 0 : index
    %c0_1 = arith.constant 0 : index
    %3 = vector.load %arg20[%c0, %c0_1] : memref<128x128xf32, #tpu.memory_space<vmem>>, vector<128x128xf32>
    %c0_2 = arith.constant 0 : index
    %c0_3 = arith.constant 0 : index
    %4 = vector.load %arg6[%c0_2, %c0_3] : memref<1440x128xf32, #tpu.memory_space<vmem>>, vector<1440x128xf32>
    %cst = arith.constant dense<0.000000e+00> : vector<1440x128xf32>
    %5 = tpu.matmul %4, %3, %cst {dimension_numbers = #tpu.dot_dimension_numbers<[1], [0], [0], [1], [0, 0, 1, 1], [], []>} : vector<1440x128xf32>, vector<128x128xf32>, vector<1440x128xf32> -> vector<1440x128xf32>
    %6 = vector.extract_strided_slice %5 {offsets = [0, 0], sizes = [1152, 128], strides = [1, 1]} : vector<1440x128xf32> to vector<1152x128xf32>
    %7 = vector.shape_cast %6 : vector<1152x128xf32> to vector<9x128x128xf32>
    %8 = vector.extract_strided_slice %5 {offsets = [1152, 0], sizes = [288, 128], strides = [1, 1]} : vector<1440x128xf32> to vector<288x128xf32>
    %9 = vector.shape_cast %8 : vector<288x128xf32> to vector<9x32x128xf32>
    %c0_4 = arith.constant 0 : index
    %c0_5 = arith.constant 0 : index
    %c0_6 = arith.constant 0 : index
    %c0_7 = arith.constant 0 : index
    %10 = vector.load %arg8[%c0_4, %c0_5, %c0_6, %c0_7] : memref<1x3x9x128xf32, #tpu.memory_space<vmem>>, vector<1x3x9x128xf32>
    %11 = vector.shape_cast %10 : vector<1x3x9x128xf32> to vector<3x9x128xf32>
    %c0_8 = arith.constant 0 : index
    %c0_9 = arith.constant 0 : index
    %c0_10 = arith.constant 0 : index
    %12 = vector.load %arg10[%c0_8, %c0_9, %c0_10] : memref<1x3x128xf32, #tpu.memory_space<vmem>>, vector<1x3x128xf32>
    %13 = vector.shape_cast %12 : vector<1x3x128xf32> to vector<3x128xf32>
    %14 = vector.extract_strided_slice %7 {offsets = [0, 0, 0], sizes = [1, 128, 128], strides = [1, 1, 1]} : vector<9x128x128xf32> to vector<1x128x128xf32>
    %15 = vector.shape_cast %14 : vector<1x128x128xf32> to vector<128x128xf32>
    %16 = vector.extract_strided_slice %11 {offsets = [0, 0, 0], sizes = [1, 1, 128], strides = [1, 1, 1]} : vector<3x9x128xf32> to vector<1x1x128xf32>
    %17 = vector.shape_cast %16 : vector<1x1x128xf32> to vector<1x128xf32>
    %18 = vector.broadcast %17 : vector<1x128xf32> to vector<128x128xf32>
    %19 = arith.mulf %15, %18 : vector<128x128xf32>
    %20 = vector.extract_strided_slice %7 {offsets = [1, 0, 0], sizes = [1, 128, 128], strides = [1, 1, 1]} : vector<9x128x128xf32> to vector<1x128x128xf32>
    %21 = vector.shape_cast %20 : vector<1x128x128xf32> to vector<128x128xf32>
    %22 = vector.extract_strided_slice %11 {offsets = [0, 1, 0], sizes = [1, 1, 128], strides = [1, 1, 1]} : vector<3x9x128xf32> to vector<1x1x128xf32>
    %23 = vector.shape_cast %22 : vector<1x1x128xf32> to vector<1x128xf32>
    %24 = vector.broadcast %23 : vector<1x128xf32> to vector<128x128xf32>
    %25 = arith.mulf %21, %24 : vector<128x128xf32>
    %26 = arith.addf %19, %25 : vector<128x128xf32>
    %27 = vector.extract_strided_slice %7 {offsets = [2, 0, 0], sizes = [1, 128, 128], strides = [1, 1, 1]} : vector<9x128x128xf32> to vector<1x128x128xf32>
    %28 = vector.shape_cast %27 : vector<1x128x128xf32> to vector<128x128xf32>
    %29 = vector.extract_strided_slice %11 {offsets = [0, 2, 0], sizes = [1, 1, 128], strides = [1, 1, 1]} : vector<3x9x128xf32> to vector<1x1x128xf32>
    %30 = vector.shape_cast %29 : vector<1x1x128xf32> to vector<1x128xf32>
    %31 = vector.broadcast %30 : vector<1x128xf32> to vector<128x128xf32>
    %32 = arith.mulf %28, %31 : vector<128x128xf32>
    %33 = arith.addf %26, %32 : vector<128x128xf32>
    %34 = vector.extract_strided_slice %7 {offsets = [3, 0, 0], sizes = [1, 128, 128], strides = [1, 1, 1]} : vector<9x128x128xf32> to vector<1x128x128xf32>
    %35 = vector.shape_cast %34 : vector<1x128x128xf32> to vector<128x128xf32>
    %36 = vector.extract_strided_slice %11 {offsets = [0, 3, 0], sizes = [1, 1, 128], strides = [1, 1, 1]} : vector<3x9x128xf32> to vector<1x1x128xf32>
    %37 = vector.shape_cast %36 : vector<1x1x128xf32> to vector<1x128xf32>
    %38 = vector.broadcast %37 : vector<1x128xf32> to vector<128x128xf32>
    %39 = arith.mulf %35, %38 : vector<128x128xf32>
    %40 = arith.addf %33, %39 : vector<128x128xf32>
    %41 = vector.extract_strided_slice %7 {offsets = [4, 0, 0], sizes = [1, 128, 128], strides = [1, 1, 1]} : vector<9x128x128xf32> to vector<1x128x128xf32>
    %42 = vector.shape_cast %41 : vector<1x128x128xf32> to vector<128x128xf32>
    %43 = vector.extract_strided_slice %11 {offsets = [0, 4, 0], sizes = [1, 1, 128], strides = [1, 1, 1]} : vector<3x9x128xf32> to vector<1x1x128xf32>
    %44 = vector.shape_cast %43 : vector<1x1x128xf32> to vector<1x128xf32>
    %45 = vector.broadcast %44 : vector<1x128xf32> to vector<128x128xf32>
    %46 = arith.mulf %42, %45 : vector<128x128xf32>
    %47 = arith.addf %40, %46 : vector<128x128xf32>
    %48 = vector.extract_strided_slice %7 {offsets = [5, 0, 0], sizes = [1, 128, 128], strides = [1, 1, 1]} : vector<9x128x128xf32> to vector<1x128x128xf32>
    %49 = vector.shape_cast %48 : vector<1x128x128xf32> to vector<128x128xf32>
    %50 = vector.extract_strided_slice %11 {offsets = [0, 5, 0], sizes = [1, 1, 128], strides = [1, 1, 1]} : vector<3x9x128xf32> to vector<1x1x128xf32>
    %51 = vector.shape_cast %50 : vector<1x1x128xf32> to vector<1x128xf32>
    %52 = vector.broadcast %51 : vector<1x128xf32> to vector<128x128xf32>
    %53 = arith.mulf %49, %52 : vector<128x128xf32>
    %54 = arith.addf %47, %53 : vector<128x128xf32>
    %55 = vector.extract_strided_slice %7 {offsets = [6, 0, 0], sizes = [1, 128, 128], strides = [1, 1, 1]} : vector<9x128x128xf32> to vector<1x128x128xf32>
    %56 = vector.shape_cast %55 : vector<1x128x128xf32> to vector<128x128xf32>
    %57 = vector.extract_strided_slice %11 {offsets = [0, 6, 0], sizes = [1, 1, 128], strides = [1, 1, 1]} : vector<3x9x128xf32> to vector<1x1x128xf32>
    %58 = vector.shape_cast %57 : vector<1x1x128xf32> to vector<1x128xf32>
    %59 = vector.broadcast %58 : vector<1x128xf32> to vector<128x128xf32>
    %60 = arith.mulf %56, %59 : vector<128x128xf32>
    %61 = arith.addf %54, %60 : vector<128x128xf32>
    %62 = vector.extract_strided_slice %7 {offsets = [7, 0, 0], sizes = [1, 128, 128], strides = [1, 1, 1]} : vector<9x128x128xf32> to vector<1x128x128xf32>
    %63 = vector.shape_cast %62 : vector<1x128x128xf32> to vector<128x128xf32>
    %64 = vector.extract_strided_slice %11 {offsets = [0, 7, 0], sizes = [1, 1, 128], strides = [1, 1, 1]} : vector<3x9x128xf32> to vector<1x1x128xf32>
    %65 = vector.shape_cast %64 : vector<1x1x128xf32> to vector<1x128xf32>
    %66 = vector.broadcast %65 : vector<1x128xf32> to vector<128x128xf32>
    %67 = arith.mulf %63, %66 : vector<128x128xf32>
    %68 = arith.addf %61, %67 : vector<128x128xf32>
    %69 = vector.extract_strided_slice %7 {offsets = [8, 0, 0], sizes = [1, 128, 128], strides = [1, 1, 1]} : vector<9x128x128xf32> to vector<1x128x128xf32>
    %70 = vector.shape_cast %69 : vector<1x128x128xf32> to vector<128x128xf32>
    %71 = vector.extract_strided_slice %11 {offsets = [0, 8, 0], sizes = [1, 1, 128], strides = [1, 1, 1]} : vector<3x9x128xf32> to vector<1x1x128xf32>
    %72 = vector.shape_cast %71 : vector<1x1x128xf32> to vector<1x128xf32>
    %73 = vector.broadcast %72 : vector<1x128xf32> to vector<128x128xf32>
    %74 = arith.mulf %70, %73 : vector<128x128xf32>
    %75 = arith.addf %68, %74 : vector<128x128xf32>
    %cst_11 = arith.constant dense<0.000000e+00> : vector<128xf32>
    %76 = vector.multi_reduction <add>, %75, %cst_11 [0] : vector<128x128xf32> to vector<128xf32>
    %77 = vector.shape_cast %76 : vector<128xf32> to vector<1x128xf32>
    %78 = arith.mulf %75, %75 : vector<128x128xf32>
    %cst_12 = arith.constant dense<0.000000e+00> : vector<128xf32>
    %79 = vector.multi_reduction <add>, %78, %cst_12 [0] : vector<128x128xf32> to vector<128xf32>
    %80 = vector.shape_cast %79 : vector<128xf32> to vector<1x128xf32>
    %cst_13 = arith.constant 7.812500e-03 : f32
    %81 = vector.broadcast %cst_13 : f32 to vector<1x128xf32>
    %82 = arith.mulf %77, %81 : vector<1x128xf32>
    %cst_14 = arith.constant 7.812500e-03 : f32
    %83 = vector.broadcast %cst_14 : f32 to vector<1x128xf32>
    %84 = arith.mulf %80, %83 : vector<1x128xf32>
    %85 = arith.mulf %82, %82 : vector<1x128xf32>
    %86 = arith.subf %84, %85 : vector<1x128xf32>
    %87 = vector.broadcast %82 : vector<1x128xf32> to vector<128x128xf32>
    %88 = arith.subf %75, %87 : vector<128x128xf32>
    %cst_15 = arith.constant 9.99999974E-6 : f32
    %89 = vector.broadcast %cst_15 : f32 to vector<1x128xf32>
    %90 = arith.addf %86, %89 : vector<1x128xf32>
    %91 = math.rsqrt %90 : vector<1x128xf32>
    %92 = vector.broadcast %91 : vector<1x128xf32> to vector<128x128xf32>
    %93 = arith.mulf %88, %92 : vector<128x128xf32>
    %c0_16 = arith.constant 0 : index
    %c0_17 = arith.constant 0 : index
    %c0_18 = arith.constant 0 : index
    %c0_19 = arith.constant 0 : index
    %94 = vector.load %arg9[%c0_16, %c0_17, %c0_18, %c0_19] : memref<1x3x128x128xf32, #tpu.memory_space<vmem>>, vector<1x1x128x128xf32>
    %95 = vector.shape_cast %94 : vector<1x1x128x128xf32> to vector<128x128xf32>
    %cst_20 = arith.constant dense<0.000000e+00> : vector<128x128xf32>
    %96 = tpu.matmul %93, %95, %cst_20 {dimension_numbers = #tpu.dot_dimension_numbers<[1], [0], [0], [1], [0, 0, 1, 1], [], []>} : vector<128x128xf32>, vector<128x128xf32>, vector<128x128xf32> -> vector<128x128xf32>
    %97 = vector.extract_strided_slice %13 {offsets = [0, 0], sizes = [1, 128], strides = [1, 1]} : vector<3x128xf32> to vector<1x128xf32>
    %98 = vector.broadcast %97 : vector<1x128xf32> to vector<128x128xf32>
    %99 = arith.addf %96, %98 : vector<128x128xf32>
    %cst_21 = arith.constant 5.000000e-01 : f32
    %100 = vector.broadcast %cst_21 : f32 to vector<128x128xf32>
    %101 = arith.mulf %100, %99 : vector<128x128xf32>
    %cst_22 = arith.constant 0.707106769 : f32
    %102 = vector.broadcast %cst_22 : f32 to vector<128x128xf32>
    %103 = arith.mulf %99, %102 : vector<128x128xf32>
    %104 = math.absf %103 : vector<128x128xf32>
    %cst_23 = arith.constant 0.327591091 : f32
    %105 = vector.broadcast %cst_23 : f32 to vector<128x128xf32>
    %106 = arith.mulf %105, %104 : vector<128x128xf32>
    %cst_24 = arith.constant 1.000000e+00 : f32
    %107 = vector.broadcast %cst_24 : f32 to vector<128x128xf32>
    %108 = arith.addf %107, %106 : vector<128x128xf32>
    %cst_25 = arith.constant 1.000000e+00 : f32
    %109 = vector.broadcast %cst_25 : f32 to vector<128x128xf32>
    %110 = arith.divf %109, %108 : vector<128x128xf32>
    %cst_26 = arith.constant 1.06140542 : f32
    %111 = vector.broadcast %cst_26 : f32 to vector<128x128xf32>
    %112 = arith.mulf %110, %111 : vector<128x128xf32>
    %cst_27 = arith.constant -1.45315206 : f32
    %113 = vector.broadcast %cst_27 : f32 to vector<128x128xf32>
    %114 = arith.addf %113, %112 : vector<128x128xf32>
    %115 = arith.mulf %110, %114 : vector<128x128xf32>
    %cst_28 = arith.constant 1.42141378 : f32
    %116 = vector.broadcast %cst_28 : f32 to vector<128x128xf32>
    %117 = arith.addf %116, %115 : vector<128x128xf32>
    %118 = arith.mulf %110, %117 : vector<128x128xf32>
    %cst_29 = arith.constant -0.284496725 : f32
    %119 = vector.broadcast %cst_29 : f32 to vector<128x128xf32>
    %120 = arith.addf %119, %118 : vector<128x128xf32>
    %121 = arith.mulf %110, %120 : vector<128x128xf32>
    %cst_30 = arith.constant 0.254829586 : f32
    %122 = vector.broadcast %cst_30 : f32 to vector<128x128xf32>
    %123 = arith.addf %122, %121 : vector<128x128xf32>
    %124 = arith.mulf %110, %123 : vector<128x128xf32>
    %cst_31 = arith.constant 0.000000e+00 : f32
    %125 = vector.broadcast %cst_31 : f32 to vector<128x128xf32>
    %126 = arith.subf %125, %104 : vector<128x128xf32>
    %127 = arith.mulf %126, %104 : vector<128x128xf32>
    %128 = math.exp %127 : vector<128x128xf32>
    %129 = arith.mulf %124, %128 : vector<128x128xf32>
    %cst_32 = arith.constant 1.000000e+00 : f32
    %130 = vector.broadcast %cst_32 : f32 to vector<128x128xf32>
    %131 = arith.subf %130, %129 : vector<128x128xf32>
    %cst_33 = arith.constant 0.000000e+00 : f32
    %132 = vector.broadcast %cst_33 : f32 to vector<128x128xf32>
    %133 = arith.cmpf oge, %103, %132 : vector<128x128xf32>
    %cst_34 = arith.constant 0.000000e+00 : f32
    %134 = vector.broadcast %cst_34 : f32 to vector<128x128xf32>
    %135 = arith.subf %134, %131 : vector<128x128xf32>
    %136 = arith.select %133, %131, %135 : vector<128x128xi1>, vector<128x128xf32>
    %cst_35 = arith.constant 1.000000e+00 : f32
    %137 = vector.broadcast %cst_35 : f32 to vector<128x128xf32>
    %138 = arith.addf %137, %136 : vector<128x128xf32>
    %139 = arith.mulf %101, %138 : vector<128x128xf32>
    %140 = vector.extract_strided_slice %9 {offsets = [0, 0, 0], sizes = [1, 32, 128], strides = [1, 1, 1]} : vector<9x32x128xf32> to vector<1x32x128xf32>
    %141 = vector.shape_cast %140 : vector<1x32x128xf32> to vector<32x128xf32>
    %142 = vector.extract_strided_slice %11 {offsets = [1, 0, 0], sizes = [1, 1, 128], strides = [1, 1, 1]} : vector<3x9x128xf32> to vector<1x1x128xf32>
    %143 = vector.shape_cast %142 : vector<1x1x128xf32> to vector<1x128xf32>
    %144 = vector.broadcast %143 : vector<1x128xf32> to vector<32x128xf32>
    %145 = arith.mulf %141, %144 : vector<32x128xf32>
    %146 = vector.extract_strided_slice %9 {offsets = [1, 0, 0], sizes = [1, 32, 128], strides = [1, 1, 1]} : vector<9x32x128xf32> to vector<1x32x128xf32>
    %147 = vector.shape_cast %146 : vector<1x32x128xf32> to vector<32x128xf32>
    %148 = vector.extract_strided_slice %11 {offsets = [1, 1, 0], sizes = [1, 1, 128], strides = [1, 1, 1]} : vector<3x9x128xf32> to vector<1x1x128xf32>
    %149 = vector.shape_cast %148 : vector<1x1x128xf32> to vector<1x128xf32>
    %150 = vector.broadcast %149 : vector<1x128xf32> to vector<32x128xf32>
    %151 = arith.mulf %147, %150 : vector<32x128xf32>
    %152 = arith.addf %145, %151 : vector<32x128xf32>
    %153 = vector.extract_strided_slice %9 {offsets = [2, 0, 0], sizes = [1, 32, 128], strides = [1, 1, 1]} : vector<9x32x128xf32> to vector<1x32x128xf32>
    %154 = vector.shape_cast %153 : vector<1x32x128xf32> to vector<32x128xf32>
    %155 = vector.extract_strided_slice %11 {offsets = [1, 2, 0], sizes = [1, 1, 128], strides = [1, 1, 1]} : vector<3x9x128xf32> to vector<1x1x128xf32>
    %156 = vector.shape_cast %155 : vector<1x1x128xf32> to vector<1x128xf32>
    %157 = vector.broadcast %156 : vector<1x128xf32> to vector<32x128xf32>
    %158 = arith.mulf %154, %157 : vector<32x128xf32>
    %159 = arith.addf %152, %158 : vector<32x128xf32>
    %160 = vector.extract_strided_slice %9 {offsets = [3, 0, 0], sizes = [1, 32, 128], strides = [1, 1, 1]} : vector<9x32x128xf32> to vector<1x32x128xf32>
    %161 = vector.shape_cast %160 : vector<1x32x128xf32> to vector<32x128xf32>
    %162 = vector.extract_strided_slice %11 {offsets = [1, 3, 0], sizes = [1, 1, 128], strides = [1, 1, 1]} : vector<3x9x128xf32> to vector<1x1x128xf32>
    %163 = vector.shape_cast %162 : vector<1x1x128xf32> to vector<1x128xf32>
    %164 = vector.broadcast %163 : vector<1x128xf32> to vector<32x128xf32>
    %165 = arith.mulf %161, %164 : vector<32x128xf32>
    %166 = arith.addf %159, %165 : vector<32x128xf32>
    %167 = vector.extract_strided_slice %9 {offsets = [4, 0, 0], sizes = [1, 32, 128], strides = [1, 1, 1]} : vector<9x32x128xf32> to vector<1x32x128xf32>
    %168 = vector.shape_cast %167 : vector<1x32x128xf32> to vector<32x128xf32>
    %169 = vector.extract_strided_slice %11 {offsets = [1, 4, 0], sizes = [1, 1, 128], strides = [1, 1, 1]} : vector<3x9x128xf32> to vector<1x1x128xf32>
    %170 = vector.shape_cast %169 : vector<1x1x128xf32> to vector<1x128xf32>
    %171 = vector.broadcast %170 : vector<1x128xf32> to vector<32x128xf32>
    %172 = arith.mulf %168, %171 : vector<32x128xf32>
    %173 = arith.addf %166, %172 : vector<32x128xf32>
    %174 = vector.extract_strided_slice %9 {offsets = [5, 0, 0], sizes = [1, 32, 128], strides = [1, 1, 1]} : vector<9x32x128xf32> to vector<1x32x128xf32>
    %175 = vector.shape_cast %174 : vector<1x32x128xf32> to vector<32x128xf32>
    %176 = vector.extract_strided_slice %11 {offsets = [1, 5, 0], sizes = [1, 1, 128], strides = [1, 1, 1]} : vector<3x9x128xf32> to vector<1x1x128xf32>
    %177 = vector.shape_cast %176 : vector<1x1x128xf32> to vector<1x128xf32>
    %178 = vector.broadcast %177 : vector<1x128xf32> to vector<32x128xf32>
    %179 = arith.mulf %175, %178 : vector<32x128xf32>
    %180 = arith.addf %173, %179 : vector<32x128xf32>
    %181 = vector.extract_strided_slice %9 {offsets = [6, 0, 0], sizes = [1, 32, 128], strides = [1, 1, 1]} : vector<9x32x128xf32> to vector<1x32x128xf32>
    %182 = vector.shape_cast %181 : vector<1x32x128xf32> to vector<32x128xf32>
    %183 = vector.extract_strided_slice %11 {offsets = [1, 6, 0], sizes = [1, 1, 128], strides = [1, 1, 1]} : vector<3x9x128xf32> to vector<1x1x128xf32>
    %184 = vector.shape_cast %183 : vector<1x1x128xf32> to vector<1x128xf32>
    %185 = vector.broadcast %184 : vector<1x128xf32> to vector<32x128xf32>
    %186 = arith.mulf %182, %185 : vector<32x128xf32>
    %187 = arith.addf %180, %186 : vector<32x128xf32>
    %188 = vector.extract_strided_slice %9 {offsets = [7, 0, 0], sizes = [1, 32, 128], strides = [1, 1, 1]} : vector<9x32x128xf32> to vector<1x32x128xf32>
    %189 = vector.shape_cast %188 : vector<1x32x128xf32> to vector<32x128xf32>
    %190 = vector.extract_strided_slice %11 {offsets = [1, 7, 0], sizes = [1, 1, 128], strides = [1, 1, 1]} : vector<3x9x128xf32> to vector<1x1x128xf32>
    %191 = vector.shape_cast %190 : vector<1x1x128xf32> to vector<1x128xf32>
    %192 = vector.broadcast %191 : vector<1x128xf32> to vector<32x128xf32>
    %193 = arith.mulf %189, %192 : vector<32x128xf32>
    %194 = arith.addf %187, %193 : vector<32x128xf32>
    %195 = vector.extract_strided_slice %9 {offsets = [8, 0, 0], sizes = [1, 32, 128], strides = [1, 1, 1]} : vector<9x32x128xf32> to vector<1x32x128xf32>
    %196 = vector.shape_cast %195 : vector<1x32x128xf32> to vector<32x128xf32>
    %197 = vector.extract_strided_slice %11 {offsets = [1, 8, 0], sizes = [1, 1, 128], strides = [1, 1, 1]} : vector<3x9x128xf32> to vector<1x1x128xf32>
    %198 = vector.shape_cast %197 : vector<1x1x128xf32> to vector<1x128xf32>
    %199 = vector.broadcast %198 : vector<1x128xf32> to vector<32x128xf32>
    %200 = arith.mulf %196, %199 : vector<32x128xf32>
    %201 = arith.addf %194, %200 : vector<32x128xf32>
    %cst_36 = arith.constant dense<0.000000e+00> : vector<128xf32>
    %202 = vector.multi_reduction <add>, %201, %cst_36 [0] : vector<32x128xf32> to vector<128xf32>
    %203 = vector.shape_cast %202 : vector<128xf32> to vector<1x128xf32>
    %204 = arith.mulf %201, %201 : vector<32x128xf32>
    %cst_37 = arith.constant dense<0.000000e+00> : vector<128xf32>
    %205 = vector.multi_reduction <add>, %204, %cst_37 [0] : vector<32x128xf32> to vector<128xf32>
    %206 = vector.shape_cast %205 : vector<128xf32> to vector<1x128xf32>
    %cst_38 = arith.constant 3.125000e-02 : f32
    %207 = vector.broadcast %cst_38 : f32 to vector<1x128xf32>
    %208 = arith.mulf %203, %207 : vector<1x128xf32>
    %cst_39 = arith.constant 3.125000e-02 : f32
    %209 = vector.broadcast %cst_39 : f32 to vector<1x128xf32>
    %210 = arith.mulf %206, %209 : vector<1x128xf32>
    %211 = arith.mulf %208, %208 : vector<1x128xf32>
    %212 = arith.subf %210, %211 : vector<1x128xf32>
    %213 = vector.broadcast %208 : vector<1x128xf32> to vector<32x128xf32>
    %214 = arith.subf %201, %213 : vector<32x128xf32>
    %cst_40 = arith.constant 9.99999974E-6 : f32
    %215 = vector.broadcast %cst_40 : f32 to vector<1x128xf32>
    %216 = arith.addf %212, %215 : vector<1x128xf32>
    %217 = math.rsqrt %216 : vector<1x128xf32>
    %218 = vector.broadcast %217 : vector<1x128xf32> to vector<32x128xf32>
    %219 = arith.mulf %214, %218 : vector<32x128xf32>
    %c0_41 = arith.constant 0 : index
    %c1 = arith.constant 1 : index
    %c0_42 = arith.constant 0 : index
    %c0_43 = arith.constant 0 : index
    %220 = vector.load %arg9[%c0_41, %c1, %c0_42, %c0_43] : memref<1x3x128x128xf32, #tpu.memory_space<vmem>>, vector<1x1x128x128xf32>
    %221 = vector.shape_cast %220 : vector<1x1x128x128xf32> to vector<128x128xf32>
    %cst_44 = arith.constant dense<0.000000e+00> : vector<32x128xf32>
    %222 = tpu.matmul %219, %221, %cst_44 {dimension_numbers = #tpu.dot_dimension_numbers<[1], [0], [0], [1], [0, 0, 1, 1], [], []>} : vector<32x128xf32>, vector<128x128xf32>, vector<32x128xf32> -> vector<32x128xf32>
    %223 = vector.extract_strided_slice %13 {offsets = [1, 0], sizes = [1, 128], strides = [1, 1]} : vector<3x128xf32> to vector<1x128xf32>
    %224 = vector.broadcast %223 : vector<1x128xf32> to vector<32x128xf32>
    %225 = arith.addf %222, %224 : vector<32x128xf32>
    %cst_45 = arith.constant 5.000000e-01 : f32
    %226 = vector.broadcast %cst_45 : f32 to vector<32x128xf32>
    %227 = arith.mulf %226, %225 : vector<32x128xf32>
    %cst_46 = arith.constant 0.707106769 : f32
    %228 = vector.broadcast %cst_46 : f32 to vector<32x128xf32>
    %229 = arith.mulf %225, %228 : vector<32x128xf32>
    %230 = math.absf %229 : vector<32x128xf32>
    %cst_47 = arith.constant 0.327591091 : f32
    %231 = vector.broadcast %cst_47 : f32 to vector<32x128xf32>
    %232 = arith.mulf %231, %230 : vector<32x128xf32>
    %cst_48 = arith.constant 1.000000e+00 : f32
    %233 = vector.broadcast %cst_48 : f32 to vector<32x128xf32>
    %234 = arith.addf %233, %232 : vector<32x128xf32>
    %cst_49 = arith.constant 1.000000e+00 : f32
    %235 = vector.broadcast %cst_49 : f32 to vector<32x128xf32>
    %236 = arith.divf %235, %234 : vector<32x128xf32>
    %cst_50 = arith.constant 1.06140542 : f32
    %237 = vector.broadcast %cst_50 : f32 to vector<32x128xf32>
    %238 = arith.mulf %236, %237 : vector<32x128xf32>
    %cst_51 = arith.constant -1.45315206 : f32
    %239 = vector.broadcast %cst_51 : f32 to vector<32x128xf32>
    %240 = arith.addf %239, %238 : vector<32x128xf32>
    %241 = arith.mulf %236, %240 : vector<32x128xf32>
    %cst_52 = arith.constant 1.42141378 : f32
    %242 = vector.broadcast %cst_52 : f32 to vector<32x128xf32>
    %243 = arith.addf %242, %241 : vector<32x128xf32>
    %244 = arith.mulf %236, %243 : vector<32x128xf32>
    %cst_53 = arith.constant -0.284496725 : f32
    %245 = vector.broadcast %cst_53 : f32 to vector<32x128xf32>
    %246 = arith.addf %245, %244 : vector<32x128xf32>
    %247 = arith.mulf %236, %246 : vector<32x128xf32>
    %cst_54 = arith.constant 0.254829586 : f32
    %248 = vector.broadcast %cst_54 : f32 to vector<32x128xf32>
    %249 = arith.addf %248, %247 : vector<32x128xf32>
    %250 = arith.mulf %236, %249 : vector<32x128xf32>
    %cst_55 = arith.constant 0.000000e+00 : f32
    %251 = vector.broadcast %cst_55 : f32 to vector<32x128xf32>
    %252 = arith.subf %251, %230 : vector<32x128xf32>
    %253 = arith.mulf %252, %230 : vector<32x128xf32>
    %254 = math.exp %253 : vector<32x128xf32>
    %255 = arith.mulf %250, %254 : vector<32x128xf32>
    %cst_56 = arith.constant 1.000000e+00 : f32
    %256 = vector.broadcast %cst_56 : f32 to vector<32x128xf32>
    %257 = arith.subf %256, %255 : vector<32x128xf32>
    %cst_57 = arith.constant 0.000000e+00 : f32
    %258 = vector.broadcast %cst_57 : f32 to vector<32x128xf32>
    %259 = arith.cmpf oge, %229, %258 : vector<32x128xf32>
    %cst_58 = arith.constant 0.000000e+00 : f32
    %260 = vector.broadcast %cst_58 : f32 to vector<32x128xf32>
    %261 = arith.subf %260, %257 : vector<32x128xf32>
    %262 = arith.select %259, %257, %261 : vector<32x128xi1>, vector<32x128xf32>
    %cst_59 = arith.constant 1.000000e+00 : f32
    %263 = vector.broadcast %cst_59 : f32 to vector<32x128xf32>
    %264 = arith.addf %263, %262 : vector<32x128xf32>
    %265 = arith.mulf %227, %264 : vector<32x128xf32>
    %266 = vector.extract_strided_slice %9 {offsets = [0, 0, 0], sizes = [1, 32, 128], strides = [1, 1, 1]} : vector<9x32x128xf32> to vector<1x32x128xf32>
    %267 = vector.shape_cast %266 : vector<1x32x128xf32> to vector<32x128xf32>
    %268 = vector.extract_strided_slice %11 {offsets = [2, 0, 0], sizes = [1, 1, 128], strides = [1, 1, 1]} : vector<3x9x128xf32> to vector<1x1x128xf32>
    %269 = vector.shape_cast %268 : vector<1x1x128xf32> to vector<1x128xf32>
    %270 = vector.broadcast %269 : vector<1x128xf32> to vector<32x128xf32>
    %271 = arith.mulf %267, %270 : vector<32x128xf32>
    %272 = vector.extract_strided_slice %9 {offsets = [1, 0, 0], sizes = [1, 32, 128], strides = [1, 1, 1]} : vector<9x32x128xf32> to vector<1x32x128xf32>
    %273 = vector.shape_cast %272 : vector<1x32x128xf32> to vector<32x128xf32>
    %274 = vector.extract_strided_slice %11 {offsets = [2, 1, 0], sizes = [1, 1, 128], strides = [1, 1, 1]} : vector<3x9x128xf32> to vector<1x1x128xf32>
    %275 = vector.shape_cast %274 : vector<1x1x128xf32> to vector<1x128xf32>
    %276 = vector.broadcast %275 : vector<1x128xf32> to vector<32x128xf32>
    %277 = arith.mulf %273, %276 : vector<32x128xf32>
    %278 = arith.addf %271, %277 : vector<32x128xf32>
    %279 = vector.extract_strided_slice %9 {offsets = [2, 0, 0], sizes = [1, 32, 128], strides = [1, 1, 1]} : vector<9x32x128xf32> to vector<1x32x128xf32>
    %280 = vector.shape_cast %279 : vector<1x32x128xf32> to vector<32x128xf32>
    %281 = vector.extract_strided_slice %11 {offsets = [2, 2, 0], sizes = [1, 1, 128], strides = [1, 1, 1]} : vector<3x9x128xf32> to vector<1x1x128xf32>
    %282 = vector.shape_cast %281 : vector<1x1x128xf32> to vector<1x128xf32>
    %283 = vector.broadcast %282 : vector<1x128xf32> to vector<32x128xf32>
    %284 = arith.mulf %280, %283 : vector<32x128xf32>
    %285 = arith.addf %278, %284 : vector<32x128xf32>
    %286 = vector.extract_strided_slice %9 {offsets = [3, 0, 0], sizes = [1, 32, 128], strides = [1, 1, 1]} : vector<9x32x128xf32> to vector<1x32x128xf32>
    %287 = vector.shape_cast %286 : vector<1x32x128xf32> to vector<32x128xf32>
    %288 = vector.extract_strided_slice %11 {offsets = [2, 3, 0], sizes = [1, 1, 128], strides = [1, 1, 1]} : vector<3x9x128xf32> to vector<1x1x128xf32>
    %289 = vector.shape_cast %288 : vector<1x1x128xf32> to vector<1x128xf32>
    %290 = vector.broadcast %289 : vector<1x128xf32> to vector<32x128xf32>
    %291 = arith.mulf %287, %290 : vector<32x128xf32>
    %292 = arith.addf %285, %291 : vector<32x128xf32>
    %293 = vector.extract_strided_slice %9 {offsets = [4, 0, 0], sizes = [1, 32, 128], strides = [1, 1, 1]} : vector<9x32x128xf32> to vector<1x32x128xf32>
    %294 = vector.shape_cast %293 : vector<1x32x128xf32> to vector<32x128xf32>
    %295 = vector.extract_strided_slice %11 {offsets = [2, 4, 0], sizes = [1, 1, 128], strides = [1, 1, 1]} : vector<3x9x128xf32> to vector<1x1x128xf32>
    %296 = vector.shape_cast %295 : vector<1x1x128xf32> to vector<1x128xf32>
    %297 = vector.broadcast %296 : vector<1x128xf32> to vector<32x128xf32>
    %298 = arith.mulf %294, %297 : vector<32x128xf32>
    %299 = arith.addf %292, %298 : vector<32x128xf32>
    %300 = vector.extract_strided_slice %9 {offsets = [5, 0, 0], sizes = [1, 32, 128], strides = [1, 1, 1]} : vector<9x32x128xf32> to vector<1x32x128xf32>
    %301 = vector.shape_cast %300 : vector<1x32x128xf32> to vector<32x128xf32>
    %302 = vector.extract_strided_slice %11 {offsets = [2, 5, 0], sizes = [1, 1, 128], strides = [1, 1, 1]} : vector<3x9x128xf32> to vector<1x1x128xf32>
    %303 = vector.shape_cast %302 : vector<1x1x128xf32> to vector<1x128xf32>
    %304 = vector.broadcast %303 : vector<1x128xf32> to vector<32x128xf32>
    %305 = arith.mulf %301, %304 : vector<32x128xf32>
    %306 = arith.addf %299, %305 : vector<32x128xf32>
    %307 = vector.extract_strided_slice %9 {offsets = [6, 0, 0], sizes = [1, 32, 128], strides = [1, 1, 1]} : vector<9x32x128xf32> to vector<1x32x128xf32>
    %308 = vector.shape_cast %307 : vector<1x32x128xf32> to vector<32x128xf32>
    %309 = vector.extract_strided_slice %11 {offsets = [2, 6, 0], sizes = [1, 1, 128], strides = [1, 1, 1]} : vector<3x9x128xf32> to vector<1x1x128xf32>
    %310 = vector.shape_cast %309 : vector<1x1x128xf32> to vector<1x128xf32>
    %311 = vector.broadcast %310 : vector<1x128xf32> to vector<32x128xf32>
    %312 = arith.mulf %308, %311 : vector<32x128xf32>
    %313 = arith.addf %306, %312 : vector<32x128xf32>
    %314 = vector.extract_strided_slice %9 {offsets = [7, 0, 0], sizes = [1, 32, 128], strides = [1, 1, 1]} : vector<9x32x128xf32> to vector<1x32x128xf32>
    %315 = vector.shape_cast %314 : vector<1x32x128xf32> to vector<32x128xf32>
    %316 = vector.extract_strided_slice %11 {offsets = [2, 7, 0], sizes = [1, 1, 128], strides = [1, 1, 1]} : vector<3x9x128xf32> to vector<1x1x128xf32>
    %317 = vector.shape_cast %316 : vector<1x1x128xf32> to vector<1x128xf32>
    %318 = vector.broadcast %317 : vector<1x128xf32> to vector<32x128xf32>
    %319 = arith.mulf %315, %318 : vector<32x128xf32>
    %320 = arith.addf %313, %319 : vector<32x128xf32>
    %321 = vector.extract_strided_slice %9 {offsets = [8, 0, 0], sizes = [1, 32, 128], strides = [1, 1, 1]} : vector<9x32x128xf32> to vector<1x32x128xf32>
    %322 = vector.shape_cast %321 : vector<1x32x128xf32> to vector<32x128xf32>
    %323 = vector.extract_strided_slice %11 {offsets = [2, 8, 0], sizes = [1, 1, 128], strides = [1, 1, 1]} : vector<3x9x128xf32> to vector<1x1x128xf32>
    %324 = vector.shape_cast %323 : vector<1x1x128xf32> to vector<1x128xf32>
    %325 = vector.broadcast %324 : vector<1x128xf32> to vector<32x128xf32>
    %326 = arith.mulf %322, %325 : vector<32x128xf32>
    %327 = arith.addf %320, %326 : vector<32x128xf32>
    %cst_60 = arith.constant dense<0.000000e+00> : vector<128xf32>
    %328 = vector.multi_reduction <add>, %327, %cst_60 [0] : vector<32x128xf32> to vector<128xf32>
    %329 = vector.shape_cast %328 : vector<128xf32> to vector<1x128xf32>
    %330 = arith.mulf %327, %327 : vector<32x128xf32>
    %cst_61 = arith.constant dense<0.000000e+00> : vector<128xf32>
    %331 = vector.multi_reduction <add>, %330, %cst_61 [0] : vector<32x128xf32> to vector<128xf32>
    %332 = vector.shape_cast %331 : vector<128xf32> to vector<1x128xf32>
    %cst_62 = arith.constant 3.125000e-02 : f32
    %333 = vector.broadcast %cst_62 : f32 to vector<1x128xf32>
    %334 = arith.mulf %329, %333 : vector<1x128xf32>
    %cst_63 = arith.constant 3.125000e-02 : f32
    %335 = vector.broadcast %cst_63 : f32 to vector<1x128xf32>
    %336 = arith.mulf %332, %335 : vector<1x128xf32>
    %337 = arith.mulf %334, %334 : vector<1x128xf32>
    %338 = arith.subf %336, %337 : vector<1x128xf32>
    %339 = vector.broadcast %334 : vector<1x128xf32> to vector<32x128xf32>
    %340 = arith.subf %327, %339 : vector<32x128xf32>
    %cst_64 = arith.constant 9.99999974E-6 : f32
    %341 = vector.broadcast %cst_64 : f32 to vector<1x128xf32>
    %342 = arith.addf %338, %341 : vector<1x128xf32>
    %343 = math.rsqrt %342 : vector<1x128xf32>
    %344 = vector.broadcast %343 : vector<1x128xf32> to vector<32x128xf32>
    %345 = arith.mulf %340, %344 : vector<32x128xf32>
    %c0_65 = arith.constant 0 : index
    %c2 = arith.constant 2 : index
    %c0_66 = arith.constant 0 : index
    %c0_67 = arith.constant 0 : index
    %346 = vector.load %arg9[%c0_65, %c2, %c0_66, %c0_67] : memref<1x3x128x128xf32, #tpu.memory_space<vmem>>, vector<1x1x128x128xf32>
    %347 = vector.shape_cast %346 : vector<1x1x128x128xf32> to vector<128x128xf32>
    %cst_68 = arith.constant dense<0.000000e+00> : vector<32x128xf32>
    %348 = tpu.matmul %345, %347, %cst_68 {dimension_numbers = #tpu.dot_dimension_numbers<[1], [0], [0], [1], [0, 0, 1, 1], [], []>} : vector<32x128xf32>, vector<128x128xf32>, vector<32x128xf32> -> vector<32x128xf32>
    %349 = vector.extract_strided_slice %13 {offsets = [2, 0], sizes = [1, 128], strides = [1, 1]} : vector<3x128xf32> to vector<1x128xf32>
    %350 = vector.broadcast %349 : vector<1x128xf32> to vector<32x128xf32>
    %351 = arith.addf %348, %350 : vector<32x128xf32>
    %cst_69 = arith.constant 5.000000e-01 : f32
    %352 = vector.broadcast %cst_69 : f32 to vector<32x128xf32>
    %353 = arith.mulf %352, %351 : vector<32x128xf32>
    %cst_70 = arith.constant 0.707106769 : f32
    %354 = vector.broadcast %cst_70 : f32 to vector<32x128xf32>
    %355 = arith.mulf %351, %354 : vector<32x128xf32>
    %356 = math.absf %355 : vector<32x128xf32>
    %cst_71 = arith.constant 0.327591091 : f32
    %357 = vector.broadcast %cst_71 : f32 to vector<32x128xf32>
    %358 = arith.mulf %357, %356 : vector<32x128xf32>
    %cst_72 = arith.constant 1.000000e+00 : f32
    %359 = vector.broadcast %cst_72 : f32 to vector<32x128xf32>
    %360 = arith.addf %359, %358 : vector<32x128xf32>
    %cst_73 = arith.constant 1.000000e+00 : f32
    %361 = vector.broadcast %cst_73 : f32 to vector<32x128xf32>
    %362 = arith.divf %361, %360 : vector<32x128xf32>
    %cst_74 = arith.constant 1.06140542 : f32
    %363 = vector.broadcast %cst_74 : f32 to vector<32x128xf32>
    %364 = arith.mulf %362, %363 : vector<32x128xf32>
    %cst_75 = arith.constant -1.45315206 : f32
    %365 = vector.broadcast %cst_75 : f32 to vector<32x128xf32>
    %366 = arith.addf %365, %364 : vector<32x128xf32>
    %367 = arith.mulf %362, %366 : vector<32x128xf32>
    %cst_76 = arith.constant 1.42141378 : f32
    %368 = vector.broadcast %cst_76 : f32 to vector<32x128xf32>
    %369 = arith.addf %368, %367 : vector<32x128xf32>
    %370 = arith.mulf %362, %369 : vector<32x128xf32>
    %cst_77 = arith.constant -0.284496725 : f32
    %371 = vector.broadcast %cst_77 : f32 to vector<32x128xf32>
    %372 = arith.addf %371, %370 : vector<32x128xf32>
    %373 = arith.mulf %362, %372 : vector<32x128xf32>
    %cst_78 = arith.constant 0.254829586 : f32
    %374 = vector.broadcast %cst_78 : f32 to vector<32x128xf32>
    %375 = arith.addf %374, %373 : vector<32x128xf32>
    %376 = arith.mulf %362, %375 : vector<32x128xf32>
    %cst_79 = arith.constant 0.000000e+00 : f32
    %377 = vector.broadcast %cst_79 : f32 to vector<32x128xf32>
    %378 = arith.subf %377, %356 : vector<32x128xf32>
    %379 = arith.mulf %378, %356 : vector<32x128xf32>
    %380 = math.exp %379 : vector<32x128xf32>
    %381 = arith.mulf %376, %380 : vector<32x128xf32>
    %cst_80 = arith.constant 1.000000e+00 : f32
    %382 = vector.broadcast %cst_80 : f32 to vector<32x128xf32>
    %383 = arith.subf %382, %381 : vector<32x128xf32>
    %cst_81 = arith.constant 0.000000e+00 : f32
    %384 = vector.broadcast %cst_81 : f32 to vector<32x128xf32>
    %385 = arith.cmpf oge, %355, %384 : vector<32x128xf32>
    %cst_82 = arith.constant 0.000000e+00 : f32
    %386 = vector.broadcast %cst_82 : f32 to vector<32x128xf32>
    %387 = arith.subf %386, %383 : vector<32x128xf32>
    %388 = arith.select %385, %383, %387 : vector<32x128xi1>, vector<32x128xf32>
    %cst_83 = arith.constant 1.000000e+00 : f32
    %389 = vector.broadcast %cst_83 : f32 to vector<32x128xf32>
    %390 = arith.addf %389, %388 : vector<32x128xf32>
    %391 = arith.mulf %353, %390 : vector<32x128xf32>
    %392 = vector.shape_cast %139 : vector<128x128xf32> to vector<2x64x128xf32>
    %393 = vector.shape_cast %265 : vector<32x128xf32> to vector<2x16x128xf32>
    %394 = vector.shape_cast %391 : vector<32x128xf32> to vector<2x16x128xf32>
    %cst_84 = arith.constant dense<0xFF800000> : vector<2x128xf32>
    %395 = vector.multi_reduction <maximumf>, %393, %cst_84 [1] : vector<2x16x128xf32> to vector<2x128xf32>
    %396 = vector.shape_cast %395 : vector<2x128xf32> to vector<2x1x128xf32>
    %397 = vector.broadcast %396 : vector<2x1x128xf32> to vector<2x16x128xf32>
    %398 = arith.subf %393, %397 : vector<2x16x128xf32>
    %399 = math.exp %398 : vector<2x16x128xf32>
    %cst_85 = arith.constant dense<0.000000e+00> : vector<2x128xf32>
    %400 = vector.multi_reduction <add>, %399, %cst_85 [1] : vector<2x16x128xf32> to vector<2x128xf32>
    %401 = vector.shape_cast %400 : vector<2x128xf32> to vector<2x1x128xf32>
    %402 = vector.broadcast %401 : vector<2x1x128xf32> to vector<2x16x128xf32>
    %403 = arith.divf %399, %402 : vector<2x16x128xf32>
    "tpu.trace_start"() <{level = 10 : i32, message = "bkc,bkd->bcd"}> : () -> ()
    %cst_86 = arith.constant dense<0.000000e+00> : vector<2x128x128xf32>
    %404 = tpu.matmul %403, %394, %cst_86 {dimension_numbers = #tpu.dot_dimension_numbers<[1], [1], [2], [2], [0, 0, 0, 2, 1, 2], [0], [0]>} : vector<2x16x128xf32>, vector<2x16x128xf32>, vector<2x128x128xf32> -> vector<2x128x128xf32>
    "tpu.trace_stop"() : () -> ()
    %c0_87 = arith.constant 0 : index
    %c0_88 = arith.constant 0 : index
    %405 = vector.load %arg7[%c0_87, %c0_88] : memref<128x128xf32, #tpu.memory_space<vmem>>, vector<128x128xf32>
    %406 = vector.shape_cast %405 : vector<128x128xf32> to vector<1x128x128xf32>
    %407 = vector.broadcast %406 : vector<1x128x128xf32> to vector<2x128x128xf32>
    %408 = arith.mulf %404, %407 : vector<2x128x128xf32>
    %409 = tpu.iota {dimensions = array<i32: 2>} : vector<1x1x128xi32>
    %cst_89 = arith.constant 0.000000e+00 : f32
    %410 = vector.broadcast %cst_89 : f32 to vector<2x64x128xf32>
    %c0_i32_90 = arith.constant 0 : i32
    %411 = vector.broadcast %c0_i32_90 : i32 to vector<1x1x128xi32>
    %412 = arith.cmpi sge, %409, %411 : vector<1x1x128xi32>
    %c32_i32 = arith.constant 32 : i32
    %413 = vector.broadcast %c32_i32 : i32 to vector<1x1x128xi32>
    %414 = arith.cmpi slt, %409, %413 : vector<1x1x128xi32>
    %415 = arith.andi %412, %414 : vector<1x1x128xi1>
    %cst_91 = arith.constant -1.000000e+30 : f32
    %416 = vector.shape_cast %415 : vector<1x1x128xi1> to vector<1x1x128xi1>
    %417 = vector.broadcast %416 : vector<1x1x128xi1> to vector<2x64x128xi1>
    %418 = vector.broadcast %cst_91 : f32 to vector<2x64x128xf32>
    %419 = arith.select %417, %392, %418 : vector<2x64x128xi1>, vector<2x64x128xf32>
    %cst_92 = arith.constant dense<0xFF800000> : vector<2x64xf32>
    %420 = vector.multi_reduction <maximumf>, %419, %cst_92 [2] : vector<2x64x128xf32> to vector<2x64xf32>
    %421 = vector.shape_cast %420 : vector<2x64xf32> to vector<2x64x1xf32>
    %422 = vector.broadcast %421 : vector<2x64x1xf32> to vector<2x64x128xf32>
    %423 = arith.subf %392, %422 : vector<2x64x128xf32>
    %424 = math.exp %423 : vector<2x64x128xf32>
    %cst_93 = arith.constant 0.000000e+00 : f32
    %425 = vector.shape_cast %415 : vector<1x1x128xi1> to vector<1x1x128xi1>
    %426 = vector.broadcast %425 : vector<1x1x128xi1> to vector<2x64x128xi1>
    %427 = vector.broadcast %cst_93 : f32 to vector<2x64x128xf32>
    %428 = arith.select %426, %424, %427 : vector<2x64x128xi1>, vector<2x64x128xf32>
    %cst_94 = arith.constant dense<0.000000e+00> : vector<2x64xf32>
    %429 = vector.multi_reduction <add>, %428, %cst_94 [2] : vector<2x64x128xf32> to vector<2x64xf32>
    %430 = vector.shape_cast %429 : vector<2x64xf32> to vector<2x64x1xf32>
    %431 = vector.broadcast %430 : vector<2x64x1xf32> to vector<2x64x128xf32>
    %432 = arith.divf %428, %431 : vector<2x64x128xf32>
    %433 = arith.addf %410, %432 : vector<2x64x128xf32>
    "tpu.trace_start"() <{level = 10 : i32, message = "blc,bcd->bld"}> : () -> ()
    %cst_95 = arith.constant dense<0.000000e+00> : vector<2x64x128xf32>
    %434 = tpu.matmul %433, %408, %cst_95 {dimension_numbers = #tpu.dot_dimension_numbers<[2], [1], [1], [2], [0, 0, 0, 1, 1, 2], [0], [0]>} : vector<2x64x128xf32>, vector<2x128x128xf32>, vector<2x64x128xf32> -> vector<2x64x128xf32>
    "tpu.trace_stop"() : () -> ()
    %435 = vector.shape_cast %434 : vector<2x64x128xf32> to vector<128x128xf32>
    %436 = arith.index_cast %arg0 : i32 to index
    %c0_96 = arith.constant 0 : index
    %437 = memref.load %arg1[%436, %c0_96] : memref<2x4xf32, #tpu.memory_space<smem>>
    %438 = vector.broadcast %437 : f32 to vector<128x128xf32>
    %439 = arith.mulf %438, %435 : vector<128x128xf32>
    %440 = arith.index_cast %arg0 : i32 to index
    %c1_97 = arith.constant 1 : index
    %441 = memref.load %arg1[%440, %c1_97] : memref<2x4xf32, #tpu.memory_space<smem>>
    %442 = vector.broadcast %441 : f32 to vector<128x128xf32>
    %443 = arith.mulf %442, %3 : vector<128x128xf32>
    %444 = arith.addf %439, %443 : vector<128x128xf32>
    %c0_98 = arith.constant 0 : index
    %c0_99 = arith.constant 0 : index
    %c0_100 = arith.constant 0 : index
    %445 = vector.load %arg11[%c0_98, %c0_99, %c0_100] : memref<1x1x128xf32, #tpu.memory_space<vmem>>, vector<1x1x128xf32>
    %446 = vector.shape_cast %445 : vector<1x1x128xf32> to vector<1x128xf32>
    %c0_101 = arith.constant 0 : index
    %c0_102 = arith.constant 0 : index
    %c0_103 = arith.constant 0 : index
    %447 = vector.load %arg12[%c0_101, %c0_102, %c0_103] : memref<1x1x128xf32, #tpu.memory_space<vmem>>, vector<1x1x128xf32>
    %448 = vector.shape_cast %447 : vector<1x1x128xf32> to vector<1x128xf32>
    %cst_104 = arith.constant dense<0.000000e+00> : vector<128xf32>
    %449 = vector.multi_reduction <add>, %444, %cst_104 [0] : vector<128x128xf32> to vector<128xf32>
    %450 = vector.shape_cast %449 : vector<128xf32> to vector<1x128xf32>
    %451 = arith.mulf %444, %444 : vector<128x128xf32>
    %cst_105 = arith.constant dense<0.000000e+00> : vector<128xf32>
    %452 = vector.multi_reduction <add>, %451, %cst_105 [0] : vector<128x128xf32> to vector<128xf32>
    %453 = vector.shape_cast %452 : vector<128xf32> to vector<1x128xf32>
    %cst_106 = arith.constant 7.812500e-03 : f32
    %454 = vector.broadcast %cst_106 : f32 to vector<1x128xf32>
    %455 = arith.mulf %450, %454 : vector<1x128xf32>
    %cst_107 = arith.constant 7.812500e-03 : f32
    %456 = vector.broadcast %cst_107 : f32 to vector<1x128xf32>
    %457 = arith.mulf %453, %456 : vector<1x128xf32>
    %458 = arith.mulf %455, %455 : vector<1x128xf32>
    %459 = arith.subf %457, %458 : vector<1x128xf32>
    %460 = vector.broadcast %455 : vector<1x128xf32> to vector<128x128xf32>
    %461 = arith.subf %444, %460 : vector<128x128xf32>
    %cst_108 = arith.constant 9.99999974E-6 : f32
    %462 = vector.broadcast %cst_108 : f32 to vector<1x128xf32>
    %463 = arith.addf %459, %462 : vector<1x128xf32>
    %464 = math.rsqrt %463 : vector<1x128xf32>
    %465 = vector.broadcast %464 : vector<1x128xf32> to vector<128x128xf32>
    %466 = arith.mulf %461, %465 : vector<128x128xf32>
    %467 = vector.broadcast %446 : vector<1x128xf32> to vector<128x128xf32>
    %468 = arith.mulf %466, %467 : vector<128x128xf32>
    %469 = vector.broadcast %448 : vector<1x128xf32> to vector<128x128xf32>
    %470 = arith.addf %468, %469 : vector<128x128xf32>
    %c0_109 = arith.constant 0 : index
    %c0_110 = arith.constant 0 : index
    %c0_111 = arith.constant 0 : index
    %471 = vector.load %arg13[%c0_109, %c0_110, %c0_111] : memref<1x128x8xf32, #tpu.memory_space<vmem>>, vector<1x128x8xf32>
    %472 = vector.shape_cast %471 : vector<1x128x8xf32> to vector<128x8xf32>
    %cst_112 = arith.constant dense<0.000000e+00> : vector<128x8xf32>
    %473 = tpu.matmul %470, %472, %cst_112 {dimension_numbers = #tpu.dot_dimension_numbers<[1], [0], [0], [1], [0, 0, 1, 1], [], []>} : vector<128x128xf32>, vector<128x8xf32>, vector<128x8xf32> -> vector<128x8xf32>
    %c0_113 = arith.constant 0 : index
    %c0_114 = arith.constant 0 : index
    %c0_115 = arith.constant 0 : index
    %474 = vector.load %arg14[%c0_113, %c0_114, %c0_115] : memref<1x1x8xf32, #tpu.memory_space<vmem>>, vector<1x1x8xf32>
    %475 = vector.shape_cast %474 : vector<1x1x8xf32> to vector<1x8xf32>
    %476 = vector.broadcast %475 : vector<1x8xf32> to vector<128x8xf32>
    %477 = arith.addf %473, %476 : vector<128x8xf32>
    %cst_116 = arith.constant 5.000000e-01 : f32
    %478 = vector.broadcast %cst_116 : f32 to vector<128x8xf32>
    %479 = arith.mulf %478, %477 : vector<128x8xf32>
    %cst_117 = arith.constant 0.707106769 : f32
    %480 = vector.broadcast %cst_117 : f32 to vector<128x8xf32>
    %481 = arith.mulf %477, %480 : vector<128x8xf32>
    %482 = math.absf %481 : vector<128x8xf32>
    %cst_118 = arith.constant 0.327591091 : f32
    %483 = vector.broadcast %cst_118 : f32 to vector<128x8xf32>
    %484 = arith.mulf %483, %482 : vector<128x8xf32>
    %cst_119 = arith.constant 1.000000e+00 : f32
    %485 = vector.broadcast %cst_119 : f32 to vector<128x8xf32>
    %486 = arith.addf %485, %484 : vector<128x8xf32>
    %cst_120 = arith.constant 1.000000e+00 : f32
    %487 = vector.broadcast %cst_120 : f32 to vector<128x8xf32>
    %488 = arith.divf %487, %486 : vector<128x8xf32>
    %cst_121 = arith.constant 1.06140542 : f32
    %489 = vector.broadcast %cst_121 : f32 to vector<128x8xf32>
    %490 = arith.mulf %488, %489 : vector<128x8xf32>
    %cst_122 = arith.constant -1.45315206 : f32
    %491 = vector.broadcast %cst_122 : f32 to vector<128x8xf32>
    %492 = arith.addf %491, %490 : vector<128x8xf32>
    %493 = arith.mulf %488, %492 : vector<128x8xf32>
    %cst_123 = arith.constant 1.42141378 : f32
    %494 = vector.broadcast %cst_123 : f32 to vector<128x8xf32>
    %495 = arith.addf %494, %493 : vector<128x8xf32>
    %496 = arith.mulf %488, %495 : vector<128x8xf32>
    %cst_124 = arith.constant -0.284496725 : f32
    %497 = vector.broadcast %cst_124 : f32 to vector<128x8xf32>
    %498 = arith.addf %497, %496 : vector<128x8xf32>
    %499 = arith.mulf %488, %498 : vector<128x8xf32>
    %cst_125 = arith.constant 0.254829586 : f32
    %500 = vector.broadcast %cst_125 : f32 to vector<128x8xf32>
    %501 = arith.addf %500, %499 : vector<128x8xf32>
    %502 = arith.mulf %488, %501 : vector<128x8xf32>
    %cst_126 = arith.constant 0.000000e+00 : f32
    %503 = vector.broadcast %cst_126 : f32 to vector<128x8xf32>
    %504 = arith.subf %503, %482 : vector<128x8xf32>
    %505 = arith.mulf %504, %482 : vector<128x8xf32>
    %506 = math.exp %505 : vector<128x8xf32>
    %507 = arith.mulf %502, %506 : vector<128x8xf32>
    %cst_127 = arith.constant 1.000000e+00 : f32
    %508 = vector.broadcast %cst_127 : f32 to vector<128x8xf32>
    %509 = arith.subf %508, %507 : vector<128x8xf32>
    %cst_128 = arith.constant 0.000000e+00 : f32
    %510 = vector.broadcast %cst_128 : f32 to vector<128x8xf32>
    %511 = arith.cmpf oge, %481, %510 : vector<128x8xf32>
    %cst_129 = arith.constant 0.000000e+00 : f32
    %512 = vector.broadcast %cst_129 : f32 to vector<128x8xf32>
    %513 = arith.subf %512, %509 : vector<128x8xf32>
    %514 = arith.select %511, %509, %513 : vector<128x8xi1>, vector<128x8xf32>
    %cst_130 = arith.constant 1.000000e+00 : f32
    %515 = vector.broadcast %cst_130 : f32 to vector<128x8xf32>
    %516 = arith.addf %515, %514 : vector<128x8xf32>
    %517 = arith.mulf %479, %516 : vector<128x8xf32>
    %c0_131 = arith.constant 0 : index
    %c0_132 = arith.constant 0 : index
    %c0_133 = arith.constant 0 : index
    %518 = vector.load %arg15[%c0_131, %c0_132, %c0_133] : memref<1x8x128xf32, #tpu.memory_space<vmem>>, vector<1x8x128xf32>
    %519 = vector.shape_cast %518 : vector<1x8x128xf32> to vector<8x128xf32>
    %cst_134 = arith.constant dense<0.000000e+00> : vector<128x128xf32>
    %520 = tpu.matmul %517, %519, %cst_134 {dimension_numbers = #tpu.dot_dimension_numbers<[1], [0], [0], [1], [0, 0, 1, 1], [], []>} : vector<128x8xf32>, vector<8x128xf32>, vector<128x128xf32> -> vector<128x128xf32>
    %c0_135 = arith.constant 0 : index
    %c0_136 = arith.constant 0 : index
    %c0_137 = arith.constant 0 : index
    %521 = vector.load %arg16[%c0_135, %c0_136, %c0_137] : memref<1x1x128xf32, #tpu.memory_space<vmem>>, vector<1x1x128xf32>
    %522 = vector.shape_cast %521 : vector<1x1x128xf32> to vector<1x128xf32>
    %523 = vector.broadcast %522 : vector<1x128xf32> to vector<128x128xf32>
    %524 = arith.addf %520, %523 : vector<128x128xf32>
    %cst_138 = arith.constant 5.000000e-01 : f32
    %525 = vector.broadcast %cst_138 : f32 to vector<128x128xf32>
    %526 = arith.mulf %525, %524 : vector<128x128xf32>
    %cst_139 = arith.constant 0.707106769 : f32
    %527 = vector.broadcast %cst_139 : f32 to vector<128x128xf32>
    %528 = arith.mulf %524, %527 : vector<128x128xf32>
    %529 = math.absf %528 : vector<128x128xf32>
    %cst_140 = arith.constant 0.327591091 : f32
    %530 = vector.broadcast %cst_140 : f32 to vector<128x128xf32>
    %531 = arith.mulf %530, %529 : vector<128x128xf32>
    %cst_141 = arith.constant 1.000000e+00 : f32
    %532 = vector.broadcast %cst_141 : f32 to vector<128x128xf32>
    %533 = arith.addf %532, %531 : vector<128x128xf32>
    %cst_142 = arith.constant 1.000000e+00 : f32
    %534 = vector.broadcast %cst_142 : f32 to vector<128x128xf32>
    %535 = arith.divf %534, %533 : vector<128x128xf32>
    %cst_143 = arith.constant 1.06140542 : f32
    %536 = vector.broadcast %cst_143 : f32 to vector<128x128xf32>
    %537 = arith.mulf %535, %536 : vector<128x128xf32>
    %cst_144 = arith.constant -1.45315206 : f32
    %538 = vector.broadcast %cst_144 : f32 to vector<128x128xf32>
    %539 = arith.addf %538, %537 : vector<128x128xf32>
    %540 = arith.mulf %535, %539 : vector<128x128xf32>
    %cst_145 = arith.constant 1.42141378 : f32
    %541 = vector.broadcast %cst_145 : f32 to vector<128x128xf32>
    %542 = arith.addf %541, %540 : vector<128x128xf32>
    %543 = arith.mulf %535, %542 : vector<128x128xf32>
    %cst_146 = arith.constant -0.284496725 : f32
    %544 = vector.broadcast %cst_146 : f32 to vector<128x128xf32>
    %545 = arith.addf %544, %543 : vector<128x128xf32>
    %546 = arith.mulf %535, %545 : vector<128x128xf32>
    %cst_147 = arith.constant 0.254829586 : f32
    %547 = vector.broadcast %cst_147 : f32 to vector<128x128xf32>
    %548 = arith.addf %547, %546 : vector<128x128xf32>
    %549 = arith.mulf %535, %548 : vector<128x128xf32>
    %cst_148 = arith.constant 0.000000e+00 : f32
    %550 = vector.broadcast %cst_148 : f32 to vector<128x128xf32>
    %551 = arith.subf %550, %529 : vector<128x128xf32>
    %552 = arith.mulf %551, %529 : vector<128x128xf32>
    %553 = math.exp %552 : vector<128x128xf32>
    %554 = arith.mulf %549, %553 : vector<128x128xf32>
    %cst_149 = arith.constant 1.000000e+00 : f32
    %555 = vector.broadcast %cst_149 : f32 to vector<128x128xf32>
    %556 = arith.subf %555, %554 : vector<128x128xf32>
    %cst_150 = arith.constant 0.000000e+00 : f32
    %557 = vector.broadcast %cst_150 : f32 to vector<128x128xf32>
    %558 = arith.cmpf oge, %528, %557 : vector<128x128xf32>
    %cst_151 = arith.constant 0.000000e+00 : f32
    %559 = vector.broadcast %cst_151 : f32 to vector<128x128xf32>
    %560 = arith.subf %559, %556 : vector<128x128xf32>
    %561 = arith.select %558, %556, %560 : vector<128x128xi1>, vector<128x128xf32>
    %cst_152 = arith.constant 1.000000e+00 : f32
    %562 = vector.broadcast %cst_152 : f32 to vector<128x128xf32>
    %563 = arith.addf %562, %561 : vector<128x128xf32>
    %564 = arith.mulf %526, %563 : vector<128x128xf32>
    %565 = arith.index_cast %arg0 : i32 to index
    %c2_153 = arith.constant 2 : index
    %566 = memref.load %arg1[%565, %c2_153] : memref<2x4xf32, #tpu.memory_space<smem>>
    %567 = vector.broadcast %566 : f32 to vector<128x128xf32>
    %568 = arith.mulf %567, %564 : vector<128x128xf32>
    %569 = arith.index_cast %arg0 : i32 to index
    %c3 = arith.constant 3 : index
    %570 = memref.load %arg1[%569, %c3] : memref<2x4xf32, #tpu.memory_space<smem>>
    %571 = vector.broadcast %570 : f32 to vector<128x128xf32>
    %572 = arith.mulf %571, %470 : vector<128x128xf32>
    %573 = arith.addf %568, %572 : vector<128x128xf32>
    %c0_154 = arith.constant 0 : index
    %c0_155 = arith.constant 0 : index
    %c0_156 = arith.constant 0 : index
    %574 = vector.load %arg17[%c0_154, %c0_155, %c0_156] : memref<1x1x128xf32, #tpu.memory_space<vmem>>, vector<1x1x128xf32>
    %575 = vector.shape_cast %574 : vector<1x1x128xf32> to vector<1x128xf32>
    %c0_157 = arith.constant 0 : index
    %c0_158 = arith.constant 0 : index
    %c0_159 = arith.constant 0 : index
    %576 = vector.load %arg18[%c0_157, %c0_158, %c0_159] : memref<1x1x128xf32, #tpu.memory_space<vmem>>, vector<1x1x128xf32>
    %577 = vector.shape_cast %576 : vector<1x1x128xf32> to vector<1x128xf32>
    %cst_160 = arith.constant dense<0.000000e+00> : vector<128xf32>
    %578 = vector.multi_reduction <add>, %573, %cst_160 [0] : vector<128x128xf32> to vector<128xf32>
    %579 = vector.shape_cast %578 : vector<128xf32> to vector<1x128xf32>
    %580 = arith.mulf %573, %573 : vector<128x128xf32>
    %cst_161 = arith.constant dense<0.000000e+00> : vector<128xf32>
    %581 = vector.multi_reduction <add>, %580, %cst_161 [0] : vector<128x128xf32> to vector<128xf32>
    %582 = vector.shape_cast %581 : vector<128xf32> to vector<1x128xf32>
    %cst_162 = arith.constant 7.812500e-03 : f32
    %583 = vector.broadcast %cst_162 : f32 to vector<1x128xf32>
    %584 = arith.mulf %579, %583 : vector<1x128xf32>
    %cst_163 = arith.constant 7.812500e-03 : f32
    %585 = vector.broadcast %cst_163 : f32 to vector<1x128xf32>
    %586 = arith.mulf %582, %585 : vector<1x128xf32>
    %587 = arith.mulf %584, %584 : vector<1x128xf32>
    %588 = arith.subf %586, %587 : vector<1x128xf32>
    %589 = vector.broadcast %584 : vector<1x128xf32> to vector<128x128xf32>
    %590 = arith.subf %573, %589 : vector<128x128xf32>
    %cst_164 = arith.constant 9.99999974E-6 : f32
    %591 = vector.broadcast %cst_164 : f32 to vector<1x128xf32>
    %592 = arith.addf %588, %591 : vector<1x128xf32>
    %593 = math.rsqrt %592 : vector<1x128xf32>
    %594 = vector.broadcast %593 : vector<1x128xf32> to vector<128x128xf32>
    %595 = arith.mulf %590, %594 : vector<128x128xf32>
    %596 = vector.broadcast %575 : vector<1x128xf32> to vector<128x128xf32>
    %597 = arith.mulf %595, %596 : vector<128x128xf32>
    %598 = vector.broadcast %577 : vector<1x128xf32> to vector<128x128xf32>
    %599 = arith.addf %597, %598 : vector<128x128xf32>
    %c0_165 = arith.constant 0 : index
    %c0_166 = arith.constant 0 : index
    %600 = vector.load %arg20[%c0_165, %c0_166] : memref<128x128xf32, #tpu.memory_space<vmem>>, vector<128x128xf32>
    tpu.vector_store %arg20[%c0_165, %c0_166], %599 {strides = array<i32>} : memref<128x128xf32, #tpu.memory_space<vmem>>, vector<128x128xf32>,
    %c0_167 = arith.constant 0 : index
    %c0_168 = arith.constant 0 : index
    %601 = vector.load %arg19[%c0_167, %c0_168] : memref<128x128xf32, #tpu.memory_space<vmem>>, vector<128x128xf32>
    tpu.vector_store %arg19[%c0_167, %c0_168], %599 {strides = array<i32>} : memref<128x128xf32, #tpu.memory_space<vmem>>, vector<128x128xf32>,
    return
  }
  func.func @transform_0(%arg0: i32) -> (i32, i32) {
    %c0_i32 = arith.constant 0 : i32
    %c0_i32_0 = arith.constant 0 : i32
    %c0_i32_1 = arith.constant 0 : i32
    return %c0_i32, %c0_i32_0 : i32, i32
  }
  func.func @transform_1(%arg0: i32) -> (i32, i32) {
    %c0_i32 = arith.constant 0 : i32
    %c0_i32_0 = arith.constant 0 : i32
    %c0_i32_1 = arith.constant 0 : i32
    return %c0_i32, %c0_i32_0 : i32, i32
  }
  func.func @transform_2(%arg0: i32) -> (i32, i32) {
    %c0_i32 = arith.constant 0 : i32
    %c0_i32_0 = arith.constant 0 : i32
    %c0_i32_1 = arith.constant 0 : i32
    return %c0_i32, %c0_i32_0 : i32, i32
  }
  func.func @transform_3(%arg0: i32) -> (i32, i32) {
    %c0_i32 = arith.constant 0 : i32
    %c0_i32_0 = arith.constant 0 : i32
    %c0_i32_1 = arith.constant 0 : i32
    return %c0_i32, %c0_i32_0 : i32, i32
  }
  func.func @transform_4(%arg0: i32) -> (i32, i32) {
    %c0_i32 = arith.constant 0 : i32
    %c0_i32_0 = arith.constant 0 : i32
    %c0_i32_1 = arith.constant 0 : i32
    return %c0_i32, %c0_i32_0 : i32, i32
  }
  func.func @transform_5(%arg0: i32) -> (i32, i32) {
    %c0_i32 = arith.constant 0 : i32
    %c0_i32_0 = arith.constant 0 : i32
    %c0_i32_1 = arith.constant 0 : i32
    return %c0_i32, %c0_i32_0 : i32, i32
  }
  func.func @transform_6(%arg0: i32) -> (i32, i32) {
    %c0_i32 = arith.constant 0 : i32
    %c0_i32_0 = arith.constant 0 : i32
    %c0_i32_1 = arith.constant 0 : i32
    return %c0_i32, %c0_i32_0 : i32, i32
  }
  func.func @transform_7(%arg0: i32) -> (i32, i32, i32, i32) {
    %c0_i32 = arith.constant 0 : i32
    %c0_i32_0 = arith.constant 0 : i32
    %c0_i32_1 = arith.constant 0 : i32
    %c0_i32_2 = arith.constant 0 : i32
    return %arg0, %c0_i32, %c0_i32_0, %c0_i32_1 : i32, i32, i32, i32
  }
  func.func @transform_8(%arg0: i32) -> (i32, i32, i32, i32) {
    %c0_i32 = arith.constant 0 : i32
    %c0_i32_0 = arith.constant 0 : i32
    %c0_i32_1 = arith.constant 0 : i32
    %c0_i32_2 = arith.constant 0 : i32
    return %arg0, %c0_i32, %c0_i32_0, %c0_i32_1 : i32, i32, i32, i32
  }
  func.func @transform_9(%arg0: i32) -> (i32, i32, i32) {
    %c0_i32 = arith.constant 0 : i32
    %c0_i32_0 = arith.constant 0 : i32
    %c0_i32_1 = arith.constant 0 : i32
    return %arg0, %c0_i32, %c0_i32_0 : i32, i32, i32
  }
  func.func @transform_10(%arg0: i32) -> (i32, i32, i32) {
    %c0_i32 = arith.constant 0 : i32
    %c0_i32_0 = arith.constant 0 : i32
    %c0_i32_1 = arith.constant 0 : i32
    return %arg0, %c0_i32, %c0_i32_0 : i32, i32, i32
  }
  func.func @transform_11(%arg0: i32) -> (i32, i32, i32) {
    %c0_i32 = arith.constant 0 : i32
    %c0_i32_0 = arith.constant 0 : i32
    %c0_i32_1 = arith.constant 0 : i32
    return %arg0, %c0_i32, %c0_i32_0 : i32, i32, i32
  }
  func.func @transform_12(%arg0: i32) -> (i32, i32, i32) {
    %c0_i32 = arith.constant 0 : i32
    %c0_i32_0 = arith.constant 0 : i32
    %c0_i32_1 = arith.constant 0 : i32
    return %arg0, %c0_i32, %c0_i32_0 : i32, i32, i32
  }
  func.func @transform_13(%arg0: i32) -> (i32, i32, i32) {
    %c0_i32 = arith.constant 0 : i32
    %c0_i32_0 = arith.constant 0 : i32
    %c0_i32_1 = arith.constant 0 : i32
    return %arg0, %c0_i32, %c0_i32_0 : i32, i32, i32
  }
  func.func @transform_14(%arg0: i32) -> (i32, i32, i32) {
    %c0_i32 = arith.constant 0 : i32
    %c0_i32_0 = arith.constant 0 : i32
    %c0_i32_1 = arith.constant 0 : i32
    return %arg0, %c0_i32, %c0_i32_0 : i32, i32, i32
  }
  func.func @transform_15(%arg0: i32) -> (i32, i32, i32) {
    %c0_i32 = arith.constant 0 : i32
    %c0_i32_0 = arith.constant 0 : i32
    %c0_i32_1 = arith.constant 0 : i32
    return %arg0, %c0_i32, %c0_i32_0 : i32, i32, i32
  }
  func.func @transform_16(%arg0: i32) -> (i32, i32, i32) {
    %c0_i32 = arith.constant 0 : i32
    %c0_i32_0 = arith.constant 0 : i32
    %c0_i32_1 = arith.constant 0 : i32
    return %arg0, %c0_i32, %c0_i32_0 : i32, i32, i32
  }
  func.func @transform_17(%arg0: i32) -> (i32, i32, i32) {
    %c0_i32 = arith.constant 0 : i32
    %c0_i32_0 = arith.constant 0 : i32
    %c0_i32_1 = arith.constant 0 : i32
    return %arg0, %c0_i32, %c0_i32_0 : i32, i32, i32
  }
  func.func @transform_18(%arg0: i32) -> (i32, i32) {
    %c0_i32 = arith.constant 0 : i32
    %c0_i32_0 = arith.constant 0 : i32
    %c0_i32_1 = arith.constant 0 : i32
    return %c0_i32, %c0_i32_0 : i32, i32
  }
}

</mosaic_0001>

<bundles_post_ra>
// kernel: clformer_forward.1
= control target key start
LH: loop header
LB: loop body
LE: loop exit
PB: predicated region body
PF: predicated region fallthrough
CT: control target
= control target key end

     0   :  { %s13264_s0 = inlined_call_operand.vmem [shape: f32[2,4], index: 0, kind: input, shape index: {}]   ;;  %s13265_s1 = inlined_call_operand.vmem [shape: f32[128,32], index: 1, kind: input, shape index: {}]   ;;  %s13266_s2 = inlined_call_operand.vmem [shape: f32[32,128], index: 2, kind: input, shape index: {}]   ;;  %s13267_s3 = inlined_call_operand.vmem [shape: f32[1,128], index: 3, kind: input, shape index: {}]   ;;  %s13268_s4 = inlined_call_operand.vmem [shape: f32[1,128], index: 4, kind: input, shape index: {}]   ;;  %s13269_s5 = inlined_call_operand.vmem [shape: f32[1440,128], index: 5, kind: input, shape index: {}]   ;;  %s13270_s6 = inlined_call_operand.vmem [shape: f32[128,128], index: 6, kind: input, shape index: {}]   ;;  %s13271_s7 = inlined_call_operand.vmem [shape: f32[2,3,9,128], index: 7, kind: input, shape index: {}]   ;;  %s13272_s8 = inlined_call_operand.vmem [shape: f32[2,3,128,128], index: 8, kind: input, shape index: {}]   ;;  %s13273_s9 = inlined_call_operand.vmem [shape: f32[2,3,128], index: 9, kind: input, shape index: {}]   ;;  %s13274_s10 = inlined_call_operand.vmem [shape: f32[2,1,128], index: 10, kind: input, shape index: {}]   ;;  %s13275_s11 = inlined_call_operand.vmem [shape: f32[2,1,128], index: 11, kind: input, shape index: {}]   ;;  %s13276_s12 = inlined_call_operand.vmem [shape: f32[2,128,8], index: 12, kind: input, shape index: {}]   ;;  %s13277_s13 = inlined_call_operand.vmem [shape: f32[2,1,8], index: 13, kind: input, shape index: {}]   ;;  %s13278_s14 = inlined_call_operand.vmem [shape: f32[2,8,128], index: 14, kind: input, shape index: {}]   ;;  %s13279_s15 = inlined_call_operand.vmem [shape: f32[2,1,128], index: 15, kind: input, shape index: {}]   ;;  %s13280_s16 = inlined_call_operand.vmem [shape: f32[2,1,128], index: 16, kind: input, shape index: {}]   ;;  %s13281_s17 = inlined_call_operand.vmem [shape: f32[2,1,128], index: 17, kind: input, shape index: {}]   ;;  %s13282_s18 = inlined_call_operand.vmem [shape: f32[128,128], index: 18, kind: output, shape index: {}]  }
   0x1   :  { %13371 = sst [smem:[#allocation82_spill]] %s13264_s0 }
   0x2   :  { %13372 = sst [smem:[#allocation83_spill]] %s13265_s1 }
   0x3   :  { %13373 = sst [smem:[#allocation84_spill]] %s13266_s2 }
   0x4   :  { %13374 = sst [smem:[#allocation85_spill]] %s13268_s4 }
   0x5   :  { %13375 = sst [smem:[#allocation86_spill]] %s13269_s5 }
   0x6   :  { %13376 = sst [smem:[#allocation87_spill]] %s13270_s6 }
   0x7   :  { %13377 = sst [smem:[#allocation88_spill]] %s13271_s7 }
   0x8   :  { %13378 = sst [smem:[#allocation89_spill]] %s13273_s9 }
   0x9   :  { %13379 = sst [smem:[#allocation90_spill]] %s13282_s18 }
   0xa   :  { %23 = vsyncpa [#allocation4], 0  ;;  %s8986_s27 = smov 0  }
   0xb LB: > { %13380 = sst [smem:[#allocation6_spill]] %s8888_s27  ;;  %s8992_s28 = sadd.s32 4294967295, %s8888_s27   ;;  %s8888_s27 = sphi %s8986_s27, %s29_s27  }
   0xc   : > { %p7173_p0 = scmp.ge.s32.totalorder %s8888_s27, 1  ;;  %p488_p1 = scmp.lt.s32.totalorder %s8888_s27, 3 }
   0xd   : > { %s13381_s0 = sld [smem:[#allocation82_spill]]  ;;  %p8459_p4 = scmp.eq.s32.totalorder %s8992_s28, 0 }
   0xe   : > { %p9000_p3 = pnand %p7173_p0, %p488_p1 }
  0x10   : > { %p8455_p5 = pneg %p9000_p3 }
  0x12   : > { %p8456_p6 = pnand %p8459_p4, %p8455_p5 }
  0x13   : > { %s501_s19 = sshll.u32 %s13381_s0, 4  ;;  %s502_s19 = int_to_ptr.vmem [resolvable:$true] %s501_s19 }
  0x14   : > { %s8863_s20 = scalar_lea.vmem %s502_s19, 32  ;;  %p8865_p8 = pneg %p8456_p6 }
  0x15   : > { %p8864_p7 = scmp.ne.s32.totalorder %s502_s19, %s8863_s20  ;;  %p8871_p11 = scmp.lt.s32.totalorder %s502_s19, %s502_s19 }
  0x16   : > { %p8872_p12 = scmp.lt.s32.totalorder %s8863_s20, %s8863_s20 }
  0x17   : > { %p8866_p9 = pnand %p8865_p8, %p8864_p7 }
  0x18   : > { %p8873_p13 = por %p8872_p12, %p8871_p11 }
  0x19   : > { %p8867_p10 = pneg %p8866_p9 }
  0x1b   : > { %p8874_p2 = pnand %p8873_p13, %p8867_p10 }
  0x1d   : > { %8877 = shalt.err (!%p8874_p2)
}
  0x1e   : > { %s8890_s21 = smov [#allocation3]   ;;  %606 = sbr.rel (%p9000_p3) target bundleno = 2735 (0xaaf), region = 92 }
  0x1f   : > { %8458 = dma.vmem_to_smem (!%p8456_p6), %s502_s19, 32, %s8890_s21, [#allocation4]  }
  0x23   : > { %8883 = dma.done.wait (%p8459_p4), [#allocation4], 32  }
  0x24   : > { %8885 = vsyncadd (%p8459_p4), [#allocation4], 4294967264 }
  0x25   : > { %612 = sfence }
  0x26   : > { %p692_p0 = scmp.lt.s32.totalorder %s8992_s28, 1  ;;  %s13383_s9 = sld [smem:[#allocation89_spill]] }
  0x27   : > { %s13384_s7 = sld [smem:[#allocation88_spill]]  ;;  %p13385_p1 = scmp.ne.s32.totalorder %s8992_s28, 0 }
  0x28   : > { %s9017_s22 = scalar_select %p692_p0, %s8992_s28, 1 }
  0x2a   : > { %s8449_s2 = smul.u32 48, %s9017_s22  ;;  %s7180_s23 = sshll.u32 %s9017_s22, 2 }
  0x2b   : > { %s8450_s24 = smul.u32 384, %s9017_s22  ;;  %s7183_s1 = sshll.u32 %s9017_s22, 3 }
  0x2c   : > { %s9025_s29 = scalar_lea.vmem %s13383_s9, %s7180_s23  ;;  %s7295_s23 = sshll.u32 %s9017_s22, 7 }
  0x2d   : > { %s9030_s19 = scalar_lea.vmem %s13384_s7, %s8449_s2  ;;  %s9039_s6 = scalar_lea.vmem %s13272_s8, %s8450_s24 }
  0x2e   : > { %s9053_s7 = scalar_lea.vmem %s13276_s12, %s7295_s23  ;;  %s9059_s18 = scalar_lea.vmem %s13278_s14, %s7183_s1 }
  0x2f   : > { %s726_s4 = scalar_lea.vmem %s13279_s15, %s9017_s22  ;;  %736 = sbr.rel (%p13385_p1) target bundleno = 456 (0x1c8), region = 100 }
  0x34   : > { %s13386_s21 = sld [smem:[#allocation84_spill]]  ;;  %vm757_vm0 = vcmask 261120  }
  0x35   : > { %s13387_s24 = sld [smem:[#allocation83_spill]] }
  0x36   : > { %s13388_s26 = sld [smem:[#allocation85_spill]] }
  0x3a   : > { %v756_v0 = vld [vmem:[%s13386_s21 + $0x18] sm:$0xff]  ;;  %v755_v1 = vld [vmem:[%s13386_s21 + $0x10] sm:$0xff]  ;;  %v754_v3 = vld [vmem:[%s13386_s21 + $0x8] sm:$0xff] }
  0x3b   : > { %7717 = vmatprep.subr.mxu0 %v756_v0  ;;  %v737_v2 = vld [vmem:[%s13387_s24] sm:$0xff]  ;;  %8409 = vmatprep.subr.mxu1 %v756_v0  ;;  %v738_v5 = vld [vmem:[%s13387_s24 + $0x8] sm:$0xff]  ;;  %v739_v6 = vld [vmem:[%s13387_s24 + $0x10] sm:$0xff] }
  0x3c   : > { %7718 = vmatpush3.msra.mxu0 %v756_v0  ;;  %7725 = vmatprep.mubr.msk.f32.mxu0 %vm757_vm0, %v737_v2  ;;  %v753_v4 = vld [vmem:[%s13386_s21] sm:$0xff]  ;;  %v746_v8 = vld [vmem:[%s13387_s24 + $0x48] sm:$0xff]  ;;  %v747_v9 = vld [vmem:[%s13387_s24 + $0x50] sm:$0xff] }
  0x3d   : > { %7719 = vmatprep.subr.mxu0 %v755_v1  ;;  %8413 = vmatpush3.msra.mxu1 %v756_v0  ;;  %v745_v7 = vld [vmem:[%s13387_s24 + $0x40] sm:$0xff]  ;;  %v740_v10 = vld [vmem:[%s13387_s24 + $0x18] sm:$0xff]  ;;  %v742_v14 = vld [vmem:[%s13387_s24 + $0x28] sm:$0xff] }
  0x3e   : > { %7720 = vmatpush3.msra.mxu0 %v755_v1  ;;  %8410 = vmatprep.subr.mxu1 %v755_v1  ;;  %v741_v11 = vld [vmem:[%s13387_s24 + $0x20] sm:$0xff]  ;;  %v748_v12 = vld [vmem:[%s13387_s24 + $0x58] sm:$0xff]  ;;  %v743_v15 = vld [vmem:[%s13387_s24 + $0x30] sm:$0xff] }
  0x3f   : > { %7721 = vmatprep.subr.mxu0 %v754_v3  ;;  %8414 = vmatpush3.msra.mxu1 %v755_v1  ;;  %v749_v13 = vld [vmem:[%s13387_s24 + $0x60] sm:$0xff]  ;;  %v750_v16 = vld [vmem:[%s13387_s24 + $0x68] sm:$0xff]  ;;  %v751_v17 = vld [vmem:[%s13387_s24 + $0x70] sm:$0xff] }
  0x40   : > { %7722 = vmatpush3.msra.mxu0 %v754_v3  ;;  %8411 = vmatprep.subr.mxu1 %v754_v3  ;;  %v744_v18 = vld [vmem:[%s13387_s24 + $0x38] sm:$0xff] }
  0x41   : > { %7723 = vmatprep.subr.mxu0 %v753_v4  ;;  %8415 = vmatpush3.msra.mxu1 %v754_v3  ;;  %v752_v19 = vld [vmem:[%s13387_s24 + $0x78] sm:$0xff] }
  0x42   : > { %7724 = vmatpush3.msra.mxu0 %v753_v4  ;;  %8412 = vmatprep.subr.mxu1 %v753_v4 }
  0x43   : > { %7726 = vmatmul.mubr.msk.f32.vlgmr.msra.gmra.mxu0 %vm757_vm0, %v738_v5  ;;  %8416 = vmatpush3.msra.mxu1 %v753_v4 }
  0x44   : > { %7728 = vmatprep.mubr.msk.f32.mxu0 %vm757_vm0, %v739_v6  ;;  %7737 = vmatprep.mubr.msk.f32.mxu1 %vm757_vm0, %v745_v7 }
  0x45   : > { %7738 = vmatmul.mubr.msk.f32.vlgmr.msra.gmra.mxu1 %vm757_vm0, %v746_v8 }
  0x46   : > { %7740 = vmatprep.mubr.msk.f32.mxu1 %vm757_vm0, %v747_v9 }
  0x47   : > { %7729 = vmatmul.mubr.msk.f32.gmra.mxu0 %vm757_vm0, %v740_v10 }
  0x48   : > { %7731 = vmatprep.mubr.msk.f32.mxu0 %vm757_vm0, %v741_v11 }
  0x49   : > { %7741 = vmatmul.mubr.msk.f32.gmra.mxu1 %vm757_vm0, %v748_v12 }
  0x4a   : > { %7743 = vmatprep.mubr.msk.f32.mxu1 %vm757_vm0, %v749_v13 }
  0x4b   : > { %7732 = vmatmul.mubr.msk.f32.gmra.mxu0 %vm757_vm0, %v742_v14 }
  0x4c   : > { %7734 = vmatprep.mubr.msk.f32.mxu0 %vm757_vm0, %v743_v15 }
  0x4d   : > { %7744 = vmatmul.mubr.msk.f32.gmra.mxu1 %vm757_vm0, %v750_v16 }
  0x4e   : > { %7746 = vmatprep.mubr.msk.f32.mxu1 %vm757_vm0, %v751_v17 }
  0x4f   : > { %7735 = vmatmul.mubr.msk.f32.gmra.mxu0 %vm757_vm0, %v744_v18 }
  0x51   : > { %7747 = vmatmul.mubr.msk.f32.gmra.mxu1 %vm757_vm0, %v752_v19 }
 0x103   : > { %v9151_v20 = vpop.f32.mrf.mxu0 }
 0x104   : > { %v975_v26 = vmul.f32 %v9151_v20, %v9151_v20 }
 0x105   : > { %v9153_v21 = vpop.f32.mrf.mxu0  ;;  %v9155_v22 = vpop.f32.mrf.mxu1 }
 0x106   : > { %v974_v23 = vmul.f32 %v9153_v21, %v9153_v21  ;;  %v953_v27 = vadd.f32 %v9151_v20, %v9153_v21  ;;  %v983_v58 = vmul.f32 %v9155_v22, %v9155_v22 }
 0x107   : > { %v9159_v24 = vpop.f32.mrf.mxu0  ;;  %v9161_v25 = vpop.f32.mrf.mxu1 }
 0x108   : > { %v990_v29 = vadd.f32 %v975_v26, %v974_v23  ;;  %v977_v34 = vmul.f32 %v9159_v24, %v9159_v24  ;;  %v982_v56 = vmul.f32 %v9161_v25, %v9161_v25 }
 0x109   : > { %v9167_v28 = vpop.f32.mrf.mxu0  ;;  %v9174_v33 = vpop.f32.mrf.mxu1 }
 0x10a   : > { %v954_v30 = vadd.f32 %v953_v27, %v9167_v28  ;;  %v976_v31 = vmul.f32 %v9167_v28, %v9167_v28  ;;  %v985_v1 = vmul.f32 %v9174_v33, %v9174_v33 }
 0x10b   : > { %v9172_v32 = vpop.f32.mrf.mxu0  ;;  %v9186_v42 = vpop.f32.mrf.mxu1 }
 0x10c   : > { %v991_v35 = vadd.f32 %v990_v29, %v976_v31  ;;  %v955_v36 = vadd.f32 %v9159_v24, %v954_v30  ;;  %v979_v43 = vmul.f32 %v9172_v32, %v9172_v32  ;;  %v984_v62 = vmul.f32 %v9186_v42, %v9186_v42 }
 0x10d   : > { %v9179_v37 = vpop.f32.mrf.mxu0  ;;  %v9196_v50 = vpop.f32.mrf.mxu1 }
 0x10e   : > { %v956_v38 = vadd.f32 %v955_v36, %v9179_v37  ;;  %v978_v39 = vmul.f32 %v9179_v37, %v9179_v37  ;;  %v992_v40 = vadd.f32 %v991_v35, %v977_v34  ;;  %v987_v8 = vmul.f32 %v9196_v50, %v9196_v50 }
 0x10f   : > { %v9184_v41 = vpop.f32.mrf.mxu0  ;;  %v9204_v57 = vpop.f32.mrf.mxu1 }
 0x110   : > { %v993_v44 = vadd.f32 %v992_v40, %v978_v39  ;;  %v957_v45 = vadd.f32 %v9172_v32, %v956_v38  ;;  %v981_v51 = vmul.f32 %v9184_v41, %v9184_v41  ;;  %v986_v5 = vmul.f32 %v9204_v57, %v9204_v57 }
 0x111   : > { %v9191_v46 = vpop.f32.mrf.mxu0  ;;  %v9212_v0 = vpop.f32.mrf.mxu1 }
 0x112   : > { %v958_v47 = vadd.f32 %v957_v45, %v9191_v46  ;;  %v980_v48 = vmul.f32 %v9191_v46, %v9191_v46  ;;  %v994_v49 = vadd.f32 %v993_v44, %v979_v43  ;;  %v989_v14 = vmul.f32 %v9212_v0, %v9212_v0 }
 0x113   : > { %v9220_v7 = vpop.f32.mrf.mxu1 }
 0x114   : > { %v959_v52 = vadd.f32 %v9184_v41, %v958_v47  ;;  %v995_v53 = vadd.f32 %v994_v49, %v980_v48  ;;  %v988_v12 = vmul.f32 %v9220_v7, %v9220_v7 }
 0x116   : > { %v996_v54 = vadd.f32 %v995_v53, %v981_v51  ;;  %v960_v55 = vadd.f32 %v959_v52, %v9161_v25 }
 0x118   : > { %v997_v59 = vadd.f32 %v996_v54, %v982_v56  ;;  %v961_v60 = vadd.f32 %v9155_v22, %v960_v55 }
 0x11a   : > { %v962_v61 = vadd.f32 %v961_v60, %v9186_v42  ;;  %v998_v63 = vadd.f32 %v997_v59, %v983_v58 }
 0x11c   : > { %v999_v2 = vadd.f32 %v998_v63, %v984_v62  ;;  %v963_v3 = vadd.f32 %v9174_v33, %v962_v61 }
 0x11e   : > { %v964_v4 = vadd.f32 %v963_v3, %v9204_v57  ;;  %v1000_v6 = vadd.f32 %v999_v2, %v985_v1 }
 0x120   : > { %v1001_v9 = vadd.f32 %v1000_v6, %v986_v5  ;;  %v965_v10 = vadd.f32 %v9196_v50, %v964_v4  ;;  %v7202_v5 = vld [vmem:[%s13388_s26] ss:$0 sm:$0xff] }
 0x122   : > { %v966_v11 = vadd.f32 %v965_v10, %v9220_v7  ;;  %v1002_v13 = vadd.f32 %v1001_v9, %v987_v8 }
 0x124   : > { %v967_v15 = vadd.f32 %v9212_v0, %v966_v11  ;;  %v1003_v16 = vadd.f32 %v1002_v13, %v988_v12 }
 0x126   : > { %v968_v17 = vrot.slane %v967_v15, 4  ;;  %v1004_v18 = vadd.f32 %v1003_v16, %v989_v14 }
 0x128   : > { %v969_v19 = vadd.f32 %v968_v17, %v967_v15  ;;  %v1005_v23 = vrot.slane %v1004_v18, 4 }
 0x12a   : > { %v970_v26 = vrot.slane %v969_v19, 2  ;;  %v1006_v27 = vadd.f32 %v1005_v23, %v1004_v18 }
 0x12c   : > { %v971_v29 = vadd.f32 %v970_v26, %v969_v19  ;;  %v1007_v30 = vrot.slane %v1006_v27, 2 }
 0x12e   : > { %v972_v31 = vrot.slane %v971_v29, 1  ;;  %v1008_v34 = vadd.f32 %v1007_v30, %v1006_v27 }
 0x130   : > { %v973_v35 = vadd.f32 %v972_v31, %v971_v29  ;;  %v1009_v36 = vrot.slane %v1008_v34, 1 }
 0x132   : > { %v1010_v38 = vadd.f32 %v1009_v36, %v1008_v34  ;;  %v1011_v39 = vmul.f32 0.0078125, %v973_v35 }
 0x134   : > { %v1012_v40 = vmul.f32 0.0078125, %v1010_v38  ;;  %v1013_v43 = vmul.f32 %v1011_v39, %v1011_v39  ;;  %v1015_v48 = vsub.f32 %v9153_v21, %v1011_v39  ;;  %v1016_v49 = vsub.f32 %v9151_v20, %v1011_v39 }
 0x135   : > { %v1017_v51 = vsub.f32 %v9167_v28, %v1011_v39  ;;  %v1018_v52 = vsub.f32 %v9159_v24, %v1011_v39  ;;  %v1019_v53 = vsub.f32 %v9179_v37, %v1011_v39  ;;  %v1020_v54 = vsub.f32 %v9172_v32, %v1011_v39  ;;  %v7201_v32 = vld [vmem:[%s13267_s3] ss:$0 sm:$0xff] }
 0x136   : > { %v1014_v44 = vsub.f32 %v1012_v40, %v1013_v43  ;;  %v1021_v55 = vsub.f32 %v9191_v46, %v1011_v39  ;;  %v1022_v56 = vsub.f32 %v9184_v41, %v1011_v39  ;;  %v1023_v58 = vsub.f32 %v9161_v25, %v1011_v39 }
 0x137   : > { %v1024_v59 = vsub.f32 %v9155_v22, %v1011_v39  ;;  %v1025_v21 = vsub.f32 %v9186_v42, %v1011_v39  ;;  %v1026_v20 = vsub.f32 %v9174_v33, %v1011_v39  ;;  %v1027_v28 = vsub.f32 %v9204_v57, %v1011_v39 }
 0x138   : > { %v1031_v45 = vadd.f32 1e-05, %v1014_v44  ;;  %v1028_v24 = vsub.f32 %v9196_v50, %v1011_v39  ;;  %v1029_v57 = vsub.f32 %v9220_v7, %v1011_v39  ;;  %v1030_v50 = vsub.f32 %v9212_v0, %v1011_v39 }
 0x13a   : > { %8471 = vrsqrt.f32 %v1031_v45 }
 0x147   : > { %v8472_v47 = vpop.eup %8471 }
 0x148   : > { %v1033_v60 = vmul.f32 %v8472_v47, %v1015_v48  ;;  %v1034_v37 = vmul.f32 %v8472_v47, %v1016_v49  ;;  %v1035_v46 = vmul.f32 %v8472_v47, %v1017_v51  ;;  %v1036_v41 = vmul.f32 %v8472_v47, %v1018_v52 }
 0x149   : > { %v1037_v61 = vmul.f32 %v8472_v47, %v1019_v53  ;;  %v1038_v25 = vmul.f32 %v8472_v47, %v1020_v54  ;;  %v1039_v62 = vmul.f32 %v8472_v47, %v1021_v55  ;;  %v1040_v22 = vmul.f32 %v8472_v47, %v1022_v56 }
 0x14a   : > { %v1041_v63 = vmul.f32 %v8472_v47, %v1023_v58  ;;  %v1042_v42 = vmul.f32 %v8472_v47, %v1024_v59  ;;  %v1043_v1 = vmul.f32 %v8472_v47, %v1025_v21  ;;  %v1044_v33 = vmul.f32 %v8472_v47, %v1026_v20 }
 0x14b   : > { %v1045_v2 = vmul.f32 %v8472_v47, %v1027_v28  ;;  %v1046_v3 = vmul.f32 %v8472_v47, %v1028_v24  ;;  %v1055_v4 = vmul.f32 %v7201_v32, %v1033_v60  ;;  %v1056_v6 = vmul.f32 %v7201_v32, %v1034_v37 }
 0x14c   : > { %v1057_v8 = vmul.f32 %v7201_v32, %v1035_v46  ;;  %v1058_v9 = vmul.f32 %v7201_v32, %v1036_v41  ;;  %v1059_v10 = vmul.f32 %v7201_v32, %v1037_v61  ;;  %v1060_v11 = vmul.f32 %v7201_v32, %v1038_v25 }
 0x14d   : > { %v1061_v12 = vmul.f32 %v7201_v32, %v1039_v62  ;;  %v1062_v13 = vmul.f32 %v7201_v32, %v1040_v22  ;;  %v1063_v14 = vmul.f32 %v7201_v32, %v1041_v63  ;;  %v1064_v15 = vmul.f32 %v7201_v32, %v1042_v42 }
 0x14e   : > { %v1065_v16 = vmul.f32 %v7201_v32, %v1043_v1  ;;  %v1066_v17 = vmul.f32 %v7201_v32, %v1044_v33  ;;  %v1067_v7 = vmul.f32 %v7201_v32, %v1045_v2  ;;  %v1047_v18 = vmul.f32 %v8472_v47, %v1029_v57 }
 0x14f   : > { %v1048_v0 = vmul.f32 %v8472_v47, %v1030_v50  ;;  %v1068_v19 = vmul.f32 %v7201_v32, %v1046_v3  ;;  %v1077_v23 = vadd.f32 %v7202_v5, %v1055_v4  ;;  %v1078_v26 = vadd.f32 %v7202_v5, %v1056_v6 }
 0x150   : > { %v1079_v27 = vadd.f32 %v7202_v5, %v1057_v8  ;;  %v1080_v29 = vadd.f32 %v7202_v5, %v1058_v9  ;;  %v1081_v30 = vadd.f32 %v7202_v5, %v1059_v10  ;;  %v1082_v31 = vadd.f32 %v7202_v5, %v1060_v11 }
 0x151   : > { %v1083_v34 = vadd.f32 %v7202_v5, %v1061_v12  ;;  %v1084_v35 = vadd.f32 %v7202_v5, %v1062_v13  ;;  %v1085_v36 = vadd.f32 %v7202_v5, %v1063_v14  ;;  %v1086_v38 = vadd.f32 %v7202_v5, %v1064_v15 }
 0x152   : > { %v1087_v39 = vadd.f32 %v7202_v5, %v1065_v16  ;;  %v1088_v40 = vadd.f32 %v7202_v5, %v1066_v17  ;;  %v1089_v43 = vadd.f32 %v7202_v5, %v1067_v7  ;;  %v1069_v44 = vmul.f32 %v7201_v32, %v1047_v18 }
 0x153   : > { %v1070_v45 = vmul.f32 %v7201_v32, %v1048_v0  ;;  %v1090_v48 = vadd.f32 %v7202_v5, %v1068_v19  ;;  %v9253_v49 = vmul.f32 0.5, %v1077_v23  ;;  %v9255_v47 = vmul.f32 0.5, %v1078_v26 }
 0x154   : > { %v9257_v51 = vmul.f32 0.5, %v1079_v27  ;;  %v9259_v52 = vmul.f32 0.5, %v1080_v29  ;;  %v9261_v53 = vmul.f32 0.5, %v1081_v30  ;;  %v9263_v54 = vmul.f32 0.5, %v1082_v31 }
 0x155   : > { %13389 = vst [vmem:[#allocation7_spill] sm:$0xff] %v9253_v49  ;;  %13390 = vst [vmem:[#allocation8_spill] sm:$0xff] %v9255_v47  ;;  %v9265_v55 = vmul.f32 0.5, %v1083_v34  ;;  %v9267_v56 = vmul.f32 0.5, %v1084_v35  ;;  %v9269_v58 = vmul.f32 0.5, %v1085_v36  ;;  %v9271_v59 = vmul.f32 0.5, %v1086_v38 }
 0x156   : > { %13391 = vst [vmem:[#allocation9_spill] sm:$0xff] %v9257_v51  ;;  %13392 = vst [vmem:[#allocation10_spill] sm:$0xff] %v9259_v52  ;;  %v9273_v21 = vmul.f32 0.5, %v1087_v39  ;;  %v9275_v20 = vmul.f32 0.5, %v1088_v40  ;;  %v9277_v28 = vmul.f32 0.5, %v1089_v43  ;;  %v1091_v24 = vadd.f32 %v7202_v5, %v1069_v44 }
 0x157   : > { %13393 = vst [vmem:[#allocation11_spill] sm:$0xff] %v9261_v53  ;;  %13394 = vst [vmem:[#allocation12_spill] sm:$0xff] %v9263_v54  ;;  %v9279_v60 = vmul.f32 0.70710677, %v1077_v23  ;;  %v9281_v32 = vmul.f32 0.70710677, %v1078_v26  ;;  %v1092_v46 = vadd.f32 %v7202_v5, %v1070_v45 }
 0x158   : > { %13395 = vst [vmem:[#allocation13_spill] sm:$0xff] %v9265_v55  ;;  %13396 = vst [vmem:[#allocation14_spill] sm:$0xff] %v9267_v56  ;;  %v9283_v37 = vmul.f32 0.70710677, %v1079_v27  ;;  %v9285_v41 = vmul.f32 0.70710677, %v1080_v29 }
 0x159   : > { %13397 = vst [vmem:[#allocation15_spill] sm:$0xff] %v9269_v58  ;;  %13398 = vst [vmem:[#allocation16_spill] sm:$0xff] %v9271_v59  ;;  %v9287_v61 = vmul.f32 0.70710677, %v1081_v30  ;;  %v9289_v25 = vmul.f32 0.70710677, %v1082_v31 }
 0x15a   : > { %13399 = vst [vmem:[#allocation17_spill] sm:$0xff] %v9273_v21  ;;  %13400 = vst [vmem:[#allocation18_spill] sm:$0xff] %v9275_v20  ;;  %v9291_v62 = vmul.f32 0.70710677, %v1083_v34  ;;  %v9293_v22 = vmul.f32 0.70710677, %v1084_v35 }
 0x15b   : > { %13401 = vst [vmem:[#allocation19_spill] sm:$0xff] %v9277_v28  ;;  %13402 = vst [vmem:[#allocation20_spill] sm:$0xff] %v9281_v32  ;;  %v9295_v63 = vmul.f32 0.70710677, %v1085_v36  ;;  %v9297_v42 = vmul.f32 0.70710677, %v1086_v38 }
 0x15c   : > { %13403 = vst [vmem:[#allocation21_spill] sm:$0xff] %v9283_v37  ;;  %13404 = vst [vmem:[#allocation22_spill] sm:$0xff] %v9285_v41  ;;  %v9299_v1 = vmul.f32 0.70710677, %v1087_v39  ;;  %v9301_v33 = vmul.f32 0.70710677, %v1088_v40 }
 0x15d   : > { %13405 = vst [vmem:[#allocation23_spill] sm:$0xff] %v9287_v61  ;;  %13406 = vst [vmem:[#allocation24_spill] sm:$0xff] %v9289_v25  ;;  %v9303_v2 = vmul.f32 0.70710677, %v1089_v43  ;;  %v9305_v57 = vmul.f32 0.70710677, %v1090_v48 }
 0x15e   : > { %13407 = vst [vmem:[#allocation25_spill] sm:$0xff] %v9291_v62  ;;  %13408 = vst [vmem:[#allocation26_spill] sm:$0xff] %v9293_v22  ;;  %v9307_v50 = vmul.f32 0.70710677, %v1091_v24  ;;  %v9309_v3 = vmul.f32 0.70710677, %v1092_v46 }
 0x15f   : > { %13409 = vst [vmem:[#allocation27_spill] sm:$0xff] %v9295_v63  ;;  %13410 = vst [vmem:[#allocation28_spill] sm:$0xff] %v9297_v42  ;;  %v9312_v4 = vand.u32 2147483647, %v9279_v60  ;;  %v9315_v5 = vand.u32 2147483647, %v9281_v32 }
 0x160   : > { %13411 = vst [vmem:[#allocation29_spill] sm:$0xff] %v9299_v1  ;;  %13412 = vst [vmem:[#allocation30_spill] sm:$0xff] %v9301_v33  ;;  %v9318_v6 = vand.u32 2147483647, %v9283_v37  ;;  %v9321_v8 = vand.u32 2147483647, %v9285_v41 }
 0x161   : > { %13413 = vst [vmem:[#allocation31_spill] sm:$0xff] %v9303_v2  ;;  %13414 = vst [vmem:[#allocation32_spill] sm:$0xff] %v9305_v57  ;;  %v9324_v9 = vand.u32 2147483647, %v9287_v61  ;;  %v9327_v10 = vand.u32 2147483647, %v9289_v25 }
 0x162   : > { %13415 = vst [vmem:[#allocation33_spill] sm:$0xff] %v9307_v50  ;;  %13416 = vst [vmem:[#allocation34_spill] sm:$0xff] %v9309_v3  ;;  %v9330_v11 = vand.u32 2147483647, %v9291_v62  ;;  %v9333_v12 = vand.u32 2147483647, %v9293_v22 }
 0x163   : > { %v9336_v13 = vand.u32 2147483647, %v9295_v63  ;;  %v9339_v14 = vand.u32 2147483647, %v9297_v42  ;;  %v9342_v15 = vand.u32 2147483647, %v9299_v1 }
 0x164   : > { %v9345_v16 = vand.u32 2147483647, %v9301_v33  ;;  %v9348_v17 = vand.u32 2147483647, %v9303_v2  ;;  %v9351_v7 = vand.u32 2147483647, %v9305_v57 }
 0x165   : > { %v9354_v18 = vand.u32 2147483647, %v9307_v50  ;;  %v9357_v0 = vand.u32 2147483647, %v9309_v3  ;;  %v1141_v19 = vmul.f32 0.3275911, %v9312_v4 }
 0x166   : > { %v1142_v23 = vmul.f32 0.3275911, %v9315_v5  ;;  %v1143_v26 = vmul.f32 0.3275911, %v9318_v6  ;;  %v1144_v27 = vmul.f32 0.3275911, %v9321_v8 }
 0x167   : > { %v1145_v29 = vmul.f32 0.3275911, %v9324_v9  ;;  %v1146_v30 = vmul.f32 0.3275911, %v9327_v10  ;;  %v1147_v31 = vmul.f32 0.3275911, %v9330_v11 }
 0x168   : > { %v1148_v34 = vmul.f32 0.3275911, %v9333_v12  ;;  %v1149_v35 = vmul.f32 0.3275911, %v9336_v13  ;;  %v1150_v36 = vmul.f32 0.3275911, %v9339_v14 }
 0x169   : > { %v9369_v38 = vmul.f32 0.5, %v1090_v48  ;;  %v1151_v39 = vmul.f32 0.3275911, %v9342_v15  ;;  %v1152_v40 = vmul.f32 0.3275911, %v9345_v16  ;;  %v1157_v43 = vadd.f32 1.0, %v1141_v19 }
 0x16a   : > { %v9373_v44 = vmul.f32 0.5, %v1091_v24  ;;  %v1153_v45 = vmul.f32 0.3275911, %v9348_v17  ;;  %v1154_v28 = vmul.f32 0.3275911, %v9351_v7  ;;  %v1158_v20 = vadd.f32 1.0, %v1142_v23 }
 0x16b   : > { %13417 = vst [vmem:[#allocation35_spill] sm:$0xff] %v9369_v38  ;;  %v9377_v21 = vmul.f32 0.5, %v1092_v46  ;;  %v1155_v59 = vmul.f32 0.3275911, %v9354_v18  ;;  %v1156_v58 = vmul.f32 0.3275911, %v9357_v0  ;;  %8473 = vrcp.f32 %v1157_v43 }
 0x16c   : > { %13418 = vst [vmem:[#allocation36_spill] sm:$0xff] %v9373_v44  ;;  %v1159_v48 = vadd.f32 1.0, %v1143_v26  ;;  %v1160_v38 = vadd.f32 1.0, %v1144_v27  ;;  %v1161_v56 = vadd.f32 1.0, %v1145_v29  ;;  %v1162_v55 = vadd.f32 1.0, %v1146_v30 }
 0x16d   : > { %13419 = vst [vmem:[#allocation37_spill] sm:$0xff] %v9377_v21  ;;  %v1163_v3 = vadd.f32 1.0, %v1147_v31  ;;  %v1164_v50 = vadd.f32 1.0, %v1148_v34  ;;  %v1165_v19 = vadd.f32 1.0, %v1149_v35  ;;  %v1166_v24 = vadd.f32 1.0, %v1150_v36 }
 0x16e   : > { %v1167_v44 = vadd.f32 1.0, %v1151_v39  ;;  %v1168_v57 = vadd.f32 1.0, %v1152_v40  ;;  %v1169_v54 = vadd.f32 1.0, %v1153_v45  ;;  %8475 = vrcp.f32 %v1158_v20 }
 0x16f   : > { %v1170_v23 = vadd.f32 1.0, %v1154_v28  ;;  %v1171_v46 = vadd.f32 1.0, %v1155_v59  ;;  %v1172_v21 = vadd.f32 1.0, %v1156_v58  ;;  %8477 = vrcp.f32 %v1159_v48 }
 0x170   : > { %8479 = vrcp.f32 %v1160_v38  ;;  %v1349_v53 = vsub.f32 0.0, %v9312_v4  ;;  %v1350_v26 = vsub.f32 0.0, %v9315_v5  ;;  %v1351_v27 = vsub.f32 0.0, %v9318_v6 }
 0x171   : > { %8481 = vrcp.f32 %v1161_v56  ;;  %v1352_v29 = vsub.f32 0.0, %v9321_v8  ;;  %v1353_v30 = vsub.f32 0.0, %v9324_v9  ;;  %v1354_v31 = vsub.f32 0.0, %v9327_v10 }
 0x172   : > { %8483 = vrcp.f32 %v1162_v55  ;;  %v1355_v20 = vsub.f32 0.0, %v9330_v11  ;;  %v1356_v58 = vsub.f32 0.0, %v9333_v12  ;;  %v1357_v59 = vsub.f32 0.0, %v9336_v13 }
 0x173   : > { %8485 = vrcp.f32 %v1163_v3  ;;  %v1358_v28 = vsub.f32 0.0, %v9339_v14  ;;  %v1359_v34 = vsub.f32 0.0, %v9342_v15  ;;  %v1360_v56 = vsub.f32 0.0, %v9345_v16 }
 0x174   : > { %8487 = vrcp.f32 %v1164_v50  ;;  %v1361_v35 = vsub.f32 0.0, %v9348_v17  ;;  %v1362_v36 = vsub.f32 0.0, %v9351_v7  ;;  %v1363_v55 = vsub.f32 0.0, %v9354_v18 }
 0x175   : > { %8489 = vrcp.f32 %v1165_v19  ;;  %v1364_v38 = vsub.f32 0.0, %v9357_v0  ;;  %v1365_v39 = vmul.f32 %v1349_v53, %v9312_v4  ;;  %v1366_v3 = vmul.f32 %v1350_v26, %v9315_v5 }
 0x176   : > { %8491 = vrcp.f32 %v1166_v24  ;;  %v1367_v40 = vmul.f32 %v1351_v27, %v9318_v6  ;;  %v1368_v43 = vmul.f32 %v1352_v29, %v9321_v8  ;;  %v1369_v50 = vmul.f32 %v1353_v30, %v9324_v9 }
 0x177   : > { %8493 = vrcp.f32 %v1167_v44  ;;  %v1370_v45 = vmul.f32 %v1354_v31, %v9327_v10  ;;  %v1371_v48 = vmul.f32 %v1355_v20, %v9330_v11  ;;  %v1372_v19 = vmul.f32 %v1356_v58, %v9333_v12 }
 0x178   : > { %8495 = vrcp.f32 %v1168_v57  ;;  %v1373_v2 = vmul.f32 %v1357_v59, %v9336_v13  ;;  %v1374_v53 = vmul.f32 %v1358_v28, %v9339_v14  ;;  %v1375_v4 = vmul.f32 %v1359_v34, %v9342_v15  ;;  %v9411_v9 = vpop.eup %8473 }
 0x179   : > { %8497 = vrcp.f32 %v1169_v54  ;;  %v1376_v5 = vmul.f32 %v1360_v56, %v9345_v16  ;;  %v1377_v6 = vmul.f32 %v1361_v35, %v9348_v17  ;;  %v1378_v8 = vmul.f32 %v1362_v36, %v9351_v7 }
 0x17a   : > { %8499 = vrcp.f32 %v1170_v23  ;;  %v1381_v10 = vmul.f32 1.442695, %v1365_v39  ;;  %v1383_v11 = vmul.f32 1.442695, %v1366_v3  ;;  %v1385_v12 = vmul.f32 1.442695, %v1367_v40 }
 0x17b   : > { %v9413_v57 = vpop.eup %8475  ;;  %8501 = vrcp.f32 %v1171_v46  ;;  %v1205_v13 = vmul.f32 1.0614054, %v9411_v9  ;;  %v1387_v14 = vmul.f32 1.442695, %v1368_v43  ;;  %v9416_v15 = vmul.f32 1.442695, %v1369_v50 }
 0x17c   : > { %v9418_v54 = vpop.eup %8477  ;;  %8503 = vrcp.f32 %v1172_v21  ;;  %v1206_v16 = vmul.f32 1.0614054, %v9413_v57  ;;  %v9421_v17 = vmul.f32 1.442695, %v1370_v45  ;;  %v9423_v7 = vmul.f32 1.442695, %v1371_v48 }
 0x17d   : > { %v9425_v44 = vpop.eup %8479  ;;  %v1207_v24 = vmul.f32 1.0614054, %v9418_v54  ;;  %v1221_v23 = vadd.f32 -1.4531521, %v1205_v13  ;;  %v1379_v46 = vmul.f32 %v1363_v55, %v9354_v18  ;;  %v9429_v26 = vmul.f32 1.442695, %v1372_v19 }
 0x17e   : > { %v9431_v27 = vpop.eup %8481  ;;  %v1222_v29 = vadd.f32 -1.4531521, %v1206_v16  ;;  %v1380_v21 = vmul.f32 %v1364_v38, %v9357_v0  ;;  %v9434_v30 = vmul.f32 1.442695, %v1373_v2  ;;  %v9436_v31 = vmul.f32 1.442695, %v1374_v53 }
 0x17f   : > { %v9438_v20 = vpop.eup %8483  ;;  %v1208_v58 = vmul.f32 1.0614054, %v9425_v44  ;;  %v1209_v59 = vmul.f32 1.0614054, %v9431_v27  ;;  %v9442_v28 = vmul.f32 1.442695, %v1375_v4  ;;  %v1237_v35 = vmul.f32 %v9411_v9, %v1221_v23 }
 0x180   : > { %v9444_v18 = vpop.eup %8485  ;;  %v1210_v34 = vmul.f32 1.0614054, %v9438_v20  ;;  %v1223_v56 = vadd.f32 -1.4531521, %v1207_v24  ;;  %v9448_v0 = vmul.f32 1.442695, %v1376_v5  ;;  %v1238_v55 = vmul.f32 %v9413_v57, %v1222_v29 }
 0x181   : > { %v9450_v2 = vpop.eup %8487  ;;  %v1211_v36 = vmul.f32 1.0614054, %v9444_v18  ;;  %v9454_v38 = vmul.f32 1.442695, %v1377_v6  ;;  %v9456_v39 = vmul.f32 1.442695, %v1378_v8  ;;  %8505 = vpow2.f32 %v1381_v10 }
 0x182   : > { %v9458_v3 = vpop.eup %8489  ;;  %v1212_v40 = vmul.f32 1.0614054, %v9450_v2  ;;  %v9461_v43 = vmul.f32 1.442695, %v1379_v46  ;;  %v9463_v50 = vmul.f32 1.442695, %v1380_v21  ;;  %8507 = vpow2.f32 %v1383_v11 }
 0x183   : > { %v9465_v45 = vpop.eup %8491  ;;  %v1213_v48 = vmul.f32 1.0614054, %v9458_v3  ;;  %v1224_v19 = vadd.f32 -1.4531521, %v1208_v58  ;;  %v1225_v53 = vadd.f32 -1.4531521, %v1209_v59  ;;  %v1239_v8 = vmul.f32 %v9418_v54, %v1223_v56 }
 0x184   : > { %13420 = vst [vmem:[#allocation38_spill] sm:$0xff] %v9463_v50  ;;  %v9468_v4 = vpop.eup %8493  ;;  %v1214_v5 = vmul.f32 1.0614054, %v9465_v45  ;;  %v1226_v6 = vadd.f32 -1.4531521, %v1210_v34  ;;  %8509 = vpow2.f32 %v1385_v12  ;;  %vm1445_vm1 = vcmp.ge.f32.partialorder %v9279_v60, 0.0 }
 0x185   : > { %v1253_v13 = vadd.f32 1.4214138, %v1237_v35  ;;  %v9472_v10 = vpop.eup %8495  ;;  %v1215_v16 = vmul.f32 1.0614054, %v9468_v4  ;;  %v1227_v24 = vadd.f32 -1.4531521, %v1211_v36  ;;  %8511 = vpow2.f32 %v1387_v14 }
 0x186   : > { %v1254_v23 = vadd.f32 1.4214138, %v1238_v55  ;;  %v9475_v46 = vpop.eup %8497  ;;  %v1216_v29 = vmul.f32 1.0614054, %v9472_v10  ;;  %v1228_v11 = vadd.f32 -1.4531521, %v1212_v40  ;;  %v1240_v35 = vmul.f32 %v9425_v44, %v1224_v19 }
 0x187   : > { %v1229_v21 = vadd.f32 -1.4531521, %v1213_v48  ;;  %v9478_v58 = vpop.eup %8499  ;;  %v1217_v59 = vmul.f32 1.0614054, %v9475_v46  ;;  %v1230_v34 = vadd.f32 -1.4531521, %v1214_v5  ;;  %v1241_v55 = vmul.f32 %v9431_v27, %v1225_v53 }
 0x188   : > { %v1231_v56 = vadd.f32 -1.4531521, %v1215_v16  ;;  %v9482_v52 = vpop.eup %8501  ;;  %v1218_v36 = vmul.f32 1.0614054, %v9478_v58  ;;  %v1232_v12 = vadd.f32 -1.4531521, %v1216_v29  ;;  %v1242_v48 = vmul.f32 %v9438_v20, %v1226_v6 }
 0x189   : > { %v1255_v51 = vadd.f32 1.4214138, %v1239_v8  ;;  %v9486_v33 = vpop.eup %8503  ;;  %v1219_v14 = vmul.f32 1.0614054, %v9482_v52  ;;  %v1233_v40 = vadd.f32 -1.4531521, %v1217_v59  ;;  %v1243_v5 = vmul.f32 %v9444_v18, %v1227_v24 }
 0x18a   : > { %v1220_v16 = vmul.f32 1.0614054, %v9486_v33  ;;  %v1234_v19 = vadd.f32 -1.4531521, %v1218_v36  ;;  %v1244_v47 = vmul.f32 %v9450_v2, %v1228_v11  ;;  %v1245_v49 = vmul.f32 %v9458_v3, %v1229_v21  ;;  %v13430_v60 = vld [vmem:[#allocation28_spill] sm:$0xff] }
 0x18b   : > { %v1235_v29 = vadd.f32 -1.4531521, %v1219_v14  ;;  %v1246_v53 = vmul.f32 %v9465_v45, %v1230_v34  ;;  %v1247_v8 = vmul.f32 %v9468_v4, %v1231_v56  ;;  %v1248_v1 = vmul.f32 %v9472_v10, %v1232_v12 }
 0x18c   : > { %v1236_v42 = vadd.f32 -1.4531521, %v1220_v16  ;;  %v1249_v59 = vmul.f32 %v9475_v46, %v1233_v40  ;;  %v1250_v6 = vmul.f32 %v9478_v58, %v1234_v19  ;;  %v1256_v24 = vadd.f32 1.4214138, %v1240_v35 }
 0x18d   : > { %v1251_v63 = vmul.f32 %v9482_v52, %v1235_v29  ;;  %v1257_v36 = vadd.f32 1.4214138, %v1241_v55  ;;  %v1258_v22 = vadd.f32 1.4214138, %v1242_v48  ;;  %v1259_v11 = vadd.f32 1.4214138, %v1243_v5 }
 0x18e   : > { %v1252_v21 = vmul.f32 %v9486_v33, %v1236_v42  ;;  %v1260_v14 = vadd.f32 1.4214138, %v1244_v47  ;;  %v1261_v62 = vadd.f32 1.4214138, %v1245_v49  ;;  %v1269_v34 = vmul.f32 %v9411_v9, %v1253_v13  ;;  %v9502_v56 = vpop.eup %8505 }
 0x18f   : > { %v1262_v12 = vadd.f32 1.4214138, %v1246_v53  ;;  %v1263_v16 = vadd.f32 1.4214138, %v1247_v8  ;;  %v1264_v25 = vadd.f32 1.4214138, %v1248_v1  ;;  %v1270_v40 = vmul.f32 %v9413_v57, %v1254_v23  ;;  %v9505_v19 = vpop.eup %8507 }
 0x190   : > { %v1265_v35 = vadd.f32 1.4214138, %v1249_v59  ;;  %v1266_v29 = vadd.f32 1.4214138, %v1250_v6  ;;  %v1271_v55 = vmul.f32 %v9418_v54, %v1255_v51  ;;  %v1272_v48 = vmul.f32 %v9425_v44, %v1256_v24 }
 0x191   : > { %v1267_v42 = vadd.f32 1.4214138, %v1251_v63  ;;  %v1268_v47 = vadd.f32 1.4214138, %v1252_v21  ;;  %v1273_v49 = vmul.f32 %v9431_v27, %v1257_v36  ;;  %v1274_v13 = vmul.f32 %v9438_v20, %v1258_v22  ;;  %v9511_v5 = vpop.eup %8509 }
 0x192   : > { %v1275_v1 = vmul.f32 %v9444_v18, %v1259_v11  ;;  %v1276_v23 = vmul.f32 %v9450_v2, %v1260_v14  ;;  %v1277_v53 = vmul.f32 %v9458_v3, %v1261_v62  ;;  %v1285_v8 = vadd.f32 -0.28449672, %v1269_v34  ;;  %v9516_v59 = vpop.eup %8511 }
 0x193   : > { %v1278_v51 = vmul.f32 %v9465_v45, %v1262_v12  ;;  %v1279_v63 = vmul.f32 %v9468_v4, %v1263_v16  ;;  %v1280_v6 = vmul.f32 %v9472_v10, %v1264_v25  ;;  %v1286_v24 = vadd.f32 -0.28449672, %v1270_v40 }
 0x194   : > { %v1281_v22 = vmul.f32 %v9475_v46, %v1265_v35  ;;  %v1282_v36 = vmul.f32 %v9478_v58, %v1266_v29  ;;  %v1287_v21 = vadd.f32 -0.28449672, %v1271_v55  ;;  %v1288_v11 = vadd.f32 -0.28449672, %v1272_v48 }
 0x195   : > { %v1283_v14 = vmul.f32 %v9482_v52, %v1267_v42  ;;  %v1284_v62 = vmul.f32 %v9486_v33, %v1268_v47  ;;  %v1289_v34 = vadd.f32 -0.28449672, %v1273_v49  ;;  %v1290_v61 = vadd.f32 -0.28449672, %v1274_v13 }
 0x196   : > { %v1291_v41 = vadd.f32 -0.28449672, %v1275_v1  ;;  %v1292_v50 = vadd.f32 -0.28449672, %v1276_v23  ;;  %v1293_v12 = vadd.f32 -0.28449672, %v1277_v53  ;;  %v1301_v16 = vmul.f32 %v9411_v9, %v1285_v8 }
 0x197   : > { %v1294_v37 = vadd.f32 -0.28449672, %v1278_v51  ;;  %v1295_v25 = vadd.f32 -0.28449672, %v1279_v63  ;;  %v1296_v40 = vadd.f32 -0.28449672, %v1280_v6  ;;  %v1302_v35 = vmul.f32 %v9413_v57, %v1286_v24 }
 0x198   : > { %v1297_v32 = vadd.f32 -0.28449672, %v1281_v22  ;;  %v1298_v29 = vadd.f32 -0.28449672, %v1282_v36  ;;  %v1303_v55 = vmul.f32 %v9418_v54, %v1287_v21  ;;  %v1304_v48 = vmul.f32 %v9425_v44, %v1288_v11 }
 0x199   : > { %v1299_v42 = vadd.f32 -0.28449672, %v1283_v14  ;;  %v1300_v47 = vadd.f32 -0.28449672, %v1284_v62  ;;  %v1305_v49 = vmul.f32 %v9431_v27, %v1289_v34  ;;  %v1306_v13 = vmul.f32 %v9438_v20, %v1290_v61 }
 0x19a   : > { %v1307_v1 = vmul.f32 %v9444_v18, %v1291_v41  ;;  %v1308_v23 = vmul.f32 %v9450_v2, %v1292_v50  ;;  %v1309_v53 = vmul.f32 %v9458_v3, %v1293_v12  ;;  %8513 = vpow2.f32 %v9416_v15 }
 0x19b   : > { %v1310_v8 = vmul.f32 %v9465_v45, %v1294_v37  ;;  %v1317_v51 = vadd.f32 0.2548296, %v1301_v16  ;;  %v1318_v63 = vadd.f32 0.2548296, %v1302_v35  ;;  %8515 = vpow2.f32 %v9421_v17 }
 0x19c   : > { %v1311_v6 = vmul.f32 %v9468_v4, %v1295_v25  ;;  %v1312_v24 = vmul.f32 %v9472_v10, %v1296_v40  ;;  %v1319_v22 = vadd.f32 0.2548296, %v1303_v55  ;;  %v1320_v61 = vadd.f32 0.2548296, %v1304_v48 }
 0x19d   : > { %v1313_v41 = vmul.f32 %v9475_v46, %v1297_v32  ;;  %v1314_v50 = vmul.f32 %v9478_v58, %v1298_v29  ;;  %v1315_v36 = vmul.f32 %v9482_v52, %v1299_v42  ;;  %v1321_v21 = vadd.f32 0.2548296, %v1305_v49 }
 0x19e   : > { %v1316_v15 = vmul.f32 %v9486_v33, %v1300_v47  ;;  %v1322_v37 = vadd.f32 0.2548296, %v1306_v13  ;;  %v1323_v11 = vadd.f32 0.2548296, %v1307_v1  ;;  %v1324_v14 = vadd.f32 0.2548296, %v1308_v23 }
 0x19f   : > { %v1325_v62 = vadd.f32 0.2548296, %v1309_v53  ;;  %v1326_v17 = vadd.f32 0.2548296, %v1310_v8  ;;  %v1333_v34 = vmul.f32 %v9411_v9, %v1317_v51  ;;  %v1334_v12 = vmul.f32 %v9413_v57, %v1318_v63  ;;  %v13424_v13 = vld [vmem:[#allocation22_spill] sm:$0xff]  ;;  %v13425_v1 = vld [vmem:[#allocation23_spill] sm:$0xff] }
 0x1a0   : > { %v1327_v16 = vadd.f32 0.2548296, %v1311_v6  ;;  %v1328_v25 = vadd.f32 0.2548296, %v1312_v24  ;;  %v1335_v32 = vmul.f32 %v9418_v54, %v1319_v22  ;;  %v1336_v40 = vmul.f32 %v9425_v44, %v1320_v61  ;;  %v13426_v8 = vld [vmem:[#allocation24_spill] sm:$0xff]  ;;  %v13427_v51 = vld [vmem:[#allocation25_spill] sm:$0xff] }
 0x1a1   : > { %v1329_v35 = vadd.f32 0.2548296, %v1313_v41  ;;  %v1330_v29 = vadd.f32 0.2548296, %v1314_v50  ;;  %v1331_v55 = vadd.f32 0.2548296, %v1315_v36  ;;  %v1337_v42 = vmul.f32 %v9431_v27, %v1321_v21 }
 0x1a2   : > { %v1332_v48 = vadd.f32 0.2548296, %v1316_v15  ;;  %v1338_v47 = vmul.f32 %v9438_v20, %v1322_v37  ;;  %8517 = vpow2.f32 %v9423_v7  ;;  %v1339_v9 = vmul.f32 %v9444_v18, %v1323_v11  ;;  %v13428_v6 = vld [vmem:[#allocation26_spill] sm:$0xff]  ;;  %v13429_v36 = vld [vmem:[#allocation27_spill] sm:$0xff] }
 0x1a3   : > { %8519 = vpow2.f32 %v9429_v26  ;;  %v1413_v57 = vmul.f32 %v9502_v56, %v1333_v34  ;;  %v1414_v54 = vmul.f32 %v9505_v19, %v1334_v12  ;;  %v1340_v44 = vmul.f32 %v9450_v2, %v1324_v14 }
 0x1a4   : > { %8521 = vpow2.f32 %v9434_v30  ;;  %v1415_v49 = vmul.f32 %v9511_v5, %v1335_v32  ;;  %v1416_v27 = vmul.f32 %v9516_v59, %v1336_v40  ;;  %v1341_v20 = vmul.f32 %v9458_v3, %v1325_v62  ;;  %v13423_v59 = vld [vmem:[#allocation38_spill] sm:$0xff]  ;;  %v13431_v32 = vld [vmem:[#allocation29_spill] sm:$0xff] }
 0x1a5   : > { %v9560_v7 = vmul.f32 %v9465_v45, %v1326_v17  ;;  %v9563_v18 = vmul.f32 %v9468_v4, %v1327_v16  ;;  %8523 = vpow2.f32 %v9436_v31  ;;  %v9567_v26 = vmul.f32 %v9472_v10, %v1328_v25 }
 0x1a6   : > { %v9570_v2 = vmul.f32 %v9475_v46, %v1329_v35  ;;  %v9573_v30 = vmul.f32 %v9478_v58, %v1330_v29  ;;  %8525 = vpow2.f32 %v9442_v28  ;;  %v9577_v45 = vmul.f32 %v9482_v52, %v1331_v55  ;;  %v13422_v58 = vld [vmem:[#allocation21_spill] sm:$0xff]  ;;  %v13432_v35 = vld [vmem:[#allocation7_spill] sm:$0xff]  ;;  %v13433_v55 = vld [vmem:[#allocation8_spill] sm:$0xff] }
 0x1a7   : > { %v8514_v3 = vpop.eup %8513  ;;  %8527 = vpow2.f32 %v9448_v0  ;;  %v1429_v4 = vsub.f32 1.0, %v1413_v57  ;;  %v1430_v56 = vsub.f32 1.0, %v1414_v54  ;;  %v1431_v19 = vsub.f32 1.0, %v1415_v49  ;;  %v13421_v0 = vld [vmem:[#allocation20_spill] sm:$0xff]  ;;  %v13434_v54 = vld [vmem:[#allocation30_spill] sm:$0xff] }
 0x1a8   : > { %v8516_v31 = vpop.eup %8515  ;;  %8529 = vpow2.f32 %v9454_v38  ;;  %v1417_v10 = vmul.f32 %v8514_v3, %v1337_v42  ;;  %v1432_v46 = vsub.f32 1.0, %v1416_v27  ;;  %v9582_v5 = vmul.f32 %v9486_v33, %v1332_v48  ;;  %v13436_v27 = vld [vmem:[#allocation10_spill] sm:$0xff] }
 0x1a9   : > { %8531 = vpow2.f32 %v9456_v39  ;;  %v1418_v28 = vmul.f32 %v8516_v31, %v1338_v47  ;;  %vm1446_vm2 = vcmp.ge.f32.partialorder %v13421_v0, 0.0  ;;  %vm1447_vm3 = vcmp.ge.f32.partialorder %v13422_v58, 0.0  ;;  %v13437_v31 = vld [vmem:[#allocation31_spill] sm:$0xff]  ;;  %v13440_v58 = vld [vmem:[#allocation32_spill] sm:$0xff] }
 0x1aa   : > { %8533 = vpow2.f32 %v9461_v43  ;;  %v1433_v52 = vsub.f32 1.0, %v1417_v10  ;;  %vm1448_vm4 = vcmp.ge.f32.partialorder %v13424_v13, 0.0  ;;  %vm1449_vm5 = vcmp.ge.f32.partialorder %v13425_v1, 0.0  ;;  %v13438_v10 = vld [vmem:[#allocation11_spill] sm:$0xff]  ;;  %v13441_v1 = vld [vmem:[#allocation33_spill] sm:$0xff] }
 0x1ab   : > { %8535 = vpow2.f32 %v13423_v59  ;;  %v1434_v38 = vsub.f32 1.0, %v1418_v28  ;;  %v1461_v33 = vsub.f32 0.0, %v1429_v4  ;;  %v1462_v23 = vsub.f32 0.0, %v1430_v56 }
 0x1ac   : > { %v1463_v39 = vsub.f32 0.0, %v1431_v19  ;;  %v1464_v53 = vsub.f32 0.0, %v1432_v46  ;;  %vm1450_vm6 = vcmp.ge.f32.partialorder %v13426_v8, 0.0  ;;  %vm1451_vm7 = vcmp.ge.f32.partialorder %v13427_v51, 0.0 }
 0x1ad   : > { %v1465_v43 = vsub.f32 0.0, %v1433_v52  ;;  %v1466_v63 = vsub.f32 0.0, %v1434_v38  ;;  %vm1452_vm8 = vcmp.ge.f32.partialorder %v13428_v6, 0.0  ;;  %v1477_v24 = vsel %vm1445_vm1, %v1429_v4, %v1461_v33 }
 0x1ae   : > { %v1478_v22 = vsel %vm1446_vm2, %v1430_v56, %v1462_v23  ;;  %v1479_v61 = vsel %vm1447_vm3, %v1431_v19, %v1463_v39  ;;  %v1480_v41 = vsel %vm1448_vm4, %v1432_v46, %v1464_v53  ;;  %vm1453_vm9 = vcmp.ge.f32.partialorder %v13429_v36, 0.0  ;;  %v13439_v46 = vld [vmem:[#allocation12_spill] sm:$0xff] }
 0x1af   : > { %v8518_v50 = vpop.eup %8517  ;;  %v1481_v21 = vsel %vm1449_vm5, %v1433_v52, %v1465_v43  ;;  %v1482_v15 = vsel %vm1450_vm6, %v1434_v38, %v1466_v63  ;;  %v1493_v37 = vadd.f32 1.0, %v1477_v24  ;;  %v1494_v11 = vadd.f32 1.0, %v1478_v22 }
 0x1b0   : > { %v8520_v14 = vpop.eup %8519  ;;  %v1419_v62 = vmul.f32 %v8518_v50, %v1339_v9  ;;  %vm1454_vm10 = vcmp.ge.f32.partialorder %v13430_v60, 0.0  ;;  %v1495_v17 = vadd.f32 1.0, %v1479_v61  ;;  %v1496_v34 = vadd.f32 1.0, %v1480_v41  ;;  %v13435_v9 = vld [vmem:[#allocation9_spill] sm:$0xff] }
 0x1b1   : > { %v1497_v12 = vadd.f32 1.0, %v1481_v21  ;;  %v8522_v16 = vpop.eup %8521  ;;  %v1420_v25 = vmul.f32 %v8520_v14, %v1340_v44  ;;  %vm1455_vm11 = vcmp.ge.f32.partialorder %v13431_v32, 0.0  ;;  %v1498_v40 = vadd.f32 1.0, %v1482_v15 }
 0x1b2   : > { %v1509_v29 = vmul.f32 %v1493_v37, %v13432_v35  ;;  %v1510_v48 = vmul.f32 %v1494_v11, %v13433_v55  ;;  %v8524_v42 = vpop.eup %8523  ;;  %v1421_v47 = vmul.f32 %v8522_v16, %v1341_v20  ;;  %v1435_v57 = vsub.f32 1.0, %v1419_v62 }
 0x1b3   : > { %vm1456_vm12 = vcmp.ge.f32.partialorder %v13434_v54, 0.0  ;;  %v1511_v49 = vmul.f32 %v1495_v17, %v13435_v9  ;;  %v1512_v3 = vmul.f32 %v1496_v34, %v13436_v27  ;;  %v8526_v4 = vpop.eup %8525  ;;  %v1422_v56 = vmul.f32 %v8524_v42, %v9560_v7 }
 0x1b4   : > { %v1436_v44 = vsub.f32 1.0, %v1420_v25  ;;  %vm1457_vm13 = vcmp.ge.f32.partialorder %v13437_v31, 0.0  ;;  %v1513_v19 = vmul.f32 %v1497_v12, %v13438_v10  ;;  %v1514_v28 = vmul.f32 %v1498_v40, %v13439_v46  ;;  %1525 = vst [vmem:[#allocation2 + $0x30] sm:$0xff] %v1509_v29  ;;  %1526 = vst [vmem:[#allocation2] sm:$0xff] %v1510_v48  ;;  %v8528_v20 = vpop.eup %8527  ;;  %v13447_v10 = vld [vmem:[#allocation17_spill] sm:$0xff]  ;;  %v13448_v46 = vld [vmem:[#allocation18_spill] sm:$0xff] }
 0x1b5   : > { %v1423_v52 = vmul.f32 %v8526_v4, %v9563_v18  ;;  %v1437_v0 = vsub.f32 1.0, %v1421_v47  ;;  %vm1458_vm14 = vcmp.ge.f32.partialorder %v13440_v58, 0.0  ;;  %v1467_v59 = vsub.f32 0.0, %v1435_v57  ;;  %1527 = vst [vmem:[#allocation2 + $0x58] sm:$0xff] %v1511_v49  ;;  %1528 = vst [vmem:[#allocation2 + $0x18] sm:$0xff] %v1512_v3  ;;  %v8530_v38 = vpop.eup %8529  ;;  %v13442_v18 = vld [vmem:[#allocation34_spill] sm:$0xff] }
 0x1b6   : > { %v1424_v7 = vmul.f32 %v8528_v20, %v9567_v26  ;;  %v1438_v13 = vsub.f32 1.0, %v1422_v56  ;;  %vm1459_vm15 = vcmp.ge.f32.partialorder %v13441_v1, 0.0  ;;  %v1468_v33 = vsub.f32 0.0, %v1436_v44  ;;  %1529 = vst [vmem:[#allocation2 + $0x50] sm:$0xff] %v1513_v19  ;;  %1530 = vst [vmem:[#allocation2 + $0x68] sm:$0xff] %v1514_v28  ;;  %v8532_v23 = vpop.eup %8531  ;;  %v13443_v47 = vld [vmem:[#allocation13_spill] sm:$0xff] }
 0x1b7   : > { %v1425_v39 = vmul.f32 %v8530_v38, %v9570_v2  ;;  %v1439_v53 = vsub.f32 1.0, %v1423_v52  ;;  %vm1460_vm0 = vcmp.ge.f32.partialorder %v13442_v18, 0.0  ;;  %v1469_v8 = vsub.f32 0.0, %v1437_v0  ;;  %v8534_v63 = vpop.eup %8533  ;;  %v13444_v49 = vld [vmem:[#allocation14_spill] sm:$0xff]  ;;  %v13445_v3 = vld [vmem:[#allocation15_spill] sm:$0xff] }
 0x1b8   : > { %v1483_v43 = vsel %vm1451_vm7, %v1435_v57, %v1467_v59  ;;  %v1426_v24 = vmul.f32 %v8532_v23, %v9573_v30  ;;  %v1440_v26 = vsub.f32 1.0, %v1424_v7  ;;  %v1470_v22 = vsub.f32 0.0, %v1438_v13  ;;  %v8536_v41 = vpop.eup %8535  ;;  %v13449_v20 = vld [vmem:[#allocation19_spill] sm:$0xff]  ;;  %v13451_v59 = vld [vmem:[#allocation36_spill] sm:$0xff]  ;;  %v13452_v7 = vld [vmem:[#allocation37_spill] sm:$0xff] }
 0x1b9   : > { %v1484_v61 = vsel %vm1452_vm8, %v1436_v44, %v1468_v33  ;;  %v1427_v50 = vmul.f32 %v8534_v63, %v9577_v45  ;;  %v1441_v21 = vsub.f32 1.0, %v1425_v39  ;;  %v1471_v2 = vsub.f32 0.0, %v1439_v53  ;;  %v13446_v44 = vld [vmem:[#allocation16_spill] sm:$0xff] }
 0x1ba   : > { %v1485_v15 = vsel %vm1453_vm9, %v1437_v0, %v1469_v8  ;;  %v1428_v37 = vmul.f32 %v8536_v41, %v9582_v5  ;;  %v1442_v51 = vsub.f32 1.0, %v1426_v24  ;;  %v1472_v11 = vsub.f32 0.0, %v1440_v26  ;;  %v13450_v0 = vld [vmem:[#allocation35_spill] sm:$0xff] }
 0x1bb   : > { %v1486_v30 = vsel %vm1454_vm10, %v1438_v13, %v1470_v22  ;;  %v1443_v14 = vsub.f32 1.0, %v1427_v50  ;;  %v1473_v62 = vsub.f32 0.0, %v1441_v21  ;;  %v1487_v6 = vsel %vm1455_vm11, %v1439_v53, %v1471_v2 }
 0x1bc   : > { %v1499_v17 = vadd.f32 1.0, %v1483_v43  ;;  %v1444_v34 = vsub.f32 1.0, %v1428_v37  ;;  %v1474_v45 = vsub.f32 0.0, %v1442_v51  ;;  %v1488_v12 = vsel %vm1456_vm12, %v1440_v26, %v1472_v11 }
 0x1bd   : > { %v1500_v36 = vadd.f32 1.0, %v1484_v61  ;;  %v1475_v16 = vsub.f32 0.0, %v1443_v14  ;;  %v1489_v5 = vsel %vm1457_vm13, %v1441_v21, %v1473_v62  ;;  %v1501_v25 = vadd.f32 1.0, %v1485_v15 }
 0x1be   : > { %v1502_v40 = vadd.f32 1.0, %v1486_v30  ;;  %v1476_v60 = vsub.f32 0.0, %v1444_v34  ;;  %v1490_v35 = vsel %vm1458_vm14, %v1442_v51, %v1474_v45  ;;  %v1503_v29 = vadd.f32 1.0, %v1487_v6 }
 0x1bf   : > { %v1504_v32 = vadd.f32 1.0, %v1488_v12  ;;  %v1491_v55 = vsel %vm1459_vm15, %v1443_v14, %v1475_v16  ;;  %v1505_v48 = vadd.f32 1.0, %v1489_v5  ;;  %v1506_v42 = vadd.f32 1.0, %v1490_v35 }
 0x1c0   : > { %v1515_v57 = vmul.f32 %v1499_v17, %v13443_v47  ;;  %v1492_v54 = vsel %vm1460_vm0, %v1444_v34, %v1476_v60  ;;  %v1507_v9 = vadd.f32 1.0, %v1491_v55  ;;  %v1516_v27 = vmul.f32 %v1500_v36, %v13444_v49 }
 0x1c1   : > { %v1517_v4 = vmul.f32 %v1501_v25, %v13445_v3  ;;  %v1508_v56 = vadd.f32 1.0, %v1492_v54  ;;  %v1518_v31 = vmul.f32 %v1502_v40, %v13446_v44  ;;  %v1519_v19 = vmul.f32 %v1503_v29, %v13447_v10 }
 0x1c2   : > { %v1520_v28 = vmul.f32 %v1504_v32, %v13448_v46  ;;  %1531 = vst [vmem:[#allocation2 + $0x8] sm:$0xff] %v1515_v57  ;;  %v1521_v52 = vmul.f32 %v1505_v48, %v13449_v20  ;;  %v1522_v58 = vmul.f32 %v1506_v42, %v13450_v0  ;;  %v1523_v38 = vmul.f32 %v1507_v9, %v13451_v59 }
 0x1c3   : > { %1532 = vst [vmem:[#allocation2 + $0x48] sm:$0xff] %v1516_v27  ;;  %1533 = vst [vmem:[#allocation2 + $0x40] sm:$0xff] %v1517_v4  ;;  %v1524_v13 = vmul.f32 %v1508_v56, %v13452_v7 }
 0x1c4   : > { %1534 = vst [vmem:[#allocation2 + $0x20] sm:$0xff] %v1518_v31  ;;  %1535 = vst [vmem:[#allocation2 + $0x10] sm:$0xff] %v1519_v19 }
 0x1c5   : > { %1536 = vst [vmem:[#allocation2 + $0x38] sm:$0xff] %v1520_v28  ;;  %1537 = vst [vmem:[#allocation2 + $0x60] sm:$0xff] %v1521_v52 }
 0x1c6   : > { %1538 = vst [vmem:[#allocation2 + $0x70] sm:$0xff] %v1522_v58  ;;  %1539 = vst [vmem:[#allocation2 + $0x78] sm:$0xff] %v1523_v38 }
 0x1c7   : > { %1540 = vst [vmem:[#allocation2 + $0x28] sm:$0xff] %v1524_v13 }
 0x1c8 PF: > { %s13453_s1 = sld [smem:[#allocation86_spill]]  ;;  %v1546_v22 = vld [vmem:[#allocation2 + $0x68] sm:$0xff]  ;;  %v1545_v61 = vld [vmem:[#allocation2 + $0x50] sm:$0xff]  ;;  %v1544_v41 = vld [vmem:[#allocation2 + $0x18] sm:$0xff]  ;;  %s12175_s5 = sshll.u32 %s8992_s28, 7 }
 0x1c9   : > { %v1547_v26 = vld [vmem:[#allocation2 + $0x8] sm:$0xff]  ;;  %v1543_v50 = vld [vmem:[#allocation2 + $0x58] sm:$0xff]  ;;  %v1542_v21 = vld [vmem:[#allocation2] sm:$0xff]  ;;  %s5391_s26 = sadd.s32 1, %s12175_s5  ;;  %s5373_s23 = sld [smem:[#allocation3 + %s12175_s5]] }
 0x1ca   : > { %v1549_v63 = vld [vmem:[#allocation2 + $0x40] sm:$0xff]  ;;  %v1548_v24 = vld [vmem:[#allocation2 + $0x48] sm:$0xff]  ;;  %v1541_v2 = vld [vmem:[#allocation2 + $0x30] sm:$0xff]  ;;  %s5392_s0 = sld [smem:[#allocation3 + %s5391_s26]]  ;;  %s13622_s27 = scalar_lea.vmem %s13275_s11, %s9017_s22 }
 0x1cb   : > { %v1551_v8 = vld [vmem:[#allocation2 + $0x10] sm:$0xff]  ;;  %v1550_v43 = vld [vmem:[#allocation2 + $0x20] sm:$0xff]  ;;  %s13630_s9 = scalar_lea.vmem %s13277_s13, %s9017_s22  ;;  %s6821_s26 = sadd.s32 3, %s12175_s5 }
 0x1cc   : > { %v1553_v39 = vld [vmem:[#allocation2 + $0x60] sm:$0xff]  ;;  %v1552_v18 = vld [vmem:[#allocation2 + $0x38] sm:$0xff]  ;;  %s13638_s28 = scalar_lea.vmem %s13280_s16, %s9017_s22  ;;  %s13639_s20 = scalar_lea.vmem %s13281_s17, %s9017_s22 }
 0x1cd   : > { %v1555_v33 = vld [vmem:[#allocation2 + $0x78] sm:$0xff]  ;;  %v1554_v23 = vld [vmem:[#allocation2 + $0x70] sm:$0xff]  ;;  %s13640_s25 = sld [smem:[#allocation90_spill]] }
 0x1ce   : > { %v1556_v1 = vld [vmem:[#allocation2 + $0x28] sm:$0xff]  ;;  %v1557_v53 = vld [vmem:[%s13453_s1] sm:$0xff]  ;;  %v1559_v37 = vld [vmem:[%s13453_s1 + $0x10] sm:$0xff] }
 0x1cf   : > { %7749 = vmatprep.subr.mxu0 %v1556_v1  ;;  %8417 = vmatprep.subr.mxu1 %v1556_v1  ;;  %v1558_v15 = vld [vmem:[%s13453_s1 + $0x8] sm:$0xff]  ;;  %v1560_v51 = vld [vmem:[%s13453_s1 + $0x18] sm:$0xff]  ;;  %v1561_v11 = vld [vmem:[%s13453_s1 + $0x20] sm:$0xff] }
 0x1d0   : > { %7750 = vmatpush3.msra.mxu0 %v1556_v1  ;;  %8433 = vmatpush3.msra.mxu1 %v1556_v1  ;;  %v1562_v30 = vld [vmem:[%s13453_s1 + $0x28] sm:$0xff]  ;;  %v1563_v14 = vld [vmem:[%s13453_s1 + $0x30] sm:$0xff]  ;;  %v1564_v62 = vld [vmem:[%s13453_s1 + $0x38] sm:$0xff] }
 0x1d1   : > { %7751 = vmatprep.subr.mxu0 %v1555_v33  ;;  %8418 = vmatprep.subr.mxu1 %v1555_v33  ;;  %v1565_v6 = vld [vmem:[%s13453_s1 + $0x40] sm:$0xff]  ;;  %v1566_v17 = vld [vmem:[%s13453_s1 + $0x48] sm:$0xff]  ;;  %v1567_v34 = vld [vmem:[%s13453_s1 + $0x50] sm:$0xff] }
 0x1d2   : > { %7752 = vmatpush3.msra.mxu0 %v1555_v33  ;;  %8434 = vmatpush3.msra.mxu1 %v1555_v33  ;;  %v1568_v45 = vld [vmem:[%s13453_s1 + $0x58] sm:$0xff]  ;;  %v1569_v12 = vld [vmem:[%s13453_s1 + $0x60] sm:$0xff]  ;;  %v1570_v36 = vld [vmem:[%s13453_s1 + $0x68] sm:$0xff] }
 0x1d3   : > { %7753 = vmatprep.subr.mxu0 %v1554_v23  ;;  %8419 = vmatprep.subr.mxu1 %v1554_v23  ;;  %v1571_v16 = vld [vmem:[%s13453_s1 + $0x70] sm:$0xff]  ;;  %v1572_v5 = vld [vmem:[%s13453_s1 + $0x78] sm:$0xff]  ;;  %v1573_v25 = vld [vmem:[%s13453_s1 + $0x80] sm:$0xff] }
 0x1d4   : > { %7754 = vmatpush3.msra.mxu0 %v1554_v23  ;;  %7781 = vmatprep.mubr.f32.mxu0 %v1557_v53  ;;  %v1574_v40 = vld [vmem:[%s13453_s1 + $0x88] sm:$0xff]  ;;  %v1575_v60 = vld [vmem:[%s13453_s1 + $0x90] sm:$0xff]  ;;  %v1576_v35 = vld [vmem:[%s13453_s1 + $0x98] sm:$0xff] }
 0x1d5   : > { %7755 = vmatprep.subr.mxu0 %v1553_v39  ;;  %8435 = vmatpush3.msra.mxu1 %v1554_v23  ;;  %v1577_v29 = vld [vmem:[%s13453_s1 + $0xa0] sm:$0xff]  ;;  %v1578_v32 = vld [vmem:[%s13453_s1 + $0xa8] sm:$0xff]  ;;  %v1579_v55 = vld [vmem:[%s13453_s1 + $0xb0] sm:$0xff] }
 0x1d6   : > { %7756 = vmatpush3.msra.mxu0 %v1553_v39  ;;  %8420 = vmatprep.subr.mxu1 %v1553_v39  ;;  %v1580_v48 = vld [vmem:[%s13453_s1 + $0xb8] sm:$0xff]  ;;  %v1581_v42 = vld [vmem:[%s13453_s1 + $0xc0] sm:$0xff]  ;;  %v1582_v47 = vld [vmem:[%s13453_s1 + $0xc8] sm:$0xff] }
 0x1d7   : > { %7757 = vmatprep.subr.mxu0 %v1552_v18  ;;  %8436 = vmatpush3.msra.mxu1 %v1553_v39  ;;  %v1583_v57 = vld [vmem:[%s13453_s1 + $0xd0] sm:$0xff]  ;;  %v1584_v54 = vld [vmem:[%s13453_s1 + $0xd8] sm:$0xff]  ;;  %v1585_v9 = vld [vmem:[%s13453_s1 + $0xe0] sm:$0xff] }
 0x1d8   : > { %7758 = vmatpush3.msra.mxu0 %v1552_v18  ;;  %8421 = vmatprep.subr.mxu1 %v1552_v18  ;;  %v1586_v49 = vld [vmem:[%s13453_s1 + $0xe8] sm:$0xff]  ;;  %v1587_v27 = vld [vmem:[%s13453_s1 + $0xf0] sm:$0xff]  ;;  %v1588_v3 = vld [vmem:[%s13453_s1 + $0xf8] sm:$0xff] }
 0x1d9   : > { %7759 = vmatprep.subr.mxu0 %v1551_v8  ;;  %8437 = vmatpush3.msra.mxu1 %v1552_v18  ;;  %v1589_v4 = vld [vmem:[%s13453_s1 + $0x100] sm:$0xff]  ;;  %v1590_v56 = vld [vmem:[%s13453_s1 + $0x108] sm:$0xff]  ;;  %v1591_v44 = vld [vmem:[%s13453_s1 + $0x110] sm:$0xff] }
 0x1da   : > { %7760 = vmatpush3.msra.mxu0 %v1551_v8  ;;  %8422 = vmatprep.subr.mxu1 %v1551_v8  ;;  %v1592_v31 = vld [vmem:[%s13453_s1 + $0x118] sm:$0xff]  ;;  %v1593_v10 = vld [vmem:[%s13453_s1 + $0x120] sm:$0xff]  ;;  %v1594_v19 = vld [vmem:[%s13453_s1 + $0x128] sm:$0xff] }
 0x1db   : > { %7761 = vmatprep.subr.mxu0 %v1550_v43  ;;  %8438 = vmatpush3.msra.mxu1 %v1551_v8  ;;  %v1595_v46 = vld [vmem:[%s13453_s1 + $0x130] sm:$0xff]  ;;  %v1596_v28 = vld [vmem:[%s13453_s1 + $0x138] sm:$0xff]  ;;  %v1597_v20 = vld [vmem:[%s13453_s1 + $0x140] sm:$0xff] }
 0x1dc   : > { %7762 = vmatpush3.msra.mxu0 %v1550_v43  ;;  %8423 = vmatprep.subr.mxu1 %v1550_v43  ;;  %v1598_v52 = vld [vmem:[%s13453_s1 + $0x148] sm:$0xff]  ;;  %v1599_v0 = vld [vmem:[%s13453_s1 + $0x150] sm:$0xff]  ;;  %v1600_v58 = vld [vmem:[%s13453_s1 + $0x158] sm:$0xff] }
 0x1dd   : > { %7763 = vmatprep.subr.mxu0 %v1549_v63  ;;  %8439 = vmatpush3.msra.mxu1 %v1550_v43  ;;  %v1601_v59 = vld [vmem:[%s13453_s1 + $0x160] sm:$0xff]  ;;  %v1602_v38 = vld [vmem:[%s13453_s1 + $0x168] sm:$0xff]  ;;  %v1603_v7 = vld [vmem:[%s13453_s1 + $0x170] sm:$0xff] }
 0x1de   : > { %7764 = vmatpush3.msra.mxu0 %v1549_v63  ;;  %8424 = vmatprep.subr.mxu1 %v1549_v63  ;;  %v1604_v13 = vld [vmem:[%s13453_s1 + $0x178] sm:$0xff]  ;;  %v1605_v1 = vld [vmem:[%s13453_s1 + $0x180] sm:$0xff]  ;;  %v1606_v33 = vld [vmem:[%s13453_s1 + $0x188] sm:$0xff] }
 0x1df   : > { %7765 = vmatprep.subr.mxu0 %v1548_v24  ;;  %8440 = vmatpush3.msra.mxu1 %v1549_v63  ;;  %v1607_v23 = vld [vmem:[%s13453_s1 + $0x190] sm:$0xff]  ;;  %v1608_v39 = vld [vmem:[%s13453_s1 + $0x198] sm:$0xff]  ;;  %v1609_v53 = vld [vmem:[%s13453_s1 + $0x1a0] sm:$0xff] }
 0x1e0   : > { %7766 = vmatpush3.msra.mxu0 %v1548_v24  ;;  %8425 = vmatprep.subr.mxu1 %v1548_v24  ;;  %v1610_v18 = vld [vmem:[%s13453_s1 + $0x1a8] sm:$0xff]  ;;  %v1611_v8 = vld [vmem:[%s13453_s1 + $0x1b0] sm:$0xff]  ;;  %v1612_v43 = vld [vmem:[%s13453_s1 + $0x1b8] sm:$0xff] }
 0x1e1   : > { %7767 = vmatprep.subr.mxu0 %v1547_v26  ;;  %8441 = vmatpush3.msra.mxu1 %v1548_v24  ;;  %v1613_v63 = vld [vmem:[%s13453_s1 + $0x1c0] sm:$0xff]  ;;  %v1614_v24 = vld [vmem:[%s13453_s1 + $0x1c8] sm:$0xff] }
 0x1e2   : > { %7768 = vmatpush3.msra.mxu0 %v1547_v26  ;;  %8426 = vmatprep.subr.mxu1 %v1547_v26 }
 0x1e3   : > { %7769 = vmatprep.subr.mxu0 %v1546_v22  ;;  %8442 = vmatpush3.msra.mxu1 %v1547_v26  ;;  %v1615_v26 = vld [vmem:[%s13453_s1 + $0x1d0] sm:$0xff] }
 0x1e4   : > { %7770 = vmatpush3.msra.mxu0 %v1546_v22  ;;  %8427 = vmatprep.subr.mxu1 %v1546_v22 }
 0x1e5   : > { %7771 = vmatprep.subr.mxu0 %v1545_v61  ;;  %8443 = vmatpush3.msra.mxu1 %v1546_v22  ;;  %v1616_v22 = vld [vmem:[%s13453_s1 + $0x1d8] sm:$0xff] }
 0x1e6   : > { %7772 = vmatpush3.msra.mxu0 %v1545_v61  ;;  %8428 = vmatprep.subr.mxu1 %v1545_v61 }
 0x1e7   : > { %7773 = vmatprep.subr.mxu0 %v1544_v41  ;;  %8444 = vmatpush3.msra.mxu1 %v1545_v61  ;;  %v1617_v61 = vld [vmem:[%s13453_s1 + $0x1e0] sm:$0xff] }
 0x1e8   : > { %7774 = vmatpush3.msra.mxu0 %v1544_v41  ;;  %8429 = vmatprep.subr.mxu1 %v1544_v41 }
 0x1e9   : > { %7775 = vmatprep.subr.mxu0 %v1543_v50  ;;  %8445 = vmatpush3.msra.mxu1 %v1544_v41  ;;  %v1618_v41 = vld [vmem:[%s13453_s1 + $0x1e8] sm:$0xff] }
 0x1ea   : > { %7776 = vmatpush3.msra.mxu0 %v1543_v50  ;;  %8430 = vmatprep.subr.mxu1 %v1543_v50 }
 0x1eb   : > { %7777 = vmatprep.subr.mxu0 %v1542_v21  ;;  %8446 = vmatpush3.msra.mxu1 %v1543_v50  ;;  %v1619_v50 = vld [vmem:[%s13453_s1 + $0x1f0] sm:$0xff] }
 0x1ec   : > { %7778 = vmatpush3.msra.mxu0 %v1542_v21  ;;  %8431 = vmatprep.subr.mxu1 %v1542_v21 }
 0x1ed   : > { %7779 = vmatprep.subr.mxu0 %v1541_v2  ;;  %8447 = vmatpush3.msra.mxu1 %v1542_v21  ;;  %v1620_v21 = vld [vmem:[%s13453_s1 + $0x1f8] sm:$0xff] }
 0x1ee   : > { %7780 = vmatpush3.msra.mxu0 %v1541_v2  ;;  %8432 = vmatprep.subr.mxu1 %v1541_v2 }
 0x1ef   : > { %7782 = vmatmul.mubr.f32.vlgmr.msra.gmra.mxu0 %v1558_v15  ;;  %8448 = vmatpush3.msra.mxu1 %v1541_v2  ;;  %v1621_v2 = vld [vmem:[%s13453_s1 + $0x200] sm:$0xff]  ;;  %v1622_v15 = vld [vmem:[%s13453_s1 + $0x208] sm:$0xff] }
 0x1f0   : > { %7784 = vmatprep.mubr.f32.mxu0 %v1559_v37  ;;  %v1623_v37 = vld [vmem:[%s13453_s1 + $0x210] sm:$0xff] }
 0x1f3   : > { %7785 = vmatmul.mubr.f32.gmra.mxu0 %v1560_v51  ;;  %v1624_v51 = vld [vmem:[%s13453_s1 + $0x218] sm:$0xff] }
 0x1f4   : > { %7787 = vmatprep.mubr.f32.mxu0 %v1561_v11  ;;  %v1625_v11 = vld [vmem:[%s13453_s1 + $0x220] sm:$0xff] }
 0x1f7   : > { %7788 = vmatmul.mubr.f32.gmra.mxu0 %v1562_v30  ;;  %v1626_v30 = vld [vmem:[%s13453_s1 + $0x228] sm:$0xff] }
 0x1f8   : > { %7790 = vmatprep.mubr.f32.mxu0 %v1563_v14  ;;  %v1627_v14 = vld [vmem:[%s13453_s1 + $0x230] sm:$0xff] }
 0x1fb   : > { %7791 = vmatmul.mubr.f32.gmra.mxu0 %v1564_v62  ;;  %v1628_v62 = vld [vmem:[%s13453_s1 + $0x238] sm:$0xff] }
 0x1fc   : > { %7793 = vmatprep.mubr.f32.mxu0 %v1565_v6  ;;  %v1629_v6 = vld [vmem:[%s13453_s1 + $0x240] sm:$0xff] }
 0x1ff   : > { %7794 = vmatmul.mubr.f32.gmra.mxu0 %v1566_v17  ;;  %v1630_v17 = vld [vmem:[%s13453_s1 + $0x248] sm:$0xff] }
 0x200   : > { %7796 = vmatprep.mubr.f32.mxu0 %v1567_v34  ;;  %v1631_v34 = vld [vmem:[%s13453_s1 + $0x250] sm:$0xff] }
 0x203   : > { %7797 = vmatmul.mubr.f32.gmra.mxu0 %v1568_v45  ;;  %v1713_v45 = vld [vmem:[%s13453_s1 + $0x4e0] sm:$0xff] }
 0x204   : > { %7799 = vmatprep.mubr.f32.mxu0 %v1569_v12  ;;  %v1632_v12 = vld [vmem:[%s13453_s1 + $0x258] sm:$0xff]  ;;  %8015 = vmatprep.mubr.f32.mxu1 %v1713_v45 }
 0x207   : > { %7800 = vmatmul.mubr.f32.gmra.mxu0 %v1570_v36  ;;  %v1714_v36 = vld [vmem:[%s13453_s1 + $0x4e8] sm:$0xff] }
 0x208   : > { %7802 = vmatprep.mubr.f32.mxu0 %v1571_v16  ;;  %v1633_v16 = vld [vmem:[%s13453_s1 + $0x260] sm:$0xff]  ;;  %8016 = vmatmul.mubr.f32.vlgmr.msra.gmra.mxu1 %v1714_v36  ;;  %v1664_v36 = vld [vmem:[%s13453_s1 + $0x358] sm:$0xff] }
 0x20b   : > { %7803 = vmatmul.mubr.f32.gmra.mxu0 %v1572_v5  ;;  %v1715_v5 = vld [vmem:[%s13453_s1 + $0x4f0] sm:$0xff] }
 0x20c   : > { %7805 = vmatprep.mubr.f32.mxu0 %v1573_v25  ;;  %v1634_v25 = vld [vmem:[%s13453_s1 + $0x268] sm:$0xff]  ;;  %8018 = vmatprep.mubr.f32.mxu1 %v1715_v5  ;;  %v1665_v5 = vld [vmem:[%s13453_s1 + $0x360] sm:$0xff] }
 0x20f   : > { %7806 = vmatmul.mubr.f32.gmra.mxu0 %v1574_v40  ;;  %v1716_v40 = vld [vmem:[%s13453_s1 + $0x4f8] sm:$0xff] }
 0x210   : > { %7808 = vmatprep.mubr.f32.mxu0 %v1575_v60  ;;  %v1635_v60 = vld [vmem:[%s13453_s1 + $0x270] sm:$0xff]  ;;  %8019 = vmatmul.mubr.f32.gmra.mxu1 %v1716_v40 }
 0x213   : > { %7809 = vmatmul.mubr.f32.gmra.mxu0 %v1576_v35  ;;  %v1717_v35 = vld [vmem:[%s13453_s1 + $0x500] sm:$0xff] }
 0x214   : > { %7811 = vmatprep.mubr.f32.mxu0 %v1577_v29  ;;  %v1636_v29 = vld [vmem:[%s13453_s1 + $0x278] sm:$0xff]  ;;  %8021 = vmatprep.mubr.f32.mxu1 %v1717_v35 }
 0x217   : > { %7812 = vmatmul.mubr.f32.gmra.mxu0 %v1578_v32  ;;  %v1718_v32 = vld [vmem:[%s13453_s1 + $0x508] sm:$0xff] }
 0x218   : > { %7814 = vmatprep.mubr.f32.mxu0 %v1579_v55  ;;  %v1637_v55 = vld [vmem:[%s13453_s1 + $0x280] sm:$0xff]  ;;  %8022 = vmatmul.mubr.f32.gmra.mxu1 %v1718_v32 }
 0x21b   : > { %7815 = vmatmul.mubr.f32.gmra.mxu0 %v1580_v48  ;;  %v1719_v48 = vld [vmem:[%s13453_s1 + $0x510] sm:$0xff] }
 0x21c   : > { %7817 = vmatprep.mubr.f32.mxu0 %v1581_v42  ;;  %v1638_v42 = vld [vmem:[%s13453_s1 + $0x288] sm:$0xff]  ;;  %8024 = vmatprep.mubr.f32.mxu1 %v1719_v48  ;;  %v1668_v48 = vld [vmem:[%s13453_s1 + $0x378] sm:$0xff] }
 0x21f   : > { %7818 = vmatmul.mubr.f32.gmra.mxu0 %v1582_v47  ;;  %v1720_v47 = vld [vmem:[%s13453_s1 + $0x518] sm:$0xff] }
 0x220   : > { %7820 = vmatprep.mubr.f32.mxu0 %v1583_v57  ;;  %v1639_v57 = vld [vmem:[%s13453_s1 + $0x290] sm:$0xff]  ;;  %8025 = vmatmul.mubr.f32.gmra.mxu1 %v1720_v47  ;;  %v10092_v47 = vld [vmem:[%s9030_s19] sm:$0xff] }
 0x223   : > { %7821 = vmatmul.mubr.f32.gmra.mxu0 %v1584_v54  ;;  %v1721_v54 = vld [vmem:[%s13453_s1 + $0x520] sm:$0xff] }
 0x224   : > { %7823 = vmatprep.mubr.f32.mxu0 %v1585_v9  ;;  %v1640_v9 = vld [vmem:[%s13453_s1 + $0x298] sm:$0xff]  ;;  %8027 = vmatprep.mubr.f32.mxu1 %v1721_v54  ;;  %v1669_v54 = vld [vmem:[%s13453_s1 + $0x380] sm:$0xff] }
 0x227   : > { %7824 = vmatmul.mubr.f32.gmra.mxu0 %v1586_v49  ;;  %v1722_v49 = vld [vmem:[%s13453_s1 + $0x528] sm:$0xff] }
 0x228   : > { %7826 = vmatprep.mubr.f32.mxu0 %v1587_v27  ;;  %v1641_v27 = vld [vmem:[%s13453_s1 + $0x2a0] sm:$0xff]  ;;  %8028 = vmatmul.mubr.f32.gmra.mxu1 %v1722_v49 }
 0x22b   : > { %7827 = vmatmul.mubr.f32.gmra.mxu0 %v1588_v3  ;;  %v1723_v3 = vld [vmem:[%s13453_s1 + $0x530] sm:$0xff] }
 0x22c   : > { %7829 = vmatprep.mubr.f32.mxu0 %v1589_v4  ;;  %v1642_v4 = vld [vmem:[%s13453_s1 + $0x2a8] sm:$0xff]  ;;  %8030 = vmatprep.mubr.f32.mxu1 %v1723_v3 }
 0x22d   : > { %v1670_v3 = vld [vmem:[%s13453_s1 + $0x388] sm:$0xff] }
 0x22f   : > { %7830 = vmatmul.mubr.f32.gmra.mxu0 %v1590_v56  ;;  %v1724_v56 = vld [vmem:[%s13453_s1 + $0x538] sm:$0xff] }
 0x230   : > { %7832 = vmatprep.mubr.f32.mxu0 %v1591_v44  ;;  %v1643_v44 = vld [vmem:[%s13453_s1 + $0x2b0] sm:$0xff]  ;;  %8031 = vmatmul.mubr.f32.gmra.mxu1 %v1724_v56 }
 0x231   : > { %v1671_v56 = vld [vmem:[%s13453_s1 + $0x390] sm:$0xff] }
 0x233   : > { %7833 = vmatmul.mubr.f32.gmra.mxu0 %v1592_v31  ;;  %v1725_v31 = vld [vmem:[%s13453_s1 + $0x540] sm:$0xff] }
 0x234   : > { %7835 = vmatprep.mubr.f32.mxu0 %v1593_v10  ;;  %v1644_v10 = vld [vmem:[%s13453_s1 + $0x2b8] sm:$0xff]  ;;  %8033 = vmatprep.mubr.f32.mxu1 %v1725_v31 }
 0x237   : > { %7836 = vmatmul.mubr.f32.gmra.mxu0 %v1594_v19  ;;  %v1726_v19 = vld [vmem:[%s13453_s1 + $0x548] sm:$0xff] }
 0x238   : > { %7838 = vmatprep.mubr.f32.mxu0 %v1595_v46  ;;  %v1645_v46 = vld [vmem:[%s13453_s1 + $0x2c0] sm:$0xff]  ;;  %8034 = vmatmul.mubr.f32.gmra.mxu1 %v1726_v19  ;;  %v1672_v19 = vld [vmem:[%s13453_s1 + $0x398] sm:$0xff] }
 0x23b   : > { %7839 = vmatmul.mubr.f32.gmra.mxu0 %v1596_v28  ;;  %v1727_v28 = vld [vmem:[%s13453_s1 + $0x550] sm:$0xff] }
 0x23c   : > { %7841 = vmatprep.mubr.f32.mxu0 %v1597_v20  ;;  %v1646_v20 = vld [vmem:[%s13453_s1 + $0x2c8] sm:$0xff]  ;;  %8036 = vmatprep.mubr.f32.mxu1 %v1727_v28  ;;  %v1673_v28 = vld [vmem:[%s13453_s1 + $0x3a0] sm:$0xff] }
 0x23f   : > { %7842 = vmatmul.mubr.f32.gmra.mxu0 %v1598_v52  ;;  %v1728_v52 = vld [vmem:[%s13453_s1 + $0x558] sm:$0xff] }
 0x240   : > { %7844 = vmatprep.mubr.f32.mxu0 %v1599_v0  ;;  %v1647_v0 = vld [vmem:[%s13453_s1 + $0x2d0] sm:$0xff]  ;;  %8037 = vmatmul.mubr.f32.gmra.mxu1 %v1728_v52 }
 0x243   : > { %7845 = vmatmul.mubr.f32.gmra.mxu0 %v1600_v58  ;;  %v1729_v58 = vld [vmem:[%s13453_s1 + $0x560] sm:$0xff] }
 0x244   : > { %7847 = vmatprep.mubr.f32.mxu0 %v1601_v59  ;;  %v1648_v59 = vld [vmem:[%s13453_s1 + $0x2d8] sm:$0xff]  ;;  %8039 = vmatprep.mubr.f32.mxu1 %v1729_v58 }
 0x247   : > { %7848 = vmatmul.mubr.f32.gmra.mxu0 %v1602_v38  ;;  %v1730_v38 = vld [vmem:[%s13453_s1 + $0x568] sm:$0xff] }
 0x248   : > { %7850 = vmatprep.mubr.f32.mxu0 %v1603_v7  ;;  %v1649_v7 = vld [vmem:[%s13453_s1 + $0x2e0] sm:$0xff]  ;;  %8040 = vmatmul.mubr.f32.gmra.mxu1 %v1730_v38 }
 0x24b   : > { %7851 = vmatmul.mubr.f32.gmra.mxu0 %v1604_v13  ;;  %v1731_v13 = vld [vmem:[%s13453_s1 + $0x570] sm:$0xff] }
 0x24c   : > { %7853 = vmatprep.mubr.f32.mxu0 %v1605_v1  ;;  %v1650_v1 = vld [vmem:[%s13453_s1 + $0x2e8] sm:$0xff]  ;;  %8042 = vmatprep.mubr.f32.mxu1 %v1731_v13 }
 0x24d   : > { %v1674_v13 = vld [vmem:[%s13453_s1 + $0x3a8] sm:$0xff] }
 0x24f   : > { %7854 = vmatmul.mubr.f32.gmra.mxu0 %v1606_v33  ;;  %v1732_v33 = vld [vmem:[%s13453_s1 + $0x578] sm:$0xff] }
 0x250   : > { %7856 = vmatprep.mubr.f32.mxu0 %v1607_v23  ;;  %v1651_v23 = vld [vmem:[%s13453_s1 + $0x2f0] sm:$0xff]  ;;  %8043 = vmatmul.mubr.f32.gmra.mxu1 %v1732_v33 }
 0x251   : > { %v1675_v33 = vld [vmem:[%s13453_s1 + $0x3b0] sm:$0xff] }
 0x253   : > { %7857 = vmatmul.mubr.f32.gmra.mxu0 %v1608_v39  ;;  %v1733_v39 = vld [vmem:[%s13453_s1 + $0x580] sm:$0xff] }
 0x254   : > { %7859 = vmatprep.mubr.f32.mxu0 %v1609_v53  ;;  %v1652_v53 = vld [vmem:[%s13453_s1 + $0x2f8] sm:$0xff]  ;;  %8045 = vmatprep.mubr.f32.mxu1 %v1733_v39 }
 0x257   : > { %7860 = vmatmul.mubr.f32.gmra.mxu0 %v1610_v18  ;;  %v1734_v18 = vld [vmem:[%s13453_s1 + $0x588] sm:$0xff] }
 0x258   : > { %7862 = vmatprep.mubr.f32.mxu0 %v1611_v8  ;;  %v1653_v8 = vld [vmem:[%s13453_s1 + $0x300] sm:$0xff]  ;;  %8046 = vmatmul.mubr.f32.gmra.mxu1 %v1734_v18 }
 0x25b   : > { %7863 = vmatmul.mubr.f32.gmra.mxu0 %v1612_v43  ;;  %v1735_v43 = vld [vmem:[%s13453_s1 + $0x590] sm:$0xff] }
 0x25c   : > { %7865 = vmatprep.mubr.f32.mxu0 %v1613_v63  ;;  %v1654_v63 = vld [vmem:[%s13453_s1 + $0x308] sm:$0xff]  ;;  %8048 = vmatprep.mubr.f32.mxu1 %v1735_v43 }
 0x25f   : > { %7866 = vmatmul.mubr.f32.gmra.mxu0 %v1614_v24  ;;  %v1736_v24 = vld [vmem:[%s13453_s1 + $0x598] sm:$0xff] }
 0x260   : > { %7868 = vmatprep.mubr.f32.mxu0 %v1615_v26  ;;  %v1655_v26 = vld [vmem:[%s13453_s1 + $0x310] sm:$0xff]  ;;  %8049 = vmatmul.mubr.f32.gmra.mxu1 %v1736_v24  ;;  %v1676_v24 = vld [vmem:[%s13453_s1 + $0x3b8] sm:$0xff] }
 0x263   : > { %7869 = vmatmul.mubr.f32.gmra.mxu0 %v1616_v22 }
 0x264   : > { %7871 = vmatprep.mubr.f32.mxu0 %v1617_v61  ;;  %v1656_v61 = vld [vmem:[%s13453_s1 + $0x318] sm:$0xff] }
 0x267   : > { %7872 = vmatmul.mubr.f32.gmra.mxu0 %v1618_v41 }
 0x268   : > { %7874 = vmatprep.mubr.f32.mxu0 %v1619_v50  ;;  %v1657_v50 = vld [vmem:[%s13453_s1 + $0x320] sm:$0xff] }
 0x26b   : > { %7875 = vmatmul.mubr.f32.gmra.mxu0 %v1620_v21 }
 0x26c   : > { %7877 = vmatprep.mubr.f32.mxu0 %v1621_v2  ;;  %v1658_v2 = vld [vmem:[%s13453_s1 + $0x328] sm:$0xff] }
 0x26f   : > { %7878 = vmatmul.mubr.f32.gmra.mxu0 %v1622_v15 }
 0x270   : > { %7880 = vmatprep.mubr.f32.mxu0 %v1623_v37  ;;  %v1659_v37 = vld [vmem:[%s13453_s1 + $0x330] sm:$0xff] }
 0x273   : > { %7881 = vmatmul.mubr.f32.gmra.mxu0 %v1624_v51 }
 0x274   : > { %7883 = vmatprep.mubr.f32.mxu0 %v1625_v11  ;;  %v1660_v11 = vld [vmem:[%s13453_s1 + $0x338] sm:$0xff] }
 0x277   : > { %7884 = vmatmul.mubr.f32.gmra.mxu0 %v1626_v30 }
 0x278   : > { %7886 = vmatprep.mubr.f32.mxu0 %v1627_v14  ;;  %v1661_v14 = vld [vmem:[%s13453_s1 + $0x340] sm:$0xff] }
 0x27b   : > { %7887 = vmatmul.mubr.f32.gmra.mxu0 %v1628_v62 }
 0x27c   : > { %7889 = vmatprep.mubr.f32.mxu0 %v1629_v6  ;;  %v1662_v6 = vld [vmem:[%s13453_s1 + $0x348] sm:$0xff] }
 0x27f   : > { %7890 = vmatmul.mubr.f32.gmra.mxu0 %v1630_v17 }
 0x280   : > { %7892 = vmatprep.mubr.f32.mxu0 %v1631_v34  ;;  %v1663_v34 = vld [vmem:[%s13453_s1 + $0x350] sm:$0xff] }
 0x283   : > { %7893 = vmatmul.mubr.f32.gmra.mxu0 %v1632_v12  ;;  %v13317_v12 = vlaneseq }
 0x284   : > { %7895 = vmatprep.mubr.f32.mxu0 %v1633_v16 }
 0x285   : > { %v10070_v40 = vshrl.u32 %v13317_v12, 7 }
 0x287   : > { %7896 = vmatmul.mubr.f32.gmra.mxu0 %v1634_v25 }
 0x288   : > { %7898 = vmatprep.mubr.f32.mxu0 %v1635_v60  ;;  %v1666_v60 = vld [vmem:[%s13453_s1 + $0x368] sm:$0xff] }
 0x28b   : > { %7899 = vmatmul.mubr.f32.gmra.mxu0 %v1636_v29  ;;  %v1667_v29 = vld [vmem:[%s13453_s1 + $0x370] sm:$0xff] }
 0x28c   : > { %7901 = vmatprep.mubr.f32.mxu0 %v1637_v55  ;;  %v10083_v55 = vsub.s32 0, %v10070_v40 }
 0x28e   : > { %13454 = vst [vmem:[#allocation39_spill] sm:$0xff] %v10083_v55  ;;  %v10103_v49 = vrot.slane %v10092_v47, %v10083_v55 }
 0x28f   : > { %7902 = vmatmul.mubr.f32.gmra.mxu0 %v1638_v42  ;;  %v10089_v42 = vsub.s32 1, %v10070_v40 }
 0x290   : > { %7904 = vmatprep.mubr.f32.mxu0 %v1639_v57 }
 0x291   : > { %13455 = vst [vmem:[#allocation40_spill] sm:$0xff] %v10089_v42 }
 0x293   : > { %7905 = vmatmul.mubr.f32.gmra.mxu0 %v1640_v9 }
 0x294   : > { %7907 = vmatprep.mubr.f32.mxu0 %v1641_v27  ;;  %v10107_v27 = vrot.slane %v10092_v47, %v10089_v42 }
 0x297   : > { %7908 = vmatmul.mubr.f32.gmra.mxu0 %v1642_v4 }
 0x298   : > { %7910 = vmatprep.mubr.f32.mxu0 %v1643_v44 }
 0x29b   : > { %7911 = vmatmul.mubr.f32.gmra.mxu0 %v1644_v10 }
 0x29c   : > { %7913 = vmatprep.mubr.f32.mxu0 %v1645_v46 }
 0x29f   : > { %7914 = vmatmul.mubr.f32.gmra.mxu0 %v1646_v20 }
 0x2a0   : > { %7916 = vmatprep.mubr.f32.mxu0 %v1647_v0 }
 0x2a3   : > { %7917 = vmatmul.mubr.f32.gmra.mxu0 %v1648_v59 }
 0x2a4   : > { %7919 = vmatprep.mubr.f32.mxu0 %v1649_v7 }
 0x2a7   : > { %7920 = vmatmul.mubr.f32.gmra.mxu0 %v1650_v1 }
 0x2a8   : > { %7922 = vmatprep.mubr.f32.mxu0 %v1651_v23 }
 0x2ab   : > { %7923 = vmatmul.mubr.f32.gmra.mxu0 %v1652_v53 }
 0x2ac   : > { %7925 = vmatprep.mubr.f32.mxu0 %v1653_v8 }
 0x2af   : > { %v7783_v22 = vpop.f32.mrf.mxu0  ;;  %7926 = vmatmul.mubr.f32.gmra.mxu0 %v1654_v63 }
 0x2b0   : > { %7928 = vmatprep.mubr.f32.mxu0 %v1655_v26  ;;  %v2714_v31 = vmul.f32 %v7783_v22, %v10103_v49  ;;  %v1677_v22 = vld [vmem:[%s13453_s1 + $0x3c0] sm:$0xff] }
 0x2b1   : > { %v1803_v41 = vpop.f32.mrf.mxu0 }
 0x2b2   : > { %v2713_v20 = vmul.f32 %v10103_v49, %v1803_v41 }
 0x2b3   : > { %v7786_v21 = vpop.f32.mrf.mxu0  ;;  %7929 = vmatmul.mubr.f32.gmra.mxu0 %v1656_v61 }
 0x2b4   : > { %7931 = vmatprep.mubr.f32.mxu0 %v1657_v50  ;;  %v2716_v59 = vmul.f32 %v7786_v21, %v10103_v49 }
 0x2b5   : > { %v10032_v15 = vpop.f32.mrf.mxu0 }
 0x2b6   : > { %v2715_v23 = vmul.f32 %v10103_v49, %v10032_v15 }
 0x2b7   : > { %v10037_v51 = vpop.f32.mrf.mxu0  ;;  %7932 = vmatmul.mubr.f32.gmra.mxu0 %v1658_v2 }
 0x2b8   : > { %7934 = vmatprep.mubr.f32.mxu0 %v1659_v37  ;;  %v2718_v8 = vmul.f32 %v10037_v51, %v10103_v49  ;;  %v1678_v51 = vld [vmem:[%s13453_s1 + $0x3c8] sm:$0xff] }
 0x2b9   : > { %v10042_v30 = vpop.f32.mrf.mxu0 }
 0x2ba   : > { %v2717_v61 = vmul.f32 %v10103_v49, %v10042_v30  ;;  %v1679_v30 = vld [vmem:[%s13453_s1 + $0x3d0] sm:$0xff] }
 0x2bb   : > { %v10047_v62 = vpop.f32.mrf.mxu0  ;;  %7935 = vmatmul.mubr.f32.gmra.mxu0 %v1660_v11 }
 0x2bc   : > { %7937 = vmatprep.mubr.f32.mxu0 %v1661_v14  ;;  %v2720_v2 = vmul.f32 %v10047_v62, %v10103_v49 }
 0x2bd   : > { %v10052_v17 = vpop.f32.mrf.mxu0 }
 0x2be   : > { %v2719_v14 = vmul.f32 %v10103_v49, %v10052_v17  ;;  %v1681_v17 = vld [vmem:[%s13453_s1 + $0x3e0] sm:$0xff] }
 0x2bf   : > { %v10057_v45 = vpop.f32.mrf.mxu0  ;;  %7938 = vmatmul.mubr.f32.gmra.mxu0 %v1662_v6 }
 0x2c0   : > { %7940 = vmatprep.mubr.f32.mxu0 %v1663_v34 }
 0x2c1   : > { %v10062_v16 = vpop.f32.mrf.mxu0 }
 0x2c3   : > { %v10067_v25 = vpop.f32.mrf.mxu0  ;;  %7941 = vmatmul.mubr.f32.gmra.mxu0 %v1664_v36  ;;  %v2722_v36 = vmul.f32 %v10057_v45, %v10103_v49 }
 0x2c4   : > { %7943 = vmatprep.mubr.f32.mxu0 %v1665_v5 }
 0x2c5   : > { %v10075_v35 = vpop.f32.mrf.mxu0 }
 0x2c7   : > { %v10080_v32 = vpop.f32.mrf.mxu0  ;;  %7944 = vmatmul.mubr.f32.gmra.mxu0 %v1666_v60 }
 0x2c8   : > { %7946 = vmatprep.mubr.f32.mxu0 %v1667_v29  ;;  %v1680_v29 = vld [vmem:[%s13453_s1 + $0x3d8] sm:$0xff] }
 0x2c9   : > { %v10094_v57 = vpop.f32.mrf.mxu0 }
 0x2cb   : > { %v10099_v9 = vpop.f32.mrf.mxu0  ;;  %7947 = vmatmul.mubr.f32.gmra.mxu0 %v1668_v48 }
 0x2cc   : > { %7949 = vmatprep.mubr.f32.mxu0 %v1669_v54  ;;  %v2721_v54 = vmul.f32 %v10103_v49, %v10062_v16  ;;  %v1683_v16 = vld [vmem:[%s13453_s1 + $0x3f0] sm:$0xff] }
 0x2cd   : > { %v10112_v4 = vpop.f32.mrf.mxu0 }
 0x2cf   : > { %v7807_v44 = vpop.f32.mrf.mxu0  ;;  %7950 = vmatmul.mubr.f32.gmra.mxu0 %v1670_v3 }
 0x2d0   : > { %v2734_v10 = vmul.f32 %v7807_v44, %v10107_v27  ;;  %7952 = vmatprep.mubr.f32.mxu0 %v1671_v56  ;;  %v2724_v44 = vmul.f32 %v10067_v25, %v10103_v49 }
 0x2d1   : > { %v1883_v46 = vpop.f32.mrf.mxu0 }
 0x2d2   : > { %v10126_v52 = vadd.f32 %v2734_v10, %v2714_v31  ;;  %v2733_v0 = vmul.f32 %v10107_v27, %v1883_v46 }
 0x2d3   : > { %v7810_v58 = vpop.f32.mrf.mxu0  ;;  %7953 = vmatmul.mubr.f32.gmra.mxu0 %v1672_v19  ;;  %v1682_v19 = vld [vmem:[%s13453_s1 + $0x3e8] sm:$0xff] }
 0x2d4   : > { %v10130_v38 = vadd.f32 %v2733_v0, %v2713_v20  ;;  %v2736_v7 = vmul.f32 %v7810_v58, %v10107_v27  ;;  %7955 = vmatprep.mubr.f32.mxu0 %v1673_v28  ;;  %v2723_v28 = vmul.f32 %v10103_v49, %v10075_v35  ;;  %v2726_v58 = vmul.f32 %v10080_v32, %v10103_v49 }
 0x2d5   : > { %v1893_v1 = vpop.f32.mrf.mxu0  ;;  %v10217_v35 = vsub.s32 2, %v10070_v40  ;;  %v2725_v32 = vmul.f32 %v10103_v49, %v10094_v57  ;;  %v1686_v57 = vld [vmem:[%s13453_s1 + $0x408] sm:$0xff] }
 0x2d6   : > { %v10141_v39 = vadd.f32 %v2736_v7, %v2716_v59  ;;  %v2735_v53 = vmul.f32 %v10107_v27, %v1893_v1 }
 0x2d7   : > { %v7813_v18 = vpop.f32.mrf.mxu0  ;;  %7956 = vmatmul.mubr.f32.gmra.mxu0 %v1674_v13  ;;  %v1684_v13 = vld [vmem:[%s13453_s1 + $0x3f8] sm:$0xff]  ;;  %13456 = vst [vmem:[#allocation41_spill] sm:$0xff] %v10217_v35 }
 0x2d8   : > { %v10146_v43 = vadd.f32 %v2735_v53, %v2715_v23  ;;  %v2738_v63 = vmul.f32 %v7813_v18, %v10107_v27  ;;  %7958 = vmatprep.mubr.f32.mxu0 %v1675_v33  ;;  %v1685_v33 = vld [vmem:[%s13453_s1 + $0x400] sm:$0xff] }
 0x2d9   : > { %v1903_v26 = vpop.f32.mrf.mxu0 }
 0x2da   : > { %v10157_v41 = vadd.f32 %v2738_v63, %v2718_v8  ;;  %v2737_v50 = vmul.f32 %v10107_v27, %v1903_v26  ;;  %v2728_v8 = vmul.f32 %v10099_v9, %v10103_v49  ;;  %v10234_v26 = vrot.slane %v10092_v47, %v10217_v35 }
 0x2db   : > { %v7816_v21 = vpop.f32.mrf.mxu0  ;;  %7959 = vmatmul.mubr.f32.gmra.mxu0 %v1676_v24  ;;  %v2727_v9 = vmul.f32 %v10103_v49, %v10112_v4  ;;  %v1689_v49 = vld [vmem:[%s13453_s1 + $0x420] sm:$0xff] }
 0x2dc   : > { %v10162_v15 = vadd.f32 %v2737_v50, %v2717_v61  ;;  %v2740_v37 = vmul.f32 %v7816_v21, %v10107_v27  ;;  %7961 = vmatprep.mubr.f32.mxu0 %v1677_v22  ;;  %v1687_v61 = vld [vmem:[%s13453_s1 + $0x410] sm:$0xff] }
 0x2dd   : > { %v1913_v11 = vpop.f32.mrf.mxu0 }
 0x2de   : > { %v10173_v6 = vadd.f32 %v2740_v37, %v2720_v2  ;;  %v2739_v62 = vmul.f32 %v10107_v27, %v1913_v11  ;;  %v1688_v11 = vld [vmem:[%s13453_s1 + $0x418] sm:$0xff] }
 0x2df   : > { %v7819_v34 = vpop.f32.mrf.mxu0  ;;  %7962 = vmatmul.mubr.f32.gmra.mxu0 %v1678_v51 }
 0x2e0   : > { %v10178_v5 = vadd.f32 %v2739_v62, %v2719_v14  ;;  %v2742_v60 = vmul.f32 %v7819_v34, %v10107_v27  ;;  %7964 = vmatprep.mubr.f32.mxu0 %v1679_v30 }
 0x2e1   : > { %v1923_v48 = vpop.f32.mrf.mxu0 }
 0x2e2   : > { %v10189_v3 = vadd.f32 %v2742_v60, %v2722_v36  ;;  %v2741_v45 = vmul.f32 %v10107_v27, %v1923_v48  ;;  %v1690_v36 = vld [vmem:[%s13453_s1 + $0x428] sm:$0xff] }
 0x2e3   : > { %v7822_v56 = vpop.f32.mrf.mxu0  ;;  %7965 = vmatmul.mubr.f32.gmra.mxu0 %v1680_v29 }
 0x2e4   : > { %v10194_v31 = vadd.f32 %v2741_v45, %v2721_v54  ;;  %v2744_v10 = vmul.f32 %v7822_v56, %v10107_v27  ;;  %7967 = vmatprep.mubr.f32.mxu0 %v1681_v17  ;;  %v1692_v45 = vld [vmem:[%s13453_s1 + $0x438] sm:$0xff] }
 0x2e5   : > { %v1933_v46 = vpop.f32.mrf.mxu0 }
 0x2e6   : > { %v10205_v20 = vadd.f32 %v2744_v10, %v2724_v44  ;;  %v2743_v25 = vmul.f32 %v10107_v27, %v1933_v46 }
 0x2e7   : > { %v7825_v0 = vpop.f32.mrf.mxu0  ;;  %7968 = vmatmul.mubr.f32.gmra.mxu0 %v1682_v19 }
 0x2e8   : > { %v10210_v59 = vadd.f32 %v2743_v25, %v2723_v28  ;;  %v2746_v7 = vmul.f32 %v7825_v0, %v10107_v27  ;;  %7970 = vmatprep.mubr.f32.mxu0 %v1683_v16  ;;  %v1694_v16 = vld [vmem:[%s13453_s1 + $0x448] sm:$0xff] }
 0x2e9   : > { %v1943_v1 = vpop.f32.mrf.mxu0 }
 0x2ea   : > { %v10224_v23 = vadd.f32 %v2746_v7, %v2726_v58  ;;  %v2745_v53 = vmul.f32 %v10107_v27, %v1943_v1 }
 0x2eb   : > { %v7828_v18 = vpop.f32.mrf.mxu0  ;;  %7971 = vmatmul.mubr.f32.gmra.mxu0 %v1684_v13  ;;  %v1696_v13 = vld [vmem:[%s13453_s1 + $0x458] sm:$0xff] }
 0x2ec   : > { %v10229_v63 = vadd.f32 %v2745_v53, %v2725_v32  ;;  %v2748_v24 = vmul.f32 %v7828_v18, %v10107_v27  ;;  %7973 = vmatprep.mubr.f32.mxu0 %v1685_v33 }
 0x2ed   : > { %v1953_v22 = vpop.f32.mrf.mxu0 }
 0x2ee   : > { %v10244_v50 = vadd.f32 %v2748_v24, %v2728_v8  ;;  %v2747_v21 = vmul.f32 %v10107_v27, %v1953_v22  ;;  %v1698_v8 = vld [vmem:[%s13453_s1 + $0x468] sm:$0xff] }
 0x2ef   : > { %v7831_v2 = vpop.f32.mrf.mxu0  ;;  %7974 = vmatmul.mubr.f32.gmra.mxu0 %v1686_v57 }
 0x2f0   : > { %v10247_v37 = vadd.f32 %v2747_v21, %v2727_v9  ;;  %v2770_v51 = vmul.f32 %v7831_v2, %v10234_v26  ;;  %7976 = vmatprep.mubr.f32.mxu0 %v1687_v61  ;;  %v1700_v21 = vld [vmem:[%s13453_s1 + $0x478] sm:$0xff]  ;;  %v10338_v2 = vsub.s32 3, %v10070_v40 }
 0x2f1   : > { %v1963_v30 = vpop.f32.mrf.mxu0 }
 0x2f2   : > { %v10257_v4 = vadd.f32 %v2770_v51, %v10126_v52  ;;  %v2769_v27 = vmul.f32 %v10234_v26, %v1963_v30  ;;  %v1691_v52 = vld [vmem:[%s13453_s1 + $0x430] sm:$0xff] }
 0x2f3   : > { %v7834_v14 = vpop.f32.mrf.mxu0  ;;  %7977 = vmatmul.mubr.f32.gmra.mxu0 %v1688_v11 }
 0x2f4   : > { %v10261_v62 = vadd.f32 %v2769_v27, %v10130_v38  ;;  %v2772_v34 = vmul.f32 %v7834_v14, %v10234_v26  ;;  %7979 = vmatprep.mubr.f32.mxu0 %v1689_v49  ;;  %v10353_v14 = vrot.slane %v10092_v47, %v10338_v2 }
 0x2f5   : > { %v1973_v60 = vpop.f32.mrf.mxu0 }
 0x2f6   : > { %v10271_v29 = vadd.f32 %v2772_v34, %v10141_v39  ;;  %v2771_v48 = vmul.f32 %v10234_v26, %v1973_v60  ;;  %v1693_v39 = vld [vmem:[%s13453_s1 + $0x440] sm:$0xff]  ;;  %v1702_v34 = vld [vmem:[%s13453_s1 + $0x488] sm:$0xff] }
 0x2f7   : > { %v7837_v17 = vpop.f32.mrf.mxu0  ;;  %7980 = vmatmul.mubr.f32.gmra.mxu0 %v1690_v36  ;;  %v1703_v36 = vld [vmem:[%s13453_s1 + $0x490] sm:$0xff] }
 0x2f8   : > { %v10275_v38 = vadd.f32 %v2771_v48, %v10146_v43  ;;  %v2774_v54 = vmul.f32 %v7837_v17, %v10234_v26  ;;  %7982 = vmatprep.mubr.f32.mxu0 %v1691_v52 }
 0x2f9   : > { %v1983_v56 = vpop.f32.mrf.mxu0 }
 0x2fa   : > { %v10285_v44 = vadd.f32 %v2774_v54, %v10157_v41  ;;  %v2773_v10 = vmul.f32 %v10234_v26, %v1983_v56  ;;  %v1695_v41 = vld [vmem:[%s13453_s1 + $0x450] sm:$0xff]  ;;  %v1704_v54 = vld [vmem:[%s13453_s1 + $0x498] sm:$0xff] }
 0x2fb   : > { %v7840_v19 = vpop.f32.mrf.mxu0  ;;  %7983 = vmatmul.mubr.f32.gmra.mxu0 %v1692_v45 }
 0x2fc   : > { %v10289_v43 = vadd.f32 %v2773_v10, %v10162_v15  ;;  %v2776_v46 = vmul.f32 %v7840_v19, %v10234_v26  ;;  %7985 = vmatprep.mubr.f32.mxu0 %v1693_v39  ;;  %v1706_v19 = vld [vmem:[%s13453_s1 + $0x4a8] sm:$0xff] }
 0x2fd   : > { %v1993_v28 = vpop.f32.mrf.mxu0 }
 0x2fe   : > { %v10299_v25 = vadd.f32 %v2776_v46, %v10173_v6  ;;  %v2775_v0 = vmul.f32 %v10234_v26, %v1993_v28  ;;  %v1697_v6 = vld [vmem:[%s13453_s1 + $0x460] sm:$0xff] }
 0x2ff   : > { %v7843_v58 = vpop.f32.mrf.mxu0  ;;  %7986 = vmatmul.mubr.f32.gmra.mxu0 %v1694_v16 }
 0x300   : > { %v10303_v15 = vadd.f32 %v2775_v0, %v10178_v5  ;;  %v2778_v7 = vmul.f32 %v7843_v58, %v10234_v26  ;;  %7988 = vmatprep.mubr.f32.mxu0 %v1695_v41  ;;  %v1708_v58 = vld [vmem:[%s13453_s1 + $0x4b8] sm:$0xff] }
 0x301   : > { %v2003_v1 = vpop.f32.mrf.mxu0 }
 0x302   : > { %v10313_v33 = vadd.f32 %v2778_v7, %v10189_v3  ;;  %v2777_v32 = vmul.f32 %v10234_v26, %v2003_v1  ;;  %v1699_v3 = vld [vmem:[%s13453_s1 + $0x470] sm:$0xff] }
 0x303   : > { %v7846_v53 = vpop.f32.mrf.mxu0  ;;  %7989 = vmatmul.mubr.f32.gmra.mxu0 %v1696_v13  ;;  %v1709_v13 = vld [vmem:[%s13453_s1 + $0x4c0] sm:$0xff] }
 0x304   : > { %v10317_v5 = vadd.f32 %v2777_v32, %v10194_v31  ;;  %v2780_v18 = vmul.f32 %v7846_v53, %v10234_v26  ;;  %7991 = vmatprep.mubr.f32.mxu0 %v1697_v6  ;;  %v1710_v53 = vld [vmem:[%s13453_s1 + $0x4c8] sm:$0xff] }
 0x305   : > { %v2013_v24 = vpop.f32.mrf.mxu0 }
 0x306   : > { %v10327_v57 = vadd.f32 %v2780_v18, %v10205_v20  ;;  %v2779_v22 = vmul.f32 %v10234_v26, %v2013_v24  ;;  %v1701_v20 = vld [vmem:[%s13453_s1 + $0x480] sm:$0xff] }
 0x307   : > { %v7849_v61 = vpop.f32.mrf.mxu0  ;;  %7992 = vmatmul.mubr.f32.gmra.mxu0 %v1698_v8  ;;  %v1711_v8 = vld [vmem:[%s13453_s1 + $0x4d0] sm:$0xff] }
 0x308   : > { %v10331_v31 = vadd.f32 %v2779_v22, %v10210_v59  ;;  %v2782_v9 = vmul.f32 %v7849_v61, %v10234_v26  ;;  %7994 = vmatprep.mubr.f32.mxu0 %v1699_v3  ;;  %v1712_v61 = vld [vmem:[%s13453_s1 + $0x4d8] sm:$0xff] }
 0x309   : > { %v2023_v51 = vpop.f32.mrf.mxu0 }
 0x30a   : > { %v10344_v11 = vadd.f32 %v2782_v9, %v10224_v23  ;;  %v2781_v59 = vmul.f32 %v10234_v26, %v2023_v51 }
 0x30b   : > { %v7852_v30 = vpop.f32.mrf.mxu0  ;;  %7995 = vmatmul.mubr.f32.gmra.mxu0 %v1700_v21 }
 0x30c   : > { %v10348_v49 = vadd.f32 %v2781_v59, %v10229_v63  ;;  %v2784_v27 = vmul.f32 %v7852_v30, %v10234_v26  ;;  %7997 = vmatprep.mubr.f32.mxu0 %v1701_v20 }
 0x30d   : > { %v2033_v23 = vpop.f32.mrf.mxu0 }
 0x30e   : > { %v10362_v60 = vadd.f32 %v2784_v27, %v10244_v50  ;;  %v2783_v63 = vmul.f32 %v10234_v26, %v2033_v23  ;;  %v1705_v50 = vld [vmem:[%s13453_s1 + $0x4a0] sm:$0xff] }
 0x30f   : > { %v7855_v52 = vpop.f32.mrf.mxu0  ;;  %7998 = vmatmul.mubr.f32.gmra.mxu0 %v1702_v34 }
 0x310   : > { %v10366_v48 = vadd.f32 %v2783_v63, %v10247_v37  ;;  %v2806_v17 = vmul.f32 %v7855_v52, %v10353_v14  ;;  %8000 = vmatprep.mubr.f32.mxu0 %v1703_v36 }
 0x311   : > { %v2043_v45 = vpop.f32.mrf.mxu0 }
 0x312   : > { %v10376_v56 = vadd.f32 %v2806_v17, %v10257_v4  ;;  %v2805_v26 = vmul.f32 %v10353_v14, %v2043_v45  ;;  %v1707_v4 = vld [vmem:[%s13453_s1 + $0x4b0] sm:$0xff] }
 0x313   : > { %v7858_v39 = vpop.f32.mrf.mxu0  ;;  %8001 = vmatmul.mubr.f32.gmra.mxu0 %v1704_v54 }
 0x314   : > { %v10380_v37 = vadd.f32 %v2805_v26, %v10261_v62  ;;  %v2808_v10 = vmul.f32 %v7858_v39, %v10353_v14  ;;  %8003 = vmatprep.mubr.f32.mxu0 %v1705_v50 }
 0x315   : > { %v2053_v46 = vpop.f32.mrf.mxu0 }
 0x316   : > { %v2824_v16 = vadd.f32 %v2808_v10, %v10271_v29  ;;  %v2807_v28 = vmul.f32 %v10353_v14, %v2053_v46 }
 0x317   : > { %v7861_v41 = vpop.f32.mrf.mxu0  ;;  %8004 = vmatmul.mubr.f32.gmra.mxu0 %v1706_v19 }
 0x318   : > { %v2823_v62 = vadd.f32 %v2807_v28, %v10275_v38  ;;  %v2810_v0 = vmul.f32 %v7861_v41, %v10353_v14  ;;  %8006 = vmatprep.mubr.f32.mxu0 %v1707_v4 }
 0x319   : > { %v2063_v7 = vpop.f32.mrf.mxu0 }
 0x31a   : > { %v2826_v29 = vadd.f32 %v2810_v0, %v10285_v44  ;;  %v2809_v1 = vmul.f32 %v10353_v14, %v2063_v7 }
 0x31b   : > { %v7864_v6 = vpop.f32.mrf.mxu0  ;;  %8007 = vmatmul.mubr.f32.gmra.mxu0 %v1708_v58 }
 0x31c   : > { %v2825_v38 = vadd.f32 %v2809_v1, %v10289_v43  ;;  %v2812_v32 = vmul.f32 %v7864_v6, %v10353_v14  ;;  %8009 = vmatprep.mubr.f32.mxu0 %v1709_v13 }
 0x31d   : > { %v2073_v18 = vpop.f32.mrf.mxu0 }
 0x31e   : > { %v2828_v44 = vadd.f32 %v2812_v32, %v10299_v25  ;;  %v2811_v24 = vmul.f32 %v10353_v14, %v2073_v18 }
 0x31f   : > { %v7867_v3 = vpop.f32.mrf.mxu0  ;;  %8010 = vmatmul.mubr.f32.gmra.mxu0 %v1710_v53 }
 0x320   : > { %v2827_v43 = vadd.f32 %v2811_v24, %v10303_v15  ;;  %v2814_v22 = vmul.f32 %v7867_v3, %v10353_v14  ;;  %8012 = vmatprep.mubr.f32.mxu0 %v1711_v8 }
 0x321   : > { %v2083_v9 = vpop.f32.mrf.mxu0 }
 0x322   : > { %v2830_v21 = vadd.f32 %v2814_v22, %v10313_v33  ;;  %v2813_v51 = vmul.f32 %v10353_v14, %v2083_v9  ;;  %v10425_v33 = vsub.s32 4, %v10070_v40 }
 0x323   : > { %v7870_v20 = vpop.f32.mrf.mxu0  ;;  %8013 = vmatmul.mubr.f32.gmra.mxu0 %v1712_v61 }
 0x324   : > { %v2829_v25 = vadd.f32 %v2813_v51, %v10317_v5  ;;  %v2816_v59 = vmul.f32 %v7870_v20, %v10353_v14  ;;  %v2840_v45 = vrot.slane %v10092_v47, %v10425_v33 }
 0x325   : > { %v2093_v30 = vpop.f32.mrf.mxu0 }
 0x326   : > { %v2832_v15 = vadd.f32 %v2816_v59, %v10327_v57  ;;  %v2815_v27 = vmul.f32 %v10353_v14, %v2093_v30 }
 0x327   : > { %v7873_v34 = vpop.f32.mrf.mxu0 }
 0x328   : > { %v2831_v23 = vadd.f32 %v2815_v27, %v10331_v31  ;;  %v2818_v36 = vmul.f32 %v7873_v34, %v10353_v14 }
 0x329   : > { %v2103_v63 = vpop.f32.mrf.mxu0 }
 0x32a   : > { %v2834_v52 = vadd.f32 %v2818_v36, %v10344_v11  ;;  %v2817_v5 = vmul.f32 %v10353_v14, %v2103_v63 }
 0x32b   : > { %v7876_v17 = vpop.f32.mrf.mxu0 }
 0x32c   : > { %v2833_v54 = vadd.f32 %v2817_v5, %v10348_v49  ;;  %v2820_v57 = vmul.f32 %v7876_v17, %v10353_v14 }
 0x32d   : > { %v2113_v50 = vpop.f32.mrf.mxu0 }
 0x32e   : > { %v2836_v31 = vadd.f32 %v2820_v57, %v10362_v60  ;;  %v2819_v26 = vmul.f32 %v10353_v14, %v2113_v50 }
 0x32f   : > { %v7879_v39 = vpop.f32.mrf.mxu0 }
 0x330   : > { %v2835_v10 = vadd.f32 %v2819_v26, %v10366_v48  ;;  %v2842_v19 = vmul.f32 %v7879_v39, %v2840_v45 }
 0x331   : > { %v2123_v11 = vpop.f32.mrf.mxu0 }
 0x332   : > { %v2858_v46 = vadd.f32 %v2842_v19, %v10376_v56  ;;  %v2841_v4 = vmul.f32 %v2840_v45, %v2123_v11 }
 0x333   : > { %v7882_v28 = vpop.f32.mrf.mxu0 }
 0x334   : > { %v2857_v49 = vadd.f32 %v2841_v4, %v10380_v37  ;;  %v2844_v41 = vmul.f32 %v7882_v28, %v2840_v45 }
 0x335   : > { %v2133_v0 = vpop.f32.mrf.mxu0 }
 0x336   : > { %v2860_v58 = vadd.f32 %v2844_v41, %v2824_v16  ;;  %v2843_v7 = vmul.f32 %v2840_v45, %v2133_v0 }
 0x337   : > { %v7885_v13 = vpop.f32.mrf.mxu0 }
 0x338   : > { %v2859_v1 = vadd.f32 %v2843_v7, %v2823_v62  ;;  %v2846_v60 = vmul.f32 %v7885_v13, %v2840_v45 }
 0x339   : > { %v2143_v6 = vpop.f32.mrf.mxu0 }
 0x33a   : > { %v2862_v14 = vadd.f32 %v2846_v60, %v2826_v29  ;;  %v2845_v32 = vmul.f32 %v2840_v45, %v2143_v6  ;;  %v3128_v6 = vld [vmem:[%s9039_s6 + $0x78] sm:$0xff] }
 0x33b   : > { %v7888_v53 = vpop.f32.mrf.mxu0  ;;  %8051 = vmatprep.subr.mxu1 %v3128_v6 }
 0x33c   : > { %v2861_v48 = vadd.f32 %v2845_v32, %v2825_v38  ;;  %v2848_v18 = vmul.f32 %v7888_v53, %v2840_v45  ;;  %8052 = vmatpush3.msra.mxu1 %v3128_v6 }
 0x33d   : > { %v2153_v8 = vpop.f32.mrf.mxu0 }
 0x33e   : > { %v2864_v24 = vadd.f32 %v2848_v18, %v2828_v44  ;;  %v2847_v56 = vmul.f32 %v2840_v45, %v2153_v8  ;;  %v10445_v44 = vsub.s32 5, %v10070_v40 }
 0x33f   : > { %v7891_v3 = vpop.f32.mrf.mxu0 }
 0x340   : > { %v2863_v22 = vadd.f32 %v2847_v56, %v2827_v43  ;;  %v2850_v61 = vmul.f32 %v7891_v3, %v2840_v45  ;;  %v3126_v56 = vld [vmem:[%s9039_s6 + $0x68] sm:$0xff] }
 0x341   : > { %v2163_v37 = vpop.f32.mrf.mxu0 }
 0x342   : > { %v2866_v9 = vadd.f32 %v2850_v61, %v2830_v21  ;;  %v2849_v51 = vmul.f32 %v2840_v45, %v2163_v37  ;;  %v3125_v37 = vld [vmem:[%s9039_s6 + $0x60] sm:$0xff] }
 0x343   : > { %v7894_v16 = vpop.f32.mrf.mxu0 }
 0x344   : > { %v10438_v20 = vadd.f32 %v2849_v51, %v2829_v25  ;;  %v2852_v62 = vmul.f32 %v7894_v16, %v2840_v45 }
 0x345   : > { %v2173_v59 = vpop.f32.mrf.mxu0 }
 0x346   : > { %v10440_v30 = vadd.f32 %v2852_v62, %v2832_v15  ;;  %v2851_v29 = vmul.f32 %v2840_v45, %v2173_v59  ;;  %v10453_v15 = vrot.slane %v10092_v47, %v10445_v44  ;;  %v3124_v62 = vld [vmem:[%s9039_s6 + $0x58] sm:$0xff] }
 0x347   : > { %v7897_v27 = vpop.f32.mrf.mxu0 }
 0x348   : > { %v10442_v38 = vadd.f32 %v2851_v29, %v2831_v23  ;;  %v2854_v34 = vmul.f32 %v7897_v27, %v2840_v45  ;;  %v3123_v27 = vld [vmem:[%s9039_s6 + $0x50] sm:$0xff] }
 0x349   : > { %v2183_v43 = vpop.f32.mrf.mxu0 }
 0x34a   : > { %v10447_v36 = vadd.f32 %v2854_v34, %v2834_v52  ;;  %v2853_v21 = vmul.f32 %v2840_v45, %v2183_v43 }
 0x34b   : > { %v7900_v63 = vpop.f32.mrf.mxu0 }
 0x34c   : > { %v10449_v5 = vadd.f32 %v2853_v21, %v2833_v54  ;;  %v2856_v25 = vmul.f32 %v7900_v63, %v2840_v45  ;;  %v3122_v21 = vld [vmem:[%s9039_s6 + $0x48] sm:$0xff] }
 0x34d   : > { %v2193_v17 = vpop.f32.mrf.mxu0 }
 0x34e   : > { %v10455_v57 = vadd.f32 %v2856_v25, %v2836_v31  ;;  %v2855_v23 = vmul.f32 %v2840_v45, %v2193_v17  ;;  %v10507_v25 = vsub.s32 6, %v10070_v40 }
 0x34f   : > { %v7903_v50 = vpop.f32.mrf.mxu0 }
 0x350   : > { %v10457_v26 = vadd.f32 %v2855_v23, %v2835_v10  ;;  %v2878_v39 = vmul.f32 %v7903_v50, %v10453_v15  ;;  %13457 = vst [vmem:[#allocation42_spill] sm:$0xff] %v10507_v25  ;;  %v3121_v23 = vld [vmem:[%s9039_s6 + $0x40] sm:$0xff] }
 0x351   : > { %v2203_v52 = vpop.f32.mrf.mxu0 }
 0x352   : > { %v10460_v19 = vadd.f32 %v2878_v39, %v2858_v46  ;;  %v2877_v54 = vmul.f32 %v10453_v15, %v2203_v52 }
 0x353   : > { %v7906_v11 = vpop.f32.mrf.mxu0 }
 0x354   : > { %v10463_v4 = vadd.f32 %v2877_v54, %v2857_v49  ;;  %v2880_v28 = vmul.f32 %v7906_v11, %v10453_v15  ;;  %v10520_v54 = vrot.slane %v10092_v47, %v10507_v25 }
 0x355   : > { %v2213_v41 = vpop.f32.mrf.mxu0 }
 0x356   : > { %v10466_v31 = vadd.f32 %v2880_v28, %v2860_v58  ;;  %v2879_v45 = vmul.f32 %v10453_v15, %v2213_v41 }
 0x357   : > { %v7909_v10 = vpop.f32.mrf.mxu0 }
 0x358   : > { %v10469_v0 = vadd.f32 %v2879_v45, %v2859_v1  ;;  %v2882_v7 = vmul.f32 %v7909_v10, %v10453_v15  ;;  %v3127_v1 = vld [vmem:[%s9039_s6 + $0x70] sm:$0xff] }
 0x359   : > { %v2223_v46 = vpop.f32.mrf.mxu0  ;;  %8053 = vmatprep.subr.mxu1 %v3127_v1 }
 0x35a   : > { %v10472_v13 = vadd.f32 %v2882_v7, %v2862_v14  ;;  %v2881_v49 = vmul.f32 %v10453_v15, %v2223_v46  ;;  %8054 = vmatpush3.msra.mxu1 %v3127_v1  ;;  %v3120_v7 = vld [vmem:[%s9039_s6 + $0x38] sm:$0xff] }
 0x35b   : > { %v7912_v60 = vpop.f32.mrf.mxu0  ;;  %8055 = vmatprep.subr.mxu1 %v3126_v56 }
 0x35c   : > { %v10476_v32 = vadd.f32 %v2881_v49, %v2861_v48  ;;  %v2884_v58 = vmul.f32 %v7912_v60, %v10453_v15  ;;  %8056 = vmatpush3.msra.mxu1 %v3126_v56  ;;  %v10552_v56 = vpop.f32.mrf.mxu1 }
 0x35d   : > { %v2233_v53 = vpop.f32.mrf.mxu0  ;;  %8057 = vmatprep.subr.mxu1 %v3125_v37 }
 0x35e   : > { %v10480_v18 = vadd.f32 %v2884_v58, %v2864_v24  ;;  %v2883_v8 = vmul.f32 %v10453_v15, %v2233_v53  ;;  %8058 = vmatpush3.msra.mxu1 %v3125_v37 }
 0x35f   : > { %v7915_v14 = vpop.f32.mrf.mxu0  ;;  %8059 = vmatprep.subr.mxu1 %v3124_v62 }
 0x360   : > { %v10484_v3 = vadd.f32 %v2883_v8, %v2863_v22  ;;  %v2886_v48 = vmul.f32 %v7915_v14, %v10453_v15  ;;  %8060 = vmatpush3.msra.mxu1 %v3124_v62  ;;  %v3116_v8 = vld [vmem:[%s9039_s6 + $0x18] sm:$0xff]  ;;  %v2583_v62 = vpop.f32.mrf.mxu1 }
 0x361   : > { %v2243_v61 = vpop.f32.mrf.mxu0  ;;  %8061 = vmatprep.subr.mxu1 %v3123_v27 }
 0x362   : > { %v10488_v51 = vadd.f32 %v2886_v48, %v2866_v9  ;;  %v2885_v24 = vmul.f32 %v10453_v15, %v2243_v61  ;;  %8062 = vmatpush3.msra.mxu1 %v3123_v27  ;;  %v3115_v48 = vld [vmem:[%s9039_s6 + $0x10] sm:$0xff] }
 0x363   : > { %v7918_v16 = vpop.f32.mrf.mxu0  ;;  %8063 = vmatprep.subr.mxu1 %v3122_v21 }
 0x364   : > { %v10493_v59 = vadd.f32 %v2885_v24, %v10438_v20  ;;  %v2888_v22 = vmul.f32 %v7918_v16, %v10453_v15  ;;  %8064 = vmatpush3.msra.mxu1 %v3122_v21  ;;  %v3114_v24 = vld [vmem:[%s9039_s6 + $0x8] sm:$0xff] }
 0x365   : > { %v2253_v29 = vpop.f32.mrf.mxu0  ;;  %8065 = vmatprep.subr.mxu1 %v3121_v23 }
 0x366   : > { %v10498_v9 = vadd.f32 %v2888_v22, %v10440_v30  ;;  %v2887_v34 = vmul.f32 %v10453_v15, %v2253_v29  ;;  %8066 = vmatpush3.msra.mxu1 %v3121_v23  ;;  %v3113_v22 = vld [vmem:[%s9039_s6] sm:$0xff] }
 0x367   : > { %v7921_v43 = vpop.f32.mrf.mxu0  ;;  %8067 = vmatprep.subr.mxu1 %v3120_v7 }
 0x368   : > { %v10503_v63 = vadd.f32 %v2887_v34, %v10442_v38  ;;  %v2890_v20 = vmul.f32 %v7921_v43, %v10453_v15  ;;  %8068 = vmatpush3.msra.mxu1 %v3120_v7  ;;  %v8020_v43 = vpop.f32.mrf.mxu1 }
 0x369   : > { %v2263_v17 = vpop.f32.mrf.mxu0 }
 0x36a   : > { %v10511_v30 = vadd.f32 %v2890_v20, %v10447_v36  ;;  %v2889_v50 = vmul.f32 %v10453_v15, %v2263_v17  ;;  %v2593_v23 = vpop.f32.mrf.mxu1 }
 0x36b   : > { %v7924_v39 = vpop.f32.mrf.mxu0 }
 0x36c   : > { %v10515_v38 = vadd.f32 %v2889_v50, %v10449_v5  ;;  %v2892_v52 = vmul.f32 %v7924_v39, %v10453_v15 }
 0x36d   : > { %v2273_v11 = vpop.f32.mrf.mxu0 }
 0x36e   : > { %13458 = vst [vmem:[#allocation43_spill] sm:$0xff] %v10515_v38  ;;  %v10523_v28 = vadd.f32 %v2892_v52, %v10455_v57  ;;  %v2891_v36 = vmul.f32 %v10453_v15, %v2273_v11  ;;  %v3119_v57 = vld [vmem:[%s9039_s6 + $0x30] sm:$0xff] }
 0x36f   : > { %v7927_v41 = vpop.f32.mrf.mxu0  ;;  %8069 = vmatprep.subr.mxu1 %v3119_v57 }
 0x370   : > { %v10527_v45 = vadd.f32 %v2891_v36, %v10457_v26  ;;  %v2914_v5 = vmul.f32 %v7927_v41, %v10520_v54  ;;  %8070 = vmatpush3.msra.mxu1 %v3119_v57  ;;  %v3118_v26 = vld [vmem:[%s9039_s6 + $0x28] sm:$0xff]  ;;  %v10588_v57 = vld [vmem:[%s9039_s6 + $0xf8] sm:$0xff] }
 0x371   : > { %v10530_v10 = vpop.f32.mrf.mxu0  ;;  %8071 = vmatprep.subr.mxu1 %v3118_v26  ;;  %13463 = vst [vmem:[#allocation48_spill] sm:$0xff] %v10588_v57 }
 0x372   : > { %13459 = vst [vmem:[#allocation44_spill] sm:$0xff] %v10527_v45  ;;  %v10534_v46 = vadd.f32 %v2914_v5, %v10460_v19  ;;  %8072 = vmatpush3.msra.mxu1 %v3118_v26  ;;  %v3117_v19 = vld [vmem:[%s9039_s6 + $0x20] sm:$0xff] }
 0x373   : > { %v7930_v49 = vpop.f32.mrf.mxu0  ;;  %8073 = vmatprep.subr.mxu1 %v3117_v19 }
 0x374   : > { %v2916_v15 = vmul.f32 %v7930_v49, %v10520_v54  ;;  %8074 = vmatpush3.msra.mxu1 %v3117_v19 }
 0x375   : > { %v10538_v60 = vpop.f32.mrf.mxu0  ;;  %8075 = vmatprep.subr.mxu1 %v3116_v8 }
 0x376   : > { %v10542_v6 = vadd.f32 %v2916_v15, %v10466_v31  ;;  %8076 = vmatpush3.msra.mxu1 %v3116_v8 }
 0x377   : > { %v7933_v58 = vpop.f32.mrf.mxu0  ;;  %8077 = vmatprep.subr.mxu1 %v3115_v48 }
 0x378   : > { %v2918_v53 = vmul.f32 %v7933_v58, %v10520_v54  ;;  %8078 = vmatpush3.msra.mxu1 %v3115_v48 }
 0x379   : > { %v10546_v1 = vpop.f32.mrf.mxu0  ;;  %8079 = vmatprep.subr.mxu1 %v3114_v24 }
 0x37a   : > { %v10550_v14 = vadd.f32 %v2918_v53, %v10472_v13  ;;  %8080 = vmatpush3.msra.mxu1 %v3114_v24 }
 0x37b   : > { %v7936_v31 = vpop.f32.mrf.mxu0  ;;  %8081 = vmatprep.subr.mxu1 %v3113_v22 }
 0x37c   : > { %v2920_v61 = vmul.f32 %v7936_v31, %v10520_v54  ;;  %8082 = vmatpush3.msra.mxu1 %v3113_v22 }
 0x37d   : > { %v10556_v37 = vpop.f32.mrf.mxu0  ;;  %8107 = vmatprep.subr.mxu1 %v10588_v57 }
 0x37e   : > { %v10560_v16 = vadd.f32 %v2920_v61, %v10480_v18 }
 0x37f   : > { %v7939_v13 = vpop.f32.mrf.mxu0 }
 0x380   : > { %v2922_v29 = vmul.f32 %v7939_v13, %v10520_v54 }
 0x381   : > { %v10564_v27 = vpop.f32.mrf.mxu0 }
 0x382   : > { %v10567_v34 = vadd.f32 %v2922_v29, %v10488_v51  ;;  %v8023_v51 = vpop.f32.mrf.mxu1 }
 0x383   : > { %v7942_v21 = vpop.f32.mrf.mxu0 }
 0x384   : > { %v2924_v18 = vmul.f32 %v7942_v21, %v10520_v54  ;;  %v10612_v21 = vld [vmem:[%s9030_s19 + $0x10] sm:$0xff] }
 0x385   : > { %v10570_v20 = vpop.f32.mrf.mxu0 }
 0x386   : > { %v10573_v17 = vadd.f32 %v2924_v18, %v10498_v9  ;;  %v2603_v9 = vpop.f32.mrf.mxu1  ;;  %v10615_v18 = vsub.s32 7, %v10070_v40 }
 0x387   : > { %v7945_v50 = vpop.f32.mrf.mxu0 }
 0x388   : > { %v2926_v39 = vmul.f32 %v7945_v50, %v10520_v54  ;;  %v8026_v26 = vpop.f32.mrf.mxu1  ;;  %13464 = vst [vmem:[#allocation49_spill] sm:$0xff] %v10615_v18  ;;  %v10618_v50 = vld [vmem:[%s9030_s19 + $0x20] sm:$0xff]  ;;  %v10632_v35 = vrot.slane %v10092_v47, %v10615_v18 }
 0x389   : > { %v10576_v52 = vpop.f32.mrf.mxu0  ;;  %v4099_v57 = vrot.slane %v10618_v50, %v10338_v2  ;;  %v4111_v45 = vrot.slane %v10618_v50, %v10425_v33 }
 0x38a   : > { %v10579_v11 = vadd.f32 %v2926_v39, %v10511_v30  ;;  %v2613_v19 = vpop.f32.mrf.mxu1 }
 0x38b   : > { %v7948_v36 = vpop.f32.mrf.mxu0  ;;  %v10652_v18 = vmul.f32 %v4099_v57, %v2583_v62  ;;  %v10659_v25 = vmul.f32 %v8020_v43, %v4099_v57 }
 0x38c   : > { %13460 = vst [vmem:[#allocation45_spill] sm:$0xff] %v10579_v11  ;;  %v2928_v41 = vmul.f32 %v7948_v36, %v10520_v54  ;;  %v10595_v31 = vpop.f32.mrf.mxu1  ;;  %v3745_v36 = vrot.slane %v10612_v21, %v10338_v2  ;;  %v10648_v2 = vmul.f32 %v10552_v56, %v4099_v57 }
 0x38d   : > { %v10582_v5 = vpop.f32.mrf.mxu0  ;;  %13471 = vst [vmem:[#allocation56_spill] sm:$0xff] %v10652_v18  ;;  %13473 = vst [vmem:[#allocation58_spill] sm:$0xff] %v10659_v25  ;;  %v10677_v18 = vmul.f32 %v4111_v45, %v2603_v9 }
 0x38e   : > { %13461 = vst [vmem:[#allocation46_spill] sm:$0xff] %v10582_v5  ;;  %v10585_v7 = vadd.f32 %v2928_v41, %v10523_v28  ;;  %v10601_v61 = vpop.f32.mrf.mxu1  ;;  %v10641_v11 = vmul.f32 %v10552_v56, %v3745_v36  ;;  %v10650_v47 = vmul.f32 %v3745_v36, %v2583_v62  ;;  %v10668_v56 = vmul.f32 %v4099_v57, %v2593_v23 }
 0x38f   : > { %v7951_v49 = vpop.f32.mrf.mxu0  ;;  %v10672_v62 = vmul.f32 %v8023_v51, %v4111_v45  ;;  %13479 = vst [vmem:[#allocation64_spill] sm:$0xff] %v10677_v18  ;;  %v10704_v18 = vmul.f32 %v8026_v26, %v4111_v45 }
 0x390   : > { %13462 = vst [vmem:[#allocation47_spill] sm:$0xff] %v10585_v7  ;;  %v10607_v22 = vpop.f32.mrf.mxu1  ;;  %v3757_v7 = vrot.slane %v10612_v21, %v10425_v33  ;;  %13467 = vst [vmem:[#allocation52_spill] sm:$0xff] %v10641_v11  ;;  %v2950_v33 = vmul.f32 %v7951_v49, %v10632_v35  ;;  %v10661_v11 = vmul.f32 %v3745_v36, %v2593_v23 }
 0x391   : > { %v2363_v15 = vpop.f32.mrf.mxu0  ;;  %13470 = vst [vmem:[#allocation55_spill] sm:$0xff] %v10650_v47  ;;  %13475 = vst [vmem:[#allocation60_spill] sm:$0xff] %v10668_v56  ;;  %v10685_v49 = vrot.slane %v10612_v21, %v10445_v44 }
 0x392   : > { %v10624_v41 = vpop.f32.mrf.mxu1  ;;  %13474 = vst [vmem:[#allocation59_spill] sm:$0xff] %v10661_v11  ;;  %v10670_v47 = vmul.f32 %v8023_v51, %v3757_v7  ;;  %13477 = vst [vmem:[#allocation62_spill] sm:$0xff] %v10672_v62  ;;  %v2915_v51 = vmul.f32 %v10520_v54, %v10538_v60  ;;  %v2966_v11 = vadd.f32 %v2950_v33, %v10534_v46 }
 0x393   : > { %v7954_v30 = vpop.f32.mrf.mxu0  ;;  %v10708_v62 = vmul.f32 %v3757_v7, %v2613_v19  ;;  %v10717_v46 = vmul.f32 %v10595_v31, %v10685_v49 }
 0x394   : > { %v10643_v5 = vpop.f32.mrf.mxu1  ;;  %13476 = vst [vmem:[#allocation61_spill] sm:$0xff] %v10670_v47  ;;  %v2952_v60 = vmul.f32 %v7954_v30, %v10632_v35  ;;  %v2931_v30 = vadd.f32 %v2915_v51, %v10469_v0  ;;  %v10741_v0 = vrot.slane %v10612_v21, %v10089_v42 }
 0x395   : > { %v2373_v58 = vpop.f32.mrf.mxu0  ;;  %13468 = vst [vmem:[#allocation53_spill] sm:$0xff] %v10643_v5 }
 0x396   : > { %v10687_v23 = vpop.f32.mrf.mxu1 }
 0x397   : > { %v10591_v53 = vpop.f32.mrf.mxu0 }
 0x399   : > { %v10593_v8 = vpop.f32.mrf.mxu0 }
 0x39b   : > { %v10597_v28 = vpop.f32.mrf.mxu0 }
 0x39d   : > { %v10599_v48 = vpop.f32.mrf.mxu0 }
 0x39f   : > { %v10603_v24 = vpop.f32.mrf.mxu0 }
 0x3a1   : > { %v10605_v13 = vpop.f32.mrf.mxu0 }
 0x3a3   : > { %v10609_v29 = vpop.f32.mrf.mxu0 }
 0x3a5   : > { %v10620_v39 = vpop.f32.mrf.mxu0 }
 0x3a7   : > { %v10626_v12 = vpop.f32.mrf.mxu0 }
 0x3a8   : > { %13465 = vst [vmem:[#allocation50_spill] sm:$0xff] %v10626_v12  ;;  %v10654_v12 = vmul.f32 %v8020_v43, %v3745_v36  ;;  %v10681_v43 = vrot.slane %v10612_v21, %v10083_v55  ;;  %v10691_v36 = vmul.f32 %v8026_v26, %v3757_v7  ;;  %v10719_v26 = vpop.f32.mrf.mxu1 }
 0x3a9   : > { %v10634_v40 = vpop.f32.mrf.mxu0 }
 0x3aa   : > { %13466 = vst [vmem:[#allocation51_spill] sm:$0xff] %v10634_v40  ;;  %13472 = vst [vmem:[#allocation57_spill] sm:$0xff] %v10654_v12  ;;  %v2913_v40 = vmul.f32 %v10520_v54, %v10530_v10  ;;  %v10674_v12 = vmul.f32 %v3757_v7, %v2603_v9  ;;  %v2949_v10 = vmul.f32 %v10632_v35, %v2363_v15 }
 0x3ab   : > { %v10645_v38 = vpop.f32.mrf.mxu0  ;;  %13480 = vst [vmem:[#allocation65_spill] sm:$0xff] %v10691_v36  ;;  %v10695_v9 = vrot.slane %v10618_v50, %v10083_v55  ;;  %v10699_v15 = vrot.slane %v10618_v50, %v10445_v44  ;;  %v2951_v36 = vmul.f32 %v10632_v35, %v2373_v58  ;;  %v10710_v55 = vmul.f32 %v4111_v45, %v2613_v19 }
 0x3ac   : > { %13469 = vst [vmem:[#allocation54_spill] sm:$0xff] %v10645_v38  ;;  %v10666_v38 = vld [vmem:[%s9030_s19 + $0x8] ss:$0 sm:$0xff]  ;;  %13478 = vst [vmem:[#allocation63_spill] sm:$0xff] %v10674_v12  ;;  %v2929_v56 = vadd.f32 %v2913_v40, %v10463_v4  ;;  %v2917_v58 = vmul.f32 %v10520_v54, %v10546_v1  ;;  %v2968_v1 = vadd.f32 %v2952_v60, %v10542_v6  ;;  %v10755_v6 = vpop.f32.mrf.mxu1 }
 0x3ad   : > { %v10663_v5 = vpop.f32.mrf.mxu0  ;;  %13481 = vst [vmem:[#allocation66_spill] sm:$0xff] %v10710_v55  ;;  %v10726_v45 = vmul.f32 %v10595_v31, %v10699_v15  ;;  %v10737_v19 = vmul.f32 %v10699_v15, %v10601_v61  ;;  %v2967_v31 = vadd.f32 %v2951_v36, %v2931_v30  ;;  %v2954_v40 = vmul.f32 %v10591_v53, %v10632_v35 }
 0x3ae   : > { %v2965_v47 = vadd.f32 %v2949_v10, %v2929_v56  ;;  %v2919_v53 = vmul.f32 %v10520_v54, %v10556_v37  ;;  %v10762_v36 = vmul.f32 %v10607_v22, %v10685_v49  ;;  %v10766_v60 = vrot.slane %v10618_v50, %v10089_v42 }
 0x3af   : > { %v7975_v57 = vpop.f32.mrf.mxu0  ;;  %v2956_v37 = vmul.f32 %v10597_v28, %v10632_v35  ;;  %v10780_v42 = vmul.f32 %v10607_v22, %v10699_v15  ;;  %v10795_v22 = vmul.f32 %v10685_v49, %v10624_v41 }
 0x3b0   : > { %v2986_v25 = vmul.f32 %v7975_v57, %v10666_v38  ;;  %v2933_v57 = vadd.f32 %v2917_v58, %v10476_v32  ;;  %v2970_v32 = vadd.f32 %v2954_v40, %v10550_v14  ;;  %v2955_v58 = vmul.f32 %v10632_v35, %v10599_v48  ;;  %v10786_v14 = vpop.f32.mrf.mxu1 }
 0x3b1   : > { %v2443_v12 = vpop.f32.mrf.mxu0  ;;  %v2935_v28 = vadd.f32 %v2919_v53, %v10484_v3  ;;  %v2921_v48 = vmul.f32 %v10520_v54, %v10564_v27  ;;  %v2923_v3 = vmul.f32 %v10520_v54, %v10570_v20  ;;  %v2972_v27 = vadd.f32 %v2956_v37, %v10560_v16 }
 0x3b2   : > { %v10712_v44 = vadd.f32 %v2986_v25, %v2966_v11  ;;  %v2985_v4 = vmul.f32 %v10666_v38, %v2443_v12  ;;  %v10730_v25 = vmul.f32 %v10685_v49, %v10601_v61  ;;  %v2957_v16 = vmul.f32 %v10632_v35, %v10605_v13 }
 0x3b3   : > { %v7978_v7 = vpop.f32.mrf.mxu0  ;;  %v2960_v13 = vmul.f32 %v10609_v29, %v10632_v35 }
 0x3b4   : > { %13482 = vst [vmem:[#allocation67_spill] sm:$0xff] %v10712_v44  ;;  %v10732_v12 = vadd.f32 %v2985_v4, %v2965_v47  ;;  %v2988_v11 = vmul.f32 %v7978_v7, %v10666_v38  ;;  %v2953_v47 = vmul.f32 %v10632_v35, %v10593_v8  ;;  %v3039_v56 = vmul.f32 %v10712_v44, %v10712_v44 }
 0x3b5   : > { %v2453_v33 = vpop.f32.mrf.mxu0 }
 0x3b6   : > { %13483 = vst [vmem:[#allocation68_spill] sm:$0xff] %v10732_v12  ;;  %v3017_v61 = vadd.f32 %v10712_v44, %v10732_v12  ;;  %v3038_v10 = vmul.f32 %v10732_v12, %v10732_v12  ;;  %v2987_v51 = vmul.f32 %v10666_v38, %v2453_v33  ;;  %v10768_v30 = vadd.f32 %v2988_v11, %v2968_v1 }
 0x3b7   : > { %v7981_v8 = vpop.f32.mrf.mxu0 }
 0x3b8   : > { %v3054_v4 = vadd.f32 %v3039_v56, %v3038_v10  ;;  %13484 = vst [vmem:[#allocation69_spill] sm:$0xff] %v10768_v30  ;;  %v10770_v7 = vadd.f32 %v2987_v51, %v2967_v31  ;;  %v2990_v33 = vmul.f32 %v7981_v8, %v10666_v38  ;;  %v2969_v56 = vadd.f32 %v2953_v47, %v2933_v57 }
 0x3b9   : > { %v2463_v44 = vpop.f32.mrf.mxu0  ;;  %v3041_v47 = vmul.f32 %v10768_v30, %v10768_v30  ;;  %v2971_v57 = vadd.f32 %v2955_v58, %v2935_v28  ;;  %v10820_v58 = vmul.f32 %v10699_v15, %v10624_v41  ;;  %v2959_v41 = vmul.f32 %v10632_v35, %v10620_v39 }
 0x3ba   : > { %13485 = vst [vmem:[#allocation70_spill] sm:$0xff] %v10770_v7  ;;  %v3018_v11 = vadd.f32 %v3017_v61, %v10770_v7  ;;  %v3040_v1 = vmul.f32 %v10770_v7, %v10770_v7  ;;  %v2989_v31 = vmul.f32 %v10666_v38, %v2463_v44  ;;  %v10791_v40 = vadd.f32 %v2990_v33, %v2970_v32 }
 0x3bb   : > { %v7984_v10 = vpop.f32.mrf.mxu0  ;;  %13488 = vst [vmem:[#allocation73_spill] sm:$0xff] %v10820_v58 }
 0x3bc   : > { %13486 = vst [vmem:[#allocation71_spill] sm:$0xff] %v10791_v40  ;;  %v3055_v61 = vadd.f32 %v3054_v4, %v3040_v1  ;;  %v10799_v51 = vadd.f32 %v2989_v31, %v2969_v56  ;;  %v3019_v44 = vadd.f32 %v3018_v11, %v10768_v30  ;;  %v2992_v53 = vmul.f32 %v7984_v10, %v10666_v38  ;;  %v10810_v56 = vpop.f32.mrf.mxu1 }
 0x3bd   : > { %v2473_v8 = vpop.f32.mrf.mxu0  ;;  %v2958_v11 = vmul.f32 %v10603_v24, %v10632_v35  ;;  %v3043_v20 = vmul.f32 %v10791_v40, %v10791_v40  ;;  %v2937_v24 = vadd.f32 %v2921_v48, %v10493_v59  ;;  %v2925_v59 = vmul.f32 %v10520_v54, %v10576_v52 }
 0x3be   : > { %13487 = vst [vmem:[#allocation72_spill] sm:$0xff] %v10799_v51  ;;  %v3020_v49 = vadd.f32 %v3019_v44, %v10799_v51  ;;  %v3042_v33 = vmul.f32 %v10799_v51, %v10799_v51  ;;  %v3056_v32 = vadd.f32 %v3055_v61, %v3041_v47  ;;  %v2991_v4 = vmul.f32 %v10666_v38, %v2473_v8 }
 0x3bf   : > { %v7987_v37 = vpop.f32.mrf.mxu0  ;;  %v10822_v31 = vadd.f32 %v2992_v53, %v2972_v27  ;;  %v2939_v47 = vadd.f32 %v2923_v3, %v10503_v63  ;;  %v10837_v53 = vpop.f32.mrf.mxu1  ;;  %v2974_v63 = vadd.f32 %v2958_v11, %v10567_v34  ;;  %v2973_v29 = vadd.f32 %v2957_v16, %v2937_v24  ;;  %v13493_v34 = vld [vmem:[#allocation42_spill] sm:$0xff] }
 0x3c0   : > { %v3057_v1 = vadd.f32 %v3056_v32, %v3042_v33  ;;  %v10824_v28 = vadd.f32 %v2991_v4, %v2971_v57  ;;  %v3021_v10 = vadd.f32 %v3020_v49, %v10791_v40  ;;  %v2994_v61 = vmul.f32 %v7987_v37, %v10666_v38  ;;  %v13494_v37 = vld [vmem:[#allocation51_spill] sm:$0xff] }
 0x3c1   : > { %13489 = vst [vmem:[#allocation74_spill] sm:$0xff] %v10822_v31  ;;  %v2483_v44 = vpop.f32.mrf.mxu0  ;;  %v3045_v39 = vmul.f32 %v10822_v31, %v10822_v31  ;;  %v2976_v32 = vadd.f32 %v2960_v13, %v10573_v17  ;;  %v10854_v11 = vrot.slane %v10612_v21, %v13493_v34  ;;  %v2975_v16 = vadd.f32 %v2959_v41, %v2939_v47  ;;  %v13495_v17 = vld [vmem:[#allocation50_spill] sm:$0xff]  ;;  %v13496_v41 = vld [vmem:[#allocation43_spill] sm:$0xff] }
 0x3c2   : > { %13490 = vst [vmem:[#allocation75_spill] sm:$0xff] %v10824_v28  ;;  %v3022_v15 = vadd.f32 %v3021_v10, %v10824_v28  ;;  %v3044_v27 = vmul.f32 %v10824_v28, %v10824_v28  ;;  %v3058_v57 = vadd.f32 %v3057_v1, %v3043_v20  ;;  %v2993_v48 = vmul.f32 %v10666_v38, %v2483_v44  ;;  %v10859_v44 = vpop.f32.mrf.mxu1 }
 0x3c3   : > { %v7990_v3 = vpop.f32.mrf.mxu0  ;;  %v10848_v4 = vadd.f32 %v2994_v61, %v2974_v63  ;;  %v2961_v1 = vmul.f32 %v10632_v35, %v13494_v37  ;;  %v2962_v13 = vmul.f32 %v13495_v17, %v10632_v35  ;;  %v4135_v47 = vrot.slane %v10618_v50, %v13493_v34  ;;  %v13497_v63 = vld [vmem:[#allocation46_spill] sm:$0xff]  ;;  %v13500_v34 = vld [vmem:[#allocation45_spill] sm:$0xff] }
 0x3c4   : > { %v3059_v8 = vadd.f32 %v3058_v57, %v3044_v27  ;;  %v3023_v49 = vadd.f32 %v3022_v15, %v10822_v31  ;;  %v2996_v33 = vmul.f32 %v7990_v3, %v10666_v38  ;;  %v10850_v20 = vadd.f32 %v2993_v48, %v2973_v29 }
 0x3c5   : > { %13491 = vst [vmem:[#allocation76_spill] sm:$0xff] %v10848_v4  ;;  %v2493_v52 = vpop.f32.mrf.mxu0  ;;  %v2941_v57 = vadd.f32 %v2925_v59, %v13496_v41  ;;  %v2927_v29 = vmul.f32 %v10520_v54, %v13497_v63  ;;  %v2963_v59 = vmul.f32 %v10632_v35, %v10663_v5  ;;  %v13504_v63 = vld [vmem:[#allocation53_spill] sm:$0xff] }
 0x3c6   : > { %13492 = vst [vmem:[#allocation77_spill] sm:$0xff] %v10850_v20  ;;  %v3060_v10 = vadd.f32 %v3059_v8, %v3045_v39  ;;  %v2995_v24 = vmul.f32 %v10666_v38, %v2493_v52  ;;  %v3024_v61 = vadd.f32 %v3023_v49, %v10850_v20  ;;  %v3046_v15 = vmul.f32 %v10850_v20, %v10850_v20 }
 0x3c7   : > { %v7993_v27 = vpop.f32.mrf.mxu0  ;;  %v10871_v48 = vadd.f32 %v2996_v33, %v2976_v32  ;;  %v3047_v39 = vmul.f32 %v10848_v4, %v10848_v4  ;;  %v2977_v17 = vadd.f32 %v2961_v1, %v2941_v57  ;;  %v10884_v32 = vpop.f32.mrf.mxu1  ;;  %v13502_v1 = vld [vmem:[#allocation44_spill] sm:$0xff] }
 0x3c8   : > { %v10873_v3 = vadd.f32 %v2995_v24, %v2975_v16  ;;  %v3061_v8 = vadd.f32 %v3060_v10, %v3046_v15  ;;  %v3025_v49 = vadd.f32 %v3024_v61, %v10848_v4  ;;  %v2998_v52 = vmul.f32 %v7993_v27, %v10666_v38  ;;  %v13501_v10 = vld [vmem:[#allocation54_spill] sm:$0xff] }
 0x3c9   : > { %13498 = vst [vmem:[#allocation42_spill] sm:$0xff] %v10871_v48  ;;  %v2503_v37 = vpop.f32.mrf.mxu0  ;;  %v2978_v16 = vadd.f32 %v2962_v13, %v13500_v34  ;;  %v2964_v24 = vmul.f32 %v13501_v10, %v10632_v35  ;;  %v2943_v41 = vadd.f32 %v2927_v29, %v13502_v1  ;;  %v3049_v5 = vmul.f32 %v10871_v48, %v10871_v48  ;;  %v13506_v10 = vld [vmem:[#allocation47_spill] sm:$0xff] }
 0x3ca   : > { %13499 = vst [vmem:[#allocation51_spill] sm:$0xff] %v10873_v3  ;;  %v3048_v54 = vmul.f32 %v10873_v3, %v10873_v3  ;;  %v2997_v33 = vmul.f32 %v10666_v38, %v2503_v37  ;;  %v3026_v61 = vadd.f32 %v3025_v49, %v10873_v3  ;;  %v3062_v15 = vadd.f32 %v3061_v8, %v3047_v39 }
 0x3cb   : > { %v7996_v27 = vpop.f32.mrf.mxu0  ;;  %v10897_v37 = vmul.f32 %v13504_v63, %v10854_v11  ;;  %v10899_v13 = vadd.f32 %v2998_v52, %v2978_v16  ;;  %v2979_v8 = vadd.f32 %v2963_v59, %v2943_v41  ;;  %v2980_v1 = vadd.f32 %v2964_v24, %v13506_v10 }
 0x3cc   : > { %v10893_v57 = vadd.f32 %v2997_v33, %v2977_v17  ;;  %v3063_v4 = vadd.f32 %v3062_v15, %v3048_v54  ;;  %v3027_v35 = vadd.f32 %v3026_v61, %v10871_v48  ;;  %v3000_v49 = vmul.f32 %v7996_v27, %v10666_v38  ;;  %v2683_v33 = vpop.f32.mrf.mxu1 }
 0x3cd   : > { %13505 = vst [vmem:[#allocation43_spill] sm:$0xff] %v10899_v13  ;;  %v2513_v39 = vpop.f32.mrf.mxu0  ;;  %v10907_v17 = vmul.f32 %v13504_v63, %v4135_v47  ;;  %v10913_v61 = vmul.f32 %v10854_v11, %v10687_v23  ;;  %v10918_v15 = vmul.f32 %v4135_v47, %v10687_v23  ;;  %v3051_v24 = vmul.f32 %v10899_v13, %v10899_v13 }
 0x3ce   : > { %13503 = vst [vmem:[#allocation50_spill] sm:$0xff] %v10893_v57  ;;  %v3050_v29 = vmul.f32 %v10893_v57, %v10893_v57  ;;  %v2999_v34 = vmul.f32 %v10666_v38, %v2513_v39  ;;  %v3028_v52 = vadd.f32 %v3027_v35, %v10893_v57  ;;  %v3064_v54 = vadd.f32 %v3063_v4, %v3049_v5  ;;  %v13508_v38 = vld [vmem:[#allocation49_spill] sm:$0xff] }
 0x3cf   : > { %v7999_v16 = vpop.f32.mrf.mxu0  ;;  %v3793_v27 = vrot.slane %v10612_v21, %v13508_v38  ;;  %v4147_v41 = vrot.slane %v10618_v50, %v13508_v38  ;;  %v10926_v5 = vadd.f32 %v3000_v49, %v2980_v1  ;;  %v10933_v39 = vmul.f32 %v10719_v26, %v10854_v11 }
 0x3d0   : > { %v10915_v59 = vadd.f32 %v2999_v34, %v2979_v8  ;;  %v3065_v4 = vadd.f32 %v3064_v54, %v3050_v29  ;;  %v3029_v63 = vadd.f32 %v3028_v52, %v10899_v13  ;;  %v13510_v8 = vld [vmem:[#allocation41_spill] sm:$0xff]  ;;  %v8050_v29 = vpop.f32.mrf.mxu1  ;;  %v10945_v54 = vmul.f32 %v10719_v26, %v4135_v47 }
 0x3d1   : > { %13509 = vst [vmem:[#allocation45_spill] sm:$0xff] %v10926_v5  ;;  %v2523_v35 = vpop.f32.mrf.mxu0  ;;  %v10937_v34 = vrot.slane %v10612_v21, %v13510_v8  ;;  %v10941_v49 = vrot.slane %v10618_v50, %v13510_v8  ;;  %v10949_v38 = vmul.f32 %v10854_v11, %v10755_v6  ;;  %v10952_v13 = vmul.f32 %v4135_v47, %v10755_v6 }
 0x3d2   : > { %13507 = vst [vmem:[#allocation46_spill] sm:$0xff] %v10915_v59  ;;  %v3052_v23 = vmul.f32 %v10915_v59, %v10915_v59  ;;  %v3030_v10 = vadd.f32 %v3029_v63, %v10915_v59  ;;  %v3066_v1 = vadd.f32 %v3065_v4, %v3051_v24  ;;  %v10955_v21 = vmul.f32 %v10786_v14, %v3793_v27  ;;  %v7204_v24 = vld [vmem:[%s9030_s19 + $0x18] ss:$0 sm:$0xff]  ;;  %v7221_v4 = vld [vmem:[%s9030_s19 + $0x28] ss:$0 sm:$0xff]  ;;  %v2693_v3 = vpop.f32.mrf.mxu1  ;;  %s13620_s19 = sld [smem:[#allocation87_spill]] }
 0x3d3   : > { %v8002_v52 = vpop.f32.mrf.mxu0  ;;  %13511 = vst [vmem:[#allocation54_spill] sm:$0xff] %v10949_v38  ;;  %13512 = vst [vmem:[#allocation44_spill] sm:$0xff] %v10952_v13  ;;  %v10958_v50 = vmul.f32 %v10786_v14, %v4147_v41  ;;  %v10961_v63 = vmul.f32 %v3793_v27, %v10810_v56  ;;  %v3053_v26 = vmul.f32 %v10926_v5, %v10926_v5 }
 0x3d4   : > { %v3031_v11 = vadd.f32 %v3030_v10, %v10926_v5  ;;  %v3067_v8 = vadd.f32 %v3066_v1, %v3052_v23  ;;  %v10969_v6 = vmul.f32 %v4147_v41, %v10810_v56  ;;  %v10972_v47 = vmul.f32 %v10837_v53, %v3793_v27 }
 0x3d5   : > { %v2533_v59 = vpop.f32.mrf.mxu0  ;;  %v10975_v14 = vmul.f32 %v10837_v53, %v4147_v41  ;;  %v10978_v57 = vmul.f32 %v3793_v27, %v10859_v44  ;;  %v10981_v48 = vmul.f32 %v4147_v41, %v10859_v44  ;;  %v10984_v1 = vmul.f32 %v10884_v32, %v7204_v24 }
 0x3d6   : > { %v3032_v20 = vrot.slane %v3031_v11, 4  ;;  %v3068_v10 = vadd.f32 %v3067_v8, %v3053_v26  ;;  %v10987_v56 = vmul.f32 %v10884_v32, %v7221_v4  ;;  %v10989_v5 = vmul.f32 %v7204_v24, %v2683_v33 }
 0x3d7   : > { %13513 = vst [vmem:[#allocation53_spill] sm:$0xff] %v10975_v14  ;;  %13514 = vst [vmem:[#allocation47_spill] sm:$0xff] %v10978_v57  ;;  %v8005_v23 = vpop.f32.mrf.mxu0  ;;  %v10991_v53 = vmul.f32 %v7221_v4, %v2683_v33  ;;  %v10993_v31 = vmul.f32 %v8050_v29, %v7204_v24  ;;  %v10995_v27 = vmul.f32 %v8050_v29, %v7221_v4 }
 0x3d8   : > { %13515 = vst [vmem:[#allocation49_spill] sm:$0xff] %v10981_v48  ;;  %v3033_v44 = vadd.f32 %v3032_v20, %v3031_v11  ;;  %v3069_v41 = vrot.slane %v3068_v10, 4  ;;  %v10997_v28 = vmul.f32 %v7204_v24, %v2693_v3  ;;  %v10999_v8 = vmul.f32 %v7221_v4, %v2693_v3 }
 0x3d9   : > { %13516 = vst [vmem:[#allocation78_spill] sm:$0xff] %v10993_v31  ;;  %13517 = vst [vmem:[#allocation79_spill] sm:$0xff] %v10995_v27  ;;  %v2543_v48 = vpop.f32.mrf.mxu0  ;;  %v3715_v26 = vmul.f32 %v7999_v16, %v10681_v43  ;;  %v4069_v32 = vmul.f32 %v7999_v16, %v10695_v9  ;;  %v3723_v13 = vmul.f32 %v8005_v23, %v10741_v0 }
 0x3da   : > { %13518 = vst [vmem:[#allocation80_spill] sm:$0xff] %v10997_v28  ;;  %13519 = vst [vmem:[#allocation81_spill] sm:$0xff] %v10999_v8  ;;  %v4077_v33 = vmul.f32 %v8005_v23, %v10766_v60  ;;  %v3034_v40 = vrot.slane %v3033_v44, 2  ;;  %v3070_v51 = vadd.f32 %v3069_v41, %v3068_v10  ;;  %v3714_v29 = vmul.f32 %v10681_v43, %v2523_v35 }
 0x3db   : > { %v4068_v20 = vmul.f32 %v10695_v9, %v2523_v35  ;;  %v8008_v11 = vpop.f32.mrf.mxu0  ;;  %v3717_v24 = vmul.f32 %v8002_v52, %v10681_v43  ;;  %v4071_v3 = vmul.f32 %v8002_v52, %v10695_v9  ;;  %v3722_v4 = vmul.f32 %v10741_v0, %v2543_v48 }
 0x3dc   : > { %v4076_v8 = vmul.f32 %v10766_v60, %v2543_v48  ;;  %v3035_v16 = vadd.f32 %v3034_v40, %v3033_v44  ;;  %v3071_v30 = vrot.slane %v3070_v51, 2  ;;  %v3725_v7 = vmul.f32 %v8008_v11, %v10741_v0 }
 0x3dd   : > { %v4079_v23 = vmul.f32 %v8008_v11, %v10766_v60  ;;  %v2553_v10 = vpop.f32.mrf.mxu0  ;;  %v3716_v41 = vmul.f32 %v10681_v43, %v2533_v59  ;;  %v4070_v35 = vmul.f32 %v10695_v9, %v2533_v59  ;;  %v3727_v28 = vadd.f32 %v3723_v13, %v3715_v26 }
 0x3de   : > { %v4081_v58 = vadd.f32 %v4077_v33, %v4069_v32  ;;  %v3036_v12 = vrot.slane %v3035_v16, 1  ;;  %v3072_v27 = vadd.f32 %v3071_v30, %v3070_v51  ;;  %v3724_v52 = vmul.f32 %v10741_v0, %v2553_v10  ;;  %v13520_v33 = vld [vmem:[#allocation52_spill] sm:$0xff] }
 0x3df   : > { %v4078_v31 = vmul.f32 %v10766_v60, %v2553_v10  ;;  %v8011_v48 = vpop.f32.mrf.mxu0  ;;  %v3726_v40 = vadd.f32 %v3722_v4, %v3714_v29  ;;  %v4080_v44 = vadd.f32 %v4076_v8, %v4068_v20  ;;  %v3729_v43 = vadd.f32 %v3725_v7, %v3717_v24  ;;  %v13523_v4 = vld [vmem:[#allocation55_spill] sm:$0xff] }
 0x3e0   : > { %v3735_v57 = vmul.f32 %v8011_v48, %v10937_v34  ;;  %v4089_v11 = vmul.f32 %v8011_v48, %v10941_v49  ;;  %v3037_v55 = vadd.f32 %v3036_v12, %v3035_v16  ;;  %v3073_v38 = vrot.slane %v3072_v27, 1  ;;  %v13525_v48 = vld [vmem:[#allocation63_spill] sm:$0xff] }
 0x3e1   : > { %v4083_v14 = vadd.f32 %v4079_v23, %v4071_v3  ;;  %v2563_v9 = vpop.f32.mrf.mxu0  ;;  %v3728_v26 = vadd.f32 %v3724_v52, %v3716_v41  ;;  %v4082_v8 = vadd.f32 %v4078_v31, %v4070_v35  ;;  %v13522_v3 = vld [vmem:[#allocation62_spill] sm:$0xff]  ;;  %v13524_v23 = vld [vmem:[#allocation56_spill] sm:$0xff] }
 0x3e2   : > { %v3739_v13 = vadd.f32 %v3735_v57, %v3727_v28  ;;  %v4093_v59 = vadd.f32 %v4089_v11, %v4081_v58  ;;  %v3734_v30 = vmul.f32 %v10937_v34, %v2563_v9  ;;  %v4088_v0 = vmul.f32 %v10941_v49, %v2563_v9 }
 0x3e3   : > { %v3074_v51 = vadd.f32 %v3073_v38, %v3072_v27  ;;  %v11021_v60 = vmul.f32 0.0078125, %v3037_v55  ;;  %v8014_v32 = vpop.f32.mrf.mxu0  ;;  %v13521_v55 = vld [vmem:[#allocation61_spill] sm:$0xff] }
 0x3e4   : > { %v3751_v29 = vadd.f32 %v13520_v33, %v3739_v13  ;;  %v4105_v12 = vadd.f32 %v10648_v2, %v4093_v59  ;;  %v3738_v20 = vadd.f32 %v3734_v30, %v3726_v40  ;;  %v4092_v7 = vadd.f32 %v4088_v0, %v4080_v44  ;;  %v13526_v44 = vld [vmem:[#allocation64_spill] sm:$0xff]  ;;  %v13527_v30 = vld [vmem:[#allocation57_spill] sm:$0xff] }
 0x3e5   : > { %v3076_v24 = vmul.f32 0.0078125, %v3074_v51  ;;  %v3077_v58 = vmul.f32 %v11021_v60, %v11021_v60  ;;  %v3737_v28 = vmul.f32 %v8014_v32, %v10937_v34  ;;  %v4091_v57 = vmul.f32 %v8014_v32, %v10941_v49  ;;  %v2573_v38 = vpop.f32.mrf.mxu0  ;;  %v13528_v51 = vld [vmem:[#allocation58_spill] sm:$0xff] }
 0x3e6   : > { %v3763_v27 = vadd.f32 %v13521_v55, %v3751_v29  ;;  %v4117_v31 = vadd.f32 %v13522_v3, %v4105_v12  ;;  %v3750_v16 = vadd.f32 %v13523_v4, %v3738_v20  ;;  %v4104_v10 = vadd.f32 %v13524_v23, %v4092_v7  ;;  %v13529_v12 = vld [vmem:[#allocation65_spill] sm:$0xff]  ;;  %v13534_v3 = vld [vmem:[#allocation66_spill] sm:$0xff]  ;;  %v13535_v4 = vld [vmem:[#allocation47_spill] sm:$0xff] }
 0x3e7   : > { %v3078_v2 = vsub.f32 %v3076_v24, %v3077_v58  ;;  %v3741_v41 = vadd.f32 %v3737_v28, %v3729_v43  ;;  %v4095_v35 = vadd.f32 %v4091_v57, %v4083_v14  ;;  %v3736_v52 = vmul.f32 %v10937_v34, %v2573_v38 }
 0x3e8   : > { %v3762_v40 = vadd.f32 %v13525_v48, %v3750_v16  ;;  %v4116_v11 = vadd.f32 %v13526_v44, %v4104_v10  ;;  %v3775_v9 = vadd.f32 %v10717_v46, %v3763_v27  ;;  %v4129_v13 = vadd.f32 %v10726_v45, %v4117_v31  ;;  %v13530_v45 = vld [vmem:[#allocation59_spill] sm:$0xff]  ;;  %v13536_v16 = vld [vmem:[#allocation78_spill] sm:$0xff] }
 0x3e9   : > { %v3095_v59 = vadd.f32 1e-05, %v3078_v2  ;;  %v3753_v0 = vadd.f32 %v13527_v30, %v3741_v41  ;;  %v4107_v32 = vadd.f32 %v13528_v51, %v4095_v35  ;;  %v3740_v33 = vadd.f32 %v3736_v52, %v3728_v26  ;;  %v13537_v10 = vld [vmem:[#allocation79_spill] sm:$0xff]  ;;  %v13538_v52 = vld [vmem:[#allocation68_spill] sm:$0xff]  ;;  %v13542_v51 = vld [vmem:[#allocation70_spill] sm:$0xff] }
 0x3ea   : > { %v3787_v29 = vadd.f32 %v10897_v37, %v3775_v9  ;;  %v4141_v14 = vadd.f32 %v10907_v17, %v4129_v13  ;;  %v3774_v34 = vadd.f32 %v10730_v25, %v3762_v40  ;;  %v4128_v43 = vadd.f32 %v10737_v19, %v4116_v11  ;;  %v13539_v40 = vld [vmem:[#allocation67_spill] sm:$0xff]  ;;  %v13540_v11 = vld [vmem:[#allocation73_spill] sm:$0xff]  ;;  %v13541_v30 = vld [vmem:[#allocation80_spill] sm:$0xff] }
 0x3eb   : > { %8537 = vrsqrt.f32 %v3095_v59  ;;  %v3765_v20 = vadd.f32 %v13529_v12, %v3753_v0  ;;  %v4119_v46 = vadd.f32 %v10704_v18, %v4107_v32  ;;  %v3752_v7 = vadd.f32 %v13530_v45, %v3740_v33  ;;  %v13543_v33 = vld [vmem:[#allocation69_spill] sm:$0xff] }
 0x3ec   : > { %v3799_v24 = vadd.f32 %v10955_v21, %v3787_v29  ;;  %v4153_v58 = vadd.f32 %v10958_v50, %v4141_v14  ;;  %v3786_v26 = vadd.f32 %v10913_v61, %v3774_v34  ;;  %v4140_v37 = vadd.f32 %v10918_v15, %v4128_v43  ;;  %v13544_v14 = vld [vmem:[#allocation72_spill] sm:$0xff]  ;;  %v13545_v43 = vld [vmem:[#allocation71_spill] sm:$0xff] }
 0x3ed   : > { %v3764_v17 = vadd.f32 %v10708_v62, %v3752_v7  ;;  %v4090_v25 = vmul.f32 %v10941_v49, %v2573_v38  ;;  %v3777_v19 = vadd.f32 %v10762_v36, %v3765_v20  ;;  %v4131_v28 = vadd.f32 %v10780_v42, %v4119_v46  ;;  %v13533_v38 = vld [vmem:[#allocation54_spill] sm:$0xff]  ;;  %v13546_v20 = vld [vmem:[#allocation44_spill] sm:$0xff] }
 0x3ee   : > { %v3798_v18 = vadd.f32 %v10961_v63, %v3786_v26  ;;  %v4152_v57 = vadd.f32 %v10969_v6, %v4140_v37  ;;  %v11058_v21 = vadd.f32 %v10984_v1, %v3799_v24  ;;  %v11061_v50 = vadd.f32 %v10987_v56, %v4153_v58  ;;  %v13531_v1 = vld [vmem:[#allocation60_spill] sm:$0xff]  ;;  %v13547_v24 = vld [vmem:[#allocation75_spill] sm:$0xff]  ;;  %v13548_v37 = vld [vmem:[#allocation74_spill] sm:$0xff] }
 0x3ef   : > { %v4094_v61 = vadd.f32 %v4090_v25, %v4082_v8  ;;  %v3789_v15 = vadd.f32 %v10933_v39, %v3777_v19  ;;  %v4143_v62 = vadd.f32 %v10945_v54, %v4131_v28  ;;  %v3776_v49 = vadd.f32 %v10795_v22, %v3764_v17  ;;  %v13532_v8 = vld [vmem:[#allocation53_spill] sm:$0xff]  ;;  %v13550_v28 = vld [vmem:[#allocation76_spill] sm:$0xff] }
 0x3f0   : > { %v3824_v42 = vmul.f32 %v11058_v21, %v11058_v21  ;;  %v4178_v36 = vmul.f32 %v11061_v50, %v11061_v50  ;;  %v11071_v63 = vadd.f32 %v10989_v5, %v3798_v18  ;;  %v11074_v6 = vadd.f32 %v10991_v53, %v4152_v57  ;;  %v13549_v25 = vld [vmem:[#allocation77_spill] sm:$0xff]  ;;  %v13551_v57 = vld [vmem:[#allocation51_spill] sm:$0xff] }
 0x3f1   : > { %v4106_v56 = vadd.f32 %v13531_v1, %v4094_v61  ;;  %v3801_v39 = vadd.f32 %v10972_v47, %v3789_v15  ;;  %v4155_v54 = vadd.f32 %v13532_v8, %v4143_v62  ;;  %v3788_v22 = vadd.f32 %v13533_v38, %v3776_v49  ;;  %v13552_v15 = vld [vmem:[#allocation49_spill] sm:$0xff] }
 0x3f2   : > { %v3814_v55 = vadd.f32 %v11058_v21, %v11071_v63  ;;  %v3823_v27 = vmul.f32 %v11071_v63, %v11071_v63  ;;  %v4168_v5 = vadd.f32 %v11061_v50, %v11074_v6  ;;  %v4177_v53 = vmul.f32 %v11074_v6, %v11074_v6 }
 0x3f3   : > { %v4118_v31 = vadd.f32 %v13534_v3, %v4106_v56  ;;  %v3800_v47 = vadd.f32 %v13535_v4, %v3788_v22  ;;  %v11091_v23 = vadd.f32 %v13536_v16, %v3801_v39  ;;  %v11094_v2 = vadd.f32 %v13537_v10, %v4155_v54  ;;  %v13553_v22 = vld [vmem:[#allocation81_spill] sm:$0xff] }
 0x3f4   : > { %v3827_v41 = vadd.f32 %v3824_v42, %v3823_v27  ;;  %v4181_v35 = vadd.f32 %v4178_v36, %v4177_v53  ;;  %v3079_v48 = vsub.f32 %v13538_v52, %v11021_v60  ;;  %v3080_v44 = vsub.f32 %v13539_v40, %v11021_v60  ;;  %v7219_v27 = vld [vmem:[%s9039_s6 + $0xf0] sm:$0xff]  ;;  %v7218_v40 = vld [vmem:[%s9039_s6 + $0xe8] sm:$0xff] }
 0x3f5   : > { %v4130_v9 = vadd.f32 %v13540_v11, %v4118_v31  ;;  %v3826_v13 = vmul.f32 %v11091_v23, %v11091_v23  ;;  %v4180_v59 = vmul.f32 %v11094_v2, %v11094_v2  ;;  %v11106_v0 = vadd.f32 %v13541_v30, %v3800_v47  ;;  %v13555_v11 = vld [vmem:[#allocation42_spill] sm:$0xff] }
 0x3f6   : > { %v3081_v32 = vsub.f32 %v13542_v51, %v11021_v60  ;;  %v3082_v29 = vsub.f32 %v13543_v33, %v11021_v60  ;;  %v3083_v34 = vsub.f32 %v13544_v14, %v11021_v60  ;;  %v3084_v12 = vsub.f32 %v13545_v43, %v11021_v60  ;;  %v13557_v51 = vld [vmem:[#allocation43_spill] sm:$0xff] }
 0x3f7   : > { %v4142_v46 = vadd.f32 %v13546_v20, %v4130_v9  ;;  %v3815_v45 = vadd.f32 %v3814_v55, %v11106_v0  ;;  %v3825_v7 = vmul.f32 %v11106_v0, %v11106_v0  ;;  %v3085_v58 = vsub.f32 %v13547_v24, %v11021_v60 }
 0x3f8   : > { %v11122_v26 = vpop.eup %8537  ;;  %v3086_v17 = vsub.f32 %v13548_v37, %v11021_v60  ;;  %v3087_v19 = vsub.f32 %v13549_v25, %v11021_v60  ;;  %v3088_v18 = vsub.f32 %v13550_v28, %v11021_v60  ;;  %v3089_v61 = vsub.f32 %v13551_v57, %v11021_v60 }
 0x3f9   : > { %v4154_v62 = vadd.f32 %v13552_v15, %v4142_v46  ;;  %v3816_v49 = vadd.f32 %v3815_v45, %v11091_v23  ;;  %v3828_v42 = vadd.f32 %v3827_v41, %v3825_v7  ;;  %v3097_v36 = vmul.f32 %v11122_v26, %v3079_v48  ;;  %v13554_v48 = vld [vmem:[#allocation48_spill] sm:$0xff] }
 0x3fa   : > { %v3098_v1 = vmul.f32 %v11122_v26, %v3080_v44  ;;  %v3099_v56 = vmul.f32 %v11122_v26, %v3081_v32  ;;  %v3100_v39 = vmul.f32 %v11122_v26, %v3082_v29  ;;  %v3101_v8 = vmul.f32 %v11122_v26, %v3083_v34  ;;  %v7217_v34 = vld [vmem:[%s9039_s6 + $0xe0] sm:$0xff] }
 0x3fb   : > { %v3817_v54 = vrot.slane %v3816_v49, 4  ;;  %v3829_v38 = vadd.f32 %v3828_v42, %v3826_v13  ;;  %v11140_v55 = vadd.f32 %v13553_v22, %v4154_v62  ;;  %8083 = vmatprep.mubr.f32.mxu1 %v3097_v36  ;;  %v3102_v53 = vmul.f32 %v11122_v26, %v3084_v12  ;;  %v13556_v13 = vld [vmem:[#allocation50_spill] sm:$0xff] }
 0x3fc   : > { %8084 = vmatmul.mubr.f32.vlgmr.msra.gmra.mxu1 %v3098_v1  ;;  %v3103_v3 = vmul.f32 %v11122_v26, %v3085_v58  ;;  %v3104_v31 = vmul.f32 %v11122_v26, %v3086_v17  ;;  %v11147_v4 = vmul.f32 %v11122_v26, %v3087_v19  ;;  %v11150_v47 = vmul.f32 %v11122_v26, %v3088_v18  ;;  %v13558_v58 = vld [vmem:[#allocation46_spill] sm:$0xff]  ;;  %v13559_v17 = vld [vmem:[#allocation45_spill] sm:$0xff] }
 0x3fd   : > { %v3818_v16 = vadd.f32 %v3817_v54, %v3816_v49  ;;  %v3830_v10 = vrot.slane %v3829_v38, 4  ;;  %v4169_v41 = vadd.f32 %v4168_v5, %v11140_v55  ;;  %v4179_v52 = vmul.f32 %v11140_v55, %v11140_v55  ;;  %8086 = vmatprep.mubr.f32.mxu1 %v3099_v56  ;;  %8108 = vmatpush3.msra.mxu1 %v13554_v48  ;;  %v7213_v54 = vld [vmem:[%s9039_s6 + $0xc0] sm:$0xff] }
 0x3fe   : > { %8109 = vmatprep.subr.mxu1 %v7219_v27  ;;  %v11158_v44 = vmul.f32 %v11122_v26, %v3089_v61  ;;  %v3090_v9 = vsub.f32 %v13555_v11, %v11021_v60  ;;  %v3091_v30 = vsub.f32 %v13556_v13, %v11021_v60  ;;  %v3092_v5 = vsub.f32 %v13557_v51, %v11021_v60  ;;  %v7215_v61 = vld [vmem:[%s9039_s6 + $0xd0] sm:$0xff]  ;;  %v7206_v51 = vld [vmem:[%s9039_s6 + $0x88] sm:$0xff] }
 0x3ff   : > { %v3819_v32 = vrot.slane %v3818_v16, 2  ;;  %v3831_v33 = vadd.f32 %v3830_v10, %v3829_v38  ;;  %v4170_v29 = vadd.f32 %v4169_v41, %v11094_v2  ;;  %v4182_v14 = vadd.f32 %v4181_v35, %v4179_v52  ;;  %8110 = vmatpush3.msra.mxu1 %v7219_v27  ;;  %v7216_v35 = vld [vmem:[%s9039_s6 + $0xd8] sm:$0xff]  ;;  %v7211_v41 = vld [vmem:[%s9039_s6 + $0xb0] sm:$0xff] }
 0x400   : > { %8087 = vmatmul.mubr.f32.gmra.mxu1 %v3100_v39  ;;  %8111 = vmatprep.subr.mxu1 %v7218_v40  ;;  %v11169_v43 = vmul.f32 %v11122_v26, %v3090_v9  ;;  %v11172_v12 = vmul.f32 %v11122_v26, %v3091_v30  ;;  %v11175_v20 = vmul.f32 %v11122_v26, %v3092_v5  ;;  %v7209_v9 = vld [vmem:[%s9039_s6 + $0xa0] sm:$0xff]  ;;  %v7207_v30 = vld [vmem:[%s9039_s6 + $0x90] sm:$0xff] }
 0x401   : > { %v3820_v46 = vadd.f32 %v3819_v32, %v3818_v16  ;;  %v3832_v45 = vrot.slane %v3831_v33, 2  ;;  %v4171_v7 = vrot.slane %v4170_v29, 4  ;;  %v4183_v24 = vadd.f32 %v4182_v14, %v4180_v59  ;;  %8089 = vmatprep.mubr.f32.mxu1 %v3101_v8  ;;  %8112 = vmatpush3.msra.mxu1 %v7218_v40  ;;  %v7205_v5 = vld [vmem:[%s9039_s6 + $0x80] sm:$0xff]  ;;  %v7237_v32 = vld [vmem:[%s9039_s6 + $0x178] sm:$0xff] }
 0x402   : > { %8113 = vmatprep.subr.mxu1 %v7217_v34  ;;  %v3093_v37 = vsub.f32 %v13558_v58, %v11021_v60  ;;  %v3094_v25 = vsub.f32 %v13559_v17, %v11021_v60  ;;  %v7214_v60 = vld [vmem:[%s9039_s6 + $0xc8] sm:$0xff]  ;;  %v7232_v58 = vld [vmem:[%s9039_s6 + $0x150] sm:$0xff]  ;;  %v7229_v17 = vld [vmem:[%s9039_s6 + $0x138] sm:$0xff] }
 0x403   : > { %v3821_v19 = vrot.slane %v3820_v46, 1  ;;  %v3833_v28 = vadd.f32 %v3832_v45, %v3831_v33  ;;  %v4172_v18 = vadd.f32 %v4171_v7, %v4170_v29  ;;  %v4184_v57 = vrot.slane %v4183_v24, 4  ;;  %8114 = vmatpush3.msra.mxu1 %v7217_v34 }
 0x404   : > { %8090 = vmatmul.mubr.f32.gmra.mxu1 %v3102_v53  ;;  %8115 = vmatprep.subr.mxu1 %v7216_v35  ;;  %v3111_v59 = vmul.f32 %v11122_v26, %v3093_v37  ;;  %v3112_v15 = vmul.f32 %v11122_v26, %v3094_v25  ;;  %v7212_v53 = vld [vmem:[%s9039_s6 + $0xb8] sm:$0xff]  ;;  %v7230_v37 = vld [vmem:[%s9039_s6 + $0x140] sm:$0xff]  ;;  %v7228_v25 = vld [vmem:[%s9039_s6 + $0x130] sm:$0xff] }
 0x405   : > { %v3822_v62 = vadd.f32 %v3821_v19, %v3820_v46  ;;  %v3834_v49 = vrot.slane %v3833_v28, 1  ;;  %v4173_v42 = vrot.slane %v4172_v18, 2  ;;  %v4185_v36 = vadd.f32 %v4184_v57, %v4183_v24  ;;  %8092 = vmatprep.mubr.f32.mxu1 %v3103_v3  ;;  %8116 = vmatpush3.msra.mxu1 %v7216_v35  ;;  %v7236_v46 = vld [vmem:[%s9039_s6 + $0x170] sm:$0xff]  ;;  %v7227_v19 = vld [vmem:[%s9039_s6 + $0x128] sm:$0xff] }
 0x406   : > { %8117 = vmatprep.subr.mxu1 %v7215_v61  ;;  %v7224_v57 = vld [vmem:[%s9039_s6 + $0x110] sm:$0xff] }
 0x407   : > { %v3835_v1 = vadd.f32 %v3834_v49, %v3833_v28  ;;  %v11186_v56 = vmul.f32 0.03125, %v3822_v62  ;;  %v4174_v39 = vadd.f32 %v4173_v42, %v4172_v18  ;;  %v4186_v8 = vrot.slane %v4185_v36, 2  ;;  %8118 = vmatpush3.msra.mxu1 %v7215_v61  ;;  %v7226_v28 = vld [vmem:[%s9039_s6 + $0x120] sm:$0xff]  ;;  %v7225_v18 = vld [vmem:[%s9039_s6 + $0x118] sm:$0xff]  ;;  %v7223_v61 = vld [vmem:[%s9039_s6 + $0x108] sm:$0xff] }
 0x408   : > { %8093 = vmatmul.mubr.f32.gmra.mxu1 %v3104_v31  ;;  %8119 = vmatprep.subr.mxu1 %v7214_v60 }
 0x409   : > { %v3837_v26 = vmul.f32 0.03125, %v3835_v1  ;;  %v3838_v38 = vmul.f32 %v11186_v56, %v11186_v56  ;;  %v4175_v22 = vrot.slane %v4174_v39, 1  ;;  %v4187_v27 = vadd.f32 %v4186_v8, %v4185_v36  ;;  %8095 = vmatprep.mubr.f32.mxu1 %v11147_v4  ;;  %8120 = vmatpush3.msra.mxu1 %v7214_v60  ;;  %v7210_v4 = vld [vmem:[%s9039_s6 + $0xa8] sm:$0xff] }
 0x40a   : > { %8121 = vmatprep.subr.mxu1 %v7213_v54  ;;  %v3840_v33 = vsub.f32 %v11071_v63, %v11186_v56  ;;  %v3841_v29 = vsub.f32 %v11058_v21, %v11186_v56  ;;  %v3843_v45 = vsub.f32 %v11091_v23, %v11186_v56  ;;  %v7235_v21 = vld [vmem:[%s9039_s6 + $0x168] sm:$0xff]  ;;  %v7233_v23 = vld [vmem:[%s9039_s6 + $0x158] sm:$0xff] }
 0x40b   : > { %v3839_v3 = vsub.f32 %v3837_v26, %v3838_v38  ;;  %v4176_v16 = vadd.f32 %v4175_v22, %v4174_v39  ;;  %v4188_v10 = vrot.slane %v4187_v27, 1  ;;  %8122 = vmatpush3.msra.mxu1 %v7213_v54 }
 0x40c   : > { %8096 = vmatmul.mubr.f32.gmra.mxu1 %v11150_v47  ;;  %8123 = vmatprep.subr.mxu1 %v7212_v53 }
 0x40d   : > { %v3844_v31 = vadd.f32 1e-05, %v3839_v3  ;;  %v4189_v52 = vadd.f32 %v4188_v10, %v4187_v27  ;;  %v11195_v48 = vmul.f32 0.03125, %v4176_v16  ;;  %8098 = vmatprep.mubr.f32.mxu1 %v11158_v44  ;;  %8124 = vmatpush3.msra.mxu1 %v7212_v53  ;;  %v7208_v44 = vld [vmem:[%s9039_s6 + $0x98] sm:$0xff] }
 0x40e   : > { %8125 = vmatprep.subr.mxu1 %v7211_v41 }
 0x40f   : > { %8539 = vrsqrt.f32 %v3844_v31  ;;  %v4191_v40 = vmul.f32 0.03125, %v4189_v52  ;;  %v4192_v11 = vmul.f32 %v11195_v48, %v11195_v48  ;;  %8126 = vmatpush3.msra.mxu1 %v7211_v41  ;;  %v4194_v63 = vsub.f32 %v11074_v6, %v11195_v48  ;;  %v7231_v6 = vld [vmem:[%s9039_s6 + $0x148] sm:$0xff]  ;;  %v11274_v31 = vld [vmem:[%s9025_s29] sm:$0x7] }
 0x410   : > { %8099 = vmatmul.mubr.f32.gmra.mxu1 %v11169_v43  ;;  %8127 = vmatprep.subr.mxu1 %v7210_v4  ;;  %v4196_v62 = vsub.f32 %v11140_v55, %v11195_v48  ;;  %v4197_v36 = vsub.f32 %v11094_v2, %v11195_v48  ;;  %v13560_v52 = vld [vmem:[#allocation40_spill] sm:$0xff] }
 0x411   : > { %v4193_v47 = vsub.f32 %v4191_v40, %v4192_v11  ;;  %8101 = vmatprep.mubr.f32.mxu1 %v11172_v12  ;;  %8128 = vmatpush3.msra.mxu1 %v7210_v4  ;;  %v3842_v12 = vsub.f32 %v11106_v0, %v11186_v56  ;;  %v7234_v0 = vld [vmem:[%s9039_s6 + $0x160] sm:$0xff] }
 0x412   : > { %8129 = vmatprep.subr.mxu1 %v7209_v9 }
 0x413   : > { %v4198_v13 = vadd.f32 1e-05, %v4193_v47  ;;  %8130 = vmatpush3.msra.mxu1 %v7209_v9 }
 0x414   : > { %8102 = vmatmul.mubr.f32.gmra.mxu1 %v11175_v20  ;;  %8131 = vmatprep.subr.mxu1 %v7208_v44 }
 0x415   : > { %8541 = vrsqrt.f32 %v4198_v13  ;;  %8104 = vmatprep.mubr.f32.mxu1 %v3111_v59  ;;  %8132 = vmatpush3.msra.mxu1 %v7208_v44  ;;  %v7222_v59 = vld [vmem:[%s9039_s6 + $0x100] sm:$0xff]  ;;  %s13621_s6 = scalar_lea.vmem %s13274_s10, %s9017_s22 }
 0x416   : > { %8133 = vmatprep.subr.mxu1 %v7207_v30 }
 0x417   : > { %8134 = vmatpush3.msra.mxu1 %v7207_v30 }
 0x418   : > { %8105 = vmatmul.mubr.f32.gmra.mxu1 %v3112_v15  ;;  %8135 = vmatprep.subr.mxu1 %v7206_v51  ;;  %v4195_v15 = vsub.f32 %v11061_v50, %v11195_v48  ;;  %v3870_v48 = vrot.slane %v11274_v31, %v13560_v52 }
 0x419   : > { %8136 = vmatpush3.msra.mxu1 %v7206_v51 }
 0x41a   : > { %8137 = vmatprep.subr.mxu1 %v7205_v5 }
 0x41b   : > { %8138 = vmatpush3.msra.mxu1 %v7205_v5 }
 0x41c   : > { %v8540_v14 = vpop.eup %8539  ;;  %8145 = vmatprep.subr.mxu1 %v7237_v32 }
 0x41d   : > { %v3846_v34 = vmul.f32 %v8540_v14, %v3840_v33  ;;  %v3847_v43 = vmul.f32 %v8540_v14, %v3841_v29  ;;  %v3848_v20 = vmul.f32 %v8540_v14, %v3842_v12  ;;  %v3849_v24 = vmul.f32 %v8540_v14, %v3843_v45 }
 0x41f   : > { %8139 = vmatprep.mubr.f32.mxu1 %v3846_v34 }
 0x420   : > { %8140 = vmatmul.mubr.f32.vlgmr.msra.gmra.mxu1 %v3847_v43 }
 0x421   : > { %8146 = vmatpush3.msra.mxu1 %v7237_v32  ;;  %8142 = vmatprep.mubr.f32.mxu1 %v3848_v20 }
 0x422   : > { %v8542_v7 = vpop.eup %8541  ;;  %8147 = vmatprep.subr.mxu1 %v7236_v46 }
 0x423   : > { %8148 = vmatpush3.msra.mxu1 %v7236_v46  ;;  %v4200_v35 = vmul.f32 %v8542_v7, %v4194_v63  ;;  %v4201_v49 = vmul.f32 %v8542_v7, %v4195_v15  ;;  %v4202_v42 = vmul.f32 %v8542_v7, %v4196_v62  ;;  %v4203_v60 = vmul.f32 %v8542_v7, %v4197_v36 }
 0x424   : > { %8149 = vmatprep.subr.mxu1 %v7235_v21  ;;  %8143 = vmatmul.mubr.f32.gmra.mxu1 %v3849_v24 }
 0x425   : > { %8150 = vmatpush3.msra.mxu1 %v7235_v21  ;;  %8177 = vmatprep.mubr.f32.mxu1 %v4200_v35 }
 0x426   : > { %8151 = vmatprep.subr.mxu1 %v7234_v0 }
 0x427   : > { %8152 = vmatpush3.msra.mxu1 %v7234_v0  ;;  %v13561_v0 = vld [vmem:[#allocation41_spill] sm:$0xff] }
 0x428   : > { %8153 = vmatprep.subr.mxu1 %v7233_v23  ;;  %v11304_v35 = vrot.slane %v11274_v31, %v13561_v0 }
 0x429   : > { %8154 = vmatpush3.msra.mxu1 %v7233_v23 }
 0x42a   : > { %8155 = vmatprep.subr.mxu1 %v7232_v58 }
 0x42b   : > { %8156 = vmatpush3.msra.mxu1 %v7232_v58 }
 0x42c   : > { %8157 = vmatprep.subr.mxu1 %v7231_v6 }
 0x42d   : > { %8158 = vmatpush3.msra.mxu1 %v7231_v6 }
 0x42e   : > { %8159 = vmatprep.subr.mxu1 %v7230_v37 }
 0x42f   : > { %8160 = vmatpush3.msra.mxu1 %v7230_v37 }
 0x430   : > { %8161 = vmatprep.subr.mxu1 %v7229_v17 }
 0x431   : > { %8162 = vmatpush3.msra.mxu1 %v7229_v17 }
 0x432   : > { %8163 = vmatprep.subr.mxu1 %v7228_v25 }
 0x433   : > { %8164 = vmatpush3.msra.mxu1 %v7228_v25 }
 0x434   : > { %8165 = vmatprep.subr.mxu1 %v7227_v19 }
 0x435   : > { %8166 = vmatpush3.msra.mxu1 %v7227_v19 }
 0x436   : > { %8167 = vmatprep.subr.mxu1 %v7226_v28 }
 0x437   : > { %8168 = vmatpush3.msra.mxu1 %v7226_v28 }
 0x438   : > { %8169 = vmatprep.subr.mxu1 %v7225_v18 }
 0x439   : > { %8170 = vmatpush3.msra.mxu1 %v7225_v18 }
 0x43a   : > { %8171 = vmatprep.subr.mxu1 %v7224_v57 }
 0x43b   : > { %8172 = vmatpush3.msra.mxu1 %v7224_v57 }
 0x43c   : > { %8173 = vmatprep.subr.mxu1 %v7223_v61 }
 0x43d   : > { %8174 = vmatpush3.msra.mxu1 %v7223_v61 }
 0x43e   : > { %8175 = vmatprep.subr.mxu1 %v7222_v59 }
 0x43f   : > { %8176 = vmatpush3.msra.mxu1 %v7222_v59 }
 0x440   : > { %8178 = vmatmul.mubr.f32.vlgmr.msra.gmra.mxu1 %v4201_v49 }
 0x441   : > { %8180 = vmatprep.mubr.f32.mxu1 %v4202_v42 }
 0x444   : > { %8181 = vmatmul.mubr.f32.gmra.mxu1 %v4203_v60 }
 0x4bc   : > { %v11241_v1 = vpop.f32.mrf.mxu1 }
 0x4be   : > { %v11243_v56 = vpop.f32.mrf.mxu1 }
 0x4c0   : > { %v11245_v50 = vpop.f32.mrf.mxu1 }
 0x4c2   : > { %v11247_v39 = vpop.f32.mrf.mxu1 }
 0x4c4   : > { %v11249_v55 = vpop.f32.mrf.mxu1 }
 0x4c6   : > { %v11251_v8 = vpop.f32.mrf.mxu1 }
 0x4c8   : > { %v11253_v54 = vpop.f32.mrf.mxu1 }
 0x4ca   : > { %v11255_v26 = vpop.f32.mrf.mxu1 }
 0x4cc   : > { %v11257_v2 = vpop.f32.mrf.mxu1 }
 0x4ce   : > { %v11259_v38 = vpop.f32.mrf.mxu1 }
 0x4d0   : > { %v11261_v22 = vpop.f32.mrf.mxu1 }
 0x4d2   : > { %v11263_v27 = vpop.f32.mrf.mxu1 }
 0x4d4   : > { %v11265_v53 = vpop.f32.mrf.mxu1 }
 0x4d6   : > { %v11267_v3 = vpop.f32.mrf.mxu1 }
 0x4d8   : > { %v11269_v16 = vpop.f32.mrf.mxu1 }
 0x4da   : > { %v11271_v10 = vpop.f32.mrf.mxu1 }
 0x4e0   : > { %v8141_v41 = vpop.f32.mrf.mxu1 }
 0x4e1   : > { %v11278_v40 = vadd.f32 %v8141_v41, %v3870_v48 }
 0x4e2   : > { %v3937_v4 = vpop.f32.mrf.mxu1 }
 0x4e3   : > { %v11280_v9 = vadd.f32 %v3937_v4, %v3870_v48  ;;  %v11283_v47 = vmul.f32 0.70710677, %v11278_v40 }
 0x4e4   : > { %v8144_v11 = vpop.f32.mrf.mxu1 }
 0x4e5   : > { %v11285_v44 = vadd.f32 %v8144_v11, %v3870_v48  ;;  %v3965_v13 = vand.u32 2147483647, %v11283_v47  ;;  %v11289_v30 = vmul.f32 0.70710677, %v11280_v9  ;;  %vm4045_vm1 = vcmp.ge.f32.partialorder %v11283_v47, 0.0 }
 0x4e6   : > { %v3947_v33 = vpop.f32.mrf.mxu1 }
 0x4e7   : > { %v3969_v51 = vmul.f32 0.3275911, %v3965_v13  ;;  %v3964_v5 = vand.u32 2147483647, %v11289_v30  ;;  %v11293_v32 = vmul.f32 0.70710677, %v11285_v44  ;;  %v11296_v43 = vadd.f32 %v3947_v33, %v3870_v48 }
 0x4e8   : > { %v4021_v63 = vsub.f32 0.0, %v3965_v13  ;;  %vm4044_vm2 = vcmp.ge.f32.partialorder %v11289_v30, 0.0 }
 0x4e9   : > { %v3973_v29 = vadd.f32 1.0, %v3969_v51  ;;  %v3968_v14 = vmul.f32 0.3275911, %v3964_v5  ;;  %v3967_v34 = vand.u32 2147483647, %v11293_v32  ;;  %v4020_v7 = vsub.f32 0.0, %v3964_v5 }
 0x4ea   : > { %v11299_v46 = vmul.f32 0.70710677, %v11296_v43  ;;  %v4025_v58 = vmul.f32 %v4021_v63, %v3965_v13  ;;  %vm4047_vm3 = vcmp.ge.f32.partialorder %v11293_v32, 0.0 }
 0x4eb   : > { %8543 = vrcp.f32 %v3973_v29  ;;  %v3972_v12 = vadd.f32 1.0, %v3968_v14  ;;  %v3971_v20 = vmul.f32 0.3275911, %v3967_v34  ;;  %v4024_v6 = vmul.f32 %v4020_v7, %v3964_v5 }
 0x4ec   : > { %v3966_v21 = vand.u32 2147483647, %v11299_v46  ;;  %v4023_v25 = vsub.f32 0.0, %v3967_v34  ;;  %v4030_v28 = vmul.f32 1.442695, %v4025_v58  ;;  %vm4046_vm4 = vcmp.ge.f32.partialorder %v11299_v46, 0.0 }
 0x4ed   : > { %8545 = vrcp.f32 %v3972_v12  ;;  %v3975_v45 = vadd.f32 1.0, %v3971_v20  ;;  %v4028_v59 = vmul.f32 1.442695, %v4024_v6 }
 0x4ee   : > { %v3970_v24 = vmul.f32 0.3275911, %v3966_v21  ;;  %v4027_v36 = vmul.f32 %v4023_v25, %v3967_v34  ;;  %v4022_v60 = vsub.f32 0.0, %v3966_v21 }
 0x4ef   : > { %8547 = vrcp.f32 %v3975_v45 }
 0x4f0   : > { %v3974_v23 = vadd.f32 1.0, %v3970_v24  ;;  %v4034_v12 = vmul.f32 1.442695, %v4027_v36  ;;  %v4026_v20 = vmul.f32 %v4022_v60, %v3966_v21 }
 0x4f2   : > { %8549 = vrcp.f32 %v3974_v23 }
 0x4f3   : > { %8551 = vpow2.f32 %v4030_v28 }
 0x4f4   : > { %8553 = vpow2.f32 %v4028_v59  ;;  %v4032_v59 = vmul.f32 1.442695, %v4026_v20 }
 0x4f8   : > { %v8544_v61 = vpop.eup %8543 }
 0x4f9   : > { %v3985_v62 = vmul.f32 1.0614054, %v8544_v61 }
 0x4fa   : > { %v8546_v42 = vpop.eup %8545 }
 0x4fb   : > { %v3989_v48 = vadd.f32 -1.4531521, %v3985_v62  ;;  %v3984_v4 = vmul.f32 1.0614054, %v8546_v42 }
 0x4fc   : > { %v8548_v51 = vpop.eup %8547 }
 0x4fd   : > { %v3993_v5 = vmul.f32 %v8544_v61, %v3989_v48  ;;  %v3988_v33 = vadd.f32 -1.4531521, %v3984_v4  ;;  %v3987_v34 = vmul.f32 1.0614054, %v8548_v51 }
 0x4ff   : > { %v3997_v63 = vadd.f32 1.4214138, %v3993_v5  ;;  %v3992_v7 = vmul.f32 %v8546_v42, %v3988_v33  ;;  %v3991_v0 = vadd.f32 -1.4531521, %v3987_v34  ;;  %v11327_v58 = vpop.eup %8549 }
 0x500   : > { %v8179_v37 = vpop.f32.mrf.mxu1  ;;  %v3986_v28 = vmul.f32 1.0614054, %v11327_v58 }
 0x501   : > { %v11307_v17 = vadd.f32 %v8179_v37, %v11304_v35  ;;  %v4001_v6 = vmul.f32 %v8544_v61, %v3997_v63  ;;  %v3996_v37 = vadd.f32 1.4214138, %v3992_v7 }
 0x502   : > { %v4291_v19 = vpop.f32.mrf.mxu1  ;;  %v3990_v60 = vadd.f32 -1.4531521, %v3986_v28 }
 0x503   : > { %v11310_v18 = vmul.f32 0.70710677, %v11307_v17  ;;  %v11313_v57 = vadd.f32 %v4291_v19, %v11304_v35  ;;  %v3995_v19 = vmul.f32 %v8548_v51, %v3991_v0  ;;  %v4000_v21 = vmul.f32 %v8546_v42, %v3996_v37 }
 0x504   : > { %v8182_v15 = vpop.f32.mrf.mxu1  ;;  %v3994_v33 = vmul.f32 %v11327_v58, %v3990_v60 }
 0x505   : > { %v4319_v49 = vand.u32 2147483647, %v11310_v18  ;;  %v11317_v41 = vmul.f32 0.70710677, %v11313_v57  ;;  %v11320_v52 = vadd.f32 %v8182_v15, %v11304_v35  ;;  %v4005_v15 = vadd.f32 -0.28449672, %v4001_v6 }
 0x506   : > { %v3999_v36 = vadd.f32 1.4214138, %v3995_v19  ;;  %v3998_v63 = vadd.f32 1.4214138, %v3994_v33  ;;  %v3957_v19 = vmul.f32 0.5, %v11278_v40  ;;  %vm4399_vm5 = vcmp.ge.f32.partialorder %v11310_v18, 0.0 }
 0x507   : > { %v4323_v11 = vmul.f32 0.3275911, %v4319_v49  ;;  %v4318_v13 = vand.u32 2147483647, %v11317_v41  ;;  %v11324_v14 = vmul.f32 0.70710677, %v11320_v52  ;;  %v4009_v4 = vmul.f32 %v8544_v61, %v4005_v15 }
 0x508   : > { %v4375_v48 = vsub.f32 0.0, %v4319_v49  ;;  %v4003_v5 = vmul.f32 %v8548_v51, %v3999_v36  ;;  %vm4398_vm6 = vcmp.ge.f32.partialorder %v11317_v41, 0.0 }
 0x509   : > { %v4327_v29 = vadd.f32 1.0, %v4323_v11  ;;  %v4322_v45 = vmul.f32 0.3275911, %v4318_v13  ;;  %v4321_v24 = vand.u32 2147483647, %v11324_v14  ;;  %v4374_v6 = vsub.f32 0.0, %v4318_v13 }
 0x50a   : > { %v4004_v11 = vadd.f32 -0.28449672, %v4000_v21  ;;  %v4379_v20 = vmul.f32 %v4375_v48, %v4319_v49  ;;  %v3956_v49 = vmul.f32 0.5, %v11280_v9  ;;  %vm4401_vm7 = vcmp.ge.f32.partialorder %v11324_v14, 0.0 }
 0x50b   : > { %8555 = vrcp.f32 %v4327_v29  ;;  %v4326_v23 = vadd.f32 1.0, %v4322_v45  ;;  %v4325_v25 = vmul.f32 0.3275911, %v4321_v24  ;;  %v4013_v29 = vadd.f32 0.2548296, %v4009_v4 }
 0x50c   : > { %8557 = vpow2.f32 %v4034_v12  ;;  %v4008_v34 = vmul.f32 %v8546_v42, %v4004_v11  ;;  %v8552_v12 = vpop.eup %8551  ;;  %v4007_v45 = vadd.f32 -0.28449672, %v4003_v5  ;;  %v4377_v21 = vsub.f32 0.0, %v4321_v24 }
 0x50d   : > { %8559 = vrcp.f32 %v4326_v23  ;;  %v4329_v62 = vadd.f32 1.0, %v4325_v25  ;;  %v8554_v7 = vpop.eup %8553  ;;  %v4017_v0 = vmul.f32 %v8544_v61, %v4013_v29  ;;  %v4002_v25 = vmul.f32 %v11327_v58, %v3998_v63 }
 0x50e   : > { %v4012_v23 = vadd.f32 0.2548296, %v4008_v34  ;;  %v4011_v37 = vmul.f32 %v8548_v51, %v4007_v45  ;;  %v4384_v60 = vmul.f32 1.442695, %v4379_v20  ;;  %v4378_v61 = vmul.f32 %v4374_v6, %v4318_v13 }
 0x50f   : > { %8561 = vrcp.f32 %v4329_v62  ;;  %v4037_v28 = vmul.f32 %v8552_v12, %v4017_v0  ;;  %v4006_v36 = vadd.f32 -0.28449672, %v4002_v25  ;;  %v4381_v34 = vmul.f32 %v4377_v21, %v4321_v24 }
 0x510   : > { %8563 = vpow2.f32 %v4032_v59  ;;  %v4016_v15 = vmul.f32 %v8546_v42, %v4012_v23  ;;  %v4015_v59 = vadd.f32 0.2548296, %v4011_v37  ;;  %v4382_v47 = vmul.f32 1.442695, %v4378_v61 }
 0x511   : > { %v4041_v4 = vsub.f32 1.0, %v4037_v28  ;;  %v4010_v5 = vmul.f32 %v11327_v58, %v4006_v36  ;;  %8565 = vpow2.f32 %v4384_v60  ;;  %v4388_v28 = vmul.f32 1.442695, %v4381_v34 }
 0x512   : > { %v4036_v48 = vmul.f32 %v8554_v7, %v4016_v15  ;;  %v4019_v11 = vmul.f32 %v8548_v51, %v4015_v59  ;;  %8567 = vpow2.f32 %v4382_v47 }
 0x513   : > { %v4049_v42 = vsub.f32 0.0, %v4041_v4  ;;  %v4014_v63 = vadd.f32 0.2548296, %v4010_v5  ;;  %8569 = vpow2.f32 %v4388_v28 }
 0x514   : > { %v4040_v29 = vsub.f32 1.0, %v4036_v48 }
 0x515   : > { %v4053_v13 = vsel %vm4045_vm1, %v4041_v4, %v4049_v42  ;;  %v4018_v6 = vmul.f32 %v11327_v58, %v4014_v63 }
 0x516   : > { %v4048_v20 = vsub.f32 0.0, %v4040_v29  ;;  %v4057_v0 = vadd.f32 1.0, %v4053_v13 }
 0x518   : > { %v11333_v62 = vpop.eup %8555  ;;  %v4052_v25 = vsel %vm4044_vm2, %v4040_v29, %v4048_v20  ;;  %v4061_v61 = vmul.f32 %v4057_v0, %v3957_v19  ;;  %v3959_v19 = vmul.f32 0.5, %v11285_v44 }
 0x519   : > { %v4339_v40 = vmul.f32 1.0614054, %v11333_v62  ;;  %v8558_v33 = vpop.eup %8557  ;;  %v4056_v59 = vadd.f32 1.0, %v4052_v25 }
 0x51a   : > { %v11340_v12 = vpop.eup %8559  ;;  %v4039_v45 = vmul.f32 %v8558_v33, %v4019_v11 }
 0x51b   : > { %v4343_v9 = vadd.f32 -1.4531521, %v4339_v40  ;;  %v4338_v51 = vmul.f32 1.0614054, %v11340_v12  ;;  %v4060_v11 = vmul.f32 %v4056_v59, %v3956_v49  ;;  %v3958_v49 = vmul.f32 0.5, %v11296_v43 }
 0x51c   : > { %v11343_v7 = vpop.eup %8561  ;;  %v4043_v23 = vsub.f32 1.0, %v4039_v45 }
 0x51d   : > { %v4347_v37 = vmul.f32 %v11333_v62, %v4343_v9  ;;  %v8564_v24 = vpop.eup %8563  ;;  %v4342_v15 = vadd.f32 -1.4531521, %v4338_v51  ;;  %v4341_v21 = vmul.f32 1.0614054, %v11343_v7  ;;  %v4418_v29 = vmax.f32 %v4060_v11, %v4061_v61 }
 0x51e   : > { %v4051_v36 = vsub.f32 0.0, %v4043_v23  ;;  %v4038_v60 = vmul.f32 %v8564_v24, %v4018_v6  ;;  %v8566_v24 = vpop.eup %8565 }
 0x51f   : > { %v4351_v4 = vadd.f32 1.4214138, %v4347_v37  ;;  %v4346_v48 = vmul.f32 %v11340_v12, %v4342_v15  ;;  %v4345_v58 = vadd.f32 -1.4531521, %v4341_v21  ;;  %v4419_v13 = vrot.slane %v4418_v29, 4 }
 0x520   : > { %v4055_v5 = vsel %vm4047_vm3, %v4043_v23, %v4051_v36  ;;  %v4042_v40 = vsub.f32 1.0, %v4038_v60 }
 0x521   : > { %v4355_v30 = vmul.f32 %v11333_v62, %v4351_v4  ;;  %v4350_v33 = vadd.f32 1.4214138, %v4346_v48  ;;  %v4349_v42 = vmul.f32 %v11343_v7, %v4345_v58  ;;  %v4059_v34 = vadd.f32 1.0, %v4055_v5 }
 0x522   : > { %v4050_v32 = vsub.f32 0.0, %v4042_v40  ;;  %v4420_v6 = vmax.f32 %v4418_v29, %v4419_v13 }
 0x523   : > { %v4359_v45 = vadd.f32 -0.28449672, %v4355_v30  ;;  %v4354_v63 = vmul.f32 %v11340_v12, %v4350_v33  ;;  %v4353_v9 = vadd.f32 1.4214138, %v4349_v42  ;;  %v4063_v37 = vmul.f32 %v4059_v34, %v3959_v19 }
 0x524   : > { %v4054_v20 = vsel %vm4046_vm4, %v4042_v40, %v4050_v32  ;;  %v4421_v21 = vrot.slane %v4420_v6, 2  ;;  %v8568_v40 = vpop.eup %8567 }
 0x525   : > { %v4058_v47 = vadd.f32 1.0, %v4054_v20  ;;  %v4363_v51 = vmul.f32 %v11333_v62, %v4359_v45  ;;  %v4358_v0 = vadd.f32 -0.28449672, %v4354_v63  ;;  %v4357_v23 = vmul.f32 %v11343_v7, %v4353_v9  ;;  %v8570_v32 = vpop.eup %8569 }
 0x526   : > { %v4422_v60 = vmax.f32 %v4420_v6, %v4421_v21  ;;  %v4311_v20 = vmul.f32 0.5, %v11307_v17  ;;  %v4313_v21 = vmul.f32 0.5, %v11320_v52 }
 0x527   : > { %v4062_v46 = vmul.f32 %v4058_v47, %v3958_v49  ;;  %v4367_v25 = vadd.f32 0.2548296, %v4363_v51  ;;  %v4362_v28 = vmul.f32 %v11340_v12, %v4358_v0  ;;  %v4361_v15 = vadd.f32 -0.28449672, %v4357_v23 }
 0x528   : > { %v4423_v30 = vrot.slane %v4422_v60, 1 }
 0x529   : > { %v4425_v59 = vmax.f32 %v4062_v46, %v4063_v37  ;;  %v4371_v44 = vmul.f32 %v11333_v62, %v4367_v25  ;;  %v4366_v43 = vadd.f32 0.2548296, %v4362_v28  ;;  %v4365_v36 = vmul.f32 %v11343_v7, %v4361_v15 }
 0x52a   : > { %v4424_v45 = vmax.f32 %v4422_v60, %v4423_v30  ;;  %v4310_v25 = vmul.f32 0.5, %v11313_v57 }
 0x52b   : > { %v4426_v4 = vrot.slane %v4425_v59, 4  ;;  %v4391_v48 = vmul.f32 %v8566_v24, %v4371_v44  ;;  %v4370_v58 = vmul.f32 %v11340_v12, %v4366_v43  ;;  %v4369_v5 = vadd.f32 0.2548296, %v4365_v36 }
 0x52c   : > { %v4432_v19 = vsub.f32 %v4060_v11, %v4424_v45  ;;  %v4433_v49 = vsub.f32 %v4061_v61, %v4424_v45 }
 0x52d   : > { %v4427_v33 = vmax.f32 %v4425_v59, %v4426_v4  ;;  %v4395_v42 = vsub.f32 1.0, %v4391_v48  ;;  %v4390_v29 = vmul.f32 %v8568_v40, %v4370_v58  ;;  %v4373_v34 = vmul.f32 %v11343_v7, %v4369_v5 }
 0x52e   : > { %v4436_v23 = vmul.f32 1.442695, %v4432_v19  ;;  %v4438_v6 = vmul.f32 1.442695, %v4433_v49 }
 0x52f   : > { %v4428_v63 = vrot.slane %v4427_v33, 2  ;;  %v4403_v62 = vsub.f32 0.0, %v4395_v42  ;;  %v4394_v9 = vsub.f32 1.0, %v4390_v29  ;;  %v4393_v13 = vmul.f32 %v8570_v32, %v4373_v34 }
 0x530   : > { %8571 = vpow2.f32 %v4436_v23 }
 0x531   : > { %v4429_v12 = vmax.f32 %v4427_v33, %v4428_v63  ;;  %v4407_v47 = vsel %vm4399_vm5, %v4395_v42, %v4403_v62  ;;  %v4402_v51 = vsub.f32 0.0, %v4394_v9  ;;  %v4397_v0 = vsub.f32 1.0, %v4393_v13  ;;  %v13563_v33 = vld [vmem:[#allocation39_spill] sm:$0xff] }
 0x532   : > { %v4411_v7 = vadd.f32 1.0, %v4407_v47  ;;  %8573 = vpow2.f32 %v4438_v6  ;;  %v11376_v42 = vrot.slane %v11274_v31, %v13563_v33 }
 0x533   : > { %v4430_v24 = vrot.slane %v4429_v12, 1  ;;  %v4406_v28 = vsel %vm4398_vm6, %v4394_v9, %v4402_v51  ;;  %v4405_v15 = vsub.f32 0.0, %v4397_v0 }
 0x534   : > { %v4415_v17 = vmul.f32 %v4411_v7, %v4311_v20  ;;  %v4410_v61 = vadd.f32 1.0, %v4406_v28  ;;  %v3205_v63 = vadd.f32 %v11241_v1, %v11376_v42  ;;  %v11387_v1 = vadd.f32 %v11245_v50, %v11376_v42 }
 0x535   : > { %v4431_v18 = vmax.f32 %v4429_v12, %v4430_v24  ;;  %v4409_v11 = vsel %vm4401_vm7, %v4397_v0, %v4405_v15  ;;  %v3200_v0 = vadd.f32 %v11243_v56, %v11376_v42  ;;  %v11393_v24 = vadd.f32 %v11247_v39, %v11376_v42 }
 0x536   : > { %8183 = vmatprep.subr.mxu1 %v4415_v17  ;;  %v4414_v59 = vmul.f32 %v4410_v61, %v4310_v25  ;;  %v4413_v44 = vadd.f32 1.0, %v4409_v11  ;;  %v11380_v13 = vmul.f32 0.70710677, %v3205_v63  ;;  %v11396_v28 = vmul.f32 0.70710677, %v11387_v1 }
 0x537   : > { %v4434_v41 = vsub.f32 %v4062_v46, %v4431_v18  ;;  %v4435_v43 = vsub.f32 %v4063_v37, %v4431_v18  ;;  %8184 = vmatpush3.msra.mxu1 %v4415_v17  ;;  %v11389_v7 = vmul.f32 0.70710677, %v3200_v0  ;;  %v11400_v50 = vmul.f32 0.70710677, %v11393_v24 }
 0x538   : > { %8185 = vmatprep.subr.mxu1 %v4414_v59  ;;  %v11371_v57 = vmul.f32 %v4413_v44, %v4313_v21  ;;  %v3311_v20 = vand.u32 2147483647, %v11380_v13  ;;  %v11404_v17 = vadd.f32 %v11249_v55, %v11376_v42  ;;  %v3313_v39 = vand.u32 2147483647, %v11396_v28 }
 0x539   : > { %v4440_v36 = vmul.f32 1.442695, %v4434_v41  ;;  %v4442_v60 = vmul.f32 1.442695, %v4435_v43  ;;  %8186 = vmatpush3.msra.mxu1 %v4414_v59  ;;  %v3310_v56 = vand.u32 2147483647, %v11389_v7  ;;  %v11409_v18 = vadd.f32 %v11251_v8, %v11376_v42 }
 0x53a   : > { %13562 = vst [vmem:[#allocation52_spill] sm:$0xff] %v11371_v57  ;;  %8211 = vmatprep.subr.mxu1 %v11371_v57  ;;  %v3327_v12 = vmul.f32 0.3275911, %v3311_v20  ;;  %v3535_v15 = vsub.f32 0.0, %v3311_v20  ;;  %v3312_v21 = vand.u32 2147483647, %v11400_v50  ;;  %v11417_v55 = vadd.f32 %v11253_v54, %v11376_v42 }
 0x53b   : > { %8575 = vpow2.f32 %v4440_v36  ;;  %v3534_v11 = vsub.f32 0.0, %v3310_v56  ;;  %v11413_v44 = vmul.f32 0.70710677, %v11404_v17  ;;  %v3326_v41 = vmul.f32 0.3275911, %v3310_v56 }
 0x53c   : > { %8577 = vpow2.f32 %v4442_v60  ;;  %v3343_v51 = vadd.f32 1.0, %v3327_v12  ;;  %v3551_v59 = vmul.f32 %v3535_v15, %v3311_v20  ;;  %v3537_v43 = vsub.f32 0.0, %v3313_v39  ;;  %13564 = vst [vmem:[#allocation61_spill] sm:$0xff] %v11417_v55 }
 0x53d   : > { %v8572_v14 = vpop.eup %8571  ;;  %v11420_v36 = vmul.f32 0.70710677, %v11409_v18  ;;  %v13565_v8 = vlaneseq  ;;  %v11432_v54 = vmul.f32 0.5, %v3205_v63  ;;  %v3328_v33 = vmul.f32 0.3275911, %v3312_v21 }
 0x53e   : > { %v11446_v63 = vmul.f32 0.5, %v3200_v0  ;;  %v11459_v15 = vadd.f32 %v11263_v27, %v11376_v42  ;;  %v11471_v27 = vadd.f32 %v11261_v22, %v11376_v42  ;;  %vm3631_vm8 = vcmp.ge.f32.partialorder %v11380_v13, 0.0 }
 0x53f   : > { %v8574_v4 = vpop.eup %8573  ;;  %vm3630_vm10 = vcmp.ge.f32.partialorder %v11389_v7, 0.0  ;;  %vm3632_vm11 = vcmp.ge.f32.partialorder %v11400_v50, 0.0  ;;  %vm3634_vm12 = vcmp.ge.f32.partialorder %v11420_v36, 0.0  ;;  %vm3633_vm13 = vcmp.ge.f32.partialorder %v11396_v28, 0.0 }
 0x540   : > { %v4444_v48 = vadd.f32 %v8574_v4, %v8572_v14  ;;  %13567 = vst [vmem:[#allocation55_spill] sm:$0xff] %v11459_v15  ;;  %13570 = vst [vmem:[#allocation64_spill] sm:$0xff] %v11471_v27  ;;  %vm3635_vm15 = vcmp.ge.f32.partialorder %v11413_v44, 0.0 }
 0x542   : > { %v4445_v52 = vrot.slane %v4444_v48, 4 }
 0x544   : > { %v4446_v58 = vadd.f32 %v4445_v52, %v4444_v48  ;;  %v3536_v48 = vsub.f32 0.0, %v3312_v21  ;;  %v11429_v52 = vadd.f32 %v11255_v26, %v11376_v42 }
 0x546   : > { %v4447_v46 = vrot.slane %v4446_v58, 2  ;;  %v11440_v26 = vmul.f32 0.70710677, %v11429_v52 }
 0x548   : > { %v8576_v5 = vpop.eup %8575  ;;  %v4448_v30 = vadd.f32 %v4447_v46, %v4446_v58  ;;  %v3568_v58 = vmul.f32 1.442695, %v3551_v59  ;;  %v3342_v46 = vadd.f32 1.0, %v3326_v41  ;;  %vm3636_vm14 = vcmp.ge.f32.partialorder %v11440_v26, 0.0 }
 0x549   : > { %v8578_v40 = vpop.eup %8577 }
 0x54a   : > { %v4451_v37 = vadd.f32 %v8578_v40, %v8576_v5  ;;  %v4449_v34 = vrot.slane %v4448_v30, 1 }
 0x54c   : > { %v4452_v29 = vrot.slane %v4451_v37, 4  ;;  %v4450_v45 = vadd.f32 %v4449_v34, %v4448_v30  ;;  %v11435_v30 = vmul.f32 0.70710677, %v11417_v55 }
 0x54e   : > { %v4453_v32 = vadd.f32 %v4452_v29, %v4451_v37  ;;  %8579 = vrcp.f32 %v4450_v45  ;;  %v3553_v37 = vmul.f32 %v3537_v43, %v3313_v39  ;;  %v3314_v29 = vand.u32 2147483647, %v11420_v36 }
 0x54f   : > { %v3552_v45 = vmul.f32 %v3536_v48, %v3312_v21  ;;  %v3317_v12 = vand.u32 2147483647, %v11435_v30  ;;  %vm3637_vm1 = vcmp.ge.f32.partialorder %v11435_v30, 0.0 }
 0x550   : > { %v4454_v62 = vrot.slane %v4453_v32, 2 }
 0x552   : > { %v4455_v9 = vadd.f32 %v4454_v62, %v4453_v32  ;;  %v11444_v62 = vadd.f32 %v11259_v38, %v11376_v42  ;;  %v3570_v38 = vmul.f32 1.442695, %v3552_v45 }
 0x554   : > { %v4456_v19 = vrot.slane %v4455_v9, 1  ;;  %v11455_v0 = vmul.f32 0.70710677, %v11444_v62 }
 0x556   : > { %v4457_v49 = vadd.f32 %v4456_v19, %v4455_v9  ;;  %v3318_v43 = vand.u32 2147483647, %v11455_v0  ;;  %vm3638_vm0 = vcmp.ge.f32.partialorder %v11455_v0, 0.0 }
 0x558   : > { %8581 = vrcp.f32 %v4457_v49  ;;  %v3572_v49 = vmul.f32 1.442695, %v3553_v37 }
 0x559   : > { %8583 = vrcp.f32 %v3343_v51  ;;  %v11451_v51 = vadd.f32 %v11257_v2, %v11376_v42 }
 0x55a   : > { %8585 = vpow2.f32 %v3568_v58  ;;  %v3333_v58 = vmul.f32 0.3275911, %v3317_v12 }
 0x55b   : > { %v8580_v31 = vpop.eup %8579  ;;  %8587 = vrcp.f32 %v3342_v46  ;;  %13566 = vst [vmem:[#allocation62_spill] sm:$0xff] %v11451_v51  ;;  %v11465_v21 = vmul.f32 0.70710677, %v11451_v51  ;;  %v11481_v46 = vmul.f32 0.5, %v11393_v24  ;;  %v11497_v24 = vadd.f32 %v11271_v10, %v11376_v42 }
 0x55c   : > { %v4459_v47 = vmul.f32 %v8580_v31, %v8572_v14  ;;  %v4460_v23 = vmul.f32 %v8580_v31, %v8574_v4  ;;  %v11425_v14 = vand.u32 127, %v13565_v8  ;;  %v3550_v4 = vmul.f32 %v3534_v11, %v3310_v56 }
 0x55d   : > { %v3344_v31 = vadd.f32 1.0, %v3328_v33  ;;  %v3538_v56 = vsub.f32 0.0, %v3314_v29  ;;  %13569 = vst [vmem:[#allocation63_spill] sm:$0xff] %v11465_v21  ;;  %v11474_v8 = vmul.f32 0.70710677, %v11459_v15  ;;  %13573 = vst [vmem:[#allocation65_spill] sm:$0xff] %v11481_v46 }
 0x55e   : > { %4464 = vxpose.xlu0.b32.start [1/2] (short) %v4459_v47, 128  ;;  %v3566_v32 = vmul.f32 1.442695, %v3550_v4  ;;  %v3330_v47 = vmul.f32 0.3275911, %v3314_v29  ;;  %v11478_v4 = vadd.f32 %v11267_v3, %v11376_v42  ;;  %v3319_v22 = vand.u32 2147483647, %v11465_v21 }
 0x55f   : > { %13571 = vst [vmem:[#allocation57_spill] sm:$0xff] %v11474_v8  ;;  %v11489_v3 = vadd.f32 %v11265_v53, %v11376_v42  ;;  %v3320_v45 = vand.u32 2147483647, %v11474_v8  ;;  %13577 = vst [vmem:[#allocation54_spill] sm:$0xff] %v11497_v24  ;;  %vm4966_vm9 = vcmp.lt.s32.totalorder %v11425_v14, 32 }
 0x560   : > { %8589 = vpow2.f32 %v3566_v32  ;;  %v3346_v11 = vadd.f32 1.0, %v3330_v47  ;;  %13572 = vst [vmem:[#allocation58_spill] sm:$0xff] %v11478_v4  ;;  %v3335_v53 = vmul.f32 0.3275911, %v3319_v22  ;;  %v3543_v47 = vsub.f32 0.0, %v3319_v22 }
 0x561   : > { %13575 = vst [vmem:[#allocation60_spill] sm:$0xff] %v11489_v3  ;;  %v11506_v10 = vmul.f32 0.70710677, %v11489_v3 }
 0x562   : > { %4465 = vxpose.xlu0.b32.end [2/2] (short) %v4460_v23, 128 }
 0x563   : > { %13578 = vst [vmem:[#allocation66_spill] sm:$0xff] %v11506_v10 }
 0x565   : > { %v8582_v6 = vpop.eup %8581 }
 0x566   : > { %v4462_v25 = vmul.f32 %v8582_v6, %v8576_v5  ;;  %v4463_v61 = vmul.f32 %v8582_v6, %v8578_v40  ;;  %v11422_v60 = vpop.eup %8583  ;;  %v3329_v5 = vmul.f32 0.3275911, %v3313_v39  ;;  %v3315_v40 = vand.u32 2147483647, %v11413_v44 }
 0x567   : > { %v3391_v34 = vmul.f32 1.0614054, %v11422_v60  ;;  %v3316_v6 = vand.u32 2147483647, %v11440_v26  ;;  %v3541_v39 = vsub.f32 0.0, %v3317_v12 }
 0x568   : > { %4690 = vxpose.xlu1.b32.start [1/2] (short) %v4462_v25, 128  ;;  %v3345_v9 = vadd.f32 1.0, %v3329_v5  ;;  %v3331_v19 = vmul.f32 0.3275911, %v3315_v40  ;;  %v3539_v20 = vsub.f32 0.0, %v3315_v40 }
 0x569   : > { %v3407_v23 = vadd.f32 -1.4531521, %v3391_v34  ;;  %v3332_v41 = vmul.f32 0.3275911, %v3316_v6  ;;  %v3557_v5 = vmul.f32 %v3541_v39, %v3317_v12  ;;  %v11485_v34 = vmul.f32 0.70710677, %v11471_v27 }
 0x56a   : > { %8591 = vrcp.f32 %v3345_v9  ;;  %v3347_v25 = vadd.f32 1.0, %v3331_v19  ;;  %v3555_v2 = vmul.f32 %v3539_v20, %v3315_v40  ;;  %v3540_v40 = vsub.f32 0.0, %v3316_v6  ;;  %v11499_v19 = vpop.eup %8585 }
 0x56b   : > { %8593 = vpow2.f32 %v3572_v49  ;;  %v3423_v59 = vmul.f32 %v11422_v60, %v3407_v23  ;;  %v3348_v33 = vadd.f32 1.0, %v3332_v41  ;;  %13574 = vst [vmem:[#allocation59_spill] sm:$0xff] %v11485_v34  ;;  %v11493_v9 = vmul.f32 0.70710677, %v11478_v4 }
 0x56c   : > { %4691 = vxpose.xlu1.b32.end [2/2] (short) %v4463_v61, 128  ;;  %v11462_v61 = vmul.f32 0.5, %v11387_v1  ;;  %8595 = vrcp.f32 %v3344_v31  ;;  %v3554_v1 = vmul.f32 %v3538_v56, %v3314_v29  ;;  %v3576_v48 = vmul.f32 1.442695, %v3555_v2  ;;  %v11501_v31 = vpop.eup %8587 }
 0x56d   : > { %8597 = vpow2.f32 %v3570_v38  ;;  %v3439_v37 = vadd.f32 1.4214138, %v3423_v59  ;;  %v3334_v29 = vmul.f32 0.3275911, %v3318_v43  ;;  %13576 = vst [vmem:[#allocation53_spill] sm:$0xff] %v11493_v9  ;;  %v3349_v49 = vadd.f32 1.0, %v3333_v58  ;;  %v4301_v38 = vpop.f32.mrf.mxu1  ;;  %v11508_v39 = vpop.eup %8589 }
 0x56e   : > { %13568 = vst [vmem:[#allocation56_spill] sm:$0xff] %v11462_v61  ;;  %8599 = vrcp.f32 %v3347_v25  ;;  %v3574_v32 = vmul.f32 1.442695, %v3554_v1  ;;  %v3580_v20 = vmul.f32 1.442695, %v3557_v5  ;;  %v3556_v12 = vmul.f32 %v3540_v40, %v3316_v6 }
 0x56f   : > { %8601 = vrcp.f32 %v3346_v11  ;;  %v3542_v23 = vsub.f32 0.0, %v3318_v43  ;;  %v3455_v25 = vmul.f32 %v11422_v60, %v3439_v37  ;;  %v3350_v56 = vadd.f32 1.0, %v3334_v29 }
 0x570   : > { %8603 = vpow2.f32 %v3576_v48  ;;  %v3321_v2 = vand.u32 2147483647, %v11485_v34  ;;  %v3336_v11 = vmul.f32 0.3275911, %v3320_v45  ;;  %v11511_v6 = vand.u32 2147483647, %v11493_v9 }
 0x571   : > { %8605 = vrcp.f32 %v3348_v33  ;;  %v11514_v59 = vmul.f32 0.70710677, %v11497_v24  ;;  %v3578_v1 = vmul.f32 1.442695, %v3556_v12  ;;  %v11519_v48 = vadd.f32 %v4301_v38, %v11304_v35 }
 0x572   : > { %8607 = vpow2.f32 %v3574_v32  ;;  %v3390_v58 = vmul.f32 1.0614054, %v11501_v31  ;;  %v3351_v40 = vadd.f32 1.0, %v3335_v53  ;;  %v3559_v37 = vmul.f32 %v3543_v47, %v3319_v22 }
 0x573   : > { %13579 = vst [vmem:[#allocation47_spill] sm:$0xff] %v11514_v59  ;;  %8609 = vrcp.f32 %v3349_v49  ;;  %13580 = vst [vmem:[#allocation78_spill] sm:$0xff] %v11519_v48  ;;  %v3558_v33 = vmul.f32 %v3542_v23, %v3318_v43  ;;  %v3471_v29 = vadd.f32 -0.28449672, %v3455_v25  ;;  %v3337_v57 = vmul.f32 0.3275911, %v3321_v2 }
 0x574   : > { %8611 = vrcp.f32 %v3350_v56  ;;  %v3545_v3 = vsub.f32 0.0, %v3321_v2  ;;  %v3323_v27 = vand.u32 2147483647, %v11506_v10  ;;  %v3352_v12 = vadd.f32 1.0, %v3336_v11 }
 0x575   : > { %v3338_v35 = vmul.f32 0.3275911, %v11511_v6  ;;  %v11532_v38 = vadd.f32 %v11269_v16, %v11376_v42  ;;  %v11535_v22 = vand.u32 2147483647, %v11514_v59  ;;  %8613 = vpow2.f32 %v3580_v20 }
 0x576   : > { %v3544_v53 = vsub.f32 0.0, %v3320_v45  ;;  %v11540_v47 = vmul.f32 0.70710677, %v11519_v48  ;;  %v3406_v23 = vadd.f32 -1.4531521, %v3390_v58  ;;  %v11543_v25 = vmul.f32 0.5, %v11404_v17 }
 0x577   : > { %v11516_v41 = vpop.eup %8591  ;;  %13581 = vst [vmem:[#allocation79_spill] sm:$0xff] %v11532_v38  ;;  %8615 = vpow2.f32 %v3578_v1  ;;  %v3584_v56 = vmul.f32 1.442695, %v3559_v37  ;;  %v3487_v11 = vmul.f32 %v11422_v60, %v3471_v29  ;;  %v3582_v42 = vmul.f32 1.442695, %v3558_v33 }
 0x578   : > { %v11522_v5 = vpop.eup %8593  ;;  %13582 = vst [vmem:[#allocation68_spill] sm:$0xff] %v11540_v47  ;;  %13583 = vst [vmem:[#allocation67_spill] sm:$0xff] %v11543_v25  ;;  %8617 = vrcp.f32 %v3351_v40  ;;  %v3561_v24 = vmul.f32 %v3545_v3, %v3321_v2  ;;  %v3547_v10 = vsub.f32 0.0, %v3323_v27  ;;  %v3354_v20 = vadd.f32 1.0, %v3338_v35 }
 0x579   : > { %v11524_v32 = vpop.eup %8595  ;;  %8619 = vrcp.f32 %v3352_v12  ;;  %v11549_v51 = vmul.f32 0.70710677, %v11532_v38  ;;  %v3340_v58 = vmul.f32 0.3275911, %v11535_v22  ;;  %v3353_v48 = vadd.f32 1.0, %v3337_v57 }
 0x57a   : > { %v11527_v49 = vpop.eup %8597  ;;  %v3560_v17 = vmul.f32 %v3544_v53, %v3320_v45  ;;  %v11553_v1 = vand.u32 2147483647, %v11540_v47  ;;  %v3422_v37 = vmul.f32 %v11501_v31, %v3406_v23  ;;  %8621 = vpow2.f32 %v3584_v56 }
 0x57b   : > { %v11537_v43 = vpop.eup %8599  ;;  %13584 = vst [vmem:[#allocation73_spill] sm:$0xff] %v11549_v51  ;;  %v3503_v40 = vadd.f32 0.2548296, %v3487_v11  ;;  %v3392_v3 = vmul.f32 1.0614054, %v11524_v32  ;;  %v11561_v33 = vmul.f32 0.5, %v11409_v18  ;;  %8623 = vpow2.f32 %v3582_v42 }
 0x57c   : > { %v11546_v16 = vpop.eup %8601  ;;  %v3588_v12 = vmul.f32 1.442695, %v3561_v24  ;;  %v3339_v57 = vmul.f32 0.3275911, %v3323_v27  ;;  %v3563_v35 = vmul.f32 %v3547_v10, %v3323_v27  ;;  %8625 = vrcp.f32 %v3354_v20 }
 0x57d   : > { %v11556_v29 = vpop.eup %8603  ;;  %v3394_v2 = vmul.f32 1.0614054, %v11546_v16  ;;  %13585 = vst [vmem:[#allocation80_spill] sm:$0xff] %v11561_v33  ;;  %v3325_v53 = vand.u32 2147483647, %v11549_v51  ;;  %v3356_v23 = vadd.f32 1.0, %v3340_v58  ;;  %8627 = vrcp.f32 %v3353_v48 }
 0x57e   : > { %v11563_v45 = vpop.eup %8605  ;;  %v3586_v56 = vmul.f32 1.442695, %v3560_v17  ;;  %v4324_v11 = vmul.f32 0.3275911, %v11553_v1  ;;  %v3438_v47 = vadd.f32 1.4214138, %v3422_v37  ;;  %v3519_v18 = vmul.f32 %v11422_v60, %v3503_v40 }
 0x57f   : > { %v11566_v38 = vpop.eup %8607  ;;  %v3408_v24 = vadd.f32 -1.4531521, %v3392_v3  ;;  %v3410_v42 = vadd.f32 -1.4531521, %v3394_v2  ;;  %v3393_v4 = vmul.f32 1.0614054, %v11516_v41  ;;  %8629 = vpow2.f32 %v3588_v12 }
 0x580   : > { %v11569_v59 = vpop.eup %8609  ;;  %v3355_v27 = vadd.f32 1.0, %v3339_v57  ;;  %v3546_v10 = vsub.f32 0.0, %v11511_v6  ;;  %v3396_v20 = vmul.f32 1.0614054, %v11563_v45  ;;  %v3592_v48 = vmul.f32 1.442695, %v3563_v35 }
 0x581   : > { %v11575_v58 = vpop.eup %8611  ;;  %v3341_v17 = vmul.f32 0.3275911, %v3325_v53  ;;  %v3549_v51 = vsub.f32 0.0, %v3325_v53  ;;  %8631 = vrcp.f32 %v3356_v23  ;;  %v11578_v37 = vmul.f32 0.5, %v11429_v52 }
 0x582   : > { %8633 = vpow2.f32 %v3586_v56  ;;  %v4328_v60 = vadd.f32 1.0, %v4324_v11  ;;  %v3454_v40 = vmul.f32 %v11501_v31, %v3438_v47  ;;  %v11581_v3 = vpop.eup %8613  ;;  %v3599_v2 = vmul.f32 %v11499_v19, %v3519_v18 }
 0x583   : > { %13586 = vst [vmem:[#allocation70_spill] sm:$0xff] %v11578_v37  ;;  %v3424_v12 = vmul.f32 %v11524_v32, %v3408_v24  ;;  %v3426_v57 = vmul.f32 %v11546_v16, %v3410_v42  ;;  %v3409_v34 = vadd.f32 -1.4531521, %v3393_v4  ;;  %8635 = vrcp.f32 %v3355_v27 }
 0x584   : > { %v11586_v35 = vpop.eup %8615  ;;  %v3412_v23 = vadd.f32 -1.4531521, %v3396_v20  ;;  %v3395_v52 = vmul.f32 1.0614054, %v11537_v43  ;;  %v3398_v56 = vmul.f32 1.0614054, %v11575_v58  ;;  %8637 = vpow2.f32 %v3592_v48 }
 0x585   : > { %v11590_v11 = vpop.eup %8617  ;;  %v3562_v47 = vmul.f32 %v3546_v10, %v11511_v6  ;;  %v3357_v55 = vadd.f32 1.0, %v3341_v17  ;;  %v3565_v19 = vmul.f32 %v3549_v51, %v3325_v53  ;;  %v3548_v4 = vsub.f32 0.0, %v11535_v22 }
 0x586   : > { %v11593_v18 = vpop.eup %8619  ;;  %8639 = vrcp.f32 %v4328_v60  ;;  %v4376_v24 = vsub.f32 0.0, %v11553_v1  ;;  %v3470_v42 = vadd.f32 -0.28449672, %v3454_v40  ;;  %v3615_v27 = vsub.f32 1.0, %v3599_v2 }
 0x587   : > { %v3440_v20 = vadd.f32 1.4214138, %v3424_v12  ;;  %v3442_v25 = vadd.f32 1.4214138, %v3426_v57  ;;  %v3425_v9 = vmul.f32 %v11516_v41, %v3409_v34  ;;  %v11599_v48 = vpop.eup %8621  ;;  %v3428_v6 = vmul.f32 %v11563_v45, %v3412_v23 }
 0x588   : > { %v3411_v51 = vadd.f32 -1.4531521, %v3395_v52  ;;  %v3414_v53 = vadd.f32 -1.4531521, %v3398_v56  ;;  %v3397_v10 = vmul.f32 1.0614054, %v11569_v59  ;;  %v11603_v17 = vpop.eup %8623  ;;  %8641 = vrcp.f32 %v3357_v55 }
 0x589   : > { %v11606_v60 = vmul.f32 0.5, %v11444_v62  ;;  %v3590_v15 = vmul.f32 1.442695, %v3562_v47  ;;  %v3400_v40 = vmul.f32 1.0614054, %v11593_v18  ;;  %v11609_v2 = vpop.eup %8625  ;;  %v3564_v12 = vmul.f32 %v3548_v4, %v11535_v22 }
 0x58a   : > { %v3596_v34 = vmul.f32 1.442695, %v3565_v19  ;;  %v4380_v57 = vmul.f32 %v4376_v24, %v11553_v1  ;;  %v3486_v23 = vmul.f32 %v11501_v31, %v3470_v42  ;;  %v11614_v52 = vpop.eup %8627  ;;  %v3647_v56 = vsub.f32 0.0, %v3615_v27 }
 0x58b   : > { %13587 = vst [vmem:[#allocation69_spill] sm:$0xff] %v11606_v60  ;;  %v3456_v21 = vmul.f32 %v11524_v32, %v3440_v20  ;;  %v3458_v62 = vmul.f32 %v11546_v16, %v3442_v25  ;;  %v3441_v47 = vadd.f32 1.4214138, %v3425_v9  ;;  %v3444_v55 = vadd.f32 1.4214138, %v3428_v6 }
 0x58c   : > { %v3427_v60 = vmul.f32 %v11537_v43, %v3411_v51  ;;  %v3430_v37 = vmul.f32 %v11575_v58, %v3414_v53  ;;  %v3413_v19 = vadd.f32 -1.4531521, %v3397_v10  ;;  %v11620_v61 = vpop.eup %8629  ;;  %8643 = vpow2.f32 %v3590_v15 }
 0x58d   : > { %13588 = vst [vmem:[#allocation72_spill] sm:$0xff] %v11620_v61  ;;  %v3416_v22 = vadd.f32 -1.4531521, %v3400_v40  ;;  %v3399_v1 = vmul.f32 1.0614054, %v11590_v11  ;;  %8645 = vpow2.f32 %v3596_v34  ;;  %v3663_v6 = vsel %vm3631_vm8, %v3615_v27, %v3647_v56 }
 0x58e   : > { %v3402_v4 = vmul.f32 1.0614054, %v11609_v2  ;;  %v11624_v24 = vpop.eup %8631  ;;  %v3594_v42 = vmul.f32 1.442695, %v3564_v12  ;;  %v4386_v25 = vmul.f32 1.442695, %v4380_v57  ;;  %v3457_v15 = vmul.f32 %v11516_v41, %v3441_v47 }
 0x58f   : > { %v3502_v9 = vadd.f32 0.2548296, %v3486_v23  ;;  %v11626_v20 = vpop.eup %8633  ;;  %v3472_v51 = vadd.f32 -0.28449672, %v3456_v21  ;;  %v3474_v53 = vadd.f32 -0.28449672, %v3458_v62  ;;  %v3460_v10 = vmul.f32 %v11563_v45, %v3444_v55 }
 0x590   : > { %v3443_v40 = vadd.f32 1.4214138, %v3427_v60  ;;  %v3446_v8 = vadd.f32 1.4214138, %v3430_v37  ;;  %v3429_v34 = vmul.f32 %v11569_v59, %v3413_v19  ;;  %v11634_v12 = vpop.eup %8635  ;;  %v3432_v57 = vmul.f32 %v11593_v18, %v3416_v22 }
 0x591   : > { %v3415_v23 = vadd.f32 -1.4531521, %v3399_v1  ;;  %v3418_v61 = vadd.f32 -1.4531521, %v3402_v4  ;;  %v3404_v13 = vmul.f32 1.0614054, %v11624_v24  ;;  %v11638_v21 = vpop.eup %8637  ;;  %8647 = vpow2.f32 %v3594_v42 }
 0x592   : > { %13589 = vst [vmem:[#allocation71_spill] sm:$0xff] %v11638_v21  ;;  %v3679_v27 = vadd.f32 1.0, %v3663_v6  ;;  %v3518_v56 = vmul.f32 %v11501_v31, %v3502_v9  ;;  %v3401_v62 = vmul.f32 1.0614054, %v11614_v52  ;;  %8649 = vpow2.f32 %v4386_v25 }
 0x593   : > { %v11642_v60 = vpop.eup %8639  ;;  %v3488_v37 = vmul.f32 %v11524_v32, %v3472_v51  ;;  %v3490_v47 = vmul.f32 %v11546_v16, %v3474_v53  ;;  %v3473_v55 = vadd.f32 -0.28449672, %v3457_v15  ;;  %v3476_v19 = vadd.f32 -0.28449672, %v3460_v10 }
 0x594   : > { %v3459_v22 = vmul.f32 %v11537_v43, %v3443_v40  ;;  %v3462_v1 = vmul.f32 %v11575_v58, %v3446_v8  ;;  %v3445_v4 = vadd.f32 1.4214138, %v3429_v34  ;;  %v3448_v42 = vadd.f32 1.4214138, %v3432_v57 }
 0x595   : > { %v3431_v6 = vmul.f32 %v11590_v11, %v3415_v23  ;;  %v3434_v31 = vmul.f32 %v11609_v2, %v3418_v61  ;;  %v3420_v9 = vadd.f32 -1.4531521, %v3404_v13  ;;  %v11650_v21 = vpop.eup %8641  ;;  %v11653_v25 = vmul.f32 %v3679_v27, %v11432_v54 }
 0x596   : > { %v3417_v51 = vadd.f32 -1.4531521, %v3401_v62  ;;  %v4340_v53 = vmul.f32 1.0614054, %v11642_v60  ;;  %v3403_v15 = vmul.f32 1.0614054, %v11634_v12  ;;  %v11658_v10 = vmul.f32 %v11508_v39, %v3518_v56 }
 0x597   : > { %13590 = vst [vmem:[#allocation44_spill] sm:$0xff] %v11653_v25  ;;  %v3504_v8 = vadd.f32 0.2548296, %v3488_v37  ;;  %v3506_v40 = vadd.f32 0.2548296, %v3490_v47  ;;  %v3489_v34 = vmul.f32 %v11516_v41, %v3473_v55  ;;  %v3492_v61 = vmul.f32 %v11563_v45, %v3476_v19 }
 0x598   : > { %v3475_v57 = vadd.f32 -0.28449672, %v3459_v22  ;;  %v3478_v23 = vadd.f32 -0.28449672, %v3462_v1  ;;  %v3461_v13 = vmul.f32 %v11569_v59, %v3445_v4  ;;  %v3464_v54 = vmul.f32 %v11593_v18, %v3448_v42 }
 0x599   : > { %v3447_v27 = vadd.f32 1.4214138, %v3431_v6  ;;  %v3450_v62 = vadd.f32 1.4214138, %v3434_v31  ;;  %v3436_v33 = vmul.f32 %v11624_v24, %v3420_v9  ;;  %v11665_v46 = vpop.eup %8643  ;;  %v3433_v39 = vmul.f32 %v11614_v52, %v3417_v51 }
 0x59a   : > { %v4344_v56 = vadd.f32 -1.4531521, %v4340_v53  ;;  %v3419_v37 = vadd.f32 -1.4531521, %v3403_v15  ;;  %v3405_v47 = vmul.f32 1.0614054, %v11650_v21  ;;  %v11669_v55 = vpop.eup %8645  ;;  %v3520_v22 = vmul.f32 %v11524_v32, %v3504_v8 }
 0x59b   : > { %13591 = vst [vmem:[#allocation75_spill] sm:$0xff] %v11669_v55  ;;  %v11674_v19 = vsel %vm4966_vm9, %v11653_v25, -1e+30  ;;  %v3522_v1 = vmul.f32 %v11546_v16, %v3506_v40  ;;  %v3505_v4 = vadd.f32 0.2548296, %v3489_v34  ;;  %v3491_v6 = vmul.f32 %v11537_v43, %v3475_v57 }
 0x59c   : > { %v3508_v42 = vadd.f32 0.2548296, %v3492_v61  ;;  %v3494_v31 = vmul.f32 %v11575_v58, %v3478_v23  ;;  %v3477_v9 = vadd.f32 -0.28449672, %v3461_v13  ;;  %v3480_v51 = vadd.f32 -0.28449672, %v3464_v54 }
 0x59d   : > { %v3463_v53 = vmul.f32 %v11590_v11, %v3447_v27  ;;  %v3466_v15 = vmul.f32 %v11609_v2, %v3450_v62  ;;  %v3452_v55 = vadd.f32 1.4214138, %v3436_v33  ;;  %v3449_v25 = vadd.f32 1.4214138, %v3433_v39 }
 0x59e   : > { %v4348_v32 = vmul.f32 %v11642_v60, %v4344_v56  ;;  %v3435_v16 = vmul.f32 %v11634_v12, %v3419_v37  ;;  %v3421_v8 = vadd.f32 -1.4531521, %v3405_v47  ;;  %v11685_v40 = vpop.eup %8647  ;;  %v3614_v34 = vsub.f32 1.0, %v11658_v10 }
 0x59f   : > { %v3600_v61 = vmul.f32 %v11527_v49, %v3520_v22  ;;  %v3602_v57 = vmul.f32 %v11566_v38, %v3522_v1  ;;  %v3521_v23 = vmul.f32 %v11516_v41, %v3505_v4  ;;  %v11691_v13 = vpop.eup %8649  ;;  %v3524_v33 = vmul.f32 %v11563_v45, %v3508_v42 }
 0x5a0   : > { %v3507_v54 = vadd.f32 0.2548296, %v3491_v6  ;;  %v3510_v27 = vadd.f32 0.2548296, %v3494_v31  ;;  %v3493_v62 = vmul.f32 %v11569_v59, %v3477_v9  ;;  %v3496_v39 = vmul.f32 %v11593_v18, %v3480_v51 }
 0x5a1   : > { %v3479_v56 = vadd.f32 -0.28449672, %v3463_v53  ;;  %v3482_v37 = vadd.f32 -0.28449672, %v3466_v15  ;;  %v3468_v10 = vmul.f32 %v11624_v24, %v3452_v55  ;;  %v3465_v41 = vmul.f32 %v11614_v52, %v3449_v25 }
 0x5a2   : > { %v4352_v49 = vadd.f32 1.4214138, %v4348_v32  ;;  %v3451_v38 = vadd.f32 1.4214138, %v3435_v16  ;;  %v3437_v45 = vmul.f32 %v11650_v21, %v3421_v8  ;;  %v3646_v47 = vsub.f32 0.0, %v3614_v34 }
 0x5a3   : > { %v3616_v22 = vsub.f32 1.0, %v3600_v61  ;;  %v3618_v1 = vsub.f32 1.0, %v3602_v57  ;;  %v3601_v4 = vmul.f32 %v11522_v5, %v3521_v23  ;;  %v3604_v42 = vmul.f32 %v11586_v35, %v3524_v33 }
 0x5a4   : > { %v3523_v6 = vmul.f32 %v11537_v43, %v3507_v54  ;;  %v3526_v55 = vmul.f32 %v11575_v58, %v3510_v27  ;;  %v3509_v31 = vadd.f32 0.2548296, %v3493_v62  ;;  %v3512_v9 = vadd.f32 0.2548296, %v3496_v39 }
 0x5a5   : > { %v3495_v51 = vmul.f32 %v11590_v11, %v3479_v56  ;;  %v3498_v25 = vmul.f32 %v11609_v2, %v3482_v37  ;;  %v3484_v53 = vadd.f32 -0.28449672, %v3468_v10  ;;  %v3481_v15 = vadd.f32 -0.28449672, %v3465_v41 }
 0x5a6   : > { %v4356_v32 = vmul.f32 %v11642_v60, %v4352_v49  ;;  %v3467_v5 = vmul.f32 %v11634_v12, %v3451_v38  ;;  %v3453_v16 = vadd.f32 1.4214138, %v3437_v45  ;;  %v3662_v43 = vsel %vm3630_vm10, %v3614_v34, %v3646_v47 }
 0x5a7   : > { %v3648_v58 = vsub.f32 0.0, %v3616_v22  ;;  %v3650_v35 = vsub.f32 0.0, %v3618_v1  ;;  %v3617_v8 = vsub.f32 1.0, %v3601_v4  ;;  %v3620_v61 = vsub.f32 1.0, %v3604_v42 }
 0x5a8   : > { %v3603_v57 = vmul.f32 %v11556_v29, %v3523_v6  ;;  %v3606_v23 = vmul.f32 %v11603_v17, %v3526_v55  ;;  %v3525_v33 = vmul.f32 %v11569_v59, %v3509_v31  ;;  %v3528_v54 = vmul.f32 %v11593_v18, %v3512_v9 }
 0x5a9   : > { %v3511_v27 = vadd.f32 0.2548296, %v3495_v51  ;;  %v3514_v62 = vadd.f32 0.2548296, %v3498_v25  ;;  %v3500_v39 = vmul.f32 %v11624_v24, %v3484_v53  ;;  %v3497_v56 = vmul.f32 %v11614_v52, %v3481_v15 }
 0x5aa   : > { %v4360_v7 = vadd.f32 -0.28449672, %v4356_v32  ;;  %v3483_v34 = vadd.f32 -0.28449672, %v3467_v5  ;;  %v3469_v37 = vmul.f32 %v11650_v21, %v3453_v16  ;;  %v3678_v29 = vadd.f32 1.0, %v3662_v43  ;;  %v13592_v16 = vld [vmem:[#allocation65_spill] sm:$0xff] }
 0x5ab   : > { %v3664_v59 = vsel %vm3632_vm11, %v3616_v22, %v3648_v58  ;;  %v3666_v18 = vsel %vm3634_vm12, %v3618_v1, %v3650_v35  ;;  %v3649_v17 = vsub.f32 0.0, %v3617_v8  ;;  %v3652_v10 = vsub.f32 0.0, %v3620_v61  ;;  %v13593_v58 = vld [vmem:[#allocation80_spill] sm:$0xff] }
 0x5ac   : > { %v3619_v41 = vsub.f32 1.0, %v3603_v57  ;;  %v3622_v49 = vsub.f32 1.0, %v3606_v23  ;;  %v3605_v38 = vmul.f32 %v11581_v3, %v3525_v33  ;;  %v3608_v45 = vmul.f32 %v11626_v20, %v3528_v54  ;;  %v13594_v54 = vld [vmem:[#allocation72_spill] sm:$0xff] }
 0x5ad   : > { %v3527_v47 = vmul.f32 %v11590_v11, %v3511_v27  ;;  %v3530_v4 = vmul.f32 %v11609_v2, %v3514_v62  ;;  %v3516_v42 = vadd.f32 0.2548296, %v3500_v39  ;;  %v3513_v6 = vadd.f32 0.2548296, %v3497_v56  ;;  %v13595_v56 = vld [vmem:[#allocation57_spill] sm:$0xff] }
 0x5ae   : > { %v4364_v50 = vmul.f32 %v11642_v60, %v4360_v7  ;;  %v3499_v22 = vmul.f32 %v11634_v12, %v3483_v34  ;;  %v3485_v36 = vadd.f32 -0.28449672, %v3469_v37  ;;  %v11734_v1 = vmul.f32 %v3678_v29, %v11446_v63 }
 0x5af   : > { %v3680_v55 = vadd.f32 1.0, %v3664_v59  ;;  %v3682_v3 = vadd.f32 1.0, %v3666_v18  ;;  %v3665_v20 = vsel %vm3633_vm13, %v3617_v8, %v3649_v17  ;;  %v3668_v11 = vsel %vm3636_vm14, %v3620_v61, %v3652_v10 }
 0x5b0   : > { %v3651_v2 = vsub.f32 0.0, %v3619_v41  ;;  %v3654_v31 = vsub.f32 0.0, %v3622_v49  ;;  %v3621_v9 = vsub.f32 1.0, %v3605_v38  ;;  %v3624_v51 = vsub.f32 1.0, %v3608_v45  ;;  %v13598_v38 = vld [vmem:[#allocation71_spill] sm:$0xff] }
 0x5b1   : > { %v3607_v25 = vmul.f32 %v11599_v48, %v3527_v47  ;;  %v3610_v53 = vmul.f32 %v11665_v46, %v3530_v4  ;;  %v3532_v15 = vmul.f32 %v11624_v24, %v3516_v42  ;;  %v3529_v63 = vmul.f32 %v11614_v52, %v3513_v6  ;;  %v13599_v4 = vld [vmem:[#allocation63_spill] sm:$0xff] }
 0x5b2   : > { %v4368_v32 = vadd.f32 0.2548296, %v4364_v50  ;;  %v3515_v5 = vadd.f32 0.2548296, %v3499_v22  ;;  %v3501_v28 = vmul.f32 %v11650_v21, %v3485_v36  ;;  %v4970_v26 = vsel %vm4966_vm9, %v11734_v1, -1e+30 }
 0x5b3   : > { %v11749_v43 = vmul.f32 %v3680_v55, %v13592_v16  ;;  %v11752_v35 = vmul.f32 %v3682_v3, %v13593_v58  ;;  %v3681_v48 = vadd.f32 1.0, %v3665_v20  ;;  %v3684_v46 = vadd.f32 1.0, %v3668_v11  ;;  %v13600_v42 = vld [vmem:[#allocation55_spill] sm:$0xff]  ;;  %v13601_v50 = vld [vmem:[#allocation53_spill] sm:$0xff] }
 0x5b4   : > { %v3667_v24 = vsel %vm3635_vm15, %v3619_v41, %v3651_v2  ;;  %v3670_v52 = vsel %vm3638_vm0, %v3622_v49, %v3654_v31  ;;  %v3653_v8 = vsub.f32 0.0, %v3621_v9  ;;  %v3656_v61 = vsub.f32 0.0, %v3624_v51  ;;  %v13602_v36 = vld [vmem:[#allocation67_spill] sm:$0xff]  ;;  %v13603_v55 = vld [vmem:[#allocation69_spill] sm:$0xff] }
 0x5b5   : > { %v3623_v57 = vsub.f32 1.0, %v3607_v25  ;;  %v3626_v23 = vsub.f32 1.0, %v3610_v53  ;;  %v3612_v33 = vmul.f32 %v11685_v40, %v3532_v15  ;;  %v3609_v27 = vmul.f32 %v13594_v54, %v3529_v63  ;;  %v13596_v40 = vld [vmem:[#allocation56_spill] sm:$0xff]  ;;  %v13604_v53 = vld [vmem:[#allocation75_spill] sm:$0xff]  ;;  %v13605_v63 = vld [vmem:[#allocation61_spill] sm:$0xff] }
 0x5b6   : > { %v4372_v62 = vmul.f32 %v11642_v60, %v4368_v32  ;;  %v3531_v39 = vmul.f32 %v11634_v12, %v3515_v5  ;;  %v3517_v44 = vadd.f32 0.2548296, %v3501_v28  ;;  %vm3640_vm2 = vcmp.ge.f32.partialorder %v13595_v56, 0.0  ;;  %v13606_v5 = vld [vmem:[#allocation59_spill] sm:$0xff]  ;;  %v13607_v28 = vld [vmem:[#allocation58_spill] sm:$0xff] }
 0x5b7   : > { %v4972_v0 = vsel %vm4966_vm9, %v11749_v43, -1e+30  ;;  %v4974_v7 = vsel %vm4966_vm9, %v11752_v35, -1e+30  ;;  %v11771_v34 = vmul.f32 %v3681_v48, %v13596_v40  ;;  %v3683_v60 = vadd.f32 1.0, %v3667_v24  ;;  %v13608_v16 = vld [vmem:[#allocation47_spill] sm:$0xff] }
 0x5b8   : > { %v3686_v29 = vadd.f32 1.0, %v3670_v52  ;;  %v3669_v12 = vsel %vm3637_vm1, %v3621_v9, %v3653_v8  ;;  %v3672_v59 = vsel %vm3640_vm2, %v3624_v51, %v3656_v61  ;;  %v3655_v18 = vsub.f32 0.0, %v3623_v57 }
 0x5b9   : > { %v3658_v17 = vsub.f32 0.0, %v3626_v23  ;;  %v3628_v10 = vsub.f32 1.0, %v3612_v33  ;;  %v3625_v41 = vsub.f32 1.0, %v3609_v27  ;;  %v4392_v49 = vmul.f32 %v11691_v13, %v4372_v62  ;;  %v13609_v27 = vld [vmem:[#allocation62_spill] sm:$0xff] }
 0x5ba   : > { %v3611_v45 = vmul.f32 %v13598_v38, %v3531_v39  ;;  %v3533_v47 = vmul.f32 %v11650_v21, %v3517_v44  ;;  %vm3639_vm3 = vcmp.ge.f32.partialorder %v13599_v4, 0.0  ;;  %v3288_v6 = vmul.f32 0.5, %v13600_v42  ;;  %v13610_v39 = vld [vmem:[#allocation66_spill] sm:$0xff] }
 0x5bb   : > { %vm3642_vm4 = vcmp.ge.f32.partialorder %v13601_v50, 0.0  ;;  %v4973_v30 = vsel %vm4966_vm9, %v11771_v34, -1e+30  ;;  %v11791_v13 = vmul.f32 %v3683_v60, %v13602_v36  ;;  %v11794_v3 = vmul.f32 %v3686_v29, %v13603_v55  ;;  %v13611_v44 = vld [vmem:[#allocation54_spill] sm:$0xff] }
 0x5bc   : > { %v3688_v21 = vadd.f32 1.0, %v3672_v59  ;;  %v3685_v20 = vadd.f32 1.0, %v3669_v12  ;;  %v3671_v11 = vsel %vm3639_vm3, %v3623_v57, %v3655_v18  ;;  %v3674_v2 = vsel %vm3642_vm4, %v3626_v23, %v3658_v17  ;;  %v13616_v55 = vld [vmem:[#allocation78_spill] sm:$0xff] }
 0x5bd   : > { %v3660_v31 = vsub.f32 0.0, %v3628_v10  ;;  %v3657_v9 = vsub.f32 0.0, %v3625_v41  ;;  %v4396_v51 = vsub.f32 1.0, %v4392_v49  ;;  %v3627_v25 = vsub.f32 1.0, %v3611_v45  ;;  %v13614_v49 = vld [vmem:[#allocation73_spill] sm:$0xff] }
 0x5be   : > { %v3613_v15 = vmul.f32 %v13604_v53, %v3533_v47  ;;  %v3285_v32 = vmul.f32 0.5, %v13605_v63  ;;  %vm3641_vm5 = vcmp.ge.f32.partialorder %v13606_v5, 0.0  ;;  %vm3644_vm6 = vcmp.ge.f32.partialorder %v13608_v16, 0.0  ;;  %v13618_v53 = vld [vmem:[#allocation79_spill] sm:$0xff] }
 0x5bf   : > { %v4978_v58 = vsel %vm4966_vm9, %v11794_v3, -1e+30  ;;  %v11804_v48 = vmul.f32 %v3688_v21, %v3288_v6  ;;  %v4975_v24 = vsel %vm4966_vm9, %v11791_v13, -1e+30  ;;  %v3687_v8 = vadd.f32 1.0, %v3671_v11 }
 0x5c0   : > { %v11809_v52 = vmul.f32 %v3685_v20, %v3285_v32  ;;  %v3676_v61 = vsel %vm3644_vm6, %v3628_v10, %v3660_v31  ;;  %v3673_v57 = vsel %vm3641_vm5, %v3625_v41, %v3657_v9  ;;  %v4404_v23 = vsub.f32 0.0, %v4396_v51  ;;  %v13613_v10 = vld [vmem:[#allocation64_spill] sm:$0xff] }
 0x5c1   : > { %v3659_v33 = vsub.f32 0.0, %v3627_v25  ;;  %v3629_v54 = vsub.f32 1.0, %v3613_v15  ;;  %v3287_v62 = vmul.f32 0.5, %v13609_v27  ;;  %vm3643_vm7 = vcmp.ge.f32.partialorder %v13610_v39, 0.0 }
 0x5c2   : > { %v3292_v56 = vmul.f32 0.5, %v13611_v44  ;;  %v3692_v40 = vadd.f32 1.0, %v3676_v61  ;;  %v4977_v60 = vsel %vm4966_vm9, %v11809_v52, -1e+30  ;;  %v3689_v12 = vadd.f32 1.0, %v3673_v57 }
 0x5c3   : > { %v11823_v29 = vmul.f32 %v3687_v8, %v3287_v62  ;;  %vm4496_vm10 = vcmask 130048   ;;  %v3675_v18 = vsel %vm3643_vm7, %v3627_v25, %v3659_v33  ;;  %v3661_v17 = vsub.f32 0.0, %v3629_v54  ;;  %v13617_v25 = vld [vmem:[#allocation52_spill] sm:$0xff] }
 0x5c4   : > { %v3289_v41 = vmul.f32 0.5, %v13613_v10  ;;  %vm3645_vm11 = vcmp.ge.f32.partialorder %v13614_v49, 0.0  ;;  %v11830_v47 = vmul.f32 %v3692_v40, %v3292_v56  ;;  %v3691_v50 = vadd.f32 1.0, %v3675_v18 }
 0x5c5   : > { %v4979_v4 = vsel %vm4966_vm9, %v11823_v29, -1e+30  ;;  %v4312_v21 = vmul.f32 0.5, %v13616_v55  ;;  %v3293_v15 = vmul.f32 0.5, %v13618_v53  ;;  %vm6176_vm14 = vcmask 64512  }
 0x5c6   : > { %v11835_v42 = vmul.f32 %v3689_v12, %v3289_v41  ;;  %v4984_v11 = vsel %vm4966_vm9, %v11830_v47, -1e+30 }
 0x5c7   : > { %4986 = vmax.xlane.f32.xlu0 %v4970_v26  ;;  %v3290_v26 = vmul.f32 0.5, %v13607_v28 }
 0x5cb   : > { %4988 = vmax.xlane.f32.xlu1 %v11674_v19  ;;  %v13597_v19 = vld [vmem:[#allocation70_spill] sm:$0xff]  ;;  %4994 = vmax.xlane.f32.xlu0 %v4974_v7 }
 0x5cc   : > { %v11774_v37 = vmul.f32 %v3684_v46, %v13597_v19  ;;  %v3690_v46 = vadd.f32 1.0, %v3674_v2  ;;  %v13612_v19 = vld [vmem:[#allocation68_spill] sm:$0xff]  ;;  %v4981_v2 = vsel %vm4966_vm9, %v11835_v42, -1e+30 }
 0x5cd   : > { %vm4400_vm8 = vcmp.ge.f32.partialorder %v13612_v19, 0.0 }
 0x5ce   : > { %v4976_v22 = vsel %vm4966_vm9, %v11774_v37, -1e+30  ;;  %v11817_v7 = vmul.f32 %v3690_v46, %v3290_v26  ;;  %v4408_v59 = vsel %vm4400_vm8, %v4396_v51, %v4404_v23 }
 0x5cf   : > { %4990 = vmax.xlane.f32.xlu1 %v4972_v0  ;;  %4998 = vmax.xlane.f32.xlu0 %v4976_v22  ;;  %v4980_v0 = vsel %vm4966_vm9, %v11804_v48, -1e+30  ;;  %v4412_v6 = vadd.f32 1.0, %v4408_v59  ;;  %v13615_v22 = vld [vmem:[#allocation60_spill] sm:$0xff] }
 0x5d0   : > { %v4982_v45 = vsel %vm4966_vm9, %v11817_v7, -1e+30  ;;  %v3291_v36 = vmul.f32 0.5, %v13615_v22 }
 0x5d1   : > { %v4416_v31 = vmul.f32 %v4412_v6, %v4312_v21 }
 0x5d2   : > { %v11847_v9 = vmul.f32 %v3691_v50, %v3291_v36 }
 0x5d3   : > { %4992 = vmax.xlane.f32.xlu1 %v4973_v30  ;;  %5002 = vmax.xlane.f32.xlu0 %v4978_v58  ;;  %v3677_v30 = vsel %vm3645_vm11, %v3629_v54, %v3661_v17 }
 0x5d4   : > { %v3693_v51 = vadd.f32 1.0, %v3677_v30  ;;  %v4983_v5 = vsel %vm4966_vm9, %v11847_v9, -1e+30  ;;  %v13619_v30 = vld [vmem:[#allocation44_spill] sm:$0xff] }
 0x5d6   : > { %v11854_v28 = vmul.f32 %v3693_v51, %v3293_v15 }
 0x5d7   : > { %4996 = vmax.xlane.f32.xlu1 %v4975_v24  ;;  %5006 = vmax.xlane.f32.xlu0 %v4980_v0 }
 0x5d8   : > { %v4985_v58 = vsel %vm4966_vm9, %v11854_v28, -1e+30 }
 0x5da   : > { %v4480_v38 = vpop.trf.xlu0 }
 0x5db   : > { %5000 = vmax.xlane.f32.xlu1 %v4977_v60  ;;  %5010 = vmax.xlane.f32.xlu0 %v4982_v45 }
 0x5dc   : > { %8187 = vmatprep.mubr.msk.f32.mxu1 %vm4496_vm10, %v4480_v38 }
 0x5de   : > { %v4481_v20 = vpop.trf.xlu0 }
 0x5df   : > { %5004 = vmax.xlane.f32.xlu1 %v4979_v4  ;;  %5014 = vmax.xlane.f32.xlu0 %v4984_v11 }
 0x5e0   : > { %8188 = vmatmul.mubr.msk.f32.vlgmr.msra.gmra.mxu1 %vm4496_vm10, %v4481_v20 }
 0x5e1   : > { %8212 = vmatpush3.msra.mxu1 %v13617_v25 }
 0x5e2   : > { %8213 = vmatprep.subr.mxu1 %v4416_v31  ;;  %v4482_v32 = vpop.trf.xlu0 }
 0x5e3   : > { %5008 = vmax.xlane.f32.xlu1 %v4981_v2  ;;  %8214 = vmatpush3.msra.mxu1 %v4416_v31 }
 0x5e4   : > { %v4706_v63 = vpop.trf.xlu1  ;;  %8190 = vmatprep.mubr.msk.f32.mxu1 %vm4496_vm10, %v4482_v32 }
 0x5e6   : > { %v4483_v16 = vpop.trf.xlu0 }
 0x5e7   : > { %5012 = vmax.xlane.f32.xlu1 %v4983_v5  ;;  %8191 = vmatmul.mubr.msk.f32.gmra.mxu1 %vm4496_vm10, %v4483_v16 }
 0x5e8   : > { %v4707_v26 = vpop.trf.xlu1 }
 0x5ea   : > { %v4484_v24 = vpop.trf.xlu0 }
 0x5eb   : > { %5016 = vmax.xlane.f32.xlu1 %v4985_v58  ;;  %8193 = vmatprep.mubr.msk.f32.mxu1 %vm4496_vm10, %v4484_v24 }
 0x5ec   : > { %v4708_v46 = vpop.trf.xlu1 }
 0x5ee   : > { %v4485_v61 = vpop.trf.xlu0 }
 0x5ef   : > { %8194 = vmatmul.mubr.msk.f32.gmra.mxu1 %vm4496_vm10, %v4485_v61 }
 0x5f0   : > { %v4709_v8 = vpop.trf.xlu1 }
 0x5f2   : > { %v4486_v57 = vpop.trf.xlu0 }
 0x5f3   : > { %8196 = vmatprep.mubr.msk.f32.mxu1 %vm4496_vm10, %v4486_v57 }
 0x5f4   : > { %v4710_v23 = vpop.trf.xlu1 }
 0x5f6   : > { %v4487_v33 = vpop.trf.xlu0 }
 0x5f7   : > { %8197 = vmatmul.mubr.msk.f32.gmra.mxu1 %vm4496_vm10, %v4487_v33 }
 0x5f8   : > { %v4711_v54 = vpop.trf.xlu1 }
 0x5fa   : > { %v4488_v27 = vpop.trf.xlu0 }
 0x5fb   : > { %8199 = vmatprep.mubr.msk.f32.mxu1 %vm4496_vm10, %v4488_v27 }
 0x5fc   : > { %v4712_v39 = vpop.trf.xlu1 }
 0x5fe   : > { %v4489_v62 = vpop.trf.xlu0 }
 0x5ff   : > { %8200 = vmatmul.mubr.msk.f32.gmra.mxu1 %vm4496_vm10, %v4489_v62 }
 0x600   : > { %v4713_v56 = vpop.trf.xlu1 }
 0x602   : > { %v4490_v44 = vpop.trf.xlu0 }
 0x603   : > { %8202 = vmatprep.mubr.msk.f32.mxu1 %vm4496_vm10, %v4490_v44 }
 0x604   : > { %v4714_v19 = vpop.trf.xlu1 }
 0x606   : > { %v4491_v0 = vpop.trf.xlu0 }
 0x607   : > { %8203 = vmatmul.mubr.msk.f32.gmra.mxu1 %vm4496_vm10, %v4491_v0 }
 0x608   : > { %v4715_v12 = vpop.trf.xlu1 }
 0x60a   : > { %v4492_v40 = vpop.trf.xlu0 }
 0x60b   : > { %8205 = vmatprep.mubr.msk.f32.mxu1 %vm4496_vm10, %v4492_v40 }
 0x60c   : > { %v4716_v17 = vpop.trf.xlu1 }
 0x60e   : > { %v4493_v60 = vpop.trf.xlu0 }
 0x60f   : > { %8206 = vmatmul.mubr.msk.f32.gmra.mxu1 %vm4496_vm10, %v4493_v60 }
 0x610   : > { %v4717_v10 = vpop.trf.xlu1 }
 0x612   : > { %v4494_v59 = vpop.trf.xlu0 }
 0x613   : > { %8208 = vmatprep.mubr.msk.f32.mxu1 %vm4496_vm10, %v4494_v59 }
 0x614   : > { %v4718_v41 = vpop.trf.xlu1 }
 0x616   : > { %v4495_v18 = vpop.trf.xlu0 }
 0x617   : > { %8209 = vmatmul.mubr.msk.f32.gmra.mxu1 %vm4496_vm10, %v4495_v18 }
 0x618   : > { %8215 = vmatprep.mubr.msk.f32.mxu1 %vm4496_vm10, %v4706_v63  ;;  %v4719_v49 = vpop.trf.xlu1 }
 0x61b   : > { %8216 = vmatmul.mubr.msk.f32.vlgmr.msra.gmra.mxu1 %vm4496_vm10, %v4707_v26 }
 0x61c   : > { %8218 = vmatprep.mubr.msk.f32.mxu1 %vm4496_vm10, %v4708_v46  ;;  %v4720_v38 = vpop.trf.xlu1 }
 0x61f   : > { %8219 = vmatmul.mubr.msk.f32.gmra.mxu1 %vm4496_vm10, %v4709_v8 }
 0x620   : > { %8221 = vmatprep.mubr.msk.f32.mxu1 %vm4496_vm10, %v4710_v23  ;;  %v4721_v45 = vpop.trf.xlu1 }
 0x623   : > { %8222 = vmatmul.mubr.msk.f32.gmra.mxu1 %vm4496_vm10, %v4711_v54 }
 0x624   : > { %8224 = vmatprep.mubr.msk.f32.mxu1 %vm4496_vm10, %v4712_v39 }
 0x627   : > { %8225 = vmatmul.mubr.msk.f32.gmra.mxu1 %vm4496_vm10, %v4713_v56 }
 0x628   : > { %8227 = vmatprep.mubr.msk.f32.mxu1 %vm4496_vm10, %v4714_v19 }
 0x62b   : > { %8228 = vmatmul.mubr.msk.f32.gmra.mxu1 %vm4496_vm10, %v4715_v12 }
 0x62c   : > { %8230 = vmatprep.mubr.msk.f32.mxu1 %vm4496_vm10, %v4716_v17 }
 0x62f   : > { %8231 = vmatmul.mubr.msk.f32.gmra.mxu1 %vm4496_vm10, %v4717_v10 }
 0x630   : > { %8233 = vmatprep.mubr.msk.f32.mxu1 %vm4496_vm10, %v4718_v41 }
 0x633   : > { %8234 = vmatmul.mubr.msk.f32.gmra.mxu1 %vm4496_vm10, %v4719_v49 }
 0x634   : > { %8236 = vmatprep.mubr.msk.f32.mxu1 %vm4496_vm10, %v4720_v38 }
 0x637   : > { %8237 = vmatmul.mubr.msk.f32.gmra.mxu1 %vm4496_vm10, %v4721_v45 }
 0x650   : > { %v4987_v4 = vpop.xlane.xlu0 %4986 }
 0x651   : > { %v5018_v50 = vsub.f32 %v11734_v1, %v4987_v4 }
 0x653   : > { %v5034_v36 = vmul.f32 1.442695, %v5018_v50 }
 0x654   : > { %v4989_v6 = vpop.xlane.xlu1 %4988  ;;  %v4995_v21 = vpop.xlane.xlu0 %4994 }
 0x655   : > { %v5019_v22 = vsub.f32 %v13619_v30, %v4989_v6  ;;  %8651 = vpow2.f32 %v5034_v36  ;;  %v5022_v11 = vsub.f32 %v11752_v35, %v4995_v21 }
 0x657   : > { %v5036_v55 = vmul.f32 1.442695, %v5019_v22  ;;  %v5042_v31 = vmul.f32 1.442695, %v5022_v11 }
 0x658   : > { %v4991_v20 = vpop.xlane.xlu1 %4990  ;;  %v4999_v25 = vpop.xlane.xlu0 %4998 }
 0x659   : > { %8653 = vpow2.f32 %v5036_v55  ;;  %v5020_v2 = vsub.f32 %v11749_v43, %v4991_v20  ;;  %v5024_v15 = vsub.f32 %v11774_v37, %v4999_v25 }
 0x65b   : > { %v5038_v51 = vmul.f32 1.442695, %v5020_v2  ;;  %v5046_v32 = vmul.f32 1.442695, %v5024_v15 }
 0x65c   : > { %v4993_v53 = vpop.xlane.xlu1 %4992  ;;  %v5003_v5 = vpop.xlane.xlu0 %5002 }
 0x65d   : > { %8655 = vpow2.f32 %v5038_v51  ;;  %v5021_v1 = vsub.f32 %v11771_v34, %v4993_v53  ;;  %v5026_v16 = vsub.f32 %v11794_v3, %v5003_v5 }
 0x65e   : > { %8657 = vpow2.f32 %v5042_v31 }
 0x65f   : > { %v5040_v63 = vmul.f32 1.442695, %v5021_v1  ;;  %v5050_v58 = vmul.f32 1.442695, %v5026_v16 }
 0x660   : > { %v4997_v26 = vpop.xlane.xlu1 %4996  ;;  %v5007_v46 = vpop.xlane.xlu0 %5006 }
 0x661   : > { %8659 = vpow2.f32 %v5040_v63  ;;  %v5023_v35 = vsub.f32 %v11791_v13, %v4997_v26  ;;  %v5028_v37 = vsub.f32 %v11804_v48, %v5007_v46 }
 0x662   : > { %8661 = vpow2.f32 %v5046_v32  ;;  %v8652_v8 = vpop.eup %8651 }
 0x663   : > { %v5044_v43 = vmul.f32 1.442695, %v5023_v35  ;;  %v11901_v57 = vsel %vm4966_vm9, %v8652_v8, 0.0  ;;  %v5054_v23 = vmul.f32 1.442695, %v5028_v37 }
 0x664   : > { %v5001_v24 = vpop.xlane.xlu1 %5000  ;;  %5082 = vadd.xlane.f32.xlu0 %v11901_v57  ;;  %v5011_v33 = vpop.xlane.xlu0 %5010 }
 0x665   : > { %8663 = vpow2.f32 %v5044_v43  ;;  %v5025_v34 = vsub.f32 %v11809_v52, %v5001_v24  ;;  %v5030_v52 = vsub.f32 %v11817_v7, %v5011_v33  ;;  %v12003_v33 = vld [vmem:[%s13620_s19 + $0x70] sm:$0xff] }
 0x666   : > { %v8654_v61 = vpop.eup %8653  ;;  %8665 = vpow2.f32 %v5050_v58 }
 0x667   : > { %v5048_v3 = vmul.f32 1.442695, %v5025_v34  ;;  %v11905_v13 = vsel %vm4966_vm9, %v8654_v61, 0.0  ;;  %v5058_v44 = vmul.f32 1.442695, %v5030_v52  ;;  %v12009_v52 = vld [vmem:[%s13620_s19 + $0x68] sm:$0xff] }
 0x668   : > { %5084 = vadd.xlane.f32.xlu1 %v11905_v13  ;;  %v5005_v48 = vpop.xlane.xlu1 %5004  ;;  %v5015_v0 = vpop.xlane.xlu0 %5014 }
 0x669   : > { %8667 = vpow2.f32 %v5048_v3  ;;  %v5027_v54 = vsub.f32 %v11823_v29, %v5005_v48  ;;  %v5032_v19 = vsub.f32 %v11830_v47, %v5015_v0  ;;  %v11998_v3 = vld [vmem:[%s13620_s19 + $0x78] sm:$0xff] }
 0x66a   : > { %v8656_v27 = vpop.eup %8655  ;;  %8669 = vpow2.f32 %v5054_v23  ;;  %v12023_v0 = vld [vmem:[%s13620_s19 + $0x58] sm:$0xff] }
 0x66b   : > { %v8658_v62 = vpop.eup %8657  ;;  %v5052_v39 = vmul.f32 1.442695, %v5027_v54  ;;  %v11913_v56 = vsel %vm4966_vm9, %v8656_v27, 0.0  ;;  %v5062_v59 = vmul.f32 1.442695, %v5032_v19 }
 0x66c   : > { %v5009_v40 = vpop.xlane.xlu1 %5008  ;;  %5086 = vadd.xlane.f32.xlu0 %v11913_v56  ;;  %v11920_v29 = vsel %vm4966_vm9, %v8658_v62, 0.0  ;;  %v12015_v62 = vld [vmem:[%s13620_s19 + $0x60] sm:$0xff] }
 0x66d   : > { %8671 = vpow2.f32 %v5052_v39  ;;  %v5029_v7 = vsub.f32 %v11835_v42, %v5009_v40 }
 0x66e   : > { %v8660_v60 = vpop.eup %8659  ;;  %8673 = vpow2.f32 %v5058_v44 }
 0x66f   : > { %v5056_v12 = vmul.f32 1.442695, %v5029_v7  ;;  %v11924_v18 = vsel %vm4966_vm9, %v8660_v60, 0.0  ;;  %v8662_v17 = vpop.eup %8661  ;;  %v12031_v7 = vld [vmem:[%s13620_s19 + $0x50] sm:$0xff] }
 0x670   : > { %5088 = vadd.xlane.f32.xlu1 %v11924_v18  ;;  %v5013_v10 = vpop.xlane.xlu1 %5012  ;;  %5090 = vadd.xlane.f32.xlu0 %v11920_v29  ;;  %v11935_v38 = vsel %vm4966_vm9, %v8662_v17, 0.0 }
 0x671   : > { %8675 = vpow2.f32 %v5056_v12  ;;  %v5031_v47 = vsub.f32 %v11847_v9, %v5013_v10 }
 0x672   : > { %v8664_v42 = vpop.eup %8663  ;;  %8677 = vpow2.f32 %v5062_v59  ;;  %v12039_v59 = vld [vmem:[%s13620_s19 + $0x48] sm:$0xff] }
 0x673   : > { %v5060_v41 = vmul.f32 1.442695, %v5031_v47  ;;  %v11931_v49 = vsel %vm4966_vm9, %v8664_v42, 0.0  ;;  %v8666_v45 = vpop.eup %8665  ;;  %v12047_v47 = vld [vmem:[%s13620_s19 + $0x40] sm:$0xff] }
 0x674   : > { %5092 = vadd.xlane.f32.xlu1 %v11931_v49  ;;  %v5017_v4 = vpop.xlane.xlu1 %5016  ;;  %5094 = vadd.xlane.f32.xlu0 %v11935_v38  ;;  %v11946_v22 = vsel %vm4966_vm9, %v8666_v45, 0.0  ;;  %v12055_v45 = vld [vmem:[%s13620_s19 + $0x38] sm:$0xff] }
 0x675   : > { %8679 = vpow2.f32 %v5060_v41  ;;  %v5033_v9 = vsub.f32 %v11854_v28, %v5017_v4 }
 0x676   : > { %v8668_v6 = vpop.eup %8667 }
 0x677   : > { %v5064_v50 = vmul.f32 1.442695, %v5033_v9  ;;  %v11942_v30 = vsel %vm4966_vm9, %v8668_v6, 0.0  ;;  %v8670_v36 = vpop.eup %8669  ;;  %v12063_v6 = vld [vmem:[%s13620_s19 + $0x30] sm:$0xff] }
 0x678   : > { %5096 = vadd.xlane.f32.xlu1 %v11942_v30  ;;  %5098 = vadd.xlane.f32.xlu0 %v11946_v22  ;;  %v11956_v21 = vsel %vm4966_vm9, %v8670_v36, 0.0 }
 0x679   : > { %8681 = vpow2.f32 %v5064_v50 }
 0x67a   : > { %v8672_v55 = vpop.eup %8671 }
 0x67b   : > { %v11952_v28 = vsel %vm4966_vm9, %v8672_v55, 0.0  ;;  %v8674_v20 = vpop.eup %8673  ;;  %v12071_v55 = vld [vmem:[%s13620_s19 + $0x28] sm:$0xff] }
 0x67c   : > { %5100 = vadd.xlane.f32.xlu1 %v11952_v28  ;;  %5102 = vadd.xlane.f32.xlu0 %v11956_v21  ;;  %v11966_v31 = vsel %vm4966_vm9, %v8674_v20, 0.0 }
 0x67e   : > { %v8676_v11 = vpop.eup %8675 }
 0x67f   : > { %v11962_v2 = vsel %vm4966_vm9, %v8676_v11, 0.0  ;;  %v8678_v51 = vpop.eup %8677 }
 0x680   : > { %5104 = vadd.xlane.f32.xlu1 %v11962_v2  ;;  %5106 = vadd.xlane.f32.xlu0 %v11966_v31  ;;  %v11976_v15 = vsel %vm4966_vm9, %v8678_v51, 0.0  ;;  %v12079_v51 = vld [vmem:[%s13620_s19 + $0x20] sm:$0xff] }
 0x682   : > { %v8680_v25 = vpop.eup %8679 }
 0x683   : > { %v11972_v53 = vsel %vm4966_vm9, %v8680_v25, 0.0 }
 0x684   : > { %5108 = vadd.xlane.f32.xlu1 %v11972_v53  ;;  %5110 = vadd.xlane.f32.xlu0 %v11976_v15 }
 0x686   : > { %v8682_v1 = vpop.eup %8681 }
 0x687   : > { %v11982_v63 = vsel %vm4966_vm9, %v8682_v1, 0.0 }
 0x688   : > { %5112 = vadd.xlane.f32.xlu1 %v11982_v63 }
 0x6a0   : > { %v11985_v32 = vpop.f32.mrf.mxu1 }
 0x6a2   : > { %v11987_v5 = vpop.f32.mrf.mxu1 }
 0x6a7   : > { %v11989_v26 = vpop.f32.mrf.mxu1 }
 0x6a9   : > { %v11991_v16 = vpop.f32.mrf.mxu1 }
 0x6af   : > { %v8195_v35 = vpop.f32.mrf.mxu1 }
 0x6b0   : > { %v4936_v1 = vmul.f32 %v8195_v35, %v12071_v55  ;;  %v12096_v35 = vld [vmem:[%s13620_s19 + $0x10] sm:$0xff] }
 0x6b1   : > { %v11993_v43 = vpop.f32.mrf.mxu1 }
 0x6b7   : > { %v8198_v58 = vpop.f32.mrf.mxu1 }
 0x6b8   : > { %v4938_v36 = vmul.f32 %v8198_v58, %v12055_v45  ;;  %v12087_v58 = vld [vmem:[%s13620_s19 + $0x18] sm:$0xff] }
 0x6b9   : > { %v4641_v46 = vpop.f32.mrf.mxu1 }
 0x6ba   : > { %v4937_v11 = vmul.f32 %v12063_v6, %v4641_v46 }
 0x6bf   : > { %v8201_v24 = vpop.f32.mrf.mxu1 }
 0x6c0   : > { %v4940_v41 = vmul.f32 %v8201_v24, %v12039_v59 }
 0x6c1   : > { %v4651_v37 = vpop.f32.mrf.mxu1 }
 0x6c2   : > { %v4939_v9 = vmul.f32 %v12047_v47, %v4651_v37  ;;  %v4935_v37 = vmul.f32 %v12079_v51, %v11993_v43 }
 0x6c7   : > { %v8204_v14 = vpop.f32.mrf.mxu1 }
 0x6c8   : > { %v4942_v12 = vmul.f32 %v8204_v14, %v12023_v0 }
 0x6c9   : > { %v4661_v8 = vpop.f32.mrf.mxu1 }
 0x6ca   : > { %v4941_v10 = vmul.f32 %v12031_v7, %v4661_v8 }
 0x6cf   : > { %v8207_v34 = vpop.f32.mrf.mxu1 }
 0x6d0   : > { %v4944_v44 = vmul.f32 %v8207_v34, %v12009_v52  ;;  %v4934_v34 = vmul.f32 %v11989_v26, %v12087_v58 }
 0x6d1   : > { %v4671_v61 = vpop.f32.mrf.mxu1 }
 0x6d2   : > { %v4943_v19 = vmul.f32 %v12015_v62, %v4671_v61  ;;  %v12103_v61 = vld [vmem:[%s13620_s19 + $0x8] sm:$0xff] }
 0x6d7   : > { %v8210_v23 = vpop.f32.mrf.mxu1 }
 0x6d8   : > { %v4946_v48 = vmul.f32 %v8210_v23, %v11998_v3  ;;  %v4933_v23 = vmul.f32 %v12096_v35, %v11991_v16 }
 0x6d9   : > { %v4681_v54 = vpop.f32.mrf.mxu1 }
 0x6da   : > { %v4945_v27 = vmul.f32 %v12003_v33, %v4681_v54  ;;  %8239 = vmatprep.subr.mxu1 %v4946_v48  ;;  %v12110_v54 = vld [vmem:[%s13620_s19] sm:$0xff] }
 0x6db   : > { %v12017_v39 = vpop.f32.mrf.mxu1  ;;  %8240 = vmatpush3.msra.mxu1 %v4946_v48 }
 0x6dc   : > { %8241 = vmatprep.subr.mxu1 %v4945_v27 }
 0x6dd   : > { %v12025_v40 = vpop.f32.mrf.mxu1  ;;  %8242 = vmatpush3.msra.mxu1 %v4945_v27  ;;  %v4932_v27 = vmul.f32 %v11985_v32, %v12103_v61 }
 0x6de   : > { %8243 = vmatprep.subr.mxu1 %v4944_v44 }
 0x6df   : > { %v12033_v60 = vpop.f32.mrf.mxu1  ;;  %8244 = vmatpush3.msra.mxu1 %v4944_v44 }
 0x6e0   : > { %8245 = vmatprep.subr.mxu1 %v4943_v19 }
 0x6e1   : > { %v12041_v17 = vpop.f32.mrf.mxu1  ;;  %8246 = vmatpush3.msra.mxu1 %v4943_v19  ;;  %v4931_v19 = vmul.f32 %v12110_v54, %v11987_v5 }
 0x6e2   : > { %8247 = vmatprep.subr.mxu1 %v4942_v12 }
 0x6e3   : > { %v12049_v42 = vpop.f32.mrf.mxu1  ;;  %8248 = vmatpush3.msra.mxu1 %v4942_v12 }
 0x6e4   : > { %8249 = vmatprep.subr.mxu1 %v4941_v10 }
 0x6e5   : > { %v12057_v4 = vpop.f32.mrf.mxu1  ;;  %8250 = vmatpush3.msra.mxu1 %v4941_v10 }
 0x6e6   : > { %8251 = vmatprep.subr.mxu1 %v4940_v41 }
 0x6e7   : > { %v12065_v50 = vpop.f32.mrf.mxu1  ;;  %8252 = vmatpush3.msra.mxu1 %v4940_v41 }
 0x6e8   : > { %8253 = vmatprep.subr.mxu1 %v4939_v9 }
 0x6e9   : > { %v12073_v20 = vpop.f32.mrf.mxu1  ;;  %8254 = vmatpush3.msra.mxu1 %v4939_v9 }
 0x6ea   : > { %8255 = vmatprep.subr.mxu1 %v4938_v36 }
 0x6eb   : > { %v12081_v25 = vpop.f32.mrf.mxu1  ;;  %8256 = vmatpush3.msra.mxu1 %v4938_v36 }
 0x6ec   : > { %8257 = vmatprep.subr.mxu1 %v4937_v11 }
 0x6ed   : > { %v12089_v24 = vpop.f32.mrf.mxu1  ;;  %8258 = vmatpush3.msra.mxu1 %v4937_v11  ;;  %v5083_v46 = vpop.xlane.xlu0 %5082 }
 0x6ee   : > { %8683 = vrcp.f32 %v5083_v46  ;;  %8259 = vmatprep.subr.mxu1 %v4936_v1 }
 0x6ef   : > { %v8232_v8 = vpop.f32.mrf.mxu1  ;;  %8260 = vmatpush3.msra.mxu1 %v4936_v1 }
 0x6f0   : > { %8261 = vmatprep.subr.mxu1 %v4935_v37 }
 0x6f1   : > { %v5085_v14 = vpop.xlane.xlu1 %5084  ;;  %v4886_v43 = vpop.f32.mrf.mxu1  ;;  %8262 = vmatpush3.msra.mxu1 %v4935_v37 }
 0x6f2   : > { %8685 = vrcp.f32 %v5085_v14  ;;  %8263 = vmatprep.subr.mxu1 %v4934_v34 }
 0x6f3   : > { %v8235_v26 = vpop.f32.mrf.mxu1  ;;  %8264 = vmatpush3.msra.mxu1 %v4934_v34 }
 0x6f4   : > { %8265 = vmatprep.subr.mxu1 %v4933_v23 }
 0x6f5   : > { %v5087_v48 = vpop.xlane.xlu0 %5086  ;;  %v4896_v44 = vpop.f32.mrf.mxu1  ;;  %8266 = vmatpush3.msra.mxu1 %v4933_v23  ;;  %v4960_v23 = vmul.f32 %v8235_v26, %v12009_v52  ;;  %v4957_v26 = vmul.f32 %v12031_v7, %v4886_v43 }
 0x6f6   : > { %8687 = vrcp.f32 %v5087_v48  ;;  %8267 = vmatprep.subr.mxu1 %v4932_v27 }
 0x6f7   : > { %8268 = vmatpush3.msra.mxu1 %v4932_v27  ;;  %v8238_v10 = vpop.f32.mrf.mxu1 }
 0x6f8   : > { %8269 = vmatprep.subr.mxu1 %v4931_v19  ;;  %v4962_v41 = vmul.f32 %v8238_v10, %v11998_v3  ;;  %v4954_v10 = vmul.f32 %v12065_v50, %v12055_v45  ;;  %v4952_v45 = vmul.f32 %v12049_v42, %v12071_v55  ;;  %v4949_v42 = vmul.f32 %v12096_v35, %v12041_v17 }
 0x6f9   : > { %v5089_v16 = vpop.xlane.xlu1 %5088  ;;  %v5091_v12 = vpop.xlane.xlu0 %5090  ;;  %8270 = vmatpush3.msra.mxu1 %v4931_v19  ;;  %v4948_v55 = vmul.f32 %v12017_v39, %v12103_v61 }
 0x6fa   : > { %8689 = vrcp.f32 %v5089_v16  ;;  %8283 = vmatprep.subr.mxu1 %v4962_v41  ;;  %v4906_v1 = vpop.f32.mrf.mxu1 }
 0x6fb   : > { %8691 = vrcp.f32 %v5091_v12  ;;  %v8684_v32 = vpop.eup %8683  ;;  %v4961_v34 = vmul.f32 %v12003_v33, %v4906_v1  ;;  %v4958_v33 = vmul.f32 %v8232_v8, %v12023_v0  ;;  %v4956_v12 = vmul.f32 %v12081_v25, %v12039_v59  ;;  %v5574_v1 = vld [vmem:[%s9053_s7 + $0x30] sm:$0xff] }
 0x6fc   : > { %v5115_v5 = vmul.f32 %v8684_v32, %v11901_v57  ;;  %v4959_v57 = vmul.f32 %v12015_v62, %v4896_v44  ;;  %v5576_v32 = vld [vmem:[%s9053_s7 + $0x40] sm:$0xff] }
 0x6fd   : > { %v5093_v9 = vpop.xlane.xlu1 %5092  ;;  %v5095_v36 = vpop.xlane.xlu0 %5094 }
 0x6fe   : > { %8693 = vrcp.f32 %v5093_v9  ;;  %8271 = vmatprep.mubr.f32.mxu1 %v5115_v5  ;;  %v5582_v9 = vld [vmem:[%s9053_s7 + $0x70] sm:$0xff]  ;;  %v5573_v5 = vld [vmem:[%s9053_s7 + $0x28] sm:$0xff] }
 0x6ff   : > { %v8686_v11 = vpop.eup %8685  ;;  %8695 = vrcp.f32 %v5095_v36  ;;  %v5577_v36 = vld [vmem:[%s9053_s7 + $0x48] sm:$0xff] }
 0x700   : > { %v5117_v46 = vmul.f32 %v8686_v11, %v11905_v13  ;;  %v5575_v11 = vld [vmem:[%s9053_s7 + $0x38] sm:$0xff] }
 0x701   : > { %v5097_v37 = vpop.xlane.xlu1 %5096  ;;  %v5099_v14 = vpop.xlane.xlu0 %5098 }
 0x702   : > { %8697 = vrcp.f32 %v5097_v37  ;;  %8272 = vmatmul.mubr.f32.vlgmr.msra.gmra.mxu1 %v5117_v46  ;;  %v5572_v46 = vld [vmem:[%s9053_s7 + $0x20] sm:$0xff]  ;;  %v5571_v37 = vld [vmem:[%s9053_s7 + $0x18] sm:$0xff] }
 0x703   : > { %v8688_v3 = vpop.eup %8687  ;;  %8699 = vrcp.f32 %v5099_v14  ;;  %8284 = vmatpush3.msra.mxu1 %v4962_v41  ;;  %v5570_v14 = vld [vmem:[%s9053_s7 + $0x10] sm:$0xff] }
 0x704   : > { %8285 = vmatprep.subr.mxu1 %v4961_v34  ;;  %v5119_v48 = vmul.f32 %v8688_v3, %v11913_v56  ;;  %v5568_v3 = vld [vmem:[%s9053_s7] sm:$0xff] }
 0x705   : > { %8286 = vmatpush3.msra.mxu1 %v4961_v34  ;;  %v5101_v27 = vpop.xlane.xlu1 %5100  ;;  %v5103_v56 = vpop.xlane.xlu0 %5102  ;;  %v5569_v34 = vld [vmem:[%s9053_s7 + $0x8] sm:$0xff] }
 0x706   : > { %8274 = vmatprep.mubr.f32.mxu1 %v5119_v48  ;;  %8287 = vmatprep.subr.mxu1 %v4960_v23  ;;  %8701 = vrcp.f32 %v5101_v27 }
 0x707   : > { %v8690_v13 = vpop.eup %8689  ;;  %8288 = vmatpush3.msra.mxu1 %v4960_v23  ;;  %8703 = vrcp.f32 %v5103_v56 }
 0x708   : > { %v8692_v19 = vpop.eup %8691  ;;  %v5121_v16 = vmul.f32 %v8690_v13, %v11924_v18  ;;  %8289 = vmatprep.subr.mxu1 %v4959_v57  ;;  %v12181_v13 = vstv %s5392_s0 }
 0x709   : > { %8290 = vmatpush3.msra.mxu1 %v4959_v57  ;;  %v5123_v52 = vmul.f32 %v8692_v19, %v11920_v29  ;;  %v5105_v18 = vpop.xlane.xlu1 %5104  ;;  %v4955_v29 = vmul.f32 %v12047_v47, %v12089_v24  ;;  %v5107_v59 = vpop.xlane.xlu0 %5106  ;;  %v4953_v47 = vmul.f32 %v12063_v6, %v12073_v20  ;;  %v12179_v57 = vstv %s5373_s23  ;;  %v8847_v19 = vld [vmem:[#allocation2 + $0x30] sm:$0xff]  ;;  %s6822_s23 = sld [smem:[#allocation3 + %s6821_s26]] }
 0x70a   : > { %8275 = vmatmul.mubr.f32.gmra.mxu1 %v5121_v16  ;;  %8291 = vmatprep.subr.mxu1 %v4958_v33  ;;  %8705 = vrcp.f32 %v5105_v18 }
 0x70b   : > { %v8694_v62 = vpop.eup %8693  ;;  %8277 = vmatprep.mubr.f32.mxu1 %v5123_v52  ;;  %8292 = vmatpush3.msra.mxu1 %v4958_v33  ;;  %8707 = vrcp.f32 %v5107_v59  ;;  %v5394_v33 = vmul.f32 %v8847_v19, %v12181_v13  ;;  %v8848_v52 = vld [vmem:[#allocation2] sm:$0xff] }
 0x70c   : > { %v8696_v44 = vpop.eup %8695  ;;  %v5125_v0 = vmul.f32 %v8694_v62, %v11931_v49  ;;  %8293 = vmatprep.subr.mxu1 %v4957_v26 }
 0x70d   : > { %8294 = vmatpush3.msra.mxu1 %v4957_v26  ;;  %v5127_v8 = vmul.f32 %v8696_v44, %v11935_v38  ;;  %v5109_v25 = vpop.xlane.xlu1 %5108  ;;  %v5111_v50 = vpop.xlane.xlu0 %5110  ;;  %v5395_v26 = vmul.f32 %v8848_v52, %v12181_v13  ;;  %v8849_v44 = vld [vmem:[#allocation2 + $0x58] sm:$0xff] }
 0x70e   : > { %8278 = vmatmul.mubr.f32.gmra.mxu1 %v5125_v0  ;;  %8295 = vmatprep.subr.mxu1 %v4956_v12  ;;  %8709 = vrcp.f32 %v5109_v25 }
 0x70f   : > { %v8698_v7 = vpop.eup %8697  ;;  %8280 = vmatprep.mubr.f32.mxu1 %v5127_v8  ;;  %8296 = vmatpush3.msra.mxu1 %v4956_v12  ;;  %8711 = vrcp.f32 %v5111_v50  ;;  %v5396_v12 = vmul.f32 %v8849_v44, %v12181_v13  ;;  %v8858_v44 = vld [vmem:[#allocation2 + $0x10] sm:$0xff] }
 0x710   : > { %v8700_v43 = vpop.eup %8699  ;;  %v5129_v49 = vmul.f32 %v8698_v7, %v11942_v30  ;;  %8297 = vmatprep.subr.mxu1 %v4955_v29  ;;  %v4951_v30 = vmul.f32 %v12079_v51, %v12057_v4 }
 0x711   : > { %8298 = vmatpush3.msra.mxu1 %v4955_v29  ;;  %v5131_v38 = vmul.f32 %v8700_v43, %v11946_v22  ;;  %v4950_v22 = vmul.f32 %v12033_v60, %v12087_v58  ;;  %v5113_v6 = vpop.xlane.xlu1 %5112  ;;  %v4947_v60 = vmul.f32 %v12110_v54, %v12025_v40 }
 0x712   : > { %8281 = vmatmul.mubr.f32.gmra.mxu1 %v5129_v49  ;;  %8299 = vmatprep.subr.mxu1 %v4954_v10  ;;  %8713 = vrcp.f32 %v5113_v6 }
 0x713   : > { %8315 = vmatprep.mubr.f32.mxu1 %v5131_v38  ;;  %8300 = vmatpush3.msra.mxu1 %v4954_v10  ;;  %v8702_v4 = vpop.eup %8701  ;;  %v8850_v10 = vld [vmem:[#allocation2 + $0x18] sm:$0xff] }
 0x714   : > { %8301 = vmatprep.subr.mxu1 %v4953_v47  ;;  %v8704_v20 = vpop.eup %8703  ;;  %v5133_v51 = vmul.f32 %v8702_v4, %v11952_v28  ;;  %v5397_v59 = vmul.f32 %v8850_v10, %v12181_v13 }
 0x715   : > { %8302 = vmatpush3.msra.mxu1 %v4953_v47  ;;  %v5135_v17 = vmul.f32 %v8704_v20, %v11956_v21  ;;  %v8851_v47 = vld [vmem:[#allocation2 + $0x50] sm:$0xff] }
 0x716   : > { %8303 = vmatprep.subr.mxu1 %v4952_v45  ;;  %v5398_v25 = vmul.f32 %v8851_v47, %v12181_v13 }
 0x717   : > { %8304 = vmatpush3.msra.mxu1 %v4952_v45  ;;  %v8706_v58 = vpop.eup %8705 }
 0x718   : > { %8305 = vmatprep.subr.mxu1 %v4951_v30  ;;  %v8708_v24 = vpop.eup %8707  ;;  %v5137_v39 = vmul.f32 %v8706_v58, %v11962_v2  ;;  %v5583_v2 = vld [vmem:[%s9053_s7 + $0x78] sm:$0xff] }
 0x719   : > { %8306 = vmatpush3.msra.mxu1 %v4951_v30  ;;  %v5139_v40 = vmul.f32 %v8708_v24, %v11966_v31  ;;  %v5581_v31 = vld [vmem:[%s9053_s7 + $0x68] sm:$0xff] }
 0x71a   : > { %8307 = vmatprep.subr.mxu1 %v4950_v22  ;;  %v8852_v24 = vld [vmem:[#allocation2 + $0x68] sm:$0xff] }
 0x71b   : > { %8308 = vmatpush3.msra.mxu1 %v4950_v22  ;;  %v8710_v35 = vpop.eup %8709 }
 0x71c   : > { %8309 = vmatprep.subr.mxu1 %v4949_v42  ;;  %v8712_v61 = vpop.eup %8711  ;;  %v5141_v28 = vmul.f32 %v8710_v35, %v11972_v53  ;;  %v5580_v53 = vld [vmem:[%s9053_s7 + $0x60] sm:$0xff] }
 0x71d   : > { %8310 = vmatpush3.msra.mxu1 %v4949_v42  ;;  %v5143_v21 = vmul.f32 %v8712_v61, %v11976_v15  ;;  %v5579_v15 = vld [vmem:[%s9053_s7 + $0x58] sm:$0xff] }
 0x71e   : > { %8311 = vmatprep.subr.mxu1 %v4948_v55 }
 0x71f   : > { %8312 = vmatpush3.msra.mxu1 %v4948_v55  ;;  %v8714_v54 = vpop.eup %8713 }
 0x720   : > { %8313 = vmatprep.subr.mxu1 %v4947_v60  ;;  %v5145_v41 = vmul.f32 %v8714_v54, %v11982_v63  ;;  %v5578_v63 = vld [vmem:[%s9053_s7 + $0x50] sm:$0xff]  ;;  %v8853_v54 = vld [vmem:[#allocation2 + $0x8] sm:$0xff] }
 0x721   : > { %8314 = vmatpush3.msra.mxu1 %v4947_v60 }
 0x722   : > { %8316 = vmatmul.mubr.f32.vlgmr.msra.gmra.mxu1 %v5133_v51  ;;  %8327 = vmatprep.subr.mxu1 %v5583_v2 }
 0x723   : > { %8318 = vmatprep.mubr.f32.mxu1 %v5135_v17  ;;  %8328 = vmatpush3.msra.mxu1 %v5583_v2 }
 0x724   : > { %8329 = vmatprep.subr.mxu1 %v5582_v9 }
 0x725   : > { %8330 = vmatpush3.msra.mxu1 %v5582_v9 }
 0x726   : > { %8319 = vmatmul.mubr.f32.gmra.mxu1 %v5137_v39  ;;  %8331 = vmatprep.subr.mxu1 %v5581_v31  ;;  %v5399_v39 = vmul.f32 %v8852_v24, %v12181_v13 }
 0x727   : > { %8321 = vmatprep.mubr.f32.mxu1 %v5139_v40  ;;  %8332 = vmatpush3.msra.mxu1 %v5581_v31 }
 0x728   : > { %8333 = vmatprep.subr.mxu1 %v5580_v53 }
 0x729   : > { %8334 = vmatpush3.msra.mxu1 %v5580_v53 }
 0x72a   : > { %8322 = vmatmul.mubr.f32.gmra.mxu1 %v5141_v28  ;;  %8335 = vmatprep.subr.mxu1 %v5579_v15 }
 0x72b   : > { %8324 = vmatprep.mubr.f32.mxu1 %v5143_v21  ;;  %8336 = vmatpush3.msra.mxu1 %v5579_v15  ;;  %v5400_v21 = vmul.f32 %v8853_v54, %v12181_v13  ;;  %v8854_v15 = vld [vmem:[#allocation2 + $0x48] sm:$0xff] }
 0x72c   : > { %8337 = vmatprep.subr.mxu1 %v5578_v63 }
 0x72d   : > { %8338 = vmatpush3.msra.mxu1 %v5578_v63  ;;  %v5401_v63 = vmul.f32 %v8854_v15, %v12181_v13  ;;  %v8861_v15 = vld [vmem:[#allocation2 + $0x28] sm:$0xff] }
 0x72e   : > { %8325 = vmatmul.mubr.f32.gmra.mxu1 %v5145_v41  ;;  %8339 = vmatprep.subr.mxu1 %v5577_v36 }
 0x72f   : > { %8340 = vmatpush3.msra.mxu1 %v5577_v36 }
 0x730   : > { %8341 = vmatprep.subr.mxu1 %v5576_v32 }
 0x731   : > { %8342 = vmatpush3.msra.mxu1 %v5576_v32 }
 0x732   : > { %8343 = vmatprep.subr.mxu1 %v5575_v11 }
 0x733   : > { %8344 = vmatpush3.msra.mxu1 %v5575_v11 }
 0x734   : > { %8345 = vmatprep.subr.mxu1 %v5574_v1 }
 0x735   : > { %8346 = vmatpush3.msra.mxu1 %v5574_v1 }
 0x736   : > { %8347 = vmatprep.subr.mxu1 %v5573_v5 }
 0x737   : > { %8348 = vmatpush3.msra.mxu1 %v5573_v5 }
 0x738   : > { %8349 = vmatprep.subr.mxu1 %v5572_v46 }
 0x739   : > { %8350 = vmatpush3.msra.mxu1 %v5572_v46 }
 0x73a   : > { %8351 = vmatprep.subr.mxu1 %v5571_v37 }
 0x73b   : > { %8352 = vmatpush3.msra.mxu1 %v5571_v37 }
 0x73c   : > { %8353 = vmatprep.subr.mxu1 %v5570_v14 }
 0x73d   : > { %8354 = vmatpush3.msra.mxu1 %v5570_v14 }
 0x73e   : > { %8355 = vmatprep.subr.mxu1 %v5569_v34 }
 0x73f   : > { %8356 = vmatpush3.msra.mxu1 %v5569_v34  ;;  %v8855_v34 = vld [vmem:[#allocation2 + $0x20] sm:$0xff] }
 0x740   : > { %8357 = vmatprep.subr.mxu1 %v5568_v3 }
 0x741   : > { %8358 = vmatpush3.msra.mxu1 %v5568_v3  ;;  %v5403_v3 = vmul.f32 %v8855_v34, %v12181_v13 }
 0x7c2   : > { %v8273_v23 = vpop.f32.mrf.mxu1 }
 0x7c3   : > { %v5376_v16 = vmul.f32 %v8273_v23, %v12179_v57  ;;  %v8856_v23 = vld [vmem:[#allocation2 + $0x40] sm:$0xff] }
 0x7c4   : > { %v5228_v48 = vpop.f32.mrf.mxu1 }
 0x7c5   : > { %v5375_v27 = vmul.f32 %v12179_v57, %v5228_v48  ;;  %v12190_v18 = vadd.f32 %v5395_v26, %v5376_v16  ;;  %v5402_v48 = vmul.f32 %v8856_v23, %v12181_v13  ;;  %v8857_v26 = vld [vmem:[#allocation2 + $0x38] sm:$0xff] }
 0x7c7   : > { %v12187_v62 = vadd.f32 %v5394_v33, %v5375_v27  ;;  %v5450_v45 = vmul.f32 %v12190_v18, %v12190_v18 }
 0x7c9   : > { %v5449_v7 = vmul.f32 %v12187_v62, %v12187_v62  ;;  %v5428_v30 = vadd.f32 %v12190_v18, %v12187_v62 }
 0x7ca   : > { %v8276_v56 = vpop.f32.mrf.mxu1 }
 0x7cb   : > { %v5378_v43 = vmul.f32 %v8276_v56, %v12179_v57  ;;  %v5465_v42 = vadd.f32 %v5450_v45, %v5449_v7  ;;  %v5405_v56 = vmul.f32 %v8857_v26, %v12181_v13 }
 0x7cc   : > { %v5238_v0 = vpop.f32.mrf.mxu1 }
 0x7cd   : > { %v5377_v8 = vmul.f32 %v12179_v57, %v5238_v0  ;;  %v12207_v55 = vadd.f32 %v5397_v59, %v5378_v43 }
 0x7ce   : > { %v8279_v29 = vpop.f32.mrf.mxu1 }
 0x7cf   : > { %v12197_v49 = vadd.f32 %v5396_v12, %v5377_v8  ;;  %v5452_v58 = vmul.f32 %v12207_v55, %v12207_v55  ;;  %v5380_v17 = vmul.f32 %v8279_v29, %v12179_v57  ;;  %v5404_v12 = vmul.f32 %v8858_v44, %v12181_v13 }
 0x7d0   : > { %v5248_v38 = vpop.f32.mrf.mxu1 }
 0x7d1   : > { %v5451_v50 = vmul.f32 %v12197_v49, %v12197_v49  ;;  %v5379_v22 = vmul.f32 %v12179_v57, %v5248_v38  ;;  %v5429_v4 = vadd.f32 %v5428_v30, %v12197_v49  ;;  %v12221_v41 = vadd.f32 %v5399_v39, %v5380_v17  ;;  %v8859_v30 = vld [vmem:[#allocation2 + $0x70] sm:$0xff] }
 0x7d2   : > { %v8282_v6 = vpop.f32.mrf.mxu1 }
 0x7d3   : > { %v5466_v20 = vadd.f32 %v5465_v42, %v5451_v50  ;;  %v12210_v60 = vadd.f32 %v5398_v25, %v5379_v22  ;;  %v5430_v35 = vadd.f32 %v5429_v4, %v12207_v55  ;;  %v5382_v53 = vmul.f32 %v8282_v6, %v12179_v57  ;;  %v8860_v22 = vld [vmem:[#allocation2 + $0x60] sm:$0xff] }
 0x7d4   : > { %v5258_v51 = vpop.f32.mrf.mxu1  ;;  %v5454_v36 = vmul.f32 %v12221_v41, %v12221_v41  ;;  %v5407_v50 = vmul.f32 %v8859_v30, %v12181_v13  ;;  %v5406_v6 = vmul.f32 %v8860_v22, %v12181_v13 }
 0x7d5   : > { %v5453_v40 = vmul.f32 %v12210_v60, %v12210_v60  ;;  %v5467_v61 = vadd.f32 %v5466_v20, %v5452_v58  ;;  %v5381_v28 = vmul.f32 %v12179_v57, %v5258_v51  ;;  %v5431_v2 = vadd.f32 %v5430_v35, %v12210_v60 }
 0x7d6   : > { %v12233_v5 = vadd.f32 %v5401_v63, %v5382_v53  ;;  %v5409_v63 = vmul.f32 %v8861_v15, %v12181_v13 }
 0x7d7   : > { %v5468_v9 = vadd.f32 %v5467_v61, %v5453_v40  ;;  %v12224_v31 = vadd.f32 %v5400_v21, %v5381_v28  ;;  %v5432_v32 = vadd.f32 %v5431_v2, %v12221_v41 }
 0x7d8   : > { %v5456_v16 = vmul.f32 %v12233_v5, %v12233_v5 }
 0x7d9   : > { %v5455_v11 = vmul.f32 %v12224_v31, %v12224_v31  ;;  %v5469_v1 = vadd.f32 %v5468_v9, %v5454_v36  ;;  %v5433_v37 = vadd.f32 %v5432_v32, %v12224_v31  ;;  %v8862_v32 = vld [vmem:[#allocation2 + $0x78] sm:$0xff] }
 0x7db   : > { %v5470_v19 = vadd.f32 %v5469_v1, %v5455_v11  ;;  %v5434_v29 = vadd.f32 %v5433_v37, %v12233_v5  ;;  %v5408_v11 = vmul.f32 %v8862_v32, %v12181_v13 }
 0x7dd   : > { %v5471_v38 = vadd.f32 %v5470_v19, %v5456_v16 }
 0x7e2   : > { %v8317_v46 = vpop.f32.mrf.mxu1 }
 0x7e3   : > { %v5384_v14 = vmul.f32 %v8317_v46, %v12179_v57 }
 0x7e4   : > { %v5333_v27 = vpop.f32.mrf.mxu1 }
 0x7e5   : > { %v5383_v33 = vmul.f32 %v12179_v57, %v5333_v27  ;;  %v12244_v0 = vadd.f32 %v5403_v3, %v5384_v14 }
 0x7e6   : > { %v8320_v52 = vpop.f32.mrf.mxu1 }
 0x7e7   : > { %v12246_v8 = vadd.f32 %v5402_v48, %v5383_v33  ;;  %v5386_v7 = vmul.f32 %v8320_v52, %v12179_v57  ;;  %v5458_v42 = vmul.f32 %v12244_v0, %v12244_v0 }
 0x7e8   : > { %v5343_v43 = vpop.f32.mrf.mxu1 }
 0x7e9   : > { %v5435_v10 = vadd.f32 %v5434_v29, %v12246_v8  ;;  %v5457_v59 = vmul.f32 %v12246_v8, %v12246_v8  ;;  %v5385_v47 = vmul.f32 %v12179_v57, %v5343_v43  ;;  %v12254_v25 = vadd.f32 %v5405_v56, %v5386_v7 }
 0x7ea   : > { %v8323_v45 = vpop.f32.mrf.mxu1 }
 0x7eb   : > { %v5472_v4 = vadd.f32 %v5471_v38, %v5457_v59  ;;  %v12260_v20 = vadd.f32 %v5404_v12, %v5385_v47  ;;  %v5436_v51 = vadd.f32 %v5435_v10, %v12244_v0  ;;  %v5388_v58 = vmul.f32 %v8323_v45, %v12179_v57 }
 0x7ec   : > { %v5353_v17 = vpop.f32.mrf.mxu1  ;;  %v5460_v61 = vmul.f32 %v12254_v25, %v12254_v25 }
 0x7ed   : > { %v5437_v24 = vadd.f32 %v5436_v51, %v12260_v20  ;;  %v5459_v39 = vmul.f32 %v12260_v20, %v12260_v20  ;;  %v5473_v35 = vadd.f32 %v5472_v4, %v5458_v42  ;;  %v5387_v40 = vmul.f32 %v12179_v57, %v5353_v17 }
 0x7ee   : > { %v8326_v28 = vpop.f32.mrf.mxu1  ;;  %v12270_v21 = vadd.f32 %v5407_v50, %v5388_v58 }
 0x7ef   : > { %v5474_v54 = vadd.f32 %v5473_v35, %v5459_v39  ;;  %v12272_v2 = vadd.f32 %v5406_v6, %v5387_v40  ;;  %v5438_v9 = vadd.f32 %v5437_v24, %v12254_v25  ;;  %v5390_v53 = vmul.f32 %v8326_v28, %v12179_v57  ;;  %v12312_v39 = vld [vmem:[%s13621_s6] ss:$0 sm:$0xff] }
 0x7f0   : > { %v5363_v36 = vpop.f32.mrf.mxu1  ;;  %v5462_v34 = vmul.f32 %v12270_v21, %v12270_v21 }
 0x7f1   : > { %v5439_v1 = vadd.f32 %v5438_v9, %v12272_v2  ;;  %v5461_v46 = vmul.f32 %v12272_v2, %v12272_v2  ;;  %v5475_v37 = vadd.f32 %v5474_v54, %v5460_v61  ;;  %v5389_v14 = vmul.f32 %v12179_v57, %v5363_v36  ;;  %v12326_v61 = vld [vmem:[%s13622_s27] ss:$0 sm:$0xff] }
 0x7f2   : > { %v12285_v48 = vadd.f32 %v5409_v63, %v5390_v53 }
 0x7f3   : > { %v5476_v3 = vadd.f32 %v5475_v37, %v5461_v46  ;;  %v5440_v23 = vadd.f32 %v5439_v1, %v12270_v21  ;;  %v12287_v27 = vadd.f32 %v5408_v11, %v5389_v14 }
 0x7f4   : > { %v5464_v16 = vmul.f32 %v12285_v48, %v12285_v48 }
 0x7f5   : > { %v5477_v19 = vadd.f32 %v5476_v3, %v5462_v34  ;;  %v5441_v13 = vadd.f32 %v5440_v23, %v12287_v27  ;;  %v5463_v33 = vmul.f32 %v12287_v27, %v12287_v27 }
 0x7f7   : > { %v5442_v57 = vadd.f32 %v5441_v13, %v12285_v48  ;;  %v5478_v52 = vadd.f32 %v5477_v19, %v5463_v33 }
 0x7f9   : > { %v5443_v26 = vrot.slane %v5442_v57, 4  ;;  %v5479_v56 = vadd.f32 %v5478_v52, %v5464_v16 }
 0x7fb   : > { %v5444_v44 = vadd.f32 %v5443_v26, %v5442_v57  ;;  %v5480_v12 = vrot.slane %v5479_v56, 4 }
 0x7fd   : > { %v5445_v29 = vrot.slane %v5444_v44, 2  ;;  %v5481_v7 = vadd.f32 %v5480_v12, %v5479_v56 }
 0x7ff   : > { %v5446_v43 = vadd.f32 %v5445_v29, %v5444_v44  ;;  %v5482_v10 = vrot.slane %v5481_v7, 2 }
 0x801   : > { %v5447_v59 = vrot.slane %v5446_v43, 1  ;;  %v5483_v38 = vadd.f32 %v5482_v10, %v5481_v7 }
 0x803   : > { %v5448_v47 = vadd.f32 %v5447_v59, %v5446_v43  ;;  %v5484_v45 = vrot.slane %v5483_v38, 1 }
 0x805   : > { %v5485_v30 = vadd.f32 %v5484_v45, %v5483_v38  ;;  %v12295_v50 = vmul.f32 0.0078125, %v5448_v47 }
 0x807   : > { %v5487_v22 = vmul.f32 0.0078125, %v5485_v30  ;;  %v5488_v6 = vmul.f32 %v12295_v50, %v12295_v50  ;;  %v5490_v51 = vsub.f32 %v12187_v62, %v12295_v50  ;;  %v5491_v58 = vsub.f32 %v12190_v18, %v12295_v50 }
 0x808   : > { %v5492_v17 = vsub.f32 %v12197_v49, %v12295_v50  ;;  %v5493_v35 = vsub.f32 %v12207_v55, %v12295_v50  ;;  %v5494_v49 = vsub.f32 %v12210_v60, %v12295_v50  ;;  %v5495_v15 = vsub.f32 %v12221_v41, %v12295_v50 }
 0x809   : > { %v5489_v42 = vsub.f32 %v5487_v22, %v5488_v6  ;;  %v5496_v36 = vsub.f32 %v12224_v31, %v12295_v50  ;;  %v5497_v37 = vsub.f32 %v12233_v5, %v12295_v50  ;;  %v5498_v31 = vsub.f32 %v12246_v8, %v12295_v50 }
 0x80a   : > { %v5499_v5 = vsub.f32 %v12244_v0, %v12295_v50  ;;  %v5500_v8 = vsub.f32 %v12260_v20, %v12295_v50  ;;  %v5501_v0 = vsub.f32 %v12254_v25, %v12295_v50  ;;  %v5502_v20 = vsub.f32 %v12272_v2, %v12295_v50 }
 0x80b   : > { %v5506_v4 = vadd.f32 1e-05, %v5489_v42  ;;  %v5503_v25 = vsub.f32 %v12270_v21, %v12295_v50  ;;  %v5504_v2 = vsub.f32 %v12287_v27, %v12295_v50  ;;  %v5505_v21 = vsub.f32 %v12285_v48, %v12295_v50 }
 0x80d   : > { %8715 = vrsqrt.f32 %v5506_v4 }
 0x81a   : > { %v12305_v24 = vpop.eup %8715 }
 0x81b   : > { %v5508_v40 = vmul.f32 %v12305_v24, %v5490_v51  ;;  %v5509_v62 = vmul.f32 %v12305_v24, %v5491_v58  ;;  %v5510_v18 = vmul.f32 %v12305_v24, %v5492_v17  ;;  %v5511_v28 = vmul.f32 %v12305_v24, %v5493_v35 }
 0x81c   : > { %v5512_v53 = vmul.f32 %v12305_v24, %v5494_v49  ;;  %v5513_v11 = vmul.f32 %v12305_v24, %v5495_v15  ;;  %v5514_v46 = vmul.f32 %v12305_v24, %v5496_v36  ;;  %v5515_v3 = vmul.f32 %v12305_v24, %v5497_v37 }
 0x81d   : > { %v5530_v54 = vmul.f32 %v12312_v39, %v5508_v40  ;;  %v5531_v55 = vmul.f32 %v12312_v39, %v5509_v62  ;;  %v5532_v9 = vmul.f32 %v12312_v39, %v5510_v18  ;;  %v5533_v32 = vmul.f32 %v12312_v39, %v5511_v28 }
 0x81e   : > { %v5534_v41 = vmul.f32 %v12312_v39, %v5512_v53  ;;  %v5535_v34 = vmul.f32 %v12312_v39, %v5513_v11  ;;  %v5536_v19 = vmul.f32 %v12312_v39, %v5514_v46  ;;  %v5516_v13 = vmul.f32 %v12305_v24, %v5498_v31 }
 0x81f   : > { %v12336_v60 = vadd.f32 %v12326_v61, %v5530_v54  ;;  %v12339_v63 = vadd.f32 %v12326_v61, %v5531_v55  ;;  %v12347_v1 = vadd.f32 %v12326_v61, %v5532_v9  ;;  %v12358_v14 = vadd.f32 %v12326_v61, %v5533_v32 }
 0x820   : > { %v12363_v23 = vadd.f32 %v12326_v61, %v5534_v41  ;;  %v12374_v33 = vadd.f32 %v12326_v61, %v5535_v34  ;;  %v5537_v16 = vmul.f32 %v12312_v39, %v5515_v3  ;;  %v5517_v57 = vmul.f32 %v12305_v24, %v5499_v5 }
 0x821   : > { %8359 = vmatprep.mubr.f32.mxu1 %v12336_v60  ;;  %v12379_v52 = vadd.f32 %v12326_v61, %v5536_v19  ;;  %v5538_v26 = vmul.f32 %v12312_v39, %v5516_v13  ;;  %v5518_v56 = vmul.f32 %v12305_v24, %v5500_v8  ;;  %v5519_v29 = vmul.f32 %v12305_v24, %v5501_v0 }
 0x822   : > { %8360 = vmatmul.mubr.f32.vlgmr.msra.gmra.mxu1 %v12339_v63  ;;  %v12390_v44 = vadd.f32 %v12326_v61, %v5537_v16  ;;  %v5539_v12 = vmul.f32 %v12312_v39, %v5517_v57  ;;  %v5520_v10 = vmul.f32 %v12305_v24, %v5502_v20  ;;  %v5521_v47 = vmul.f32 %v12305_v24, %v5503_v25 }
 0x823   : > { %8362 = vmatprep.mubr.f32.mxu1 %v12347_v1  ;;  %v12395_v7 = vadd.f32 %v12326_v61, %v5538_v26  ;;  %v5540_v43 = vmul.f32 %v12312_v39, %v5518_v56  ;;  %v5541_v38 = vmul.f32 %v12312_v39, %v5519_v29  ;;  %v5522_v22 = vmul.f32 %v12305_v24, %v5504_v2 }
 0x824   : > { %v12406_v59 = vadd.f32 %v12326_v61, %v5539_v12  ;;  %v5542_v30 = vmul.f32 %v12312_v39, %v5520_v10  ;;  %v5543_v6 = vmul.f32 %v12312_v39, %v5521_v47  ;;  %v5523_v42 = vmul.f32 %v12305_v24, %v5505_v21  ;;  %v6168_v24 = vld [vmem:[%s9059_s18] sm:$0xff] }
 0x825   : > { %v12411_v45 = vadd.f32 %v12326_v61, %v5540_v43  ;;  %v12420_v27 = vadd.f32 %v12326_v61, %v5541_v38  ;;  %v5544_v51 = vmul.f32 %v12312_v39, %v5522_v22  ;;  %8383 = vmatprep.subr.mxu1 %v6168_v24 }
 0x826   : > { %8363 = vmatmul.mubr.f32.gmra.mxu1 %v12358_v14  ;;  %13623 = vst [vmem:[#allocation74_spill] sm:$0xff] %v12406_v59  ;;  %v12425_v4 = vadd.f32 %v12326_v61, %v5542_v30  ;;  %v12431_v48 = vadd.f32 %v12326_v61, %v5543_v6  ;;  %v5545_v50 = vmul.f32 %v12312_v39, %v5523_v42  ;;  %v12449_v39 = vld [vmem:[%s13630_s9] ss:$0 sm:$0xff] }
 0x827   : > { %8365 = vmatprep.mubr.f32.mxu1 %v12363_v23  ;;  %13624 = vst [vmem:[#allocation77_spill] sm:$0xff] %v12411_v45  ;;  %13625 = vst [vmem:[#allocation76_spill] sm:$0xff] %v12420_v27  ;;  %v12435_v58 = vadd.f32 %v12326_v61, %v5544_v51  ;;  %8384 = vmatpush3.msra.mxu1 %v6168_v24 }
 0x828   : > { %13626 = vst [vmem:[#allocation51_spill] sm:$0xff] %v12425_v4  ;;  %13627 = vst [vmem:[#allocation49_spill] sm:$0xff] %v12431_v48  ;;  %v12440_v17 = vadd.f32 %v12326_v61, %v5545_v50 }
 0x829   : > { %13628 = vst [vmem:[#allocation81_spill] sm:$0xff] %v12435_v58 }
 0x82a   : > { %8366 = vmatmul.mubr.f32.gmra.mxu1 %v12374_v33  ;;  %13629 = vst [vmem:[#allocation48_spill] sm:$0xff] %v12440_v17 }
 0x82b   : > { %8368 = vmatprep.mubr.f32.mxu1 %v12379_v52 }
 0x82e   : > { %8369 = vmatmul.mubr.f32.gmra.mxu1 %v12390_v44 }
 0x82f   : > { %8371 = vmatprep.mubr.f32.mxu1 %v12395_v7 }
 0x832   : > { %8372 = vmatmul.mubr.f32.gmra.mxu1 %v12406_v59 }
 0x833   : > { %8374 = vmatprep.mubr.f32.mxu1 %v12411_v45 }
 0x836   : > { %8375 = vmatmul.mubr.f32.gmra.mxu1 %v12420_v27 }
 0x837   : > { %8377 = vmatprep.mubr.f32.mxu1 %v12425_v4 }
 0x83a   : > { %8378 = vmatmul.mubr.f32.gmra.mxu1 %v12431_v48 }
 0x83b   : > { %8380 = vmatprep.mubr.f32.mxu1 %v12435_v58 }
 0x83e   : > { %8381 = vmatmul.mubr.f32.gmra.mxu1 %v12440_v17 }
 0x8e2   : > { %v8361_v35 = vpop.f32.mrf.mxu1 }
 0x8e3   : > { %v12452_v40 = vadd.f32 %v8361_v35, %v12449_v39 }
 0x8e4   : > { %v5657_v62 = vpop.f32.mrf.mxu1 }
 0x8e5   : > { %v12455_v18 = vmul.f32 0.70710677, %v12452_v40  ;;  %v12458_v49 = vadd.f32 %v12449_v39, %v5657_v62 }
 0x8e6   : > { %v8364_v61 = vpop.f32.mrf.mxu1 }
 0x8e7   : > { %v5769_v28 = vand.u32 2147483647, %v12455_v18  ;;  %v12462_v54 = vmul.f32 0.70710677, %v12458_v49  ;;  %v12465_v55 = vadd.f32 %v8364_v61, %v12449_v39  ;;  %vm6089_vm9 = vcmp.ge.f32.partialorder %v12455_v18, 0.0 }
 0x8e8   : > { %v5667_v9 = vpop.f32.mrf.mxu1 }
 0x8e9   : > { %v5785_v53 = vmul.f32 0.3275911, %v5769_v28  ;;  %v5768_v15 = vand.u32 2147483647, %v12462_v54  ;;  %v5993_v36 = vsub.f32 0.0, %v5769_v28  ;;  %v12472_v11 = vadd.f32 %v12449_v39, %v5667_v9 }
 0x8ea   : > { %v12469_v32 = vmul.f32 0.70710677, %v12465_v55  ;;  %v8367_v41 = vpop.f32.mrf.mxu1  ;;  %vm6088_vm12 = vcmp.ge.f32.partialorder %v12462_v54, 0.0 }
 0x8eb   : > { %v5801_v46 = vadd.f32 1.0, %v5785_v53  ;;  %v5784_v37 = vmul.f32 0.3275911, %v5768_v15  ;;  %v5992_v31 = vsub.f32 0.0, %v5768_v15  ;;  %v12476_v3 = vmul.f32 0.70710677, %v12472_v11 }
 0x8ec   : > { %v5771_v34 = vand.u32 2147483647, %v12469_v32  ;;  %v5677_v19 = vpop.f32.mrf.mxu1  ;;  %v6009_v5 = vmul.f32 %v5993_v36, %v5769_v28  ;;  %v12480_v0 = vadd.f32 %v8367_v41, %v12449_v39  ;;  %vm6091_vm13 = vcmp.ge.f32.partialorder %v12469_v32, 0.0 }
 0x8ed   : > { %8717 = vrcp.f32 %v5801_v46  ;;  %v5800_v13 = vadd.f32 1.0, %v5784_v37  ;;  %v5770_v57 = vand.u32 2147483647, %v12476_v3  ;;  %v6008_v56 = vmul.f32 %v5992_v31, %v5768_v15 }
 0x8ee   : > { %v5787_v8 = vmul.f32 0.3275911, %v5771_v34  ;;  %v5995_v16 = vsub.f32 0.0, %v5771_v34  ;;  %v8370_v26 = vpop.f32.mrf.mxu1  ;;  %v12483_v20 = vadd.f32 %v12449_v39, %v5677_v19  ;;  %v12486_v25 = vmul.f32 0.70710677, %v12480_v0 }
 0x8ef   : > { %8719 = vrcp.f32 %v5800_v13  ;;  %v5786_v43 = vmul.f32 0.3275911, %v5770_v57  ;;  %v5994_v10 = vsub.f32 0.0, %v5770_v57  ;;  %v6026_v2 = vmul.f32 1.442695, %v6009_v5 }
 0x8f0   : > { %v5803_v12 = vadd.f32 1.0, %v5787_v8  ;;  %v6011_v29 = vmul.f32 %v5995_v16, %v5771_v34  ;;  %v5687_v47 = vpop.f32.mrf.mxu1  ;;  %v6024_v30 = vmul.f32 1.442695, %v6008_v56  ;;  %v5773_v21 = vand.u32 2147483647, %v12486_v25 }
 0x8f1   : > { %v5802_v38 = vadd.f32 1.0, %v5786_v43  ;;  %v6010_v22 = vmul.f32 %v5994_v10, %v5770_v57  ;;  %v12490_v6 = vmul.f32 0.70710677, %v12483_v20  ;;  %v12493_v51 = vadd.f32 %v8370_v26, %v12449_v39 }
 0x8f2   : > { %8721 = vrcp.f32 %v5803_v12  ;;  %v6030_v42 = vmul.f32 1.442695, %v6011_v29  ;;  %v5789_v50 = vmul.f32 0.3275911, %v5773_v21  ;;  %v5997_v24 = vsub.f32 0.0, %v5773_v21  ;;  %v8373_v28 = vpop.f32.mrf.mxu1 }
 0x8f3   : > { %8723 = vrcp.f32 %v5802_v38  ;;  %v12496_v35 = vadd.f32 %v12449_v39, %v5687_v47  ;;  %v5772_v62 = vand.u32 2147483647, %v12490_v6  ;;  %v12500_v61 = vmul.f32 0.70710677, %v12493_v51 }
 0x8f4   : > { %8725 = vpow2.f32 %v6026_v2  ;;  %v6028_v9 = vmul.f32 1.442695, %v6010_v22  ;;  %v5805_v53 = vadd.f32 1.0, %v5789_v50  ;;  %v6013_v15 = vmul.f32 %v5997_v24, %v5773_v21 }
 0x8f5   : > { %8727 = vpow2.f32 %v6024_v30  ;;  %v5788_v36 = vmul.f32 0.3275911, %v5772_v62  ;;  %v5996_v41 = vsub.f32 0.0, %v5772_v62  ;;  %v5775_v46 = vand.u32 2147483647, %v12500_v61  ;;  %v5697_v30 = vpop.f32.mrf.mxu1 }
 0x8f6   : > { %8729 = vpow2.f32 %v6030_v42  ;;  %v6034_v37 = vmul.f32 1.442695, %v6013_v15  ;;  %v12504_v31 = vmul.f32 0.70710677, %v12496_v35  ;;  %v12507_v34 = vadd.f32 %v8373_v28, %v12449_v39 }
 0x8f7   : > { %8731 = vrcp.f32 %v5805_v53  ;;  %v5804_v13 = vadd.f32 1.0, %v5788_v36  ;;  %v6012_v5 = vmul.f32 %v5996_v41, %v5772_v62  ;;  %v5791_v8 = vmul.f32 0.3275911, %v5775_v46 }
 0x8f8   : > { %v5999_v16 = vsub.f32 0.0, %v5775_v46  ;;  %8733 = vpow2.f32 %v6028_v9  ;;  %v5774_v26 = vand.u32 2147483647, %v12504_v31  ;;  %v12514_v56 = vmul.f32 0.5, %v12452_v40 }
 0x8f9   : > { %v12517_v12 = vmul.f32 0.5, %v12458_v49  ;;  %8735 = vrcp.f32 %v5804_v13  ;;  %v5807_v29 = vadd.f32 1.0, %v5791_v8  ;;  %v6032_v21 = vmul.f32 1.442695, %v6012_v5 }
 0x8fa   : > { %v12509_v19 = vpop.eup %8717  ;;  %v6015_v2 = vmul.f32 %v5999_v16, %v5775_v46  ;;  %v5790_v38 = vmul.f32 0.3275911, %v5774_v26  ;;  %v5998_v47 = vsub.f32 0.0, %v5774_v26  ;;  %8737 = vpow2.f32 %v6034_v37 }
 0x8fb   : > { %v5849_v57 = vmul.f32 1.0614054, %v12509_v19  ;;  %v12523_v42 = vmul.f32 0.70710677, %v12507_v34  ;;  %8739 = vrcp.f32 %v5807_v29  ;;  %v12531_v53 = vadd.f32 %v12449_v39, %v5697_v30 }
 0x8fc   : > { %v12519_v43 = vpop.eup %8719  ;;  %v5806_v50 = vadd.f32 1.0, %v5790_v38  ;;  %v6014_v24 = vmul.f32 %v5998_v47, %v5774_v26  ;;  %v6038_v36 = vmul.f32 1.442695, %v6015_v2  ;;  %v12538_v26 = vmul.f32 0.5, %v12465_v55 }
 0x8fd   : > { %v5865_v10 = vadd.f32 -1.4531521, %v5849_v57  ;;  %v5848_v22 = vmul.f32 1.0614054, %v12519_v43  ;;  %v5777_v9 = vand.u32 2147483647, %v12523_v42 }
 0x8fe   : > { %8741 = vrcp.f32 %v5806_v50  ;;  %v6036_v41 = vmul.f32 1.442695, %v6014_v24  ;;  %v12545_v24 = vmul.f32 0.70710677, %v12531_v53  ;;  %vm6090_vm15 = vcmp.ge.f32.partialorder %v12476_v3, 0.0 }
 0x8ff   : > { %v12525_v40 = vpop.eup %8721  ;;  %v5881_v49 = vmul.f32 %v12509_v19, %v5865_v10  ;;  %v5864_v62 = vadd.f32 -1.4531521, %v5848_v22  ;;  %v5793_v5 = vmul.f32 0.3275911, %v5777_v9  ;;  %v6001_v8 = vsub.f32 0.0, %v5777_v9 }
 0x900   : > { %v5851_v28 = vmul.f32 1.0614054, %v12525_v40  ;;  %v12533_v46 = vpop.eup %8723  ;;  %8743 = vpow2.f32 %v6032_v21  ;;  %vm6093_vm0 = vcmp.ge.f32.partialorder %v12486_v25, 0.0  ;;  %vm6092_vm1 = vcmp.ge.f32.partialorder %v12490_v6, 0.0 }
 0x901   : > { %v5897_v15 = vadd.f32 1.4214138, %v5881_v49  ;;  %v5880_v37 = vmul.f32 %v12519_v43, %v5864_v62  ;;  %v8726_v16 = vpop.eup %8725  ;;  %v5850_v29 = vmul.f32 1.0614054, %v12533_v46  ;;  %v5809_v47 = vadd.f32 1.0, %v5793_v5 }
 0x902   : > { %v5867_v13 = vadd.f32 -1.4531521, %v5851_v28  ;;  %v8728_v10 = vpop.eup %8727  ;;  %v6017_v30 = vmul.f32 %v6001_v8, %v5777_v9  ;;  %8745 = vpow2.f32 %v6038_v36  ;;  %v12554_v5 = vand.u32 2147483647, %v12545_v24 }
 0x903   : > { %v5913_v57 = vmul.f32 %v12509_v19, %v5897_v15  ;;  %v5896_v2 = vadd.f32 1.4214138, %v5880_v37  ;;  %v12542_v22 = vpop.eup %8729  ;;  %v5866_v50 = vadd.f32 -1.4531521, %v5850_v29  ;;  %8747 = vpow2.f32 %v6036_v41  ;;  %v8376_v15 = vpop.f32.mrf.mxu1 }
 0x904   : > { %v5883_v38 = vmul.f32 %v12525_v40, %v5867_v13  ;;  %v12547_v62 = vpop.eup %8731  ;;  %v6042_v21 = vmul.f32 1.442695, %v6017_v30  ;;  %v12560_v29 = vmul.f32 0.5, %v12472_v11  ;;  %8749 = vrcp.f32 %v5809_v47 }
 0x905   : > { %v5929_v49 = vadd.f32 -0.28449672, %v5913_v57  ;;  %v5912_v55 = vmul.f32 %v12519_v43, %v5896_v2  ;;  %v5882_v9 = vmul.f32 %v12533_v46, %v5866_v50  ;;  %v5853_v13 = vmul.f32 1.0614054, %v12547_v62  ;;  %v12556_v36 = vpop.eup %8733 }
 0x906   : > { %v5899_v28 = vadd.f32 1.4214138, %v5883_v38  ;;  %v12562_v41 = vpop.eup %8735  ;;  %8751 = vpow2.f32 %v6042_v21  ;;  %vm6095_vm2 = vcmp.ge.f32.partialorder %v12500_v61, 0.0  ;;  %vm6094_vm3 = vcmp.ge.f32.partialorder %v12504_v31, 0.0 }
 0x907   : > { %v5945_v37 = vmul.f32 %v12509_v19, %v5929_v49  ;;  %v5928_v8 = vadd.f32 -0.28449672, %v5912_v55  ;;  %v5898_v38 = vadd.f32 1.4214138, %v5882_v9  ;;  %v5869_v30 = vadd.f32 -1.4531521, %v5853_v13  ;;  %v12571_v11 = vpop.eup %8737 }
 0x908   : > { %v5915_v57 = vmul.f32 %v12525_v40, %v5899_v28  ;;  %v12565_v49 = vadd.f32 %v8376_v15, %v12449_v39  ;;  %v5852_v55 = vmul.f32 1.0614054, %v12562_v41  ;;  %v5792_v28 = vmul.f32 0.3275911, %v12554_v5  ;;  %v12576_v15 = vpop.eup %8739 }
 0x909   : > { %v5961_v2 = vadd.f32 0.2548296, %v5945_v37  ;;  %v5944_v50 = vmul.f32 %v12519_v43, %v5928_v8  ;;  %v5914_v37 = vmul.f32 %v12533_v46, %v5898_v38  ;;  %v5885_v9 = vmul.f32 %v12547_v62, %v5869_v30 }
 0x90a   : > { %v5931_v17 = vadd.f32 -0.28449672, %v5915_v57  ;;  %v5868_v8 = vadd.f32 -1.4531521, %v5852_v55  ;;  %v5808_v57 = vadd.f32 1.0, %v5792_v28  ;;  %vm6097_vm4 = vcmp.ge.f32.partialorder %v12523_v42, 0.0 }
 0x90b   : > { %v5977_v47 = vmul.f32 %v12509_v19, %v5961_v2  ;;  %v5960_v13 = vadd.f32 0.2548296, %v5944_v50  ;;  %v5930_v4 = vadd.f32 -0.28449672, %v5914_v37  ;;  %v5901_v27 = vadd.f32 1.4214138, %v5885_v9  ;;  %v12581_v19 = vpop.eup %8741 }
 0x90c   : > { %v5947_v58 = vmul.f32 %v12525_v40, %v5931_v17  ;;  %v5855_v45 = vmul.f32 1.0614054, %v12576_v15  ;;  %v5884_v21 = vmul.f32 %v12562_v41, %v5868_v8  ;;  %8753 = vrcp.f32 %v5808_v57 }
 0x90d   : > { %v6057_v48 = vmul.f32 %v8726_v16, %v5977_v47  ;;  %v5976_v2 = vmul.f32 %v12519_v43, %v5960_v13  ;;  %v5946_v17 = vmul.f32 %v12533_v46, %v5930_v4  ;;  %v5917_v16 = vmul.f32 %v12547_v62, %v5901_v27  ;;  %v8744_v55 = vpop.eup %8743 }
 0x90e   : > { %v5963_v38 = vadd.f32 0.2548296, %v5947_v58  ;;  %v5871_v50 = vadd.f32 -1.4531521, %v5855_v45  ;;  %v5900_v37 = vadd.f32 1.4214138, %v5884_v21 }
 0x90f   : > { %v6073_v30 = vsub.f32 1.0, %v6057_v48  ;;  %v6056_v28 = vmul.f32 %v8728_v10, %v5976_v2  ;;  %v5854_v9 = vmul.f32 1.0614054, %v12581_v19  ;;  %v5962_v43 = vadd.f32 0.2548296, %v5946_v17  ;;  %v12591_v8 = vpop.eup %8745 }
 0x910   : > { %v5979_v47 = vmul.f32 %v12525_v40, %v5963_v38  ;;  %v5933_v13 = vadd.f32 -0.28449672, %v5917_v16  ;;  %v5887_v48 = vmul.f32 %v12576_v15, %v5871_v50  ;;  %v5916_v45 = vmul.f32 %v12562_v41, %v5900_v37  ;;  %v12596_v40 = vpop.eup %8747 }
 0x911   : > { %v6105_v58 = vsub.f32 0.0, %v6073_v30  ;;  %v6072_v57 = vsub.f32 1.0, %v6056_v28  ;;  %v5870_v27 = vadd.f32 -1.4531521, %v5854_v9  ;;  %v5978_v2 = vmul.f32 %v12533_v46, %v5962_v43 }
 0x912   : > { %v6059_v4 = vmul.f32 %v12542_v22, %v5979_v47  ;;  %v5949_v38 = vmul.f32 %v12547_v62, %v5933_v13  ;;  %v5903_v21 = vadd.f32 1.4214138, %v5887_v48  ;;  %v5932_v28 = vadd.f32 -0.28449672, %v5916_v45  ;;  %v12602_v22 = vpop.eup %8749 }
 0x913   : > { %v6121_v10 = vsel %vm6089_vm9, %v6073_v30, %v6105_v58  ;;  %v6104_v16 = vsub.f32 0.0, %v6072_v57  ;;  %v6058_v47 = vmul.f32 %v12556_v36, %v5978_v2  ;;  %v5886_v59 = vmul.f32 %v12581_v19, %v5870_v27 }
 0x914   : > { %v6137_v17 = vadd.f32 1.0, %v6121_v10  ;;  %v6075_v50 = vsub.f32 1.0, %v6059_v4  ;;  %v5965_v37 = vadd.f32 0.2548296, %v5949_v38  ;;  %v5919_v9 = vmul.f32 %v12576_v15, %v5903_v21  ;;  %v12613_v4 = vpop.eup %8751 }
 0x915   : > { %v6120_v18 = vsel %vm6088_vm12, %v6072_v57, %v6104_v16  ;;  %v5948_v30 = vmul.f32 %v12562_v41, %v5932_v28  ;;  %v6000_v58 = vsub.f32 0.0, %v12554_v5  ;;  %v6074_v13 = vsub.f32 1.0, %v6058_v47 }
 0x916   : > { %v6107_v46 = vsub.f32 0.0, %v6075_v50  ;;  %v6136_v43 = vadd.f32 1.0, %v6120_v18  ;;  %v5981_v48 = vmul.f32 %v12547_v62, %v5965_v37  ;;  %v5935_v36 = vadd.f32 -0.28449672, %v5919_v9 }
 0x917   : > { %v5964_v27 = vadd.f32 0.2548296, %v5948_v30  ;;  %v5902_v54 = vadd.f32 1.4214138, %v5886_v59  ;;  %v5857_v57 = vmul.f32 1.0614054, %v12602_v22  ;;  %v6153_v10 = vmul.f32 %v6137_v17, %v12514_v56 }
 0x918   : > { %v6123_v45 = vsel %vm6091_vm13, %v6075_v50, %v6107_v46  ;;  %v6152_v2 = vmul.f32 %v6136_v43, %v12517_v12  ;;  %v6106_v38 = vsub.f32 0.0, %v6074_v13  ;;  %v6061_v21 = vmul.f32 %v12571_v11, %v5981_v48  ;;  %v5707_v43 = vpop.f32.mrf.mxu1 }
 0x919   : > { %v5980_v62 = vmul.f32 %v12562_v41, %v5964_v27  ;;  %v5951_v16 = vmul.f32 %v12576_v15, %v5935_v36  ;;  %v5918_v32 = vmul.f32 %v12581_v19, %v5902_v54  ;;  %v5873_v50 = vadd.f32 -1.4531521, %v5857_v57  ;;  %v12625_v28 = vpop.eup %8753 }
 0x91a   : > { %v6139_v59 = vadd.f32 1.0, %v6123_v45  ;;  %v6122_v56 = vsel %vm6090_vm15, %v6074_v13, %v6106_v38  ;;  %v6077_v17 = vsub.f32 1.0, %v6061_v21  ;;  %v6016_v12 = vmul.f32 %v6000_v58, %v12554_v5  ;;  %8385 = vmatprep.mubr.msk.f32.mxu1 %vm6176_vm14, %v6152_v2 }
 0x91b   : > { %v6138_v11 = vadd.f32 1.0, %v6122_v56  ;;  %v6060_v47 = vmul.f32 %v8744_v55, %v5980_v62  ;;  %v5967_v37 = vadd.f32 0.2548296, %v5951_v16  ;;  %v5934_v41 = vadd.f32 -0.28449672, %v5918_v32  ;;  %8386 = vmatmul.mubr.msk.f32.vlgmr.msra.gmra.mxu1 %vm6176_vm14, %v6153_v10 }
 0x91c   : > { %v6109_v9 = vsub.f32 0.0, %v6077_v17  ;;  %v5889_v18 = vmul.f32 %v12602_v22, %v5873_v50  ;;  %v5856_v46 = vmul.f32 1.0614054, %v12625_v28  ;;  %v6040_v30 = vmul.f32 1.442695, %v6016_v12  ;;  %v8379_v12 = vpop.f32.mrf.mxu1 }
 0x91d   : > { %v6154_v3 = vmul.f32 %v6138_v11, %v12560_v29  ;;  %v6076_v13 = vsub.f32 1.0, %v6060_v47  ;;  %v5983_v5 = vmul.f32 %v12576_v15, %v5967_v37  ;;  %v5950_v58 = vmul.f32 %v12581_v19, %v5934_v41 }
 0x91e   : > { %v6155_v55 = vmul.f32 %v6139_v59, %v12538_v26  ;;  %v6125_v48 = vsel %vm6093_vm0, %v6077_v17, %v6109_v9  ;;  %v5905_v36 = vadd.f32 1.4214138, %v5889_v18  ;;  %v5872_v45 = vadd.f32 -1.4531521, %v5856_v46 }
 0x91f   : > { %v6108_v27 = vsub.f32 0.0, %v6076_v13  ;;  %v6063_v54 = vmul.f32 %v12591_v8, %v5983_v5  ;;  %v5966_v57 = vadd.f32 0.2548296, %v5950_v58  ;;  %v12642_v10 = vadd.f32 %v12449_v39, %v5707_v43  ;;  %8388 = vmatprep.mubr.msk.f32.mxu1 %vm6176_vm14, %v6154_v3  ;;  %v5717_v43 = vpop.f32.mrf.mxu1 }
 0x920   : > { %v5921_v29 = vmul.f32 %v12602_v22, %v5905_v36  ;;  %v5888_v15 = vmul.f32 %v12625_v28, %v5872_v45  ;;  %8755 = vpow2.f32 %v6040_v30  ;;  %v12648_v26 = vmul.f32 0.70710677, %v12565_v49  ;;  %8389 = vmatmul.mubr.msk.f32.gmra.mxu1 %vm6176_vm14, %v6155_v55 }
 0x921   : > { %v6141_v25 = vadd.f32 1.0, %v6125_v48  ;;  %v6124_v8 = vsel %vm6092_vm1, %v6076_v13, %v6108_v27  ;;  %v6079_v2 = vsub.f32 1.0, %v6063_v54  ;;  %v5982_v38 = vmul.f32 %v12581_v19, %v5966_v57  ;;  %v8382_v57 = vpop.f32.mrf.mxu1 }
 0x922   : > { %v5740_v21 = vmul.f32 0.5, %v12483_v20  ;;  %v6140_v62 = vadd.f32 1.0, %v6124_v8  ;;  %v5937_v16 = vadd.f32 -0.28449672, %v5921_v29  ;;  %v5904_v32 = vadd.f32 1.4214138, %v5888_v15 }
 0x923   : > { %v5741_v50 = vmul.f32 0.5, %v12480_v0  ;;  %v6111_v59 = vsub.f32 0.0, %v6079_v2  ;;  %v6062_v56 = vmul.f32 %v12596_v40, %v5982_v38  ;;  %v5779_v17 = vand.u32 2147483647, %v12648_v26 }
 0x924   : > { %v6156_v11 = vmul.f32 %v6140_v62, %v5740_v21  ;;  %v5953_v6 = vmul.f32 %v12602_v22, %v5937_v16  ;;  %v5920_v47 = vmul.f32 %v12625_v28, %v5904_v32  ;;  %v12661_v19 = vmul.f32 0.70710677, %v12642_v10 }
 0x925   : > { %v6157_v20 = vmul.f32 %v6141_v25, %v5741_v50  ;;  %v6078_v37 = vsub.f32 1.0, %v6062_v56  ;;  %v5795_v41 = vmul.f32 0.3275911, %v5779_v17  ;;  %v6127_v0 = vsel %vm6095_vm2, %v6079_v2, %v6111_v59 }
 0x926   : > { %v5969_v9 = vadd.f32 0.2548296, %v5953_v6  ;;  %v5936_v18 = vadd.f32 -0.28449672, %v5920_v47  ;;  %8391 = vmatprep.mubr.msk.f32.mxu1 %vm6176_vm14, %v6156_v11  ;;  %v5778_v30 = vand.u32 2147483647, %v12661_v19  ;;  %v12671_v13 = vadd.f32 %v8379_v12, %v12449_v39 }
 0x927   : > { %v6110_v40 = vsub.f32 0.0, %v6078_v37  ;;  %v5811_v46 = vadd.f32 1.0, %v5795_v41  ;;  %8392 = vmatmul.mubr.msk.f32.gmra.mxu1 %vm6176_vm14, %v6157_v20  ;;  %v6143_v5 = vadd.f32 1.0, %v6127_v0  ;;  %v5742_v48 = vmul.f32 0.5, %v12496_v35 }
 0x928   : > { %v5985_v3 = vmul.f32 %v12602_v22, %v5969_v9  ;;  %v5952_v61 = vmul.f32 %v12625_v28, %v5936_v18  ;;  %v5794_v55 = vmul.f32 0.3275911, %v5778_v30  ;;  %v5743_v54 = vmul.f32 0.5, %v12493_v51 }
 0x929   : > { %v6126_v58 = vsel %vm6094_vm3, %v6078_v37, %v6110_v40  ;;  %8757 = vrcp.f32 %v5811_v46  ;;  %v12677_v22 = vmul.f32 0.70710677, %v12671_v13  ;;  %v12682_v38 = vadd.f32 %v12449_v39, %v5717_v43 }
 0x92a   : > { %v6142_v36 = vadd.f32 1.0, %v6126_v58  ;;  %v6065_v45 = vmul.f32 %v12613_v4, %v5985_v3  ;;  %v5968_v27 = vadd.f32 0.2548296, %v5952_v61  ;;  %v5810_v31 = vadd.f32 1.0, %v5794_v55 }
 0x92b   : > { %v6159_v2 = vmul.f32 %v6143_v5, %v5743_v54  ;;  %v5781_v35 = vand.u32 2147483647, %v12677_v22  ;;  %v6003_v51 = vsub.f32 0.0, %v5779_v17  ;;  %v12685_v62 = vadd.f32 %v8382_v57, %v12449_v39 }
 0x92c   : > { %v6158_v29 = vmul.f32 %v6142_v36, %v5742_v48  ;;  %v6081_v15 = vsub.f32 1.0, %v6065_v45  ;;  %v5984_v25 = vmul.f32 %v12625_v28, %v5968_v27  ;;  %8759 = vrcp.f32 %v5810_v31  ;;  %v5727_v28 = vpop.f32.mrf.mxu1 }
 0x92d   : > { %v8756_v8 = vpop.eup %8755  ;;  %v5797_v16 = vmul.f32 0.3275911, %v5781_v35  ;;  %v12689_v32 = vmul.f32 0.70710677, %v12682_v38  ;;  %v6019_v6 = vmul.f32 %v6003_v51, %v5779_v17  ;;  %v12695_v47 = vmul.f32 0.70710677, %v12685_v62 }
 0x92e   : > { %v6113_v4 = vsub.f32 0.0, %v6081_v15  ;;  %v6064_v21 = vmul.f32 %v8756_v8, %v5984_v25  ;;  %8394 = vmatprep.mubr.msk.f32.mxu1 %vm6176_vm14, %v6158_v29  ;;  %v12698_v20 = vadd.f32 %v12449_v39, %v5727_v28  ;;  %vm6096_vm5 = vcmp.ge.f32.partialorder %v12545_v24, 0.0 }
 0x92f   : > { %8395 = vmatmul.mubr.msk.f32.gmra.mxu1 %vm6176_vm14, %v6159_v2  ;;  %v5813_v56 = vadd.f32 1.0, %v5797_v16  ;;  %v5780_v12 = vand.u32 2147483647, %v12689_v32  ;;  %v6002_v37 = vsub.f32 0.0, %v5778_v30  ;;  %v5783_v9 = vand.u32 2147483647, %v12695_v47 }
 0x930   : > { %v6080_v50 = vsub.f32 1.0, %v6064_v21  ;;  %v6129_v59 = vsel %vm6097_vm4, %v6081_v15, %v6113_v4  ;;  %v5745_v18 = vmul.f32 0.5, %v12507_v34  ;;  %v5744_v40 = vmul.f32 0.5, %v12531_v53 }
 0x931   : > { %8761 = vrcp.f32 %v5813_v56  ;;  %v5796_v41 = vmul.f32 0.3275911, %v5780_v12  ;;  %v6145_v0 = vadd.f32 1.0, %v6129_v59  ;;  %v6046_v3 = vmul.f32 1.442695, %v6019_v6 }
 0x932   : > { %v6112_v11 = vsub.f32 0.0, %v6080_v50  ;;  %v5799_v61 = vmul.f32 0.3275911, %v5783_v9  ;;  %v12705_v39 = vmul.f32 0.70710677, %v12698_v20  ;;  %v6018_v58 = vmul.f32 %v6002_v37, %v5778_v30 }
 0x933   : > { %v5812_v46 = vadd.f32 1.0, %v5796_v41  ;;  %v6161_v55 = vmul.f32 %v6145_v0, %v5745_v18  ;;  %v6005_v48 = vsub.f32 0.0, %v5781_v35  ;;  %v6004_v30 = vsub.f32 0.0, %v5780_v12 }
 0x934   : > { %v6128_v42 = vsel %vm6096_vm5, %v6080_v50, %v6112_v11  ;;  %v5815_v36 = vadd.f32 1.0, %v5799_v61  ;;  %v5782_v45 = vand.u32 2147483647, %v12705_v39  ;;  %v6044_v57 = vmul.f32 1.442695, %v6018_v58 }
 0x935   : > { %v6144_v17 = vadd.f32 1.0, %v6128_v42  ;;  %8763 = vrcp.f32 %v5812_v46  ;;  %v6021_v29 = vmul.f32 %v6005_v48, %v5781_v35  ;;  %v6020_v16 = vmul.f32 %v6004_v30, %v5780_v12 }
 0x936   : > { %v8758_v43 = vpop.eup %8757  ;;  %8765 = vpow2.f32 %v6046_v3  ;;  %v5798_v27 = vmul.f32 0.3275911, %v5782_v45  ;;  %v6007_v56 = vsub.f32 0.0, %v5783_v9  ;;  %v6006_v0 = vsub.f32 0.0, %v5782_v45 }
 0x937   : > { %v6160_v24 = vmul.f32 %v6144_v17, %v5744_v40  ;;  %v5859_v5 = vmul.f32 1.0614054, %v8758_v43  ;;  %8767 = vrcp.f32 %v5815_v36  ;;  %v6050_v51 = vmul.f32 1.442695, %v6021_v29 }
 0x938   : > { %v5814_v15 = vadd.f32 1.0, %v5798_v27  ;;  %v6048_v35 = vmul.f32 1.442695, %v6020_v16  ;;  %v6023_v46 = vmul.f32 %v6007_v56, %v5783_v9  ;;  %vm6099_vm6 = vcmp.ge.f32.partialorder %v12648_v26, 0.0 }
 0x939   : > { %v5875_v34 = vadd.f32 -1.4531521, %v5859_v5  ;;  %8397 = vmatprep.mubr.msk.f32.mxu1 %vm6176_vm14, %v6160_v24  ;;  %v8760_v53 = vpop.eup %8759  ;;  %vm6098_vm7 = vcmp.ge.f32.partialorder %v12661_v19, 0.0  ;;  %vm6101_vm8 = vcmp.ge.f32.partialorder %v12677_v22, 0.0  ;;  %vm6100_vm10 = vcmp.ge.f32.partialorder %v12689_v32, 0.0 }
 0x93a   : > { %8398 = vmatmul.mubr.msk.f32.gmra.mxu1 %vm6176_vm14, %v6161_v55  ;;  %v5858_v31 = vmul.f32 1.0614054, %v8760_v53  ;;  %8769 = vrcp.f32 %v5814_v15  ;;  %v6022_v55 = vmul.f32 %v6006_v0, %v5782_v45  ;;  %vm6103_vm11 = vcmp.ge.f32.partialorder %v12695_v47, 0.0  ;;  %v12747_v47 = vld [vmem:[%s726_s4] ss:$0 sm:$0xff]  ;;  %s6802_s4 = sadd.s32 2, %s12175_s5 }
 0x93b   : > { %v5891_v54 = vmul.f32 %v8758_v43, %v5875_v34  ;;  %8771 = vpow2.f32 %v6044_v57  ;;  %vm6102_vm9 = vcmp.ge.f32.partialorder %v12705_v39, 0.0  ;;  %s12768_s0 = sld [smem:[#allocation3 + %s6802_s4]] }
 0x93c   : > { %v5874_v8 = vadd.f32 -1.4531521, %v5858_v31  ;;  %8773 = vpow2.f32 %v6050_v51  ;;  %v6054_v31 = vmul.f32 1.442695, %v6023_v46 }
 0x93d   : > { %v5907_v25 = vadd.f32 1.4214138, %v5891_v54  ;;  %8775 = vpow2.f32 %v6048_v35 }
 0x93e   : > { %v5890_v4 = vmul.f32 %v8760_v53, %v5874_v8  ;;  %v8762_v21 = vpop.eup %8761  ;;  %8777 = vpow2.f32 %v6054_v31 }
 0x93f   : > { %v5923_v2 = vmul.f32 %v8758_v43, %v5907_v25  ;;  %v5861_v59 = vmul.f32 1.0614054, %v8762_v21 }
 0x940   : > { %v5906_v50 = vadd.f32 1.4214138, %v5890_v4 }
 0x941   : > { %v5939_v28 = vadd.f32 -0.28449672, %v5923_v2  ;;  %v5877_v37 = vadd.f32 -1.4531521, %v5861_v59  ;;  %v6052_v2 = vmul.f32 1.442695, %v6022_v55 }
 0x942   : > { %v5922_v6 = vmul.f32 %v8760_v53, %v5906_v50  ;;  %v12710_v41 = vpop.eup %8763 }
 0x943   : > { %v5955_v11 = vmul.f32 %v8758_v43, %v5939_v28  ;;  %v5893_v40 = vmul.f32 %v8762_v21, %v5877_v37  ;;  %v5860_v17 = vmul.f32 1.0614054, %v12710_v41  ;;  %v8766_v3 = vpop.eup %8765  ;;  %8779 = vpow2.f32 %v6052_v2 }
 0x944   : > { %v5938_v18 = vadd.f32 -0.28449672, %v5922_v6  ;;  %v12713_v58 = vpop.eup %8767 }
 0x945   : > { %v5971_v42 = vadd.f32 0.2548296, %v5955_v11  ;;  %v5909_v24 = vadd.f32 1.4214138, %v5893_v40  ;;  %v5876_v5 = vadd.f32 -1.4531521, %v5860_v17 }
 0x946   : > { %v5954_v61 = vmul.f32 %v8760_v53, %v5938_v18  ;;  %v5863_v54 = vmul.f32 1.0614054, %v12713_v58 }
 0x947   : > { %v5987_v12 = vmul.f32 %v8758_v43, %v5971_v42  ;;  %v5925_v34 = vmul.f32 %v8762_v21, %v5909_v24  ;;  %v5892_v27 = vmul.f32 %v12710_v41, %v5876_v5  ;;  %v8770_v57 = vpop.eup %8769 }
 0x948   : > { %v5970_v36 = vadd.f32 0.2548296, %v5954_v61  ;;  %v8772_v15 = vpop.eup %8771  ;;  %v5879_v25 = vadd.f32 -1.4531521, %v5863_v54  ;;  %v5862_v8 = vmul.f32 1.0614054, %v8770_v57 }
 0x949   : > { %v6067_v48 = vmul.f32 %v8766_v3, %v5987_v12  ;;  %v5941_v30 = vadd.f32 -0.28449672, %v5925_v34  ;;  %v5908_v43 = vadd.f32 1.4214138, %v5892_v27  ;;  %v8774_v35 = vpop.eup %8773  ;;  %v5746_v61 = vmul.f32 0.5, %v12642_v10 }
 0x94a   : > { %v5986_v9 = vmul.f32 %v8760_v53, %v5970_v36  ;;  %v5895_v28 = vmul.f32 %v12713_v58, %v5879_v25  ;;  %v5878_v50 = vadd.f32 -1.4531521, %v5862_v8  ;;  %v5747_v36 = vmul.f32 0.5, %v12565_v49 }
 0x94b   : > { %v6083_v29 = vsub.f32 1.0, %v6067_v48  ;;  %v5957_v45 = vmul.f32 %v8762_v21, %v5941_v30  ;;  %v5924_v16 = vmul.f32 %v12710_v41, %v5908_v43  ;;  %v8776_v48 = vpop.eup %8775 }
 0x94c   : > { %v6066_v51 = vmul.f32 %v8772_v15, %v5986_v9  ;;  %v5911_v6 = vadd.f32 1.4214138, %v5895_v28  ;;  %v5894_v37 = vmul.f32 %v8770_v57, %v5878_v50  ;;  %v8778_v25 = vpop.eup %8777  ;;  %v5748_v28 = vmul.f32 0.5, %v12682_v38 }
 0x94d   : > { %v6115_v4 = vsub.f32 0.0, %v6083_v29  ;;  %v5973_v56 = vadd.f32 0.2548296, %v5957_v45  ;;  %v5940_v53 = vadd.f32 -0.28449672, %v5924_v16 }
 0x94e   : > { %v6082_v59 = vsub.f32 1.0, %v6066_v51  ;;  %v5927_v40 = vmul.f32 %v12713_v58, %v5911_v6  ;;  %v5910_v17 = vadd.f32 1.4214138, %v5894_v37 }
 0x94f   : > { %v6131_v11 = vsel %vm6099_vm6, %v6083_v29, %v6115_v4  ;;  %v5989_v42 = vmul.f32 %v8762_v21, %v5973_v56  ;;  %v5956_v18 = vmul.f32 %v12710_v41, %v5940_v53  ;;  %v5749_v56 = vmul.f32 0.5, %v12671_v13 }
 0x950   : > { %v6114_v0 = vsub.f32 0.0, %v6082_v59  ;;  %v6147_v46 = vadd.f32 1.0, %v6131_v11  ;;  %v5943_v5 = vadd.f32 -0.28449672, %v5927_v40  ;;  %v5926_v55 = vmul.f32 %v8770_v57, %v5910_v17  ;;  %v8780_v51 = vpop.eup %8779 }
 0x951   : > { %v6069_v26 = vmul.f32 %v8774_v35, %v5989_v42  ;;  %v5972_v12 = vadd.f32 0.2548296, %v5956_v18  ;;  %v5750_v13 = vmul.f32 0.5, %v12698_v20 }
 0x952   : > { %v6130_v3 = vsel %vm6098_vm7, %v6082_v59, %v6114_v0  ;;  %v5959_v19 = vmul.f32 %v12713_v58, %v5943_v5  ;;  %v5942_v54 = vadd.f32 -0.28449672, %v5926_v55  ;;  %v6163_v31 = vmul.f32 %v6147_v46, %v5747_v36 }
 0x953   : > { %v6146_v24 = vadd.f32 1.0, %v6130_v3  ;;  %v6085_v21 = vsub.f32 1.0, %v6069_v26  ;;  %v5988_v34 = vmul.f32 %v12710_v41, %v5972_v12  ;;  %v5751_v0 = vmul.f32 0.5, %v12685_v62 }
 0x954   : > { %v5975_v30 = vadd.f32 0.2548296, %v5959_v19  ;;  %v5958_v43 = vmul.f32 %v8770_v57, %v5942_v54 }
 0x955   : > { %v6162_v27 = vmul.f32 %v6146_v24, %v5746_v61  ;;  %v6117_v29 = vsub.f32 0.0, %v6085_v21  ;;  %v6068_v9 = vmul.f32 %v8776_v48, %v5988_v34 }
 0x956   : > { %v5991_v15 = vmul.f32 %v12713_v58, %v5975_v30  ;;  %v5974_v41 = vadd.f32 0.2548296, %v5958_v43 }
 0x957   : > { %8400 = vmatprep.mubr.msk.f32.mxu1 %vm6176_vm14, %v6162_v27  ;;  %v6084_v10 = vsub.f32 1.0, %v6068_v9  ;;  %v6133_v49 = vsel %vm6101_vm8, %v6085_v21, %v6117_v29 }
 0x958   : > { %8401 = vmatmul.mubr.msk.f32.gmra.mxu1 %vm6176_vm14, %v6163_v31  ;;  %v6071_v2 = vmul.f32 %v8778_v25, %v5991_v15  ;;  %v5990_v4 = vmul.f32 %v8770_v57, %v5974_v41  ;;  %v6149_v45 = vadd.f32 1.0, %v6133_v49  ;;  %v12770_v15 = vstv %s6822_s23 }
 0x959   : > { %v6116_v8 = vsub.f32 0.0, %v6084_v10 }
 0x95a   : > { %v6087_v22 = vsub.f32 1.0, %v6071_v2  ;;  %v6070_v59 = vmul.f32 %v8780_v51, %v5990_v4  ;;  %v6165_v6 = vmul.f32 %v6149_v45, %v5749_v56 }
 0x95b   : > { %v6132_v16 = vsel %vm6100_vm10, %v6084_v10, %v6116_v8 }
 0x95c   : > { %v6148_v50 = vadd.f32 1.0, %v6132_v16  ;;  %v6119_v11 = vsub.f32 0.0, %v6087_v22  ;;  %v6086_v58 = vsub.f32 1.0, %v6070_v59  ;;  %v12780_v16 = vmul.f32 %v12770_v15, %v12336_v60 }
 0x95d   : > { %v12795_v59 = vmul.f32 %v12770_v15, %v12363_v23  ;;  %v12799_v60 = vmul.f32 %v12770_v15, %v12374_v33  ;;  %v12812_v33 = vstv %s12768_s0 }
 0x95e   : > { %v6164_v53 = vmul.f32 %v6148_v50, %v5748_v28  ;;  %v6135_v32 = vsel %vm6103_vm11, %v6087_v22, %v6119_v11  ;;  %v6118_v37 = vsub.f32 0.0, %v6086_v58  ;;  %v12784_v28 = vmul.f32 %v12770_v15, %v12347_v1 }
 0x95f   : > { %v6151_v38 = vadd.f32 1.0, %v6135_v32  ;;  %v12788_v50 = vmul.f32 %v12770_v15, %v12358_v14 }
 0x960   : > { %8403 = vmatprep.mubr.msk.f32.mxu1 %vm6176_vm14, %v6164_v53  ;;  %v6134_v57 = vsel %vm6102_vm9, %v6086_v58, %v6118_v37  ;;  %v12803_v53 = vmul.f32 %v12770_v15, %v12339_v63 }
 0x961   : > { %8404 = vmatmul.mubr.msk.f32.gmra.mxu1 %vm6176_vm14, %v6165_v6  ;;  %v6150_v35 = vadd.f32 1.0, %v6134_v57  ;;  %v6167_v18 = vmul.f32 %v6151_v38, %v5751_v0 }
 0x963   : > { %v6166_v42 = vmul.f32 %v6150_v35, %v5750_v13 }
 0x965   : > { %8406 = vmatprep.mubr.msk.f32.mxu1 %vm6176_vm14, %v6166_v42 }
 0x966   : > { %8407 = vmatmul.mubr.msk.f32.gmra.mxu1 %vm6176_vm14, %v6167_v18 }
 0x9db   : > { %v8387_v39 = vpop.f32.mrf.mxu1 }
 0x9dc   : > { %v6297_v40 = vadd.f32 %v8387_v39, %v12747_v47 }
 0x9dd   : > { %v6291_v17 = vpop.f32.mrf.mxu1 }
 0x9de   : > { %v12750_v20 = vmul.f32 0.70710677, %v6297_v40  ;;  %v6292_v62 = vadd.f32 %v12747_v47, %v6291_v17  ;;  %v12809_v38 = vmul.f32 0.5, %v6297_v40 }
 0x9e0   : > { %v6403_v46 = vand.u32 2147483647, %v12750_v20  ;;  %v12755_v3 = vmul.f32 0.70710677, %v6292_v62  ;;  %v8390_v26 = vpop.f32.mrf.mxu1  ;;  %v12814_v57 = vmul.f32 0.5, %v6292_v62  ;;  %vm6723_vm12 = vcmp.ge.f32.partialorder %v12750_v20, 0.0 }
 0x9e1   : > { %v6307_v12 = vadd.f32 %v8390_v26, %v12747_v47 }
 0x9e2   : > { %v6419_v61 = vmul.f32 0.3275911, %v6403_v46  ;;  %v6402_v24 = vand.u32 2147483647, %v12755_v3  ;;  %v6301_v5 = vpop.f32.mrf.mxu1  ;;  %v6627_v19 = vsub.f32 0.0, %v6403_v46  ;;  %vm6722_vm13 = vcmp.ge.f32.partialorder %v12755_v3, 0.0 }
 0x9e3   : > { %v12759_v55 = vmul.f32 0.70710677, %v6307_v12  ;;  %v6302_v48 = vadd.f32 %v12747_v47, %v6301_v5  ;;  %v12816_v63 = vmul.f32 0.5, %v6307_v12 }
 0x9e4   : > { %v6435_v36 = vadd.f32 1.0, %v6419_v61  ;;  %v6418_v21 = vmul.f32 0.3275911, %v6402_v24  ;;  %v6643_v41 = vmul.f32 %v6627_v19, %v6403_v46  ;;  %v6626_v8 = vsub.f32 0.0, %v6402_v24 }
 0x9e5   : > { %v6405_v34 = vand.u32 2147483647, %v12759_v55  ;;  %v12763_v27 = vmul.f32 0.70710677, %v6302_v48  ;;  %v12828_v61 = vmul.f32 0.5, %v6302_v48  ;;  %vm6725_vm14 = vcmp.ge.f32.partialorder %v12759_v55, 0.0 }
 0x9e6   : > { %8781 = vrcp.f32 %v6435_v36  ;;  %v6434_v54 = vadd.f32 1.0, %v6418_v21  ;;  %v6660_v1 = vmul.f32 1.442695, %v6643_v41  ;;  %v6642_v14 = vmul.f32 %v6626_v8, %v6402_v24 }
 0x9e7   : > { %v6421_v31 = vmul.f32 0.3275911, %v6405_v34  ;;  %v6404_v29 = vand.u32 2147483647, %v12763_v27  ;;  %v8393_v9 = vpop.f32.mrf.mxu1  ;;  %v6629_v51 = vsub.f32 0.0, %v6405_v34  ;;  %vm6724_vm15 = vcmp.ge.f32.partialorder %v12763_v27, 0.0 }
 0x9e8   : > { %v6317_v30 = vadd.f32 %v8393_v9, %v12747_v47  ;;  %8783 = vrcp.f32 %v6434_v54  ;;  %v6658_v39 = vmul.f32 1.442695, %v6642_v14 }
 0x9e9   : > { %v6437_v43 = vadd.f32 1.0, %v6421_v31  ;;  %v6420_v10 = vmul.f32 0.3275911, %v6404_v29  ;;  %v6311_v49 = vpop.f32.mrf.mxu1  ;;  %v6645_v6 = vmul.f32 %v6629_v51, %v6405_v34  ;;  %v6628_v32 = vsub.f32 0.0, %v6404_v29 }
 0x9ea   : > { %v12772_v25 = vmul.f32 0.70710677, %v6317_v30  ;;  %v12775_v4 = vadd.f32 %v12747_v47, %v6311_v49  ;;  %v12836_v9 = vmul.f32 0.5, %v6317_v30 }
 0x9eb   : > { %8785 = vrcp.f32 %v6437_v43  ;;  %v6436_v2 = vadd.f32 1.0, %v6420_v10  ;;  %v6664_v46 = vmul.f32 1.442695, %v6645_v6  ;;  %v6644_v26 = vmul.f32 %v6628_v32, %v6404_v29 }
 0x9ec   : > { %v6407_v45 = vand.u32 2147483647, %v12772_v25  ;;  %v12791_v22 = vmul.f32 0.70710677, %v12775_v4  ;;  %vm6727_vm0 = vcmp.ge.f32.partialorder %v12772_v25, 0.0 }
 0x9ed   : > { %8787 = vrcp.f32 %v6436_v2  ;;  %v6662_v10 = vmul.f32 1.442695, %v6644_v26 }
 0x9ee   : > { %v6423_v56 = vmul.f32 0.3275911, %v6407_v45  ;;  %v6406_v11 = vand.u32 2147483647, %v12791_v22  ;;  %v6631_v0 = vsub.f32 0.0, %v6407_v45  ;;  %vm6726_vm1 = vcmp.ge.f32.partialorder %v12791_v22, 0.0 }
 0x9ef   : > { %v8396_v58 = vpop.f32.mrf.mxu1 }
 0x9f0   : > { %v6439_v37 = vadd.f32 1.0, %v6423_v56  ;;  %v12807_v23 = vadd.f32 %v8396_v58, %v12747_v47  ;;  %v6422_v13 = vmul.f32 0.3275911, %v6406_v11  ;;  %v6630_v24 = vsub.f32 0.0, %v6406_v11 }
 0x9f1   : > { %v6321_v35 = vpop.f32.mrf.mxu1  ;;  %v6647_v34 = vmul.f32 %v6631_v0, %v6407_v45 }
 0x9f2   : > { %8789 = vrcp.f32 %v6439_v37  ;;  %v12819_v42 = vmul.f32 0.70710677, %v12807_v23  ;;  %v6438_v17 = vadd.f32 1.0, %v6422_v13  ;;  %v12824_v40 = vadd.f32 %v12747_v47, %v6321_v35 }
 0x9f3   : > { %v12821_v18 = vpop.eup %8781  ;;  %8791 = vpow2.f32 %v6660_v1  ;;  %v6646_v2 = vmul.f32 %v6630_v24, %v6406_v11  ;;  %v6668_v56 = vmul.f32 1.442695, %v6647_v34  ;;  %v12852_v11 = vmul.f32 0.5, %v12775_v4 }
 0x9f4   : > { %v6483_v62 = vmul.f32 1.0614054, %v12821_v18  ;;  %v6409_v12 = vand.u32 2147483647, %v12819_v42  ;;  %8793 = vrcp.f32 %v6438_v17  ;;  %v12831_v5 = vmul.f32 0.70710677, %v12824_v40 }
 0x9f5   : > { %v12833_v36 = vpop.eup %8783  ;;  %8795 = vpow2.f32 %v6658_v39  ;;  %vm6729_vm2 = vcmp.ge.f32.partialorder %v12819_v42, 0.0 }
 0x9f6   : > { %v6499_v21 = vadd.f32 -1.4531521, %v6483_v62  ;;  %v6425_v19 = vmul.f32 0.3275911, %v6409_v12  ;;  %v6633_v54 = vsub.f32 0.0, %v6409_v12  ;;  %8797 = vpow2.f32 %v6664_v46 }
 0x9f7   : > { %v6482_v31 = vmul.f32 1.0614054, %v12833_v36  ;;  %v6408_v29 = vand.u32 2147483647, %v12831_v5  ;;  %v6666_v62 = vmul.f32 1.442695, %v6646_v2 }
 0x9f8   : > { %v12839_v48 = vpop.eup %8785  ;;  %v6515_v43 = vmul.f32 %v12821_v18, %v6499_v21  ;;  %v6441_v49 = vadd.f32 1.0, %v6425_v19  ;;  %v6649_v1 = vmul.f32 %v6633_v54, %v6409_v12  ;;  %vm6728_vm3 = vcmp.ge.f32.partialorder %v12831_v5, 0.0 }
 0x9f9   : > { %v6498_v41 = vadd.f32 -1.4531521, %v6482_v31  ;;  %v6485_v8 = vmul.f32 1.0614054, %v12839_v48  ;;  %v6424_v51 = vmul.f32 0.3275911, %v6408_v29 }
 0x9fa   : > { %v6531_v45 = vadd.f32 1.4214138, %v6515_v43  ;;  %8799 = vrcp.f32 %v6441_v49  ;;  %v8399_v30 = vpop.f32.mrf.mxu1  ;;  %v12843_v14 = vpop.eup %8787  ;;  %v6632_v0 = vsub.f32 0.0, %v6408_v29  ;;  %v6672_v12 = vmul.f32 1.442695, %v6649_v1 }
 0x9fb   : > { %v6514_v58 = vmul.f32 %v12833_v36, %v6498_v41  ;;  %v6501_v6 = vadd.f32 -1.4531521, %v6485_v8  ;;  %v6440_v32 = vadd.f32 1.0, %v6424_v51  ;;  %v12847_v37 = vadd.f32 %v8399_v30, %v12747_v47 }
 0x9fc   : > { %v6547_v13 = vmul.f32 %v12821_v18, %v6531_v45  ;;  %v6484_v35 = vmul.f32 1.0614054, %v12843_v14  ;;  %v6648_v49 = vmul.f32 %v6632_v0, %v6408_v29 }
 0x9fd   : > { %v6530_v39 = vadd.f32 1.4214138, %v6514_v58  ;;  %v6517_v17 = vmul.f32 %v12839_v48, %v6501_v6  ;;  %8801 = vrcp.f32 %v6440_v32  ;;  %v12859_v19 = vmul.f32 0.70710677, %v12847_v37  ;;  %v6331_v6 = vpop.f32.mrf.mxu1 }
 0x9fe   : > { %v6563_v46 = vadd.f32 -0.28449672, %v6547_v13  ;;  %v6500_v26 = vadd.f32 -1.4531521, %v6484_v35  ;;  %8803 = vpow2.f32 %v6662_v10 }
 0x9ff   : > { %v12855_v24 = vpop.eup %8789  ;;  %v6546_v21 = vmul.f32 %v12833_v36, %v6530_v39  ;;  %v6533_v34 = vadd.f32 1.4214138, %v6517_v17  ;;  %8805 = vpow2.f32 %v6668_v56  ;;  %v12866_v8 = vand.u32 2147483647, %v12859_v19 }
 0xa00   : > { %v8792_v4 = vpop.eup %8791  ;;  %v6579_v54 = vmul.f32 %v12821_v18, %v6563_v46  ;;  %v6516_v31 = vmul.f32 %v12843_v14, %v6500_v26  ;;  %v6487_v43 = vmul.f32 1.0614054, %v12855_v24  ;;  %8807 = vpow2.f32 %v6666_v62 }
 0xa01   : > { %v6562_v41 = vadd.f32 -0.28449672, %v6546_v21  ;;  %v6549_v10 = vmul.f32 %v12839_v48, %v6533_v34  ;;  %v12868_v2 = vpop.eup %8793  ;;  %8809 = vpow2.f32 %v6672_v12  ;;  %v6427_v58 = vmul.f32 0.3275911, %v12866_v8 }
 0xa02   : > { %v6595_v51 = vadd.f32 0.2548296, %v6579_v54  ;;  %v6532_v45 = vadd.f32 1.4214138, %v6516_v31  ;;  %v6503_v56 = vadd.f32 -1.4531521, %v6487_v43  ;;  %v8796_v32 = vpop.eup %8795  ;;  %v12880_v31 = vadd.f32 %v12747_v47, %v6331_v6 }
 0xa03   : > { %v6578_v1 = vmul.f32 %v12833_v36, %v6562_v41  ;;  %v6565_v30 = vadd.f32 -0.28449672, %v6549_v10  ;;  %v6486_v29 = vmul.f32 1.0614054, %v12868_v2  ;;  %v6670_v39 = vmul.f32 1.442695, %v6648_v49  ;;  %v8798_v17 = vpop.eup %8797 }
 0xa04   : > { %v6611_v13 = vmul.f32 %v12821_v18, %v6595_v51  ;;  %v6548_v35 = vmul.f32 %v12843_v14, %v6532_v45  ;;  %v6519_v0 = vmul.f32 %v12855_v24, %v6503_v56  ;;  %v6443_v12 = vadd.f32 1.0, %v6427_v58 }
 0xa05   : > { %v6594_v62 = vadd.f32 0.2548296, %v6578_v1  ;;  %v6581_v46 = vmul.f32 %v12839_v48, %v6565_v30  ;;  %v6502_v26 = vadd.f32 -1.4531521, %v6486_v29  ;;  %vm6731_vm4 = vcmp.ge.f32.partialorder %v12859_v19, 0.0 }
 0xa06   : > { %v6691_v21 = vmul.f32 %v8792_v4, %v6611_v13  ;;  %v6564_v34 = vadd.f32 -0.28449672, %v6548_v35  ;;  %v6535_v54 = vadd.f32 1.4214138, %v6519_v0  ;;  %8811 = vrcp.f32 %v6443_v12 }
 0xa07   : > { %v12882_v18 = vpop.eup %8799  ;;  %v6610_v43 = vmul.f32 %v12833_v36, %v6594_v62  ;;  %v6597_v41 = vadd.f32 0.2548296, %v6581_v46  ;;  %v6518_v49 = vmul.f32 %v12868_v2, %v6502_v26  ;;  %8813 = vpow2.f32 %v6670_v39 }
 0xa08   : > { %v6707_v10 = vsub.f32 1.0, %v6691_v21  ;;  %v6580_v4 = vmul.f32 %v12843_v14, %v6564_v34  ;;  %v6551_v51 = vmul.f32 %v12855_v24, %v6535_v54  ;;  %v6489_v45 = vmul.f32 1.0614054, %v12882_v18 }
 0xa09   : > { %v6690_v56 = vmul.f32 %v8796_v32, %v6610_v43  ;;  %v6613_v1 = vmul.f32 %v12839_v48, %v6597_v41  ;;  %v6534_v30 = vadd.f32 1.4214138, %v6518_v49  ;;  %v6635_v13 = vsub.f32 0.0, %v12866_v8 }
 0xa0a   : > { %v12891_v29 = vpop.eup %8801  ;;  %v6739_v36 = vsub.f32 0.0, %v6707_v10  ;;  %v6596_v58 = vadd.f32 0.2548296, %v6580_v4  ;;  %v6567_v6 = vadd.f32 -0.28449672, %v6551_v51 }
 0xa0b   : > { %v8804_v35 = vpop.eup %8803  ;;  %v6706_v0 = vsub.f32 1.0, %v6690_v56  ;;  %v6693_v62 = vmul.f32 %v8798_v17, %v6613_v1  ;;  %v6550_v46 = vmul.f32 %v12868_v2, %v6534_v30  ;;  %v6505_v26 = vadd.f32 -1.4531521, %v6489_v45 }
 0xa0c   : > { %v8806_v32 = vpop.eup %8805  ;;  %v6755_v48 = vsel %vm6723_vm12, %v6707_v10, %v6739_v36  ;;  %v6612_v39 = vmul.f32 %v12843_v14, %v6596_v58  ;;  %v6583_v12 = vmul.f32 %v12855_v24, %v6567_v6  ;;  %v6488_v21 = vmul.f32 1.0614054, %v12891_v29 }
 0xa0d   : > { %v6771_v34 = vadd.f32 1.0, %v6755_v48  ;;  %v6738_v54 = vsub.f32 0.0, %v6706_v0  ;;  %v6709_v43 = vsub.f32 1.0, %v6693_v62  ;;  %v6566_v41 = vadd.f32 -0.28449672, %v6550_v46  ;;  %v8808_v17 = vpop.eup %8807 }
 0xa0e   : > { %v6692_v49 = vmul.f32 %v8804_v35, %v6612_v39  ;;  %v6599_v4 = vadd.f32 0.2548296, %v6583_v12  ;;  %v6521_v51 = vmul.f32 %v12882_v18, %v6505_v26  ;;  %v6504_v45 = vadd.f32 -1.4531521, %v6488_v21  ;;  %v12902_v56 = vpop.eup %8809 }
 0xa0f   : > { %v6787_v20 = vmul.f32 %v6771_v34, %v12809_v38  ;;  %v6754_v14 = vsel %vm6722_vm13, %v6706_v0, %v6738_v54  ;;  %v6741_v10 = vsub.f32 0.0, %v6709_v43  ;;  %v6582_v1 = vmul.f32 %v12868_v2, %v6566_v41 }
 0xa10   : > { %v6770_v30 = vadd.f32 1.0, %v6754_v14  ;;  %v6708_v36 = vsub.f32 1.0, %v6692_v49  ;;  %v6615_v58 = vmul.f32 %v12855_v24, %v6599_v4  ;;  %v6537_v6 = vadd.f32 1.4214138, %v6521_v51 }
 0xa11   : > { %v6806_v35 = vmul.f32 %v12812_v33, %v6787_v20  ;;  %v6757_v62 = vsel %vm6725_vm14, %v6709_v43, %v6741_v10  ;;  %v6598_v46 = vadd.f32 0.2548296, %v6582_v1  ;;  %v6520_v38 = vmul.f32 %v12891_v29, %v6504_v45 }
 0xa12   : > { %v6786_v3 = vmul.f32 %v6770_v30, %v12814_v57  ;;  %v6773_v0 = vadd.f32 1.0, %v6757_v62  ;;  %v6740_v26 = vsub.f32 0.0, %v6708_v36  ;;  %v6695_v48 = vmul.f32 %v8806_v32, %v6615_v58 }
 0xa13   : > { %v12917_v39 = vadd.f32 %v12803_v53, %v6806_v35  ;;  %v6614_v24 = vmul.f32 %v12868_v2, %v6598_v46  ;;  %v6553_v12 = vmul.f32 %v12882_v18, %v6537_v6  ;;  %v6536_v21 = vadd.f32 1.4214138, %v6520_v38  ;;  %v12921_v55 = vpop.eup %8811 }
 0xa14   : > { %v6805_v34 = vmul.f32 %v12812_v33, %v6786_v3  ;;  %v6789_v54 = vmul.f32 %v6773_v0, %v12816_v63  ;;  %v6756_v57 = vsel %vm6724_vm15, %v6708_v36, %v6740_v26  ;;  %v6711_v32 = vsub.f32 1.0, %v6695_v48  ;;  %v8814_v4 = vpop.eup %8813 }
 0xa15   : > { %v6772_v43 = vadd.f32 1.0, %v6756_v57  ;;  %v6694_v41 = vmul.f32 %v8808_v17, %v6614_v24  ;;  %v6569_v49 = vadd.f32 -0.28449672, %v6553_v12  ;;  %v6651_v53 = vmul.f32 %v6635_v13, %v12866_v8 }
 0xa16   : > { %v12929_v2 = vadd.f32 %v12780_v16, %v6805_v34  ;;  %v6808_v51 = vmul.f32 %v12812_v33, %v6789_v54  ;;  %v6743_v45 = vsub.f32 0.0, %v6711_v32  ;;  %v6552_v20 = vmul.f32 %v12891_v29, %v6536_v21 }
 0xa17   : > { %v6788_v63 = vmul.f32 %v6772_v43, %v12828_v61  ;;  %v6710_v14 = vsub.f32 1.0, %v6694_v41  ;;  %v6585_v27 = vmul.f32 %v12882_v18, %v6569_v49  ;;  %v6491_v10 = vmul.f32 1.0614054, %v12921_v55 }
 0xa18   : > { %v6880_v17 = vmul.f32 %v12917_v39, %v12917_v39  ;;  %v6858_v8 = vadd.f32 %v12917_v39, %v12929_v2  ;;  %v6879_v16 = vmul.f32 %v12929_v2, %v12929_v2  ;;  %v6759_v13 = vsel %vm6727_vm0, %v6711_v32, %v6743_v45  ;;  %v8402_v41 = vpop.f32.mrf.mxu1 }
 0xa19   : > { %v6807_v1 = vmul.f32 %v12812_v33, %v6788_v63  ;;  %v6775_v61 = vadd.f32 1.0, %v6759_v13  ;;  %v6742_v30 = vsub.f32 0.0, %v6710_v14  ;;  %v6601_v36 = vadd.f32 0.2548296, %v6585_v27 }
 0xa1a   : > { %v6895_v58 = vadd.f32 %v6880_v17, %v6879_v16  ;;  %v12946_v6 = vadd.f32 %v12788_v50, %v6808_v51  ;;  %v6568_v35 = vadd.f32 -0.28449672, %v6552_v20  ;;  %v6507_v62 = vadd.f32 -1.4531521, %v6491_v10 }
 0xa1b   : > { %v12950_v46 = vadd.f32 %v12784_v28, %v6807_v1  ;;  %v6791_v38 = vmul.f32 %v6775_v61, %v12836_v9  ;;  %v6758_v25 = vsel %vm6726_vm1, %v6710_v14, %v6742_v30  ;;  %v6617_v3 = vmul.f32 %v12882_v18, %v6601_v36 }
 0xa1c   : > { %v6774_v0 = vadd.f32 1.0, %v6758_v25  ;;  %v6584_v26 = vmul.f32 %v12891_v29, %v6568_v35  ;;  %v6523_v50 = vmul.f32 %v12921_v55, %v6507_v62  ;;  %v6676_v48 = vmul.f32 1.442695, %v6651_v53 }
 0xa1d   : > { %v6859_v24 = vadd.f32 %v6858_v8, %v12950_v46  ;;  %v6881_v12 = vmul.f32 %v12950_v46, %v12950_v46  ;;  %v6810_v28 = vmul.f32 %v12812_v33, %v6791_v38  ;;  %v6697_v9 = vmul.f32 %v12902_v56, %v6617_v3  ;;  %v6341_v8 = vpop.f32.mrf.mxu1 }
 0xa1e   : > { %v6790_v22 = vmul.f32 %v6774_v0, %v12852_v11  ;;  %v6600_v21 = vadd.f32 0.2548296, %v6584_v26  ;;  %v6539_v34 = vadd.f32 1.4214138, %v6523_v50  ;;  %v12965_v18 = vmul.f32 0.70710677, %v12880_v31 }
 0xa1f   : > { %v6882_v54 = vmul.f32 %v12946_v6, %v12946_v6  ;;  %v6896_v57 = vadd.f32 %v6895_v58, %v6881_v12  ;;  %v6860_v32 = vadd.f32 %v6859_v24, %v12946_v6  ;;  %v6713_v43 = vsub.f32 1.0, %v6697_v9 }
 0xa20   : > { %v6809_v49 = vmul.f32 %v12812_v33, %v6790_v22  ;;  %v6616_v53 = vmul.f32 %v12891_v29, %v6600_v21  ;;  %v6555_v56 = vmul.f32 %v12921_v55, %v6539_v34  ;;  %v6410_v11 = vand.u32 2147483647, %v12965_v18 }
 0xa21   : > { %v12975_v51 = vadd.f32 %v12799_v60, %v6810_v28  ;;  %v6897_v45 = vadd.f32 %v6896_v57, %v6882_v54  ;;  %v6745_v20 = vsub.f32 0.0, %v6713_v43  ;;  %8815 = vpow2.f32 %v6676_v48  ;;  %v8405_v25 = vpop.f32.mrf.mxu1 }
 0xa22   : > { %v12978_v63 = vadd.f32 %v12795_v59, %v6809_v49  ;;  %v6696_v14 = vmul.f32 %v8814_v4, %v6616_v53  ;;  %v6571_v27 = vadd.f32 -0.28449672, %v6555_v56  ;;  %v6426_v10 = vmul.f32 0.3275911, %v6410_v11 }
 0xa23   : > { %v6761_v17 = vsel %vm6729_vm2, %v6713_v43, %v6745_v20  ;;  %v12983_v29 = vadd.f32 %v8402_v41, %v12747_v47  ;;  %v6884_v59 = vmul.f32 %v12975_v51, %v12975_v51  ;;  %v6377_v4 = vmul.f32 0.5, %v12807_v23  ;;  %v6351_v34 = vpop.f32.mrf.mxu1 }
 0xa24   : > { %v6861_v16 = vadd.f32 %v6860_v32, %v12978_v63  ;;  %v6883_v60 = vmul.f32 %v12978_v63, %v12978_v63  ;;  %v6777_v13 = vadd.f32 1.0, %v6761_v17  ;;  %v6712_v1 = vsub.f32 1.0, %v6696_v14 }
 0xa25   : > { %v6587_v61 = vmul.f32 %v12921_v55, %v6571_v27  ;;  %v6442_v42 = vadd.f32 1.0, %v6426_v10  ;;  %v12994_v35 = vadd.f32 %v12747_v47, %v6341_v8  ;;  %v12998_v38 = vmul.f32 0.70710677, %v12983_v29 }
 0xa26   : > { %v6898_v30 = vadd.f32 %v6897_v45, %v6883_v60  ;;  %v6744_v36 = vsub.f32 0.0, %v6712_v1  ;;  %v6862_v58 = vadd.f32 %v6861_v16, %v12975_v51  ;;  %v6793_v62 = vmul.f32 %v6777_v13, %v6377_v4  ;;  %v8408_v14 = vpop.f32.mrf.mxu1 }
 0xa27   : > { %8817 = vrcp.f32 %v6442_v42  ;;  %v6603_v0 = vadd.f32 0.2548296, %v6587_v61  ;;  %v6376_v26 = vmul.f32 0.5, %v12824_v40  ;;  %v6413_v48 = vand.u32 2147483647, %v12998_v38 }
 0xa28   : > { %v6760_v3 = vsel %vm6728_vm3, %v6712_v1, %v6744_v36  ;;  %v6899_v23 = vadd.f32 %v6898_v30, %v6884_v59  ;;  %v13003_v24 = vmul.f32 0.70710677, %v12994_v35  ;;  %v13006_v12 = vadd.f32 %v8405_v25, %v12747_v47  ;;  %v6361_v30 = vpop.f32.mrf.mxu1 }
 0xa29   : > { %v6776_v50 = vadd.f32 1.0, %v6760_v3  ;;  %v6812_v5 = vmul.f32 %v12812_v33, %v6793_v62  ;;  %v6429_v9 = vmul.f32 0.3275911, %v6413_v48  ;;  %v6830_v22 = vmul.f32 %v12770_v15, %v12379_v52 }
 0xa2a   : > { %v6619_v21 = vmul.f32 %v12921_v55, %v6603_v0  ;;  %v6412_v40 = vand.u32 2147483647, %v13003_v24  ;;  %v6831_v54 = vmul.f32 %v12770_v15, %v12390_v44  ;;  %v6634_v32 = vsub.f32 0.0, %v6410_v11 }
 0xa2b   : > { %v6792_v28 = vmul.f32 %v6776_v50, %v6376_v26  ;;  %v6445_v43 = vadd.f32 1.0, %v6429_v9  ;;  %v13017_v53 = vmul.f32 0.70710677, %v13006_v12  ;;  %v13025_v44 = vadd.f32 %v12747_v47, %v6351_v34 }
 0xa2c   : > { %v6428_v49 = vmul.f32 0.3275911, %v6412_v40  ;;  %v13019_v56 = vadd.f32 %v6831_v54, %v6812_v5  ;;  %v6650_v17 = vmul.f32 %v6634_v32, %v6410_v11  ;;  %v6637_v8 = vsub.f32 0.0, %v6413_v48 }
 0xa2d   : > { %v6811_v57 = vmul.f32 %v12812_v33, %v6792_v28  ;;  %8819 = vrcp.f32 %v6445_v43  ;;  %v6415_v20 = vand.u32 2147483647, %v13017_v53  ;;  %v13036_v42 = vmul.f32 0.70710677, %v13025_v44 }
 0xa2e   : > { %v8816_v41 = vpop.eup %8815  ;;  %v6444_v45 = vadd.f32 1.0, %v6428_v49  ;;  %v6886_v60 = vmul.f32 %v13019_v56, %v13019_v56  ;;  %v13041_v62 = vadd.f32 %v8408_v14, %v12747_v47  ;;  %v6653_v25 = vmul.f32 %v6637_v8, %v6413_v48 }
 0xa2f   : > { %v13021_v52 = vadd.f32 %v6830_v22, %v6811_v57  ;;  %v6699_v55 = vmul.f32 %v8816_v41, %v6619_v21  ;;  %v6431_v16 = vmul.f32 0.3275911, %v6415_v20  ;;  %v6414_v3 = vand.u32 2147483647, %v13036_v42 }
 0xa30   : > { %8821 = vrcp.f32 %v6444_v45  ;;  %v6636_v0 = vsub.f32 0.0, %v6412_v40  ;;  %v13045_v26 = vadd.f32 %v12747_v47, %v6361_v30  ;;  %v13048_v28 = vmul.f32 0.70710677, %v13041_v62 }
 0xa31   : > { %v6863_v27 = vadd.f32 %v6862_v58, %v13021_v52  ;;  %v6885_v10 = vmul.f32 %v13021_v52, %v13021_v52  ;;  %v6715_v4 = vsub.f32 1.0, %v6699_v55  ;;  %v6447_v61 = vadd.f32 1.0, %v6431_v16 }
 0xa32   : > { %v6674_v58 = vmul.f32 1.442695, %v6650_v17  ;;  %v6430_v5 = vmul.f32 0.3275911, %v6414_v3  ;;  %v13051_v22 = vmul.f32 0.70710677, %v13045_v26  ;;  %v6652_v57 = vmul.f32 %v6636_v0, %v6412_v40 }
 0xa33   : > { %v6900_v13 = vadd.f32 %v6899_v23, %v6885_v10  ;;  %v13033_v1 = vadd.f32 %v6863_v27, %v13019_v56  ;;  %8823 = vrcp.f32 %v6447_v61  ;;  %v6747_v50 = vsub.f32 0.0, %v6715_v4 }
 0xa34   : > { %v8818_v59 = vpop.eup %8817  ;;  %8825 = vpow2.f32 %v6674_v58  ;;  %v6680_v21 = vmul.f32 1.442695, %v6653_v25  ;;  %v6446_v48 = vadd.f32 1.0, %v6430_v5  ;;  %v6417_v34 = vand.u32 2147483647, %v13048_v28 }
 0xa35   : > { %v6490_v36 = vmul.f32 1.0614054, %v8818_v59  ;;  %v13038_v11 = vadd.f32 %v6900_v13, %v6886_v60  ;;  %v13056_v47 = vand.u32 2147483647, %v13051_v22  ;;  %v6763_v43 = vsel %vm6731_vm4, %v6715_v4, %v6747_v50 }
 0xa36   : > { %v6639_v41 = vsub.f32 0.0, %v6415_v20  ;;  %8827 = vrcp.f32 %v6446_v48  ;;  %v6433_v49 = vmul.f32 0.3275911, %v6417_v34  ;;  %v6379_v27 = vmul.f32 0.5, %v12847_v37 }
 0xa37   : > { %v6506_v23 = vadd.f32 -1.4531521, %v6490_v36  ;;  %v6432_v14 = vmul.f32 0.3275911, %v13056_v47  ;;  %8829 = vpow2.f32 %v6680_v21  ;;  %v6779_v40 = vadd.f32 1.0, %v6763_v43 }
 0xa38   : > { %v6449_v19 = vadd.f32 1.0, %v6433_v49  ;;  %v6678_v13 = vmul.f32 1.442695, %v6652_v57  ;;  %v6655_v4 = vmul.f32 %v6639_v41, %v6415_v20  ;;  %v6638_v36 = vsub.f32 0.0, %v6414_v3 }
 0xa39   : > { %v6522_v9 = vmul.f32 %v8818_v59, %v6506_v23  ;;  %v6448_v16 = vadd.f32 1.0, %v6432_v14  ;;  %v13071_v25 = vmul.f32 %v12770_v15, %v12395_v7  ;;  %v6795_v23 = vmul.f32 %v6779_v40, %v6379_v27 }
 0xa3a   : > { %v13058_v32 = vpop.eup %8819  ;;  %8831 = vrcp.f32 %v6449_v19  ;;  %v6641_v57 = vsub.f32 0.0, %v6417_v34  ;;  %v6378_v41 = vmul.f32 0.5, %v12880_v31  ;;  %vm6730_vm5 = vcmp.ge.f32.partialorder %v12965_v18, 0.0 }
 0xa3b   : > { %v6538_v54 = vadd.f32 1.4214138, %v6522_v9  ;;  %v6493_v45 = vmul.f32 1.0614054, %v13058_v32  ;;  %8833 = vrcp.f32 %v6448_v16  ;;  %v6684_v9 = vmul.f32 1.442695, %v6655_v4 }
 0xa3c   : > { %8835 = vpow2.f32 %v6678_v13  ;;  %v6640_v27 = vsub.f32 0.0, %v13056_v47  ;;  %v6657_v16 = vmul.f32 %v6641_v57, %v6417_v34  ;;  %vm6733_vm6 = vcmp.ge.f32.partialorder %v12998_v38, 0.0 }
 0xa3d   : > { %v6554_v55 = vmul.f32 %v8818_v59, %v6538_v54  ;;  %v13063_v10 = vpop.eup %8821  ;;  %v6509_v8 = vadd.f32 -1.4531521, %v6493_v45  ;;  %v6654_v54 = vmul.f32 %v6638_v36, %v6414_v3  ;;  %v13079_v45 = vmul.f32 0.5, %v12983_v29 }
 0xa3e   : > { %v6492_v60 = vmul.f32 1.0614054, %v13063_v10  ;;  %8837 = vpow2.f32 %v6684_v9  ;;  %vm6732_vm7 = vcmp.ge.f32.partialorder %v13003_v24, 0.0  ;;  %v13632_v24 = vld [vmem:[#allocation77_spill] sm:$0xff]  ;;  %vm6735_vm8 = vcmp.ge.f32.partialorder %v13017_v53, 0.0 }
 0xa3f   : > { %v6570_v17 = vadd.f32 -0.28449672, %v6554_v55  ;;  %v6525_v30 = vmul.f32 %v13058_v32, %v6509_v8  ;;  %v6682_v8 = vmul.f32 1.442695, %v6654_v54  ;;  %v6383_v53 = vmul.f32 0.5, %v13006_v12 }
 0xa40   : > { %v6508_v58 = vadd.f32 -1.4531521, %v6492_v60  ;;  %v13067_v37 = vpop.eup %8823  ;;  %v13631_v60 = vld [vmem:[#allocation74_spill] sm:$0xff]  ;;  %vm6734_vm10 = vcmp.ge.f32.partialorder %v13036_v42, 0.0  ;;  %vm6737_vm11 = vcmp.ge.f32.partialorder %v13048_v28, 0.0  ;;  %vm6736_vm9 = vcmp.ge.f32.partialorder %v13051_v22, 0.0 }
 0xa41   : > { %v6586_v61 = vmul.f32 %v8818_v59, %v6570_v17  ;;  %v6541_v50 = vadd.f32 1.4214138, %v6525_v30  ;;  %v6495_v20 = vmul.f32 1.0614054, %v13067_v37  ;;  %v8826_v43 = vpop.eup %8825  ;;  %v6833_v29 = vmul.f32 %v12770_v15, %v13631_v60 }
 0xa42   : > { %v6524_v5 = vmul.f32 %v13063_v10, %v6508_v58  ;;  %8839 = vpow2.f32 %v6682_v8 }
 0xa43   : > { %v6602_v0 = vadd.f32 0.2548296, %v6586_v61  ;;  %v6557_v48 = vmul.f32 %v13058_v32, %v6541_v50  ;;  %v6511_v49 = vadd.f32 -1.4531521, %v6495_v20  ;;  %v13085_v40 = vpop.eup %8827 }
 0xa44   : > { %v6540_v7 = vadd.f32 1.4214138, %v6524_v5  ;;  %v6494_v61 = vmul.f32 1.0614054, %v13085_v40  ;;  %v8830_v30 = vpop.eup %8829 }
 0xa45   : > { %v6618_v21 = vmul.f32 %v8818_v59, %v6602_v0  ;;  %v6573_v14 = vadd.f32 -0.28449672, %v6557_v48  ;;  %v6814_v59 = vmul.f32 %v12812_v33, %v6795_v23  ;;  %v6527_v3 = vmul.f32 %v13067_v37, %v6511_v49 }
 0xa46   : > { %v6556_v19 = vmul.f32 %v13063_v10, %v6540_v7  ;;  %v13092_v23 = vmul.f32 0.5, %v12994_v35  ;;  %v6656_v0 = vmul.f32 %v6640_v27, %v13056_v47  ;;  %v6510_v20 = vadd.f32 -1.4531521, %v6494_v61 }
 0xa47   : > { %v6698_v55 = vmul.f32 %v8826_v43, %v6618_v21  ;;  %v6589_v17 = vmul.f32 %v13058_v32, %v6573_v14  ;;  %v6543_v4 = vadd.f32 1.4214138, %v6527_v3  ;;  %v13095_v50 = vadd.f32 %v6833_v29, %v6814_v59  ;;  %v13100_v9 = vpop.eup %8831 }
 0xa48   : > { %v6572_v13 = vadd.f32 -0.28449672, %v6556_v19  ;;  %v6688_v35 = vmul.f32 1.442695, %v6657_v16  ;;  %v13105_v54 = vpop.eup %8833  ;;  %v6526_v7 = vmul.f32 %v13085_v40, %v6510_v20  ;;  %v6686_v18 = vmul.f32 1.442695, %v6656_v0 }
 0xa49   : > { %v6714_v31 = vsub.f32 1.0, %v6698_v55  ;;  %v6605_v58 = vadd.f32 0.2548296, %v6589_v17  ;;  %v6559_v5 = vmul.f32 %v13067_v37, %v6543_v4  ;;  %v6497_v55 = vmul.f32 1.0614054, %v13100_v9  ;;  %v8836_v3 = vpop.eup %8835 }
 0xa4a   : > { %v6588_v34 = vmul.f32 %v13063_v10, %v6572_v13  ;;  %v6496_v14 = vmul.f32 1.0614054, %v13105_v54  ;;  %v6542_v19 = vadd.f32 1.4214138, %v6526_v7  ;;  %8841 = vpow2.f32 %v6688_v35 }
 0xa4b   : > { %v6746_v36 = vsub.f32 0.0, %v6714_v31  ;;  %v6621_v48 = vmul.f32 %v13058_v32, %v6605_v58  ;;  %v6575_v43 = vadd.f32 -0.28449672, %v6559_v5  ;;  %v6513_v17 = vadd.f32 -1.4531521, %v6497_v55  ;;  %v8838_v0 = vpop.eup %8837 }
 0xa4c   : > { %v6604_v57 = vadd.f32 0.2548296, %v6588_v34  ;;  %v6512_v8 = vadd.f32 -1.4531521, %v6496_v14  ;;  %v6558_v13 = vmul.f32 %v13085_v40, %v6542_v19  ;;  %8843 = vpow2.f32 %v6686_v18 }
 0xa4d   : > { %v6762_v21 = vsel %vm6730_vm5, %v6714_v31, %v6746_v36  ;;  %v6701_v49 = vmul.f32 %v8830_v30, %v6621_v48  ;;  %v6591_v59 = vmul.f32 %v13067_v37, %v6575_v43  ;;  %v6529_v61 = vmul.f32 %v13100_v9, %v6513_v17 }
 0xa4e   : > { %v6778_v47 = vadd.f32 1.0, %v6762_v21  ;;  %v6620_v32 = vmul.f32 %v13063_v10, %v6604_v57  ;;  %v6574_v58 = vadd.f32 -0.28449672, %v6558_v13  ;;  %v6888_v34 = vmul.f32 %v13095_v50, %v13095_v50 }
 0xa4f   : > { %v6717_v31 = vsub.f32 1.0, %v6701_v49  ;;  %v6607_v29 = vadd.f32 0.2548296, %v6591_v59  ;;  %v6545_v20 = vadd.f32 1.4214138, %v6529_v61  ;;  %v8840_v59 = vpop.eup %8839 }
 0xa50   : > { %v6794_v27 = vmul.f32 %v6778_v47, %v6378_v41  ;;  %v6700_v60 = vmul.f32 %v8836_v3, %v6620_v32  ;;  %v6528_v41 = vmul.f32 %v13105_v54, %v6512_v8 }
 0xa51   : > { %v6749_v4 = vsub.f32 0.0, %v6717_v31  ;;  %v6623_v36 = vmul.f32 %v13067_v37, %v6607_v29  ;;  %v6590_v37 = vmul.f32 %v13085_v40, %v6574_v58  ;;  %v6561_v43 = vmul.f32 %v13100_v9, %v6545_v20 }
 0xa52   : > { %v6813_v16 = vmul.f32 %v12812_v33, %v6794_v27  ;;  %v6716_v30 = vsub.f32 1.0, %v6700_v60  ;;  %v6544_v21 = vadd.f32 1.4214138, %v6528_v41  ;;  %v13633_v60 = vld [vmem:[#allocation76_spill] sm:$0xff] }
 0xa53   : > { %v6765_v5 = vsel %vm6733_vm6, %v6717_v31, %v6749_v4  ;;  %v6703_v57 = vmul.f32 %v8838_v0, %v6623_v36  ;;  %v6606_v27 = vadd.f32 0.2548296, %v6590_v37  ;;  %v6577_v32 = vadd.f32 -0.28449672, %v6561_v43 }
 0xa54   : > { %v13118_v10 = vadd.f32 %v13071_v25, %v6813_v16  ;;  %v6781_v35 = vadd.f32 1.0, %v6765_v5  ;;  %v6748_v47 = vsub.f32 0.0, %v6716_v30  ;;  %v6560_v7 = vmul.f32 %v13105_v54, %v6544_v21 }
 0xa55   : > { %v6719_v18 = vsub.f32 1.0, %v6703_v57  ;;  %v6834_v16 = vmul.f32 %v12770_v15, %v13632_v24  ;;  %v6835_v29 = vmul.f32 %v12770_v15, %v13633_v60 }
 0xa56   : > { %v6865_v48 = vadd.f32 %v13033_v1, %v13118_v10  ;;  %v6887_v25 = vmul.f32 %v13118_v10, %v13118_v10  ;;  %v6797_v49 = vmul.f32 %v6781_v35, %v13079_v45  ;;  %v6764_v55 = vsel %vm6732_vm7, %v6716_v30, %v6748_v47 }
 0xa57   : > { %v6780_v14 = vadd.f32 1.0, %v6764_v55  ;;  %v6576_v31 = vadd.f32 -0.28449672, %v6560_v7  ;;  %v6751_v8 = vsub.f32 0.0, %v6719_v18  ;;  %v6593_v45 = vmul.f32 %v13100_v9, %v6577_v32  ;;  %v8842_v30 = vpop.eup %8841 }
 0xa58   : > { %v6902_v38 = vadd.f32 %v13038_v11, %v6887_v25  ;;  %v6866_v1 = vadd.f32 %v6865_v48, %v13095_v50  ;;  %v6816_v19 = vmul.f32 %v12812_v33, %v6797_v49  ;;  %v6622_v11 = vmul.f32 %v13085_v40, %v6606_v27 }
 0xa59   : > { %v6796_v17 = vmul.f32 %v6780_v14, %v13092_v23  ;;  %v6592_v13 = vmul.f32 %v13105_v54, %v6576_v31  ;;  %v6767_v61 = vsel %vm6735_vm8, %v6719_v18, %v6751_v8  ;;  %v6609_v23 = vadd.f32 0.2548296, %v6593_v45  ;;  %v8844_v20 = vpop.eup %8843 }
 0xa5a   : > { %v6903_v3 = vadd.f32 %v6902_v38, %v6888_v34  ;;  %v6702_v41 = vmul.f32 %v8840_v59, %v6622_v11  ;;  %v13148_v36 = vadd.f32 %v6835_v29, %v6816_v19  ;;  %v6783_v40 = vadd.f32 1.0, %v6767_v61  ;;  %v13634_v59 = vld [vmem:[#allocation51_spill] sm:$0xff]  ;;  %v13635_v19 = vld [vmem:[#allocation49_spill] sm:$0xff] }
 0xa5b   : > { %v6815_v4 = vmul.f32 %v12812_v33, %v6796_v17  ;;  %v6608_v58 = vadd.f32 0.2548296, %v6592_v13  ;;  %v6625_v5 = vmul.f32 %v13100_v9, %v6609_v23  ;;  %v6836_v42 = vmul.f32 %v12770_v15, %v13634_v59  ;;  %v13636_v61 = vld [vmem:[#allocation81_spill] sm:$0xff] }
 0xa5c   : > { %v6718_v34 = vsub.f32 1.0, %v6702_v41  ;;  %v6890_v57 = vmul.f32 %v13148_v36, %v13148_v36  ;;  %v6799_v37 = vmul.f32 %v6783_v40, %v6383_v53  ;;  %v6385_v17 = vmul.f32 0.5, %v13041_v62  ;;  %v13637_v41 = vld [vmem:[#allocation48_spill] sm:$0xff] }
 0xa5d   : > { %v13150_v0 = vadd.f32 %v6834_v16, %v6815_v4  ;;  %v6624_v21 = vmul.f32 %v13105_v54, %v6608_v58  ;;  %v6705_v47 = vmul.f32 %v8842_v30, %v6625_v5  ;;  %v6382_v54 = vmul.f32 0.5, %v13025_v44 }
 0xa5e   : > { %v6750_v35 = vsub.f32 0.0, %v6718_v34  ;;  %v6818_v18 = vmul.f32 %v12812_v33, %v6799_v37  ;;  %v6384_v45 = vmul.f32 0.5, %v13045_v26  ;;  %v6838_v62 = vmul.f32 %v12770_v15, %v13636_v61 }
 0xa5f   : > { %v6867_v48 = vadd.f32 %v6866_v1, %v13150_v0  ;;  %v6889_v25 = vmul.f32 %v13150_v0, %v13150_v0  ;;  %v6704_v43 = vmul.f32 %v8844_v20, %v6624_v21  ;;  %v6721_v38 = vsub.f32 1.0, %v6705_v47 }
 0xa60   : > { %v6766_v7 = vsel %vm6734_vm10, %v6718_v34, %v6750_v35  ;;  %v6839_v26 = vmul.f32 %v12770_v15, %v13637_v41 }
 0xa61   : > { %v6904_v9 = vadd.f32 %v6903_v3, %v6889_v25  ;;  %v6868_v12 = vadd.f32 %v6867_v48, %v13148_v36  ;;  %v6782_v49 = vadd.f32 1.0, %v6766_v7  ;;  %v6720_v55 = vsub.f32 1.0, %v6704_v43 }
 0xa62   : > { %v6753_v14 = vsub.f32 0.0, %v6721_v38  ;;  %v6837_v3 = vmul.f32 %v12770_v15, %v13635_v19 }
 0xa63   : > { %v6905_v1 = vadd.f32 %v6904_v9, %v6890_v57  ;;  %v6798_v27 = vmul.f32 %v6782_v49, %v6382_v54  ;;  %v6752_v32 = vsub.f32 0.0, %v6720_v55 }
 0xa64   : > { %v6769_v31 = vsel %vm6737_vm11, %v6721_v38, %v6753_v14  ;;  %v13173_v28 = vadd.f32 %v6837_v3, %v6818_v18 }
 0xa65   : > { %v6817_v44 = vmul.f32 %v12812_v33, %v6798_v27  ;;  %v6785_v8 = vadd.f32 1.0, %v6769_v31  ;;  %v6768_v11 = vsel %vm6736_vm9, %v6720_v55, %v6752_v32 }
 0xa66   : > { %v6784_v24 = vadd.f32 1.0, %v6768_v11  ;;  %v6892_v30 = vmul.f32 %v13173_v28, %v13173_v28 }
 0xa67   : > { %v13175_v16 = vadd.f32 %v6836_v42, %v6817_v44  ;;  %v6801_v60 = vmul.f32 %v6785_v8, %v6385_v17 }
 0xa68   : > { %v6800_v29 = vmul.f32 %v6784_v24, %v6384_v45 }
 0xa69   : > { %v6869_v13 = vadd.f32 %v6868_v12, %v13175_v16  ;;  %v6891_v22 = vmul.f32 %v13175_v16, %v13175_v16  ;;  %v6820_v4 = vmul.f32 %v12812_v33, %v6801_v60 }
 0xa6a   : > { %v6819_v23 = vmul.f32 %v12812_v33, %v6800_v29 }
 0xa6b   : > { %v6906_v40 = vadd.f32 %v6905_v1, %v6891_v22  ;;  %v6870_v58 = vadd.f32 %v6869_v13, %v13173_v28  ;;  %v6855_v34 = vadd.f32 %v6839_v26, %v6820_v4 }
 0xa6c   : > { %v6854_v5 = vadd.f32 %v6838_v62, %v6819_v23 }
 0xa6d   : > { %v6907_v20 = vadd.f32 %v6906_v40, %v6892_v30  ;;  %v6894_v48 = vmul.f32 %v6855_v34, %v6855_v34 }
 0xa6e   : > { %v6871_v53 = vadd.f32 %v6870_v58, %v6854_v5  ;;  %v6893_v21 = vmul.f32 %v6854_v5, %v6854_v5 }
 0xa70   : > { %v6872_v25 = vadd.f32 %v6871_v53, %v6855_v34  ;;  %v6908_v35 = vadd.f32 %v6907_v20, %v6893_v21 }
 0xa72   : > { %v6873_v47 = vrot.slane %v6872_v25, 4  ;;  %v6909_v57 = vadd.f32 %v6908_v35, %v6894_v48 }
 0xa74   : > { %v6874_v37 = vadd.f32 %v6873_v47, %v6872_v25  ;;  %v6910_v15 = vrot.slane %v6909_v57, 4 }
 0xa76   : > { %v6875_v43 = vrot.slane %v6874_v37, 2  ;;  %v6911_v33 = vadd.f32 %v6910_v15, %v6909_v57 }
 0xa78   : > { %v6876_v9 = vadd.f32 %v6875_v43, %v6874_v37  ;;  %v6912_v7 = vrot.slane %v6911_v33, 2 }
 0xa7a   : > { %v6877_v12 = vrot.slane %v6876_v9, 1  ;;  %v6913_v38 = vadd.f32 %v6912_v7, %v6911_v33 }
 0xa7c   : > { %v6878_v54 = vadd.f32 %v6877_v12, %v6876_v9  ;;  %v6914_v49 = vrot.slane %v6913_v38, 1 }
 0xa7e   : > { %v6915_v55 = vadd.f32 %v6914_v49, %v6913_v38  ;;  %v6916_v1 = vmul.f32 0.0078125, %v6878_v54 }
 0xa80   : > { %v6917_v14 = vmul.f32 0.0078125, %v6915_v55  ;;  %v6918_v18 = vmul.f32 %v6916_v1, %v6916_v1  ;;  %v6920_v27 = vsub.f32 %v12929_v2, %v6916_v1  ;;  %v6921_v32 = vsub.f32 %v12917_v39, %v6916_v1 }
 0xa81   : > { %v6922_v59 = vsub.f32 %v12950_v46, %v6916_v1  ;;  %v6923_v42 = vsub.f32 %v12946_v6, %v6916_v1  ;;  %v6924_v19 = vsub.f32 %v12978_v63, %v6916_v1  ;;  %v6925_v3 = vsub.f32 %v12975_v51, %v6916_v1 }
 0xa82   : > { %v6919_v31 = vsub.f32 %v6917_v14, %v6918_v18  ;;  %v6926_v44 = vsub.f32 %v13021_v52, %v6916_v1  ;;  %v6927_v17 = vsub.f32 %v13019_v56, %v6916_v1  ;;  %v6928_v8 = vsub.f32 %v13118_v10, %v6916_v1 }
 0xa83   : > { %v6929_v2 = vsub.f32 %v13095_v50, %v6916_v1  ;;  %v6930_v39 = vsub.f32 %v13150_v0, %v6916_v1  ;;  %v6931_v46 = vsub.f32 %v13148_v36, %v6916_v1  ;;  %v6932_v6 = vsub.f32 %v13175_v16, %v6916_v1  ;;  %v7291_v50 = vld [vmem:[%s13638_s28] ss:$0 sm:$0xff] }
 0xa84   : > { %v6933_v63 = vsub.f32 %v13173_v28, %v6916_v1  ;;  %v6934_v11 = vsub.f32 %v6854_v5, %v6916_v1  ;;  %v6935_v51 = vsub.f32 %v6855_v34, %v6916_v1  ;;  %v6936_v45 = vadd.f32 1e-05, %v6919_v31  ;;  %v7292_v34 = vld [vmem:[%s13639_s20] ss:$0 sm:$0xff] }
 0xa86   : > { %8845 = vrsqrt.f32 %v6936_v45 }
 0xa93   : > { %v8846_v52 = vpop.eup %8845 }
 0xa94   : > { %v6938_v24 = vmul.f32 %v8846_v52, %v6920_v27  ;;  %v6939_v56 = vmul.f32 %v8846_v52, %v6921_v32  ;;  %v6940_v60 = vmul.f32 %v8846_v52, %v6922_v59  ;;  %v6941_v29 = vmul.f32 %v8846_v52, %v6923_v42 }
 0xa95   : > { %v6942_v10 = vmul.f32 %v8846_v52, %v6924_v19  ;;  %v6943_v36 = vmul.f32 %v8846_v52, %v6925_v3  ;;  %v6944_v0 = vmul.f32 %v8846_v52, %v6926_v44  ;;  %v6945_v16 = vmul.f32 %v8846_v52, %v6927_v17 }
 0xa96   : > { %v6946_v28 = vmul.f32 %v8846_v52, %v6928_v8  ;;  %v6947_v13 = vmul.f32 %v8846_v52, %v6929_v2  ;;  %v6948_v22 = vmul.f32 %v8846_v52, %v6930_v39  ;;  %v6949_v4 = vmul.f32 %v8846_v52, %v6931_v46 }
 0xa97   : > { %v6950_v61 = vmul.f32 %v8846_v52, %v6932_v6  ;;  %v6951_v62 = vmul.f32 %v8846_v52, %v6933_v63  ;;  %v6952_v41 = vmul.f32 %v8846_v52, %v6934_v11  ;;  %v6953_v26 = vmul.f32 %v8846_v52, %v6935_v51 }
 0xa98   : > { %v6960_v23 = vmul.f32 %v7291_v50, %v6938_v24  ;;  %v6961_v30 = vmul.f32 %v7291_v50, %v6939_v56  ;;  %v6962_v40 = vmul.f32 %v7291_v50, %v6940_v60  ;;  %v6963_v58 = vmul.f32 %v7291_v50, %v6941_v29 }
 0xa99   : > { %v6964_v5 = vmul.f32 %v7291_v50, %v6942_v10  ;;  %v6965_v20 = vmul.f32 %v7291_v50, %v6943_v36  ;;  %v6966_v53 = vmul.f32 %v7291_v50, %v6944_v0  ;;  %v6967_v21 = vmul.f32 %v7291_v50, %v6945_v16 }
 0xa9a   : > { %v6968_v48 = vmul.f32 %v7291_v50, %v6946_v28  ;;  %v6969_v25 = vmul.f32 %v7291_v50, %v6947_v13  ;;  %v6970_v35 = vmul.f32 %v7291_v50, %v6948_v22  ;;  %v6971_v47 = vmul.f32 %v7291_v50, %v6949_v4 }
 0xa9b   : > { %v6972_v57 = vmul.f32 %v7291_v50, %v6950_v61  ;;  %v6973_v37 = vmul.f32 %v7291_v50, %v6951_v62  ;;  %v6974_v15 = vmul.f32 %v7291_v50, %v6952_v41  ;;  %v6975_v43 = vmul.f32 %v7291_v50, %v6953_v26 }
 0xa9c   : > { %v6982_v33 = vadd.f32 %v7292_v34, %v6960_v23  ;;  %v6983_v9 = vadd.f32 %v7292_v34, %v6961_v30  ;;  %v6984_v7 = vadd.f32 %v7292_v34, %v6962_v40  ;;  %v6985_v12 = vadd.f32 %v7292_v34, %v6963_v58 }
 0xa9d   : > { %v6986_v38 = vadd.f32 %v7292_v34, %v6964_v5  ;;  %v6987_v54 = vadd.f32 %v7292_v34, %v6965_v20  ;;  %v6988_v49 = vadd.f32 %v7292_v34, %v6966_v53  ;;  %v6989_v55 = vadd.f32 %v7292_v34, %v6967_v21 }
 0xa9e   : > { %v6990_v1 = vadd.f32 %v7292_v34, %v6968_v48  ;;  %v6991_v14 = vadd.f32 %v7292_v34, %v6969_v25  ;;  %v6992_v18 = vadd.f32 %v7292_v34, %v6970_v35  ;;  %v6993_v27 = vadd.f32 %v7292_v34, %v6971_v47  ;;  %6998 = vst [vmem:[#allocation2 + $0x30] sm:$0xff] %v6982_v33 }
 0xa9f   : > { %6999 = vst [vmem:[#allocation2] sm:$0xff] %v6983_v9  ;;  %7000 = vst [vmem:[#allocation2 + $0x58] sm:$0xff] %v6984_v7  ;;  %v6994_v32 = vadd.f32 %v7292_v34, %v6972_v57  ;;  %v6995_v59 = vadd.f32 %v7292_v34, %v6973_v37  ;;  %v6996_v42 = vadd.f32 %v7292_v34, %v6974_v15 }
 0xaa0   : > { %7001 = vst [vmem:[#allocation2 + $0x18] sm:$0xff] %v6985_v12  ;;  %7014 = vst [vmem:[%s13640_s25] sm:$0xff] %v6982_v33  ;;  %v6997_v19 = vadd.f32 %v7292_v34, %v6975_v43 }
 0xaa1   : > { %7015 = vst [vmem:[%s13640_s25 + $0x8] sm:$0xff] %v6983_v9  ;;  %7016 = vst [vmem:[%s13640_s25 + $0x10] sm:$0xff] %v6984_v7 }
 0xaa2   : > { %7017 = vst [vmem:[%s13640_s25 + $0x18] sm:$0xff] %v6985_v12  ;;  %7002 = vst [vmem:[#allocation2 + $0x50] sm:$0xff] %v6986_v38 }
 0xaa3   : > { %7003 = vst [vmem:[#allocation2 + $0x68] sm:$0xff] %v6987_v54  ;;  %7004 = vst [vmem:[#allocation2 + $0x8] sm:$0xff] %v6988_v49 }
 0xaa4   : > { %7005 = vst [vmem:[#allocation2 + $0x48] sm:$0xff] %v6989_v55  ;;  %7018 = vst [vmem:[%s13640_s25 + $0x20] sm:$0xff] %v6986_v38 }
 0xaa5   : > { %7019 = vst [vmem:[%s13640_s25 + $0x28] sm:$0xff] %v6987_v54  ;;  %7020 = vst [vmem:[%s13640_s25 + $0x30] sm:$0xff] %v6988_v49 }
 0xaa6   : > { %7021 = vst [vmem:[%s13640_s25 + $0x38] sm:$0xff] %v6989_v55  ;;  %7006 = vst [vmem:[#allocation2 + $0x40] sm:$0xff] %v6990_v1 }
 0xaa7   : > { %7007 = vst [vmem:[#allocation2 + $0x20] sm:$0xff] %v6991_v14  ;;  %7008 = vst [vmem:[#allocation2 + $0x10] sm:$0xff] %v6992_v18 }
 0xaa8   : > { %7009 = vst [vmem:[#allocation2 + $0x38] sm:$0xff] %v6993_v27  ;;  %7022 = vst [vmem:[%s13640_s25 + $0x40] sm:$0xff] %v6990_v1 }
 0xaa9   : > { %7023 = vst [vmem:[%s13640_s25 + $0x48] sm:$0xff] %v6991_v14  ;;  %7024 = vst [vmem:[%s13640_s25 + $0x50] sm:$0xff] %v6992_v18 }
 0xaaa   : > { %7025 = vst [vmem:[%s13640_s25 + $0x58] sm:$0xff] %v6993_v27  ;;  %7010 = vst [vmem:[#allocation2 + $0x60] sm:$0xff] %v6994_v32 }
 0xaab   : > { %7011 = vst [vmem:[#allocation2 + $0x70] sm:$0xff] %v6995_v59  ;;  %7012 = vst [vmem:[#allocation2 + $0x78] sm:$0xff] %v6996_v42 }
 0xaac   : > { %7013 = vst [vmem:[#allocation2 + $0x28] sm:$0xff] %v6997_v19  ;;  %7026 = vst [vmem:[%s13640_s25 + $0x60] sm:$0xff] %v6994_v32 }
 0xaad   : > { %7027 = vst [vmem:[%s13640_s25 + $0x68] sm:$0xff] %v6995_v59  ;;  %7028 = vst [vmem:[%s13640_s25 + $0x70] sm:$0xff] %v6996_v42 }
 0xaae   : > { %7029 = vst [vmem:[%s13640_s25 + $0x78] sm:$0xff] %v6997_v19 }
 0xaaf PF: > { %s13641_s22 = sld [smem:[#allocation6_spill]] }
 0xab5   : > { %s29_s27 = sadd.s32 1, %s13641_s22  }
 0xab6   : > { %p26_p2 = scmp.ge.s32.totalorder %s29_s27, 4  }
 0xab8   :  { %28 = sbr.rel (!%p26_p2) target bundleno = 11 (0xb), region = 159 }
 0xabd   :  { %7041 = vsyncpa [#allocation4], 1 }
 0xabe   :  { %7043 = vsyncpa [#allocation4 + $0x1], 1 }

</bundles_post_ra>
